<compile_context>
chip_gen: v7x
topology: tpu7x:2x2x1
jax: 0.10.0
libtpu: 0.0.40
codegen_flags: <defaults>
</compile_context>

<pallas_src>
import functools

import jax
import jax.numpy as jnp
from jax import lax
from jax.experimental import pallas as pl
from jax.experimental.pallas import tpu as pltpu


NB = 8  # images per grid step (batch tile); batch is zero-padded to a multiple of NB


# ---------------------------------------------------------------------------
# Pallas kernels
# ---------------------------------------------------------------------------

def _conv1_pool_kernel(p_ref, w_ref, shift_ref, o_ref):
    """conv1 (block-diag im2col matmul) + BN shift + ReLU + 2x2 max-pool.

    p_ref:     (4, Mt, 64)   patches; axis 0 = pool-window position, lanes pack 4
                             consecutive spatial rows (q*16 + tap).
    w_ref:     (64, 128)     block-diag conv1 weight (BN scale folded).
    shift_ref: (1, 128)      per-channel shift, tiled over the 4 packed positions.
    o_ref:     (Mt, 128)     relu(max_g(patches[g] @ w) + shift), lane-dense bf16.
    """
    # 4 independent dots (no serial MXU->VPU->MXU chain), then a tree max.
    z0 = jnp.dot(p_ref[0], w_ref[...], preferred_element_type=jnp.float32)
    z1 = jnp.dot(p_ref[1], w_ref[...], preferred_element_type=jnp.float32)
    z2 = jnp.dot(p_ref[2], w_ref[...], preferred_element_type=jnp.float32)
    z3 = jnp.dot(p_ref[3], w_ref[...], preferred_element_type=jnp.float32)
    m = jnp.maximum(jnp.maximum(z0, z1), jnp.maximum(z2, z3))
    o_ref[...] = jnp.maximum(m + shift_ref[...], 0.0).astype(o_ref.dtype)


def _conv2_pool_fc_kernel(p_ref, w2_ref, shift2_ref, wq_ref, b1_ref,
                          wfc2_ref, b2_ref, wfc3_ref, b3_ref, o_ref, fc1in_ref,
                          *, nb, n_sites):
    """conv2 + BN + ReLU + 2x2 max-pool, then fc1 -> (dropout=id) -> fc2 -> fc3.

    p_ref:     (4, n_sites*nb, 288)  conv2 patches, rows ordered (site, image)
    w2_ref:    (288, 64)    conv2 weight (BN scale folded)
    wq_ref:    (2304, 600)  fc1 weight, rows permuted so row = site*64 + channel
    fc1in_ref: (nb, 2304)   f32 VMEM scratch: lane-packed fc1 input
    o_ref:     (nb, 128)    logits, lane-padded to 128 (cols 10.. are zero)
    """
    z0 = jnp.dot(p_ref[0], w2_ref[...], preferred_element_type=jnp.float32)
    z1 = jnp.dot(p_ref[1], w2_ref[...], preferred_element_type=jnp.float32)
    z2 = jnp.dot(p_ref[2], w2_ref[...], preferred_element_type=jnp.float32)
    z3 = jnp.dot(p_ref[3], w2_ref[...], preferred_element_type=jnp.float32)
    pooled = jnp.maximum(
        jnp.maximum(jnp.maximum(z0, z1), jnp.maximum(z2, z3)) + shift2_ref[...], 0.0)
    # pooled: (n_sites*nb, 64) f32, rows ordered (site, image-within-tile).

    # Pack into (nb, 2304) with 36 aligned (nb, 64) block copies (rows are 8-aligned,
    # lane offsets static) so fc1 is a single matmul instead of 36 serialized ones.
    c = w2_ref.shape[1]
    for s in range(n_sites):
        fc1in_ref[:, s * c:(s + 1) * c] = pooled[s * nb:(s + 1) * nb, :]

    h1 = jnp.dot(fc1in_ref[...].astype(wq_ref.dtype), wq_ref[...],
                 preferred_element_type=jnp.float32) + b1_ref[...]      # (nb, 600)
    # TODO(synk): Dropout2d(0.25) is identity in eval mode; training-mode channel
    # dropout is not implemented.  (The reference Net has no ReLU between fc layers.)
    h2 = jnp.dot(h1.astype(wfc2_ref.dtype), wfc2_ref[...],
                 preferred_element_type=jnp.float32) + b2_ref[...]      # (nb, 120)
    h3 = jnp.dot(h2.astype(wfc3_ref.dtype), wfc3_ref[...],
                 preferred_element_type=jnp.float32) + b3_ref[...]      # (nb, 128)
    o_ref[...] = h3.astype(o_ref.dtype)


# ---------------------------------------------------------------------------
# pallas_call wrappers
# ---------------------------------------------------------------------------

def conv1_bn_relu_pool(p1, w1blk, shift1t, *, nb):
    """p1:(4, N*49, 64) bf16 -> pooled1 packed (N*49, 128) bf16 (lane-dense)."""
    G, R, K = p1.shape
    n_img = R // 49
    T = n_img // nb
    Mt = nb * 49
    C = w1blk.shape[1]
    cost = pl.CostEstimate(
        flops=2 * G * R * K * C, transcendentals=0,
        bytes_accessed=(p1.size * p1.dtype.itemsize + w1blk.size * 2
                        + shift1t.size * 4 + R * C * 2))
    return pl.pallas_call(
        _conv1_pool_kernel,
        out_shape=jax.ShapeDtypeStruct((R, C), jnp.bfloat16),
        grid=(T,),
        in_specs=[
            pl.BlockSpec((G, Mt, K), lambda i: (0, i, 0)),
            pl.BlockSpec((K, C), lambda i: (0, 0)),
            pl.BlockSpec((1, C), lambda i: (0, 0)),
        ],
        out_specs=pl.BlockSpec((Mt, C), lambda i: (i, 0)),
        compiler_params=pltpu.CompilerParams(dimension_semantics=("parallel",)),
        cost_estimate=cost,
    )(p1, w1blk, shift1t)


def conv2_pool_fc_head(p2, w2, shift2, wq, b1, wfc2, b2, wfc3, b3, *, nb):
    """Fused conv2+pool2+fc1+fc2+fc3. Returns (N, 128) f32 (cols 10.. are 0)."""
    G, R2, K2 = p2.shape
    n_img = R2 // 36
    T = n_img // nb
    Mt = 36 * nb
    C2 = w2.shape[1]
    E1, E2, E3 = wq.shape[1], wfc2.shape[1], wfc3.shape[1]

    flops = 2 * (G * R2 * K2 * C2
                 + n_img * (wq.shape[0] * E1 + E1 * E2 + E2 * E3))
    bytes_acc = (p2.size * p2.dtype.itemsize
                 + 2 * (w2.size + wq.size + wfc2.size + wfc3.size)
                 + 4 * (shift2.size + b1.size + b2.size + b3.size)
                 + n_img * E3 * 4)
    kernel = functools.partial(_conv2_pool_fc_kernel, nb=nb, n_sites=36)
    return pl.pallas_call(
        kernel,
        out_shape=jax.ShapeDtypeStruct((n_img, E3), jnp.float32),
        grid=(T,),
        in_specs=[
            pl.BlockSpec((G, Mt, K2), lambda i: (0, i, 0)),
            pl.BlockSpec((K2, C2), lambda i: (0, 0)),
            pl.BlockSpec((1, C2), lambda i: (0, 0)),
            pl.BlockSpec(wq.shape, lambda i: (0, 0)),
            pl.BlockSpec((1, E1), lambda i: (0, 0)),
            pl.BlockSpec((E1, E2), lambda i: (0, 0)),
            pl.BlockSpec((1, E2), lambda i: (0, 0)),
            pl.BlockSpec((E2, E3), lambda i: (0, 0)),
            pl.BlockSpec((1, E3), lambda i: (0, 0)),
        ],
        out_specs=pl.BlockSpec((nb, E3), lambda i: (i, 0)),
        scratch_shapes=[pltpu.VMEM((nb, 36 * C2), jnp.float32)],
        compiler_params=pltpu.CompilerParams(dimension_semantics=("parallel",)),
        cost_estimate=pl.CostEstimate(flops=flops, transcendentals=0,
                                      bytes_accessed=bytes_acc),
    )(p2, w2, shift2, wq, b1, wfc2, b2, wfc3, b3)


# ---------------------------------------------------------------------------
# Plain-JAX layout glue (pure data movement on tiny activations; fuses in XLA)
# ---------------------------------------------------------------------------

def _conv1_patches(x_nhw):
    """(N,28,28) -> (4, N*49, 64): 3x3/pad=1 im2col, grouped by pool window, with 4
    consecutive spatial rows packed into lanes (lane = q*16 + tap)."""
    N = x_nhw.shape[0]
    xp = jnp.pad(x_nhw, ((0, 0), (1, 1), (1, 1)))
    sl = [xp[:, ki:ki + 28, kj:kj + 28] for ki in range(3) for kj in range(3)]
    pa = jnp.stack(sl, axis=-1)                      # (N,28,28,9) = x[y+ki, x+kj]
    pa = jnp.pad(pa, ((0, 0), (0, 0), (0, 0), (0, 7)))   # taps 9 -> 16
    pa = pa.reshape(N, 14, 2, 14, 2, 16)             # (n, yo, dy, xo, dx, t)
    pa = pa.transpose(2, 4, 0, 1, 3, 5)              # (dy, dx, n, yo, xo, t)
    pa = pa.reshape(4, N * 196, 16)                  # rows (n, yo, xo)
    pa = pa.reshape(4, N * 49, 64)                   # lanes q*16 + t
    return pa.astype(jnp.bfloat16)


def _conv2_patches(pooled1_packed, nb):
    """(N*49, 128) packed pooled1 -> (4, 36*N, 288) conv2 patches.

    Row order within dim 1: (batch-tile, site s=yo2*6+xo2, image-within-tile), so a
    block of 36*nb rows is exactly one batch tile with contiguous per-site slices.
    """
    N = pooled1_packed.shape[0] // 49
    T = N // nb
    pooled1 = pooled1_packed.reshape(N, 49, 4, 32).reshape(N, 14, 14, 32)
    sl = [pooled1[:, ki:ki + 12, kj:kj + 12, :]
          for ki in range(3) for kj in range(3)]
    pa = jnp.stack(sl, axis=3)                       # (N,12,12,9,32)
    pa = pa.reshape(N, 12, 12, 288)                  # k = tap*32 + cin
    pa = pa.reshape(T, nb, 6, 2, 6, 2, 288)          # (t, n, yo2, dy, xo2, dx, k)
    pa = pa.transpose(3, 5, 0, 2, 4, 1, 6)           # (dy, dx, t, yo2, xo2, n, k)
    return pa.reshape(4, T * 36 * nb, 288)


def _prep_params(p, dtype=jnp.bfloat16, eps=1e-5):
    """Fold BN into conv weights, block-diag/permute/pad FC weights, cast to bf16."""
    inv1 = p["bn1_gamma"] / jnp.sqrt(p["bn1_var"] + eps)
    w1 = p["conv1_w"].transpose(2, 3, 1, 0).reshape(9, 32) * inv1[None, :]
    w1 = jnp.pad(w1, ((0, 7), (0, 0)))                                  # (16, 32)
    w1blk = jnp.kron(jnp.eye(4, dtype=w1.dtype), w1).astype(dtype)      # (64, 128)
    shift1 = p["bn1_beta"] + (p["conv1_b"] - p["bn1_mean"]) * inv1
    shift1t = jnp.tile(shift1, 4).reshape(1, 128).astype(jnp.float32)

    inv2 = p["bn2_gamma"] / jnp.sqrt(p["bn2_var"] + eps)
    w2 = (p["conv2_w"].transpose(2, 3, 1, 0).reshape(288, 64)
          * inv2[None, :]).astype(dtype)                                # (288, 64)
    shift2 = (p["bn2_beta"] + (p["conv2_b"] - p["bn2_mean"]) * inv2
              ).reshape(1, 64).astype(jnp.float32)

    # fc1: PyTorch flatten index k = c*36 + s  ->  wq row f = s*64 + c.
    wq = (p["fc1_w"].reshape(64, 36, 600).transpose(1, 0, 2)
          .reshape(2304, 600)).astype(dtype)                            # (2304, 600)
    b1 = p["fc1_b"].reshape(1, 600).astype(jnp.float32)
    wfc2 = p["fc2_w"].astype(dtype)                                     # (600, 120)
    b2 = p["fc2_b"].reshape(1, 120).astype(jnp.float32)
    wfc3 = jnp.pad(p["fc3_w"], ((0, 0), (0, 118))).astype(dtype)        # (120, 128)
    b3 = jnp.pad(p["fc3_b"], (0, 118)).reshape(1, 128).astype(jnp.float32)
    return w1blk, shift1t, w2, shift2, wq, b1, wfc2, b2, wfc3, b3


# ---------------------------------------------------------------------------
# Parameters (deterministic init, shapes from Net.__init__)
# ---------------------------------------------------------------------------

def init_params(key):
    ks = jax.random.split(key, 16)
    p = {}
    p["conv1_w"] = jax.random.normal(ks[0], (32, 1, 3, 3), jnp.float32) * 0.1
    p["conv1_b"] = jax.random.normal(ks[1], (32,), jnp.float32) * 0.1
    p["bn1_gamma"] = 1.0 + 0.1 * jax.random.normal(ks[2], (32,), jnp.float32)
    p["bn1_beta"] = 0.1 * jax.random.normal(ks[3], (32,), jnp.float32)
    p["bn1_mean"] = 0.1 * jax.random.normal(ks[4], (32,), jnp.float32)
    p["bn1_var"] = 1.0 + 0.1 * jnp.abs(jax.random.normal(ks[5], (32,), jnp.float32))

    p["conv2_w"] = jax.random.normal(ks[6], (64, 32, 3, 3), jnp.float32) * 0.05
    p["conv2_b"] = jax.random.normal(ks[7], (64,), jnp.float32) * 0.05
    p["bn2_gamma"] = 1.0 + 0.1 * jax.random.normal(ks[8], (64,), jnp.float32)
    p["bn2_beta"] = 0.1 * jax.random.normal(ks[9], (64,), jnp.float32)
    p["bn2_mean"] = 0.1 * jax.random.normal(ks[10], (64,), jnp.float32)
    p["bn2_var"] = 1.0 + 0.1 * jnp.abs(jax.random.normal(ks[11], (64,), jnp.float32))

    p["fc1_w"] = jax.random.normal(ks[12], (64 * 6 * 6, 600), jnp.float32) * 0.02
    p["fc1_b"] = jnp.zeros((600,), jnp.float32)
    p["fc2_w"] = jax.random.normal(ks[13], (600, 120), jnp.float32) * 0.05
    p["fc2_b"] = jnp.zeros((120,), jnp.float32)
    p["fc3_w"] = jax.random.normal(ks[14], (120, 10), jnp.float32) * 0.1
    p["fc3_b"] = jnp.zeros((10,), jnp.float32)
    return p


# ---------------------------------------------------------------------------
# Forward pass (matches PyTorch Net.forward, inference mode)
# ---------------------------------------------------------------------------

def net_forward(params, x_nchw):
    n0 = x_nchw.shape[0]
    n_pad = ((n0 + NB - 1) // NB) * NB
    x = x_nchw.astype(jnp.float32).reshape(n0, 28, 28)
    if n_pad != n0:
        x = jnp.pad(x, ((0, n_pad - n0), (0, 0), (0, 0)))

    (w1blk, shift1t, w2, shift2, wq, b1, wfc2, b2, wfc3, b3) = _prep_params(params)

    # layer1: Conv2d(1->32,3x3,pad=1)+BN+ReLU+MaxPool(2)   (kernel 1, batch-tiled grid)
    p1 = _conv1_patches(x)                                        # (4, n*49, 64) bf16
    pooled1 = conv1_bn_relu_pool(p1, w1blk, shift1t, nb=NB)       # (n*49, 128) bf16

    # layer2 + fc stack                                     (kernel 2, batch-tiled grid)
    p2 = _conv2_patches(pooled1, NB)                              # (4, 36*n, 288) bf16
    logits_pad = conv2_pool_fc_head(p2, w2, shift2, wq, b1, wfc2, b2, wfc3, b3,
                                    nb=NB)                        # (n, 128) f32
    return logits_pad[:n0, :10]


# ---------------------------------------------------------------------------
# Pure-JAX reference (f32) for a sanity check of the fused kernels
# ---------------------------------------------------------------------------

def net_forward_ref(p, x_nchw, eps=1e-5):
    x = x_nchw.astype(jnp.float32)
    n = x.shape[0]
    dn = ("NCHW", "OIHW", "NCHW")

    y = lax.conv_general_dilated(x, p["conv1_w"], (1, 1), ((1, 1), (1, 1)),
                                 dimension_numbers=dn)
    y = y + p["conv1_b"][None, :, None, None]
    inv1 = p["bn1_gamma"] / jnp.sqrt(p["bn1_var"] + eps)
    y = (y - p["bn1_mean"][None, :, None, None]) * inv1[None, :, None, None] \
        + p["bn1_beta"][None, :, None, None]
    y = jnp.maximum(y, 0.0)
    y = y.reshape(n, 32, 14, 2, 14, 2).max(axis=(3, 5))

    y = lax.conv_general_dilated(y, p["conv2_w"], (1, 1), "VALID",
                                 dimension_numbers=dn)
    y = y + p["conv2_b"][None, :, None, None]
    inv2 = p["bn2_gamma"] / jnp.sqrt(p["bn2_var"] + eps)
    y = (y - p["bn2_mean"][None, :, None, None]) * inv2[None, :, None, None] \
        + p["bn2_beta"][None, :, None, None]
    y = jnp.maximum(y, 0.0)
    y = y.reshape(n, 64, 6, 2, 6, 2).max(axis=(3, 5))

    h = y.reshape(n, -1)
    h = h @ p["fc1_w"] + p["fc1_b"]
    h = h @ p["fc2_w"] + p["fc2_b"]
    h = h @ p["fc3_w"] + p["fc3_b"]
    return h


if __name__ == "__main__":
    key = jax.random.PRNGKey(0)
    pkey, xkey = jax.random.split(key)
    params = init_params(pkey)
    # Fashion-MNIST sized input (fc1 in_features=64*6*6 forces 1x28x28).
    # Batch 16 = 2 batch tiles, so the parallel grid / pipelining is exercised.
    x = jax.random.normal(xkey, (16, 1, 28, 28), jnp.float32)

    logits = jax.jit(net_forward)(params, x)
    jax.block_until_ready(logits)
    ref = jax.jit(net_forward_ref)(params, x)
    jax.block_until_ready(ref)

    assert logits.shape == (16, 10)
    assert bool(jnp.all(jnp.isfinite(logits)))
    err = float(jnp.max(jnp.abs(logits - ref)))
    assert err < 1e-1, f"mismatch vs f32 reference: {err}"
    print("KERNEL_OK")
</pallas_src>

<mosaic_0001>
module attributes {stable_mosaic.version = 11 : i64} {
  func.func @_conv1_pool_kernel(%arg0: i32, %arg1: memref<4x392x64xbf16, #tpu.memory_space<vmem>>, %arg2: memref<64x128xbf16, #tpu.memory_space<vmem>>, %arg3: memref<1x128xf32, #tpu.memory_space<vmem>>, %arg4: memref<392x128xbf16, #tpu.memory_space<vmem>>) attributes {dimension_semantics = [#tpu.dimension_semantics<parallel>], iteration_bounds = array<i64: 2>, scalar_prefetch = 0 : i64, scratch_operands = 0 : i64, tpu.core_type = #tpu.core_type<tc>, window_params = [{transform_indices = @transform_0, window_bounds = array<i64: 4, 392, 64>}, {pipeline_mode = #tpu.pipeline_mode<synchronous>, transform_indices = @transform_1, window_bounds = array<i64: 64, 128>}, {pipeline_mode = #tpu.pipeline_mode<synchronous>, transform_indices = @transform_2, window_bounds = array<i64: 1, 128>}, {transform_indices = @transform_3, window_bounds = array<i64: 392, 128>}]} {
    %c0 = arith.constant 0 : index
    %c0_0 = arith.constant 0 : index
    %c0_1 = arith.constant 0 : index
    %0 = vector.load %arg1[%c0, %c0_0, %c0_1] : memref<4x392x64xbf16, #tpu.memory_space<vmem>>, vector<1x392x64xbf16>
    %1 = vector.shape_cast %0 : vector<1x392x64xbf16> to vector<392x64xbf16>
    %c0_2 = arith.constant 0 : index
    %c0_3 = arith.constant 0 : index
    %2 = vector.load %arg2[%c0_2, %c0_3] : memref<64x128xbf16, #tpu.memory_space<vmem>>, vector<64x128xbf16>
    %cst = arith.constant dense<0.000000e+00> : vector<392x128xf32>
    %3 = tpu.matmul %1, %2, %cst {dimension_numbers = #tpu.dot_dimension_numbers<[1], [0], [0], [1], [0, 0, 1, 1], [], []>} : vector<392x64xbf16>, vector<64x128xbf16>, vector<392x128xf32> -> vector<392x128xf32>
    %c1 = arith.constant 1 : index
    %c0_4 = arith.constant 0 : index
    %c0_5 = arith.constant 0 : index
    %4 = vector.load %arg1[%c1, %c0_4, %c0_5] : memref<4x392x64xbf16, #tpu.memory_space<vmem>>, vector<1x392x64xbf16>
    %5 = vector.shape_cast %4 : vector<1x392x64xbf16> to vector<392x64xbf16>
    %c0_6 = arith.constant 0 : index
    %c0_7 = arith.constant 0 : index
    %6 = vector.load %arg2[%c0_6, %c0_7] : memref<64x128xbf16, #tpu.memory_space<vmem>>, vector<64x128xbf16>
    %cst_8 = arith.constant dense<0.000000e+00> : vector<392x128xf32>
    %7 = tpu.matmul %5, %6, %cst_8 {dimension_numbers = #tpu.dot_dimension_numbers<[1], [0], [0], [1], [0, 0, 1, 1], [], []>} : vector<392x64xbf16>, vector<64x128xbf16>, vector<392x128xf32> -> vector<392x128xf32>
    %c2 = arith.constant 2 : index
    %c0_9 = arith.constant 0 : index
    %c0_10 = arith.constant 0 : index
    %8 = vector.load %arg1[%c2, %c0_9, %c0_10] : memref<4x392x64xbf16, #tpu.memory_space<vmem>>, vector<1x392x64xbf16>
    %9 = vector.shape_cast %8 : vector<1x392x64xbf16> to vector<392x64xbf16>
    %c0_11 = arith.constant 0 : index
    %c0_12 = arith.constant 0 : index
    %10 = vector.load %arg2[%c0_11, %c0_12] : memref<64x128xbf16, #tpu.memory_space<vmem>>, vector<64x128xbf16>
    %cst_13 = arith.constant dense<0.000000e+00> : vector<392x128xf32>
    %11 = tpu.matmul %9, %10, %cst_13 {dimension_numbers = #tpu.dot_dimension_numbers<[1], [0], [0], [1], [0, 0, 1, 1], [], []>} : vector<392x64xbf16>, vector<64x128xbf16>, vector<392x128xf32> -> vector<392x128xf32>
    %c3 = arith.constant 3 : index
    %c0_14 = arith.constant 0 : index
    %c0_15 = arith.constant 0 : index
    %12 = vector.load %arg1[%c3, %c0_14, %c0_15] : memref<4x392x64xbf16, #tpu.memory_space<vmem>>, vector<1x392x64xbf16>
    %13 = vector.shape_cast %12 : vector<1x392x64xbf16> to vector<392x64xbf16>
    %c0_16 = arith.constant 0 : index
    %c0_17 = arith.constant 0 : index
    %14 = vector.load %arg2[%c0_16, %c0_17] : memref<64x128xbf16, #tpu.memory_space<vmem>>, vector<64x128xbf16>
    %cst_18 = arith.constant dense<0.000000e+00> : vector<392x128xf32>
    %15 = tpu.matmul %13, %14, %cst_18 {dimension_numbers = #tpu.dot_dimension_numbers<[1], [0], [0], [1], [0, 0, 1, 1], [], []>} : vector<392x64xbf16>, vector<64x128xbf16>, vector<392x128xf32> -> vector<392x128xf32>
    %16 = arith.maximumf %3, %7 : vector<392x128xf32>
    %17 = arith.maximumf %11, %15 : vector<392x128xf32>
    %18 = arith.maximumf %16, %17 : vector<392x128xf32>
    %c0_19 = arith.constant 0 : index
    %c0_20 = arith.constant 0 : index
    %19 = vector.load %arg3[%c0_19, %c0_20] : memref<1x128xf32, #tpu.memory_space<vmem>>, vector<1x128xf32>
    %20 = vector.broadcast %19 : vector<1x128xf32> to vector<392x128xf32>
    %21 = arith.addf %18, %20 : vector<392x128xf32>
    %cst_21 = arith.constant 0.000000e+00 : f32
    %22 = vector.broadcast %cst_21 : f32 to vector<392x128xf32>
    %23 = arith.maximumf %21, %22 : vector<392x128xf32>
    %24 = arith.truncf %23 : vector<392x128xf32> to vector<392x128xbf16>
    %c0_22 = arith.constant 0 : index
    %c0_23 = arith.constant 0 : index
    %25 = vector.load %arg4[%c0_22, %c0_23] : memref<392x128xbf16, #tpu.memory_space<vmem>>, vector<392x128xbf16>
    tpu.vector_store %arg4[%c0_22, %c0_23], %24 {strides = array<i32>} : memref<392x128xbf16, #tpu.memory_space<vmem>>, vector<392x128xbf16>,
    return
  }
  func.func @transform_0(%arg0: i32) -> (i32, i32, i32) {
    %c0_i32 = arith.constant 0 : i32
    %c0_i32_0 = arith.constant 0 : i32
    %c0_i32_1 = arith.constant 0 : i32
    return %c0_i32, %arg0, %c0_i32_0 : i32, i32, i32
  }
  func.func @transform_1(%arg0: i32) -> (i32, i32) {
    %c0_i32 = arith.constant 0 : i32
    %c0_i32_0 = arith.constant 0 : i32
    %c0_i32_1 = arith.constant 0 : i32
    return %c0_i32, %c0_i32_0 : i32, i32
  }
  func.func @transform_2(%arg0: i32) -> (i32, i32) {
    %c0_i32 = arith.constant 0 : i32
    %c0_i32_0 = arith.constant 0 : i32
    %c0_i32_1 = arith.constant 0 : i32
    return %c0_i32, %c0_i32_0 : i32, i32
  }
  func.func @transform_3(%arg0: i32) -> (i32, i32) {
    %c0_i32 = arith.constant 0 : i32
    %c0_i32_0 = arith.constant 0 : i32
    return %arg0, %c0_i32 : i32, i32
  }
}

module attributes {stable_mosaic.version = 11 : i64} {
  func.func @_conv2_pool_fc_kernel(%arg0: i32, %arg1: memref<4x288x288xbf16, #tpu.memory_space<vmem>>, %arg2: memref<288x64xbf16, #tpu.memory_space<vmem>>, %arg3: memref<1x64xf32, #tpu.memory_space<vmem>>, %arg4: memref<2304x600xbf16, #tpu.memory_space<vmem>>, %arg5: memref<1x600xf32, #tpu.memory_space<vmem>>, %arg6: memref<600x120xbf16, #tpu.memory_space<vmem>>, %arg7: memref<1x120xf32, #tpu.memory_space<vmem>>, %arg8: memref<120x128xbf16, #tpu.memory_space<vmem>>, %arg9: memref<1x128xf32, #tpu.memory_space<vmem>>, %arg10: memref<8x128xf32, #tpu.memory_space<vmem>>, %arg11: memref<8x2304xf32, #tpu.memory_space<vmem>>) attributes {dimension_semantics = [#tpu.dimension_semantics<parallel>], iteration_bounds = array<i64: 2>, scalar_prefetch = 0 : i64, scratch_operands = 1 : i64, tpu.core_type = #tpu.core_type<tc>, window_params = [{transform_indices = @transform_0, window_bounds = array<i64: 4, 288, 288>}, {pipeline_mode = #tpu.pipeline_mode<synchronous>, transform_indices = @transform_1, window_bounds = array<i64: 288, 64>}, {pipeline_mode = #tpu.pipeline_mode<synchronous>, transform_indices = @transform_2, window_bounds = array<i64: 1, 64>}, {pipeline_mode = #tpu.pipeline_mode<synchronous>, transform_indices = @transform_3, window_bounds = array<i64: 2304, 600>}, {pipeline_mode = #tpu.pipeline_mode<synchronous>, transform_indices = @transform_4, window_bounds = array<i64: 1, 600>}, {pipeline_mode = #tpu.pipeline_mode<synchronous>, transform_indices = @transform_5, window_bounds = array<i64: 600, 120>}, {pipeline_mode = #tpu.pipeline_mode<synchronous>, transform_indices = @transform_6, window_bounds = array<i64: 1, 120>}, {pipeline_mode = #tpu.pipeline_mode<synchronous>, transform_indices = @transform_7, window_bounds = array<i64: 120, 128>}, {pipeline_mode = #tpu.pipeline_mode<synchronous>, transform_indices = @transform_8, window_bounds = array<i64: 1, 128>}, {transform_indices = @transform_9, window_bounds = array<i64: 8, 128>}]} {
    %c0 = arith.constant 0 : index
    %c0_0 = arith.constant 0 : index
    %c0_1 = arith.constant 0 : index
    %0 = vector.load %arg1[%c0, %c0_0, %c0_1] : memref<4x288x288xbf16, #tpu.memory_space<vmem>>, vector<1x288x288xbf16>
    %1 = vector.shape_cast %0 : vector<1x288x288xbf16> to vector<288x288xbf16>
    %c0_2 = arith.constant 0 : index
    %c0_3 = arith.constant 0 : index
    %2 = vector.load %arg2[%c0_2, %c0_3] : memref<288x64xbf16, #tpu.memory_space<vmem>>, vector<288x64xbf16>
    %cst = arith.constant dense<0.000000e+00> : vector<288x64xf32>
    %3 = tpu.matmul %1, %2, %cst {dimension_numbers = #tpu.dot_dimension_numbers<[1], [0], [0], [1], [0, 0, 1, 1], [], []>} : vector<288x288xbf16>, vector<288x64xbf16>, vector<288x64xf32> -> vector<288x64xf32>
    %c1 = arith.constant 1 : index
    %c0_4 = arith.constant 0 : index
    %c0_5 = arith.constant 0 : index
    %4 = vector.load %arg1[%c1, %c0_4, %c0_5] : memref<4x288x288xbf16, #tpu.memory_space<vmem>>, vector<1x288x288xbf16>
    %5 = vector.shape_cast %4 : vector<1x288x288xbf16> to vector<288x288xbf16>
    %c0_6 = arith.constant 0 : index
    %c0_7 = arith.constant 0 : index
    %6 = vector.load %arg2[%c0_6, %c0_7] : memref<288x64xbf16, #tpu.memory_space<vmem>>, vector<288x64xbf16>
    %cst_8 = arith.constant dense<0.000000e+00> : vector<288x64xf32>
    %7 = tpu.matmul %5, %6, %cst_8 {dimension_numbers = #tpu.dot_dimension_numbers<[1], [0], [0], [1], [0, 0, 1, 1], [], []>} : vector<288x288xbf16>, vector<288x64xbf16>, vector<288x64xf32> -> vector<288x64xf32>
    %c2 = arith.constant 2 : index
    %c0_9 = arith.constant 0 : index
    %c0_10 = arith.constant 0 : index
    %8 = vector.load %arg1[%c2, %c0_9, %c0_10] : memref<4x288x288xbf16, #tpu.memory_space<vmem>>, vector<1x288x288xbf16>
    %9 = vector.shape_cast %8 : vector<1x288x288xbf16> to vector<288x288xbf16>
    %c0_11 = arith.constant 0 : index
    %c0_12 = arith.constant 0 : index
    %10 = vector.load %arg2[%c0_11, %c0_12] : memref<288x64xbf16, #tpu.memory_space<vmem>>, vector<288x64xbf16>
    %cst_13 = arith.constant dense<0.000000e+00> : vector<288x64xf32>
    %11 = tpu.matmul %9, %10, %cst_13 {dimension_numbers = #tpu.dot_dimension_numbers<[1], [0], [0], [1], [0, 0, 1, 1], [], []>} : vector<288x288xbf16>, vector<288x64xbf16>, vector<288x64xf32> -> vector<288x64xf32>
    %c3 = arith.constant 3 : index
    %c0_14 = arith.constant 0 : index
    %c0_15 = arith.constant 0 : index
    %12 = vector.load %arg1[%c3, %c0_14, %c0_15] : memref<4x288x288xbf16, #tpu.memory_space<vmem>>, vector<1x288x288xbf16>
    %13 = vector.shape_cast %12 : vector<1x288x288xbf16> to vector<288x288xbf16>
    %c0_16 = arith.constant 0 : index
    %c0_17 = arith.constant 0 : index
    %14 = vector.load %arg2[%c0_16, %c0_17] : memref<288x64xbf16, #tpu.memory_space<vmem>>, vector<288x64xbf16>
    %cst_18 = arith.constant dense<0.000000e+00> : vector<288x64xf32>
    %15 = tpu.matmul %13, %14, %cst_18 {dimension_numbers = #tpu.dot_dimension_numbers<[1], [0], [0], [1], [0, 0, 1, 1], [], []>} : vector<288x288xbf16>, vector<288x64xbf16>, vector<288x64xf32> -> vector<288x64xf32>
    %16 = arith.maximumf %3, %7 : vector<288x64xf32>
    %17 = arith.maximumf %11, %15 : vector<288x64xf32>
    %18 = arith.maximumf %16, %17 : vector<288x64xf32>
    %c0_19 = arith.constant 0 : index
    %c0_20 = arith.constant 0 : index
    %19 = vector.load %arg3[%c0_19, %c0_20] : memref<1x64xf32, #tpu.memory_space<vmem>>, vector<1x64xf32>
    %20 = vector.broadcast %19 : vector<1x64xf32> to vector<288x64xf32>
    %21 = arith.addf %18, %20 : vector<288x64xf32>
    %cst_21 = arith.constant 0.000000e+00 : f32
    %22 = vector.broadcast %cst_21 : f32 to vector<288x64xf32>
    %23 = arith.maximumf %21, %22 : vector<288x64xf32>
    %24 = vector.extract_strided_slice %23 {offsets = [0, 0], sizes = [8, 64], strides = [1, 1]} : vector<288x64xf32> to vector<8x64xf32>
    %c0_22 = arith.constant 0 : index
    %c0_23 = arith.constant 0 : index
    %25 = vector.load %arg11[%c0_22, %c0_23] : memref<8x2304xf32, #tpu.memory_space<vmem>>, vector<8x64xf32>
    tpu.vector_store %arg11[%c0_22, %c0_23], %24 {strides = array<i32>} : memref<8x2304xf32, #tpu.memory_space<vmem>>, vector<8x64xf32>,
    %26 = vector.extract_strided_slice %23 {offsets = [8, 0], sizes = [8, 64], strides = [1, 1]} : vector<288x64xf32> to vector<8x64xf32>
    %c0_24 = arith.constant 0 : index
    %c64 = arith.constant 64 : index
    %27 = vector.load %arg11[%c0_24, %c64] : memref<8x2304xf32, #tpu.memory_space<vmem>>, vector<8x64xf32>
    tpu.vector_store %arg11[%c0_24, %c64], %26 {strides = array<i32>} : memref<8x2304xf32, #tpu.memory_space<vmem>>, vector<8x64xf32>,
    %28 = vector.extract_strided_slice %23 {offsets = [16, 0], sizes = [8, 64], strides = [1, 1]} : vector<288x64xf32> to vector<8x64xf32>
    %c0_25 = arith.constant 0 : index
    %c128 = arith.constant 128 : index
    %29 = vector.load %arg11[%c0_25, %c128] : memref<8x2304xf32, #tpu.memory_space<vmem>>, vector<8x64xf32>
    tpu.vector_store %arg11[%c0_25, %c128], %28 {strides = array<i32>} : memref<8x2304xf32, #tpu.memory_space<vmem>>, vector<8x64xf32>,
    %30 = vector.extract_strided_slice %23 {offsets = [24, 0], sizes = [8, 64], strides = [1, 1]} : vector<288x64xf32> to vector<8x64xf32>
    %c0_26 = arith.constant 0 : index
    %c192 = arith.constant 192 : index
    %31 = vector.load %arg11[%c0_26, %c192] : memref<8x2304xf32, #tpu.memory_space<vmem>>, vector<8x64xf32>
    tpu.vector_store %arg11[%c0_26, %c192], %30 {strides = array<i32>} : memref<8x2304xf32, #tpu.memory_space<vmem>>, vector<8x64xf32>,
    %32 = vector.extract_strided_slice %23 {offsets = [32, 0], sizes = [8, 64], strides = [1, 1]} : vector<288x64xf32> to vector<8x64xf32>
    %c0_27 = arith.constant 0 : index
    %c256 = arith.constant 256 : index
    %33 = vector.load %arg11[%c0_27, %c256] : memref<8x2304xf32, #tpu.memory_space<vmem>>, vector<8x64xf32>
    tpu.vector_store %arg11[%c0_27, %c256], %32 {strides = array<i32>} : memref<8x2304xf32, #tpu.memory_space<vmem>>, vector<8x64xf32>,
    %34 = vector.extract_strided_slice %23 {offsets = [40, 0], sizes = [8, 64], strides = [1, 1]} : vector<288x64xf32> to vector<8x64xf32>
    %c0_28 = arith.constant 0 : index
    %c320 = arith.constant 320 : index
    %35 = vector.load %arg11[%c0_28, %c320] : memref<8x2304xf32, #tpu.memory_space<vmem>>, vector<8x64xf32>
    tpu.vector_store %arg11[%c0_28, %c320], %34 {strides = array<i32>} : memref<8x2304xf32, #tpu.memory_space<vmem>>, vector<8x64xf32>,
    %36 = vector.extract_strided_slice %23 {offsets = [48, 0], sizes = [8, 64], strides = [1, 1]} : vector<288x64xf32> to vector<8x64xf32>
    %c0_29 = arith.constant 0 : index
    %c384 = arith.constant 384 : index
    %37 = vector.load %arg11[%c0_29, %c384] : memref<8x2304xf32, #tpu.memory_space<vmem>>, vector<8x64xf32>
    tpu.vector_store %arg11[%c0_29, %c384], %36 {strides = array<i32>} : memref<8x2304xf32, #tpu.memory_space<vmem>>, vector<8x64xf32>,
    %38 = vector.extract_strided_slice %23 {offsets = [56, 0], sizes = [8, 64], strides = [1, 1]} : vector<288x64xf32> to vector<8x64xf32>
    %c0_30 = arith.constant 0 : index
    %c448 = arith.constant 448 : index
    %39 = vector.load %arg11[%c0_30, %c448] : memref<8x2304xf32, #tpu.memory_space<vmem>>, vector<8x64xf32>
    tpu.vector_store %arg11[%c0_30, %c448], %38 {strides = array<i32>} : memref<8x2304xf32, #tpu.memory_space<vmem>>, vector<8x64xf32>,
    %40 = vector.extract_strided_slice %23 {offsets = [64, 0], sizes = [8, 64], strides = [1, 1]} : vector<288x64xf32> to vector<8x64xf32>
    %c0_31 = arith.constant 0 : index
    %c512 = arith.constant 512 : index
    %41 = vector.load %arg11[%c0_31, %c512] : memref<8x2304xf32, #tpu.memory_space<vmem>>, vector<8x64xf32>
    tpu.vector_store %arg11[%c0_31, %c512], %40 {strides = array<i32>} : memref<8x2304xf32, #tpu.memory_space<vmem>>, vector<8x64xf32>,
    %42 = vector.extract_strided_slice %23 {offsets = [72, 0], sizes = [8, 64], strides = [1, 1]} : vector<288x64xf32> to vector<8x64xf32>
    %c0_32 = arith.constant 0 : index
    %c576 = arith.constant 576 : index
    %43 = vector.load %arg11[%c0_32, %c576] : memref<8x2304xf32, #tpu.memory_space<vmem>>, vector<8x64xf32>
    tpu.vector_store %arg11[%c0_32, %c576], %42 {strides = array<i32>} : memref<8x2304xf32, #tpu.memory_space<vmem>>, vector<8x64xf32>,
    %44 = vector.extract_strided_slice %23 {offsets = [80, 0], sizes = [8, 64], strides = [1, 1]} : vector<288x64xf32> to vector<8x64xf32>
    %c0_33 = arith.constant 0 : index
    %c640 = arith.constant 640 : index
    %45 = vector.load %arg11[%c0_33, %c640] : memref<8x2304xf32, #tpu.memory_space<vmem>>, vector<8x64xf32>
    tpu.vector_store %arg11[%c0_33, %c640], %44 {strides = array<i32>} : memref<8x2304xf32, #tpu.memory_space<vmem>>, vector<8x64xf32>,
    %46 = vector.extract_strided_slice %23 {offsets = [88, 0], sizes = [8, 64], strides = [1, 1]} : vector<288x64xf32> to vector<8x64xf32>
    %c0_34 = arith.constant 0 : index
    %c704 = arith.constant 704 : index
    %47 = vector.load %arg11[%c0_34, %c704] : memref<8x2304xf32, #tpu.memory_space<vmem>>, vector<8x64xf32>
    tpu.vector_store %arg11[%c0_34, %c704], %46 {strides = array<i32>} : memref<8x2304xf32, #tpu.memory_space<vmem>>, vector<8x64xf32>,
    %48 = vector.extract_strided_slice %23 {offsets = [96, 0], sizes = [8, 64], strides = [1, 1]} : vector<288x64xf32> to vector<8x64xf32>
    %c0_35 = arith.constant 0 : index
    %c768 = arith.constant 768 : index
    %49 = vector.load %arg11[%c0_35, %c768] : memref<8x2304xf32, #tpu.memory_space<vmem>>, vector<8x64xf32>
    tpu.vector_store %arg11[%c0_35, %c768], %48 {strides = array<i32>} : memref<8x2304xf32, #tpu.memory_space<vmem>>, vector<8x64xf32>,
    %50 = vector.extract_strided_slice %23 {offsets = [104, 0], sizes = [8, 64], strides = [1, 1]} : vector<288x64xf32> to vector<8x64xf32>
    %c0_36 = arith.constant 0 : index
    %c832 = arith.constant 832 : index
    %51 = vector.load %arg11[%c0_36, %c832] : memref<8x2304xf32, #tpu.memory_space<vmem>>, vector<8x64xf32>
    tpu.vector_store %arg11[%c0_36, %c832], %50 {strides = array<i32>} : memref<8x2304xf32, #tpu.memory_space<vmem>>, vector<8x64xf32>,
    %52 = vector.extract_strided_slice %23 {offsets = [112, 0], sizes = [8, 64], strides = [1, 1]} : vector<288x64xf32> to vector<8x64xf32>
    %c0_37 = arith.constant 0 : index
    %c896 = arith.constant 896 : index
    %53 = vector.load %arg11[%c0_37, %c896] : memref<8x2304xf32, #tpu.memory_space<vmem>>, vector<8x64xf32>
    tpu.vector_store %arg11[%c0_37, %c896], %52 {strides = array<i32>} : memref<8x2304xf32, #tpu.memory_space<vmem>>, vector<8x64xf32>,
    %54 = vector.extract_strided_slice %23 {offsets = [120, 0], sizes = [8, 64], strides = [1, 1]} : vector<288x64xf32> to vector<8x64xf32>
    %c0_38 = arith.constant 0 : index
    %c960 = arith.constant 960 : index
    %55 = vector.load %arg11[%c0_38, %c960] : memref<8x2304xf32, #tpu.memory_space<vmem>>, vector<8x64xf32>
    tpu.vector_store %arg11[%c0_38, %c960], %54 {strides = array<i32>} : memref<8x2304xf32, #tpu.memory_space<vmem>>, vector<8x64xf32>,
    %56 = vector.extract_strided_slice %23 {offsets = [128, 0], sizes = [8, 64], strides = [1, 1]} : vector<288x64xf32> to vector<8x64xf32>
    %c0_39 = arith.constant 0 : index
    %c1024 = arith.constant 1024 : index
    %57 = vector.load %arg11[%c0_39, %c1024] : memref<8x2304xf32, #tpu.memory_space<vmem>>, vector<8x64xf32>
    tpu.vector_store %arg11[%c0_39, %c1024], %56 {strides = array<i32>} : memref<8x2304xf32, #tpu.memory_space<vmem>>, vector<8x64xf32>,
    %58 = vector.extract_strided_slice %23 {offsets = [136, 0], sizes = [8, 64], strides = [1, 1]} : vector<288x64xf32> to vector<8x64xf32>
    %c0_40 = arith.constant 0 : index
    %c1088 = arith.constant 1088 : index
    %59 = vector.load %arg11[%c0_40, %c1088] : memref<8x2304xf32, #tpu.memory_space<vmem>>, vector<8x64xf32>
    tpu.vector_store %arg11[%c0_40, %c1088], %58 {strides = array<i32>} : memref<8x2304xf32, #tpu.memory_space<vmem>>, vector<8x64xf32>,
    %60 = vector.extract_strided_slice %23 {offsets = [144, 0], sizes = [8, 64], strides = [1, 1]} : vector<288x64xf32> to vector<8x64xf32>
    %c0_41 = arith.constant 0 : index
    %c1152 = arith.constant 1152 : index
    %61 = vector.load %arg11[%c0_41, %c1152] : memref<8x2304xf32, #tpu.memory_space<vmem>>, vector<8x64xf32>
    tpu.vector_store %arg11[%c0_41, %c1152], %60 {strides = array<i32>} : memref<8x2304xf32, #tpu.memory_space<vmem>>, vector<8x64xf32>,
    %62 = vector.extract_strided_slice %23 {offsets = [152, 0], sizes = [8, 64], strides = [1, 1]} : vector<288x64xf32> to vector<8x64xf32>
    %c0_42 = arith.constant 0 : index
    %c1216 = arith.constant 1216 : index
    %63 = vector.load %arg11[%c0_42, %c1216] : memref<8x2304xf32, #tpu.memory_space<vmem>>, vector<8x64xf32>
    tpu.vector_store %arg11[%c0_42, %c1216], %62 {strides = array<i32>} : memref<8x2304xf32, #tpu.memory_space<vmem>>, vector<8x64xf32>,
    %64 = vector.extract_strided_slice %23 {offsets = [160, 0], sizes = [8, 64], strides = [1, 1]} : vector<288x64xf32> to vector<8x64xf32>
    %c0_43 = arith.constant 0 : index
    %c1280 = arith.constant 1280 : index
    %65 = vector.load %arg11[%c0_43, %c1280] : memref<8x2304xf32, #tpu.memory_space<vmem>>, vector<8x64xf32>
    tpu.vector_store %arg11[%c0_43, %c1280], %64 {strides = array<i32>} : memref<8x2304xf32, #tpu.memory_space<vmem>>, vector<8x64xf32>,
    %66 = vector.extract_strided_slice %23 {offsets = [168, 0], sizes = [8, 64], strides = [1, 1]} : vector<288x64xf32> to vector<8x64xf32>
    %c0_44 = arith.constant 0 : index
    %c1344 = arith.constant 1344 : index
    %67 = vector.load %arg11[%c0_44, %c1344] : memref<8x2304xf32, #tpu.memory_space<vmem>>, vector<8x64xf32>
    tpu.vector_store %arg11[%c0_44, %c1344], %66 {strides = array<i32>} : memref<8x2304xf32, #tpu.memory_space<vmem>>, vector<8x64xf32>,
    %68 = vector.extract_strided_slice %23 {offsets = [176, 0], sizes = [8, 64], strides = [1, 1]} : vector<288x64xf32> to vector<8x64xf32>
    %c0_45 = arith.constant 0 : index
    %c1408 = arith.constant 1408 : index
    %69 = vector.load %arg11[%c0_45, %c1408] : memref<8x2304xf32, #tpu.memory_space<vmem>>, vector<8x64xf32>
    tpu.vector_store %arg11[%c0_45, %c1408], %68 {strides = array<i32>} : memref<8x2304xf32, #tpu.memory_space<vmem>>, vector<8x64xf32>,
    %70 = vector.extract_strided_slice %23 {offsets = [184, 0], sizes = [8, 64], strides = [1, 1]} : vector<288x64xf32> to vector<8x64xf32>
    %c0_46 = arith.constant 0 : index
    %c1472 = arith.constant 1472 : index
    %71 = vector.load %arg11[%c0_46, %c1472] : memref<8x2304xf32, #tpu.memory_space<vmem>>, vector<8x64xf32>
    tpu.vector_store %arg11[%c0_46, %c1472], %70 {strides = array<i32>} : memref<8x2304xf32, #tpu.memory_space<vmem>>, vector<8x64xf32>,
    %72 = vector.extract_strided_slice %23 {offsets = [192, 0], sizes = [8, 64], strides = [1, 1]} : vector<288x64xf32> to vector<8x64xf32>
    %c0_47 = arith.constant 0 : index
    %c1536 = arith.constant 1536 : index
    %73 = vector.load %arg11[%c0_47, %c1536] : memref<8x2304xf32, #tpu.memory_space<vmem>>, vector<8x64xf32>
    tpu.vector_store %arg11[%c0_47, %c1536], %72 {strides = array<i32>} : memref<8x2304xf32, #tpu.memory_space<vmem>>, vector<8x64xf32>,
    %74 = vector.extract_strided_slice %23 {offsets = [200, 0], sizes = [8, 64], strides = [1, 1]} : vector<288x64xf32> to vector<8x64xf32>
    %c0_48 = arith.constant 0 : index
    %c1600 = arith.constant 1600 : index
    %75 = vector.load %arg11[%c0_48, %c1600] : memref<8x2304xf32, #tpu.memory_space<vmem>>, vector<8x64xf32>
    tpu.vector_store %arg11[%c0_48, %c1600], %74 {strides = array<i32>} : memref<8x2304xf32, #tpu.memory_space<vmem>>, vector<8x64xf32>,
    %76 = vector.extract_strided_slice %23 {offsets = [208, 0], sizes = [8, 64], strides = [1, 1]} : vector<288x64xf32> to vector<8x64xf32>
    %c0_49 = arith.constant 0 : index
    %c1664 = arith.constant 1664 : index
    %77 = vector.load %arg11[%c0_49, %c1664] : memref<8x2304xf32, #tpu.memory_space<vmem>>, vector<8x64xf32>
    tpu.vector_store %arg11[%c0_49, %c1664], %76 {strides = array<i32>} : memref<8x2304xf32, #tpu.memory_space<vmem>>, vector<8x64xf32>,
    %78 = vector.extract_strided_slice %23 {offsets = [216, 0], sizes = [8, 64], strides = [1, 1]} : vector<288x64xf32> to vector<8x64xf32>
    %c0_50 = arith.constant 0 : index
    %c1728 = arith.constant 1728 : index
    %79 = vector.load %arg11[%c0_50, %c1728] : memref<8x2304xf32, #tpu.memory_space<vmem>>, vector<8x64xf32>
    tpu.vector_store %arg11[%c0_50, %c1728], %78 {strides = array<i32>} : memref<8x2304xf32, #tpu.memory_space<vmem>>, vector<8x64xf32>,
    %80 = vector.extract_strided_slice %23 {offsets = [224, 0], sizes = [8, 64], strides = [1, 1]} : vector<288x64xf32> to vector<8x64xf32>
    %c0_51 = arith.constant 0 : index
    %c1792 = arith.constant 1792 : index
    %81 = vector.load %arg11[%c0_51, %c1792] : memref<8x2304xf32, #tpu.memory_space<vmem>>, vector<8x64xf32>
    tpu.vector_store %arg11[%c0_51, %c1792], %80 {strides = array<i32>} : memref<8x2304xf32, #tpu.memory_space<vmem>>, vector<8x64xf32>,
    %82 = vector.extract_strided_slice %23 {offsets = [232, 0], sizes = [8, 64], strides = [1, 1]} : vector<288x64xf32> to vector<8x64xf32>
    %c0_52 = arith.constant 0 : index
    %c1856 = arith.constant 1856 : index
    %83 = vector.load %arg11[%c0_52, %c1856] : memref<8x2304xf32, #tpu.memory_space<vmem>>, vector<8x64xf32>
    tpu.vector_store %arg11[%c0_52, %c1856], %82 {strides = array<i32>} : memref<8x2304xf32, #tpu.memory_space<vmem>>, vector<8x64xf32>,
    %84 = vector.extract_strided_slice %23 {offsets = [240, 0], sizes = [8, 64], strides = [1, 1]} : vector<288x64xf32> to vector<8x64xf32>
    %c0_53 = arith.constant 0 : index
    %c1920 = arith.constant 1920 : index
    %85 = vector.load %arg11[%c0_53, %c1920] : memref<8x2304xf32, #tpu.memory_space<vmem>>, vector<8x64xf32>
    tpu.vector_store %arg11[%c0_53, %c1920], %84 {strides = array<i32>} : memref<8x2304xf32, #tpu.memory_space<vmem>>, vector<8x64xf32>,
    %86 = vector.extract_strided_slice %23 {offsets = [248, 0], sizes = [8, 64], strides = [1, 1]} : vector<288x64xf32> to vector<8x64xf32>
    %c0_54 = arith.constant 0 : index
    %c1984 = arith.constant 1984 : index
    %87 = vector.load %arg11[%c0_54, %c1984] : memref<8x2304xf32, #tpu.memory_space<vmem>>, vector<8x64xf32>
    tpu.vector_store %arg11[%c0_54, %c1984], %86 {strides = array<i32>} : memref<8x2304xf32, #tpu.memory_space<vmem>>, vector<8x64xf32>,
    %88 = vector.extract_strided_slice %23 {offsets = [256, 0], sizes = [8, 64], strides = [1, 1]} : vector<288x64xf32> to vector<8x64xf32>
    %c0_55 = arith.constant 0 : index
    %c2048 = arith.constant 2048 : index
    %89 = vector.load %arg11[%c0_55, %c2048] : memref<8x2304xf32, #tpu.memory_space<vmem>>, vector<8x64xf32>
    tpu.vector_store %arg11[%c0_55, %c2048], %88 {strides = array<i32>} : memref<8x2304xf32, #tpu.memory_space<vmem>>, vector<8x64xf32>,
    %90 = vector.extract_strided_slice %23 {offsets = [264, 0], sizes = [8, 64], strides = [1, 1]} : vector<288x64xf32> to vector<8x64xf32>
    %c0_56 = arith.constant 0 : index
    %c2112 = arith.constant 2112 : index
    %91 = vector.load %arg11[%c0_56, %c2112] : memref<8x2304xf32, #tpu.memory_space<vmem>>, vector<8x64xf32>
    tpu.vector_store %arg11[%c0_56, %c2112], %90 {strides = array<i32>} : memref<8x2304xf32, #tpu.memory_space<vmem>>, vector<8x64xf32>,
    %92 = vector.extract_strided_slice %23 {offsets = [272, 0], sizes = [8, 64], strides = [1, 1]} : vector<288x64xf32> to vector<8x64xf32>
    %c0_57 = arith.constant 0 : index
    %c2176 = arith.constant 2176 : index
    %93 = vector.load %arg11[%c0_57, %c2176] : memref<8x2304xf32, #tpu.memory_space<vmem>>, vector<8x64xf32>
    tpu.vector_store %arg11[%c0_57, %c2176], %92 {strides = array<i32>} : memref<8x2304xf32, #tpu.memory_space<vmem>>, vector<8x64xf32>,
    %94 = vector.extract_strided_slice %23 {offsets = [280, 0], sizes = [8, 64], strides = [1, 1]} : vector<288x64xf32> to vector<8x64xf32>
    %c0_58 = arith.constant 0 : index
    %c2240 = arith.constant 2240 : index
    %95 = vector.load %arg11[%c0_58, %c2240] : memref<8x2304xf32, #tpu.memory_space<vmem>>, vector<8x64xf32>
    tpu.vector_store %arg11[%c0_58, %c2240], %94 {strides = array<i32>} : memref<8x2304xf32, #tpu.memory_space<vmem>>, vector<8x64xf32>,
    %c0_59 = arith.constant 0 : index
    %c0_60 = arith.constant 0 : index
    %96 = vector.load %arg11[%c0_59, %c0_60] : memref<8x2304xf32, #tpu.memory_space<vmem>>, vector<8x2304xf32>
    %97 = arith.truncf %96 : vector<8x2304xf32> to vector<8x2304xbf16>
    %c0_61 = arith.constant 0 : index
    %c0_62 = arith.constant 0 : index
    %98 = vector.load %arg4[%c0_61, %c0_62] : memref<2304x600xbf16, #tpu.memory_space<vmem>>, vector<2304x600xbf16>
    %cst_63 = arith.constant dense<0.000000e+00> : vector<8x600xf32>
    %99 = tpu.matmul %97, %98, %cst_63 {dimension_numbers = #tpu.dot_dimension_numbers<[1], [0], [0], [1], [0, 0, 1, 1], [], []>} : vector<8x2304xbf16>, vector<2304x600xbf16>, vector<8x600xf32> -> vector<8x600xf32>
    %c0_64 = arith.constant 0 : index
    %c0_65 = arith.constant 0 : index
    %100 = vector.load %arg5[%c0_64, %c0_65] : memref<1x600xf32, #tpu.memory_space<vmem>>, vector<1x600xf32>
    %101 = vector.broadcast %100 : vector<1x600xf32> to vector<8x600xf32>
    %102 = arith.addf %99, %101 : vector<8x600xf32>
    %103 = arith.truncf %102 : vector<8x600xf32> to vector<8x600xbf16>
    %c0_66 = arith.constant 0 : index
    %c0_67 = arith.constant 0 : index
    %104 = vector.load %arg6[%c0_66, %c0_67] : memref<600x120xbf16, #tpu.memory_space<vmem>>, vector<600x120xbf16>
    %cst_68 = arith.constant dense<0.000000e+00> : vector<8x120xf32>
    %105 = tpu.matmul %103, %104, %cst_68 {dimension_numbers = #tpu.dot_dimension_numbers<[1], [0], [0], [1], [0, 0, 1, 1], [], []>} : vector<8x600xbf16>, vector<600x120xbf16>, vector<8x120xf32> -> vector<8x120xf32>
    %c0_69 = arith.constant 0 : index
    %c0_70 = arith.constant 0 : index
    %106 = vector.load %arg7[%c0_69, %c0_70] : memref<1x120xf32, #tpu.memory_space<vmem>>, vector<1x120xf32>
    %107 = vector.broadcast %106 : vector<1x120xf32> to vector<8x120xf32>
    %108 = arith.addf %105, %107 : vector<8x120xf32>
    %109 = arith.truncf %108 : vector<8x120xf32> to vector<8x120xbf16>
    %c0_71 = arith.constant 0 : index
    %c0_72 = arith.constant 0 : index
    %110 = vector.load %arg8[%c0_71, %c0_72] : memref<120x128xbf16, #tpu.memory_space<vmem>>, vector<120x128xbf16>
    %cst_73 = arith.constant dense<0.000000e+00> : vector<8x128xf32>
    %111 = tpu.matmul %109, %110, %cst_73 {dimension_numbers = #tpu.dot_dimension_numbers<[1], [0], [0], [1], [0, 0, 1, 1], [], []>} : vector<8x120xbf16>, vector<120x128xbf16>, vector<8x128xf32> -> vector<8x128xf32>
    %c0_74 = arith.constant 0 : index
    %c0_75 = arith.constant 0 : index
    %112 = vector.load %arg9[%c0_74, %c0_75] : memref<1x128xf32, #tpu.memory_space<vmem>>, vector<1x128xf32>
    %113 = vector.broadcast %112 : vector<1x128xf32> to vector<8x128xf32>
    %114 = arith.addf %111, %113 : vector<8x128xf32>
    %c0_76 = arith.constant 0 : index
    %c0_77 = arith.constant 0 : index
    %115 = vector.load %arg10[%c0_76, %c0_77] : memref<8x128xf32, #tpu.memory_space<vmem>>, vector<8x128xf32>
    tpu.vector_store %arg10[%c0_76, %c0_77], %114 {strides = array<i32>} : memref<8x128xf32, #tpu.memory_space<vmem>>, vector<8x128xf32>,
    return
  }
  func.func @transform_0(%arg0: i32) -> (i32, i32, i32) {
    %c0_i32 = arith.constant 0 : i32
    %c0_i32_0 = arith.constant 0 : i32
    %c0_i32_1 = arith.constant 0 : i32
    return %c0_i32, %arg0, %c0_i32_0 : i32, i32, i32
  }
  func.func @transform_1(%arg0: i32) -> (i32, i32) {
    %c0_i32 = arith.constant 0 : i32
    %c0_i32_0 = arith.constant 0 : i32
    %c0_i32_1 = arith.constant 0 : i32
    return %c0_i32, %c0_i32_0 : i32, i32
  }
  func.func @transform_2(%arg0: i32) -> (i32, i32) {
    %c0_i32 = arith.constant 0 : i32
    %c0_i32_0 = arith.constant 0 : i32
    %c0_i32_1 = arith.constant 0 : i32
    return %c0_i32, %c0_i32_0 : i32, i32
  }
  func.func @transform_3(%arg0: i32) -> (i32, i32) {
    %c0_i32 = arith.constant 0 : i32
    %c0_i32_0 = arith.constant 0 : i32
    %c0_i32_1 = arith.constant 0 : i32
    return %c0_i32, %c0_i32_0 : i32, i32
  }
  func.func @transform_4(%arg0: i32) -> (i32, i32) {
    %c0_i32 = arith.constant 0 : i32
    %c0_i32_0 = arith.constant 0 : i32
    %c0_i32_1 = arith.constant 0 : i32
    return %c0_i32, %c0_i32_0 : i32, i32
  }
  func.func @transform_5(%arg0: i32) -> (i32, i32) {
    %c0_i32 = arith.constant 0 : i32
    %c0_i32_0 = arith.constant 0 : i32
    %c0_i32_1 = arith.constant 0 : i32
    return %c0_i32, %c0_i32_0 : i32, i32
  }
  func.func @transform_6(%arg0: i32) -> (i32, i32) {
    %c0_i32 = arith.constant 0 : i32
    %c0_i32_0 = arith.constant 0 : i32
    %c0_i32_1 = arith.constant 0 : i32
    return %c0_i32, %c0_i32_0 : i32, i32
  }
  func.func @transform_7(%arg0: i32) -> (i32, i32) {
    %c0_i32 = arith.constant 0 : i32
    %c0_i32_0 = arith.constant 0 : i32
    %c0_i32_1 = arith.constant 0 : i32
    return %c0_i32, %c0_i32_0 : i32, i32
  }
  func.func @transform_8(%arg0: i32) -> (i32, i32) {
    %c0_i32 = arith.constant 0 : i32
    %c0_i32_0 = arith.constant 0 : i32
    %c0_i32_1 = arith.constant 0 : i32
    return %c0_i32, %c0_i32_0 : i32, i32
  }
  func.func @transform_9(%arg0: i32) -> (i32, i32) {
    %c0_i32 = arith.constant 0 : i32
    %c0_i32_0 = arith.constant 0 : i32
    return %arg0, %c0_i32 : i32, i32
  }
}

</mosaic_0001>

<bundles_post_ra>
// kernel: tile.8
= control target key start
LH: loop header
LB: loop body
LE: loop exit
PB: predicated region body
PF: predicated region fallthrough
CT: control target
= control target key end

     0   :  { %s22_s0 = inlined_call_operand.vmem [shape: f32[32], index: 0, kind: input, shape index: {}]   ;;  %s23_s1 = inlined_call_operand.vmem [shape: f32[4,32], index: 1, kind: output, shape index: {}]  }
   0x1   :  { %v4_v0 = vld [vmem:[%s22_s0] ss:$0 sm:$0xff] }
   0x2   :  { %5 = vst [vmem:[%s23_s1] sm:$0xf] %v4_v0 }

// kernel: tile.9
= control target key start
LH: loop header
LB: loop body
LE: loop exit
PB: predicated region body
PF: predicated region fallthrough
CT: control target
= control target key end

     0   :  { %vm7_vm0 = vcmask 261120   ;;  %s37_s8 = smov 32   ;;  %s38_s9 = smov 64   ;;  %vm13_vm1 = vcmask 1048320   ;;  %vm19_vm2 = vcmask 785920   ;;  %vm25_vm3 = vcmask 523520   ;;  %s55_s0 = inlined_call_operand.vmem [shape: f32[4,32], index: 0, kind: input, shape index: {}]   ;;  %s56_s1 = inlined_call_operand.vmem [shape: f32[1,128], index: 1, kind: output, shape index: {}]  }
   0x1   :  { %v4_v0 = vld [vmem:[%s55_s0] sm:$0xf]  ;;  %s36_s0 = smov 96  }
   0x2   :  { %5 = vst [vmem:[#allocation1] sm:$0xf] %v4_v0 }
   0x9   :  { %v10_v1 = vld [vmem:[#allocation1 + $0x3] sm:$0x1]   ;;  %v22_v2 = vld [vmem:[#allocation1 + $0x1] sm:$0x1]   ;;  %v6_v3 = vld [vmem:[#allocation1] sm:$0x1]  }
   0xa   :  { %11 = vrot.lane.b32.xlu0 %v10_v1, %s36_s0  ;;  %23 = vrot.lane.b32.xlu1 %v22_v2, %s37_s8  ;;  %v16_v4 = vld [vmem:[#allocation1 + $0x2] sm:$0x1]   ;;  %8 = vst.msk [vmem:[#allocation0] sm:$0x1] %vm7_vm0, %v6_v3  }
   0xe   :  { %17 = vrot.lane.b32.xlu0 %v16_v4, %s38_s9 }
  0x7c   :  { %v12_v5 = vpop.permute.xlu0 %11   ;;  %v24_v6 = vpop.permute.xlu1 %23  }
  0x7d   :  { %14 = vst.msk [vmem:[#allocation0] sm:$0x1] %vm13_vm1, %v12_v5  }
  0x80   :  { %v18_v7 = vpop.permute.xlu0 %17  }
  0x81   :  { %20 = vst.msk [vmem:[#allocation0] sm:$0x1] %vm19_vm2, %v18_v7  }
  0x82   :  { %26 = vst.msk [vmem:[#allocation0] sm:$0x1] %vm25_vm3, %v24_v6  }
  0x89   :  { %v30_v8 = vld [vmem:[#allocation0] sm:$0x1] }
  0x8a   :  { %32 = vst [vmem:[%s56_s1] sm:$0x1] %v30_v8 }

// kernel: net_forward.2
= control target key start
LH: loop header
LB: loop body
LE: loop exit
PB: predicated region body
PF: predicated region fallthrough
CT: control target
= control target key end

     0   :  { %s4837_s12 = smov 0   ;;  %s4839_s13 = smov 0   ;;  %s6045_s0 = inlined_call_operand.vmem [shape: bf16[4,784,64], index: 0, kind: input, shape index: {}]   ;;  %s6046_s1 = inlined_call_operand.vmem [shape: bf16[64,128], index: 1, kind: input, shape index: {}]   ;;  %s6047_s2 = inlined_call_operand.vmem [shape: f32[1,128], index: 2, kind: input, shape index: {}]   ;;  %s6048_s3 = inlined_call_operand.vmem [shape: bf16[784,128], index: 3, kind: output, shape index: {}]  }
   0x1   :  { %s4841_s14 = smov 0  }
   0x2 LB: > { %s3508_s15 = sadd.s32 4294967295, %s4813_s14   ;;  %s4854_s16 = sadd.s32 1, %s4813_s14   ;;  %s4813_s14 = sphi %s4841_s14, %s6259_s14   ;;  %s4809_s13 = sphi %s4839_s13, %s6258_s13   ;;  %s4805_s12 = sphi %s4837_s12, %s6257_s12  }
   0x3   : > { %s17_s17 = ssub.s32 %s4813_s14, %s4854_s16  ;;  %s20_s18 = sadd.s32 1, %s4809_s13 }
   0x4   : > { %p18_p0 = scmp.eq.s32.totalorder %s17_s17, 0  ;;  %p27_p1 = scmp.ne.s32.totalorder %s4809_s13, %s4805_s12 }
   0x5   : > { %p28_p2 = scmp.eq.s32.totalorder %s4813_s14, 0  ;;  %p3511_p4 = scmp.ge.s32.totalorder %s4813_s14, 2 }
   0x6   : > { %s4863_s19 = scalar_select %p18_p0, %s4809_s13, %s20_s18  }
   0x7   : > { %p29_p3 = por %p28_p2, %p27_p1  ;;  %127 = sbr.rel (%p3511_p4) target bundleno = 69 (0x45), region = 24 }
   0xe   : > { %130 = sbr.rel (!%p29_p3) target bundleno = 69 (0x45), region = 28  ;;  %s132_s20 = sand.u32 (%p29_p3), 1, %s4809_s13  }
   0xf   : > { %s3918_s21 = smul.u32 (%p29_p3), 196, %s4813_s14 }
  0x10   : > { %s4659_s22 = smul.u32 (%p29_p3), 784, %s132_s20 }
  0x11   : > { %s4871_s25 = scalar_lea.vmem (%p29_p3), %s6045_s0, %s3918_s21 }
  0x12   : > { %v153_v0 = vld [vmem:[%s4871_s25] sm:$0xff] (%p29_p3)   ;;  %v157_v1 = vld [vmem:[%s4871_s25 + $0x8] sm:$0xff] (%p29_p3)   ;;  %v161_v2 = vld [vmem:[%s4871_s25 + $0x10] sm:$0xff] (%p29_p3)   ;;  %s4876_s26 = scalar_lea.vmem (%p29_p3), [#allocation2], %s4659_s22 }
  0x13   : > { %154 = vst [vmem:[%s4876_s26] sm:$0xff] (%p29_p3), %v153_v0   ;;  %158 = vst [vmem:[%s4876_s26 + $0x8] sm:$0xff] (%p29_p3), %v157_v1   ;;  %v165_v3 = vld [vmem:[%s4871_s25 + $0x18] sm:$0xff] (%p29_p3)   ;;  %v169_v4 = vld [vmem:[%s4871_s25 + $0x20] sm:$0xff] (%p29_p3)  }
  0x14   : > { %162 = vst [vmem:[%s4876_s26 + $0x10] sm:$0xff] (%p29_p3), %v161_v2   ;;  %v173_v5 = vld [vmem:[%s4871_s25 + $0x28] sm:$0xff] (%p29_p3)   ;;  %166 = vst [vmem:[%s4876_s26 + $0x18] sm:$0xff] (%p29_p3), %v165_v3   ;;  %v177_v6 = vld [vmem:[%s4871_s25 + $0x30] sm:$0xff] (%p29_p3)  }
  0x15   : > { %170 = vst [vmem:[%s4876_s26 + $0x20] sm:$0xff] %v169_v4   ;;  %174 = vst [vmem:[%s4876_s26 + $0x28] sm:$0xff] %v173_v5   ;;  %v181_v7 = vld [vmem:[%s4871_s25 + $0x38] sm:$0xff]   ;;  %v185_v8 = vld [vmem:[%s4871_s25 + $0x40] sm:$0xff]  }
  0x16   : > { %178 = vst [vmem:[%s4876_s26 + $0x30] sm:$0xff] %v177_v6   ;;  %182 = vst [vmem:[%s4876_s26 + $0x38] sm:$0xff] %v181_v7   ;;  %v189_v9 = vld [vmem:[%s4871_s25 + $0x48] sm:$0xff]   ;;  %v193_v10 = vld [vmem:[%s4871_s25 + $0x50] sm:$0xff]  }
  0x17   : > { %186 = vst [vmem:[%s4876_s26 + $0x40] sm:$0xff] %v185_v8   ;;  %v197_v11 = vld [vmem:[%s4871_s25 + $0x58] sm:$0xff]   ;;  %190 = vst [vmem:[%s4876_s26 + $0x48] sm:$0xff] %v189_v9   ;;  %v201_v12 = vld [vmem:[%s4871_s25 + $0x60] sm:$0xff]  }
  0x18   : > { %194 = vst [vmem:[%s4876_s26 + $0x50] sm:$0xff] %v193_v10   ;;  %198 = vst [vmem:[%s4876_s26 + $0x58] sm:$0xff] %v197_v11   ;;  %v205_v13 = vld [vmem:[%s4871_s25 + $0x68] sm:$0xff]   ;;  %v209_v14 = vld [vmem:[%s4871_s25 + $0x70] sm:$0xff]  }
  0x19   : > { %202 = vst [vmem:[%s4876_s26 + $0x60] sm:$0xff] %v201_v12   ;;  %206 = vst [vmem:[%s4876_s26 + $0x68] sm:$0xff] %v205_v13   ;;  %v213_v15 = vld [vmem:[%s4871_s25 + $0x78] sm:$0xff]   ;;  %v217_v16 = vld [vmem:[%s4871_s25 + $0x80] sm:$0xff]  }
  0x1a   : > { %210 = vst [vmem:[%s4876_s26 + $0x70] sm:$0xff] %v209_v14   ;;  %v221_v17 = vld [vmem:[%s4871_s25 + $0x88] sm:$0xff]   ;;  %214 = vst [vmem:[%s4876_s26 + $0x78] sm:$0xff] %v213_v15   ;;  %v225_v18 = vld [vmem:[%s4871_s25 + $0x90] sm:$0xff]  }
  0x1b   : > { %218 = vst [vmem:[%s4876_s26 + $0x80] sm:$0xff] %v217_v16   ;;  %222 = vst [vmem:[%s4876_s26 + $0x88] sm:$0xff] %v221_v17   ;;  %v229_v19 = vld [vmem:[%s4871_s25 + $0x98] sm:$0xff]   ;;  %v233_v20 = vld [vmem:[%s4871_s25 + $0xa0] sm:$0xff]  }
  0x1c   : > { %226 = vst [vmem:[%s4876_s26 + $0x90] sm:$0xff] %v225_v18   ;;  %230 = vst [vmem:[%s4876_s26 + $0x98] sm:$0xff] %v229_v19   ;;  %v237_v21 = vld [vmem:[%s4871_s25 + $0xa8] sm:$0xff]   ;;  %v241_v22 = vld [vmem:[%s4871_s25 + $0xb0] sm:$0xff]  }
  0x1d   : > { %234 = vst [vmem:[%s4876_s26 + $0xa0] sm:$0xff] %v233_v20   ;;  %v245_v23 = vld [vmem:[%s4871_s25 + $0xb8] sm:$0xff]   ;;  %238 = vst [vmem:[%s4876_s26 + $0xa8] sm:$0xff] %v237_v21   ;;  %v249_v24 = vld [vmem:[%s4871_s25 + $0xc0] sm:$0xf] }
  0x1e   : > { %242 = vst [vmem:[%s4876_s26 + $0xb0] sm:$0xff] %v241_v22   ;;  %246 = vst [vmem:[%s4876_s26 + $0xb8] sm:$0xff] %v245_v23   ;;  %v251_v25 = vld [vmem:[%s4871_s25 + $0x188] sm:$0xff]   ;;  %v255_v26 = vld [vmem:[%s4871_s25 + $0x190] sm:$0xff]  }
  0x1f   : > { %250 = vst [vmem:[%s4876_s26 + $0xc0] sm:$0xf] %v249_v24  ;;  %252 = vst [vmem:[%s4876_s26 + $0xc4] sm:$0xff] %v251_v25   ;;  %v259_v27 = vld [vmem:[%s4871_s25 + $0x198] sm:$0xff]   ;;  %v263_v28 = vld [vmem:[%s4871_s25 + $0x1a0] sm:$0xff]  }
  0x20   : > { %256 = vst [vmem:[%s4876_s26 + $0xcc] sm:$0xff] %v255_v26   ;;  %v267_v29 = vld [vmem:[%s4871_s25 + $0x1a8] sm:$0xff]   ;;  %260 = vst [vmem:[%s4876_s26 + $0xd4] sm:$0xff] %v259_v27   ;;  %v271_v30 = vld [vmem:[%s4871_s25 + $0x1b0] sm:$0xff]  }
  0x21   : > { %264 = vst [vmem:[%s4876_s26 + $0xdc] sm:$0xff] %v263_v28   ;;  %268 = vst [vmem:[%s4876_s26 + $0xe4] sm:$0xff] %v267_v29   ;;  %v275_v31 = vld [vmem:[%s4871_s25 + $0x1b8] sm:$0xff]   ;;  %v279_v32 = vld [vmem:[%s4871_s25 + $0x1c0] sm:$0xff]  }
  0x22   : > { %272 = vst [vmem:[%s4876_s26 + $0xec] sm:$0xff] %v271_v30   ;;  %276 = vst [vmem:[%s4876_s26 + $0xf4] sm:$0xff] %v275_v31   ;;  %v283_v33 = vld [vmem:[%s4871_s25 + $0x1c8] sm:$0xff]   ;;  %v287_v34 = vld [vmem:[%s4871_s25 + $0x1d0] sm:$0xff]  }
  0x23   : > { %280 = vst [vmem:[%s4876_s26 + $0xfc] sm:$0xff] %v279_v32   ;;  %v291_v35 = vld [vmem:[%s4871_s25 + $0x1d8] sm:$0xff]   ;;  %284 = vst [vmem:[%s4876_s26 + $0x104] sm:$0xff] %v283_v33   ;;  %v295_v36 = vld [vmem:[%s4871_s25 + $0x1e0] sm:$0xff]  }
  0x24   : > { %288 = vst [vmem:[%s4876_s26 + $0x10c] sm:$0xff] %v287_v34   ;;  %292 = vst [vmem:[%s4876_s26 + $0x114] sm:$0xff] %v291_v35   ;;  %v299_v37 = vld [vmem:[%s4871_s25 + $0x1e8] sm:$0xff]   ;;  %v303_v38 = vld [vmem:[%s4871_s25 + $0x1f0] sm:$0xff]  }
  0x25   : > { %296 = vst [vmem:[%s4876_s26 + $0x11c] sm:$0xff] %v295_v36   ;;  %300 = vst [vmem:[%s4876_s26 + $0x124] sm:$0xff] %v299_v37   ;;  %v307_v39 = vld [vmem:[%s4871_s25 + $0x1f8] sm:$0xff]   ;;  %v311_v40 = vld [vmem:[%s4871_s25 + $0x200] sm:$0xff]  }
  0x26   : > { %304 = vst [vmem:[%s4876_s26 + $0x12c] sm:$0xff] %v303_v38   ;;  %v315_v41 = vld [vmem:[%s4871_s25 + $0x208] sm:$0xff]   ;;  %308 = vst [vmem:[%s4876_s26 + $0x134] sm:$0xff] %v307_v39   ;;  %v319_v42 = vld [vmem:[%s4871_s25 + $0x210] sm:$0xff]  }
  0x27   : > { %312 = vst [vmem:[%s4876_s26 + $0x13c] sm:$0xff] %v311_v40   ;;  %316 = vst [vmem:[%s4876_s26 + $0x144] sm:$0xff] %v315_v41   ;;  %v323_v43 = vld [vmem:[%s4871_s25 + $0x218] sm:$0xff]   ;;  %v327_v44 = vld [vmem:[%s4871_s25 + $0x220] sm:$0xff]  }
  0x28   : > { %320 = vst [vmem:[%s4876_s26 + $0x14c] sm:$0xff] %v319_v42   ;;  %324 = vst [vmem:[%s4876_s26 + $0x154] sm:$0xff] %v323_v43   ;;  %v331_v45 = vld [vmem:[%s4871_s25 + $0x228] sm:$0xff]   ;;  %v335_v46 = vld [vmem:[%s4871_s25 + $0x230] sm:$0xff]  }
  0x29   : > { %328 = vst [vmem:[%s4876_s26 + $0x15c] sm:$0xff] %v327_v44   ;;  %v339_v47 = vld [vmem:[%s4871_s25 + $0x238] sm:$0xff]   ;;  %332 = vst [vmem:[%s4876_s26 + $0x164] sm:$0xff] %v331_v45   ;;  %v343_v48 = vld [vmem:[%s4871_s25 + $0x240] sm:$0xff]  }
  0x2a   : > { %336 = vst [vmem:[%s4876_s26 + $0x16c] sm:$0xff] %v335_v46   ;;  %340 = vst [vmem:[%s4876_s26 + $0x174] sm:$0xff] %v339_v47   ;;  %v347_v49 = vld [vmem:[%s4871_s25 + $0x248] sm:$0xf]  ;;  %v349_v50 = vld [vmem:[%s4871_s25 + $0x310] sm:$0xff]  }
  0x2b   : > { %344 = vst [vmem:[%s4876_s26 + $0x17c] sm:$0xff] %v343_v48   ;;  %348 = vst [vmem:[%s4876_s26 + $0x184] sm:$0xf] %v347_v49  ;;  %v353_v51 = vld [vmem:[%s4871_s25 + $0x318] sm:$0xff]   ;;  %v357_v52 = vld [vmem:[%s4871_s25 + $0x320] sm:$0xff]  }
  0x2c   : > { %350 = vst [vmem:[%s4876_s26 + $0x188] sm:$0xff] %v349_v50   ;;  %v361_v53 = vld [vmem:[%s4871_s25 + $0x328] sm:$0xff]   ;;  %354 = vst [vmem:[%s4876_s26 + $0x190] sm:$0xff] %v353_v51   ;;  %v365_v54 = vld [vmem:[%s4871_s25 + $0x330] sm:$0xff]  }
  0x2d   : > { %358 = vst [vmem:[%s4876_s26 + $0x198] sm:$0xff] %v357_v52   ;;  %362 = vst [vmem:[%s4876_s26 + $0x1a0] sm:$0xff] %v361_v53   ;;  %v369_v55 = vld [vmem:[%s4871_s25 + $0x338] sm:$0xff]   ;;  %v373_v56 = vld [vmem:[%s4871_s25 + $0x340] sm:$0xff]  }
  0x2e   : > { %366 = vst [vmem:[%s4876_s26 + $0x1a8] sm:$0xff] %v365_v54   ;;  %370 = vst [vmem:[%s4876_s26 + $0x1b0] sm:$0xff] %v369_v55   ;;  %v377_v57 = vld [vmem:[%s4871_s25 + $0x348] sm:$0xff]   ;;  %v381_v58 = vld [vmem:[%s4871_s25 + $0x350] sm:$0xff]  }
  0x2f   : > { %374 = vst [vmem:[%s4876_s26 + $0x1b8] sm:$0xff] %v373_v56   ;;  %v385_v59 = vld [vmem:[%s4871_s25 + $0x358] sm:$0xff]   ;;  %378 = vst [vmem:[%s4876_s26 + $0x1c0] sm:$0xff] %v377_v57   ;;  %v389_v60 = vld [vmem:[%s4871_s25 + $0x360] sm:$0xff]  }
  0x30   : > { %382 = vst [vmem:[%s4876_s26 + $0x1c8] sm:$0xff] %v381_v58   ;;  %386 = vst [vmem:[%s4876_s26 + $0x1d0] sm:$0xff] %v385_v59   ;;  %v393_v61 = vld [vmem:[%s4871_s25 + $0x368] sm:$0xff]   ;;  %v397_v62 = vld [vmem:[%s4871_s25 + $0x370] sm:$0xff]  }
  0x31   : > { %390 = vst [vmem:[%s4876_s26 + $0x1d8] sm:$0xff] %v389_v60   ;;  %394 = vst [vmem:[%s4876_s26 + $0x1e0] sm:$0xff] %v393_v61   ;;  %v401_v63 = vld [vmem:[%s4871_s25 + $0x378] sm:$0xff]   ;;  %v405_v0 = vld [vmem:[%s4871_s25 + $0x380] sm:$0xff]  }
  0x32   : > { %398 = vst [vmem:[%s4876_s26 + $0x1e8] sm:$0xff] %v397_v62   ;;  %v409_v1 = vld [vmem:[%s4871_s25 + $0x388] sm:$0xff]   ;;  %402 = vst [vmem:[%s4876_s26 + $0x1f0] sm:$0xff] %v401_v63   ;;  %v413_v2 = vld [vmem:[%s4871_s25 + $0x390] sm:$0xff]  }
  0x33   : > { %406 = vst [vmem:[%s4876_s26 + $0x1f8] sm:$0xff] %v405_v0   ;;  %410 = vst [vmem:[%s4876_s26 + $0x200] sm:$0xff] %v409_v1   ;;  %v417_v3 = vld [vmem:[%s4871_s25 + $0x398] sm:$0xff]   ;;  %v421_v4 = vld [vmem:[%s4871_s25 + $0x3a0] sm:$0xff]  }
  0x34   : > { %414 = vst [vmem:[%s4876_s26 + $0x208] sm:$0xff] %v413_v2   ;;  %418 = vst [vmem:[%s4876_s26 + $0x210] sm:$0xff] %v417_v3   ;;  %v425_v5 = vld [vmem:[%s4871_s25 + $0x3a8] sm:$0xff]   ;;  %v429_v6 = vld [vmem:[%s4871_s25 + $0x3b0] sm:$0xff]  }
  0x35   : > { %422 = vst [vmem:[%s4876_s26 + $0x218] sm:$0xff] %v421_v4   ;;  %v433_v7 = vld [vmem:[%s4871_s25 + $0x3b8] sm:$0xff]   ;;  %426 = vst [vmem:[%s4876_s26 + $0x220] sm:$0xff] %v425_v5   ;;  %v437_v8 = vld [vmem:[%s4871_s25 + $0x3c0] sm:$0xff]  }
  0x36   : > { %430 = vst [vmem:[%s4876_s26 + $0x228] sm:$0xff] %v429_v6   ;;  %434 = vst [vmem:[%s4876_s26 + $0x230] sm:$0xff] %v433_v7   ;;  %v441_v9 = vld [vmem:[%s4871_s25 + $0x3c8] sm:$0xff]   ;;  %v445_v10 = vld [vmem:[%s4871_s25 + $0x3d0] sm:$0xf] }
  0x37   : > { %438 = vst [vmem:[%s4876_s26 + $0x238] sm:$0xff] %v437_v8   ;;  %442 = vst [vmem:[%s4876_s26 + $0x240] sm:$0xff] %v441_v9   ;;  %v447_v11 = vld [vmem:[%s4871_s25 + $0x498] sm:$0xff]   ;;  %v451_v12 = vld [vmem:[%s4871_s25 + $0x4a0] sm:$0xff]  }
  0x38   : > { %446 = vst [vmem:[%s4876_s26 + $0x248] sm:$0xf] %v445_v10  ;;  %v455_v13 = vld [vmem:[%s4871_s25 + $0x4a8] sm:$0xff]   ;;  %448 = vst [vmem:[%s4876_s26 + $0x24c] sm:$0xff] %v447_v11   ;;  %v459_v14 = vld [vmem:[%s4871_s25 + $0x4b0] sm:$0xff]  }
  0x39   : > { %452 = vst [vmem:[%s4876_s26 + $0x254] sm:$0xff] %v451_v12   ;;  %456 = vst [vmem:[%s4876_s26 + $0x25c] sm:$0xff] %v455_v13   ;;  %v463_v15 = vld [vmem:[%s4871_s25 + $0x4b8] sm:$0xff]   ;;  %v467_v16 = vld [vmem:[%s4871_s25 + $0x4c0] sm:$0xff]  }
  0x3a   : > { %460 = vst [vmem:[%s4876_s26 + $0x264] sm:$0xff] %v459_v14   ;;  %464 = vst [vmem:[%s4876_s26 + $0x26c] sm:$0xff] %v463_v15   ;;  %v471_v17 = vld [vmem:[%s4871_s25 + $0x4c8] sm:$0xff]   ;;  %v475_v18 = vld [vmem:[%s4871_s25 + $0x4d0] sm:$0xff]  }
  0x3b   : > { %468 = vst [vmem:[%s4876_s26 + $0x274] sm:$0xff] %v467_v16   ;;  %v479_v19 = vld [vmem:[%s4871_s25 + $0x4d8] sm:$0xff]   ;;  %472 = vst [vmem:[%s4876_s26 + $0x27c] sm:$0xff] %v471_v17   ;;  %v483_v20 = vld [vmem:[%s4871_s25 + $0x4e0] sm:$0xff]  }
  0x3c   : > { %476 = vst [vmem:[%s4876_s26 + $0x284] sm:$0xff] %v475_v18   ;;  %480 = vst [vmem:[%s4876_s26 + $0x28c] sm:$0xff] %v479_v19   ;;  %v487_v21 = vld [vmem:[%s4871_s25 + $0x4e8] sm:$0xff]   ;;  %v491_v22 = vld [vmem:[%s4871_s25 + $0x4f0] sm:$0xff]  }
  0x3d   : > { %484 = vst [vmem:[%s4876_s26 + $0x294] sm:$0xff] %v483_v20   ;;  %488 = vst [vmem:[%s4876_s26 + $0x29c] sm:$0xff] %v487_v21   ;;  %v495_v23 = vld [vmem:[%s4871_s25 + $0x4f8] sm:$0xff]   ;;  %v499_v24 = vld [vmem:[%s4871_s25 + $0x500] sm:$0xff]  }
  0x3e   : > { %492 = vst [vmem:[%s4876_s26 + $0x2a4] sm:$0xff] %v491_v22   ;;  %v503_v25 = vld [vmem:[%s4871_s25 + $0x508] sm:$0xff]   ;;  %496 = vst [vmem:[%s4876_s26 + $0x2ac] sm:$0xff] %v495_v23   ;;  %v507_v26 = vld [vmem:[%s4871_s25 + $0x510] sm:$0xff]  }
  0x3f   : > { %500 = vst [vmem:[%s4876_s26 + $0x2b4] sm:$0xff] %v499_v24   ;;  %504 = vst [vmem:[%s4876_s26 + $0x2bc] sm:$0xff] %v503_v25   ;;  %v511_v27 = vld [vmem:[%s4871_s25 + $0x518] sm:$0xff]   ;;  %v515_v28 = vld [vmem:[%s4871_s25 + $0x520] sm:$0xff]  }
  0x40   : > { %508 = vst [vmem:[%s4876_s26 + $0x2c4] sm:$0xff] %v507_v26   ;;  %512 = vst [vmem:[%s4876_s26 + $0x2cc] sm:$0xff] %v511_v27   ;;  %v519_v29 = vld [vmem:[%s4871_s25 + $0x528] sm:$0xff]   ;;  %v523_v30 = vld [vmem:[%s4871_s25 + $0x530] sm:$0xff]  }
  0x41   : > { %516 = vst [vmem:[%s4876_s26 + $0x2d4] sm:$0xff] %v515_v28   ;;  %v527_v31 = vld [vmem:[%s4871_s25 + $0x538] sm:$0xff]   ;;  %520 = vst [vmem:[%s4876_s26 + $0x2dc] sm:$0xff] %v519_v29   ;;  %v531_v32 = vld [vmem:[%s4871_s25 + $0x540] sm:$0xff]  }
  0x42   : > { %524 = vst [vmem:[%s4876_s26 + $0x2e4] sm:$0xff] %v523_v30   ;;  %528 = vst [vmem:[%s4876_s26 + $0x2ec] sm:$0xff] %v527_v31   ;;  %v535_v33 = vld [vmem:[%s4871_s25 + $0x548] sm:$0xff]   ;;  %v539_v34 = vld [vmem:[%s4871_s25 + $0x550] sm:$0xff]  }
  0x43   : > { %532 = vst [vmem:[%s4876_s26 + $0x2f4] sm:$0xff] %v531_v32   ;;  %536 = vst [vmem:[%s4876_s26 + $0x2fc] sm:$0xff] %v535_v33   ;;  %v543_v35 = vld [vmem:[%s4871_s25 + $0x558] sm:$0xf] }
  0x44   : > { %540 = vst [vmem:[%s4876_s26 + $0x304] sm:$0xff] %v539_v34   ;;  %544 = vst [vmem:[%s4876_s26 + $0x30c] sm:$0xf] %v543_v35 }
  0x45 PF: > { %p3513_p5 = scmp.ge.s32.totalorder %s4813_s14, 1  ;;  %p958_p6 = scmp.lt.s32.totalorder %s4813_s14, 3 }
  0x47   : > { %p959_p7 = pnand %p3513_p5, %p958_p6 }
  0x49   : > { %962 = sbr.rel (%p959_p7) target bundleno = 712 (0x2c8), region = 69 }
  0x50   : > { %v4687_v36 = vld [vmem:[%s6046_s1] sm:$0xff]   ;;  %v6049_v37 = vmov 0.0   ;;  %v4688_v38 = vld [vmem:[%s6046_s1 + $0x8] sm:$0xff]   ;;  %s965_s4 = sand.u32 1, %s4805_s12   ;;  %vm4816_vm0 = vmmov 0   ;;  %v4689_v39 = vld [vmem:[%s6046_s1 + $0x10] sm:$0xff]  }
  0x51   : > { %4227 = vmatprep.subr.bf16.mxu0 %v6049_v37  ;;  %4335 = vmatprep.subr.bf16.mxu1 %v6049_v37  ;;  %s4660_s5 = smul.u32 784, %s965_s4  ;;  %v4690_v40 = vld [vmem:[%s6046_s1 + $0x18] sm:$0xff]   ;;  %vm1200_vm1 = vcmask 523264  }
  0x52   : > { %4228 = vmatpush3.bf16.msra.mxu0 %v4687_v36  ;;  %4336 = vmatpush3.bf16.msra.mxu1 %v4687_v36  ;;  %s989_s11 = smul.u32 49, %s3508_s15 }
  0x53   : > { %4229 = vmatprep.subr.bf16.mxu0 %v6049_v37  ;;  %4337 = vmatprep.subr.bf16.mxu1 %v6049_v37  ;;  %s5095_s8 = scalar_lea.vmem [#allocation2], %s4660_s5 }
  0x54   : > { %4235 = vmatprep.mubr.msk.bf16.mxu0 %vm4816_vm0, %v6049_v37  ;;  %4343 = vmatprep.mubr.msk.bf16.mxu1 %vm4816_vm0, %v6049_v37  ;;  %v4691_v41 = vld [vmem:[%s5095_s8] sm:$0xff]   ;;  %v4693_v43 = vld [vmem:[%s5095_s8 + $0x8] sm:$0xff]   ;;  %v4695_v45 = vld [vmem:[%s5095_s8 + $0x10] sm:$0xff]   ;;  %p990_p8 = scmp.lt.s32.totalorder %s989_s11, 97 }
  0x55   : > { %v4692_v42 = vld [vmem:[%s5095_s8 + $0xc4] sm:$0xff]   ;;  %v4694_v44 = vld [vmem:[%s5095_s8 + $0xcc] sm:$0xff]   ;;  %v4696_v46 = vld [vmem:[%s5095_s8 + $0xd4] sm:$0xff]  }
  0x56   : > { %4230 = vmatpush3.bf16.msra.mxu0 %v4688_v38  ;;  %4338 = vmatpush3.bf16.msra.mxu1 %v4688_v38  ;;  %v4697_v47 = vld [vmem:[%s5095_s8 + $0x18] sm:$0xff]   ;;  %v4699_v49 = vld [vmem:[%s5095_s8 + $0x20] sm:$0xff]   ;;  %v4701_v51 = vld [vmem:[%s5095_s8 + $0x28] sm:$0xff]   ;;  %s6261_s11 = smov (!%p990_p8, %s989_s11), 97 }
  0x57   : > { %4231 = vmatprep.subr.bf16.mxu0 %v6049_v37  ;;  %4339 = vmatprep.subr.bf16.mxu1 %v6049_v37  ;;  %v4698_v48 = vld [vmem:[%s5095_s8 + $0xdc] sm:$0xff]   ;;  %v4700_v50 = vld [vmem:[%s5095_s8 + $0xe4] sm:$0xff]   ;;  %v4702_v52 = vld [vmem:[%s5095_s8 + $0xec] sm:$0xff]   ;;  %s3514_s14 = sshll.u32 %s6261_s11, 2 }
  0x58   : > { %v4703_v53 = vld [vmem:[%s5095_s8 + $0x30] sm:$0xff]   ;;  %v4705_v55 = vld [vmem:[%s5095_s8 + $0x38] sm:$0xff]   ;;  %v4707_v57 = vld [vmem:[%s5095_s8 + $0x40] sm:$0xff]   ;;  %s5820_s20 = scalar_lea.vmem %s6048_s3, %s3514_s14 }
  0x59   : > { %v4704_v54 = vld [vmem:[%s5095_s8 + $0xf4] sm:$0xff]   ;;  %v4706_v56 = vld [vmem:[%s5095_s8 + $0xfc] sm:$0xff]   ;;  %v4708_v58 = vld [vmem:[%s5095_s8 + $0x104] sm:$0xff]  }
  0x5a   : > { %4232 = vmatpush3.bf16.msra.mxu0 %v4689_v39  ;;  %4340 = vmatpush3.bf16.msra.mxu1 %v4689_v39  ;;  %v4709_v59 = vld [vmem:[%s5095_s8 + $0x48] sm:$0xff]   ;;  %v4711_v61 = vld [vmem:[%s5095_s8 + $0x50] sm:$0xff]   ;;  %v4713_v63 = vld [vmem:[%s5095_s8 + $0x58] sm:$0xff]  }
  0x5b   : > { %4233 = vmatprep.subr.bf16.mxu0 %v6049_v37  ;;  %4341 = vmatprep.subr.bf16.mxu1 %v6049_v37  ;;  %v4710_v60 = vld [vmem:[%s5095_s8 + $0x10c] sm:$0xff]   ;;  %v4712_v62 = vld [vmem:[%s5095_s8 + $0x114] sm:$0xff]   ;;  %v4714_v0 = vld [vmem:[%s5095_s8 + $0x11c] sm:$0xff]  }
  0x5c   : > { %v4715_v1 = vld [vmem:[%s5095_s8 + $0x60] sm:$0xff]   ;;  %v4717_v3 = vld [vmem:[%s5095_s8 + $0x68] sm:$0xff]   ;;  %v4719_v5 = vld [vmem:[%s5095_s8 + $0x70] sm:$0xff]  }
  0x5d   : > { %v4716_v2 = vld [vmem:[%s5095_s8 + $0x124] sm:$0xff]   ;;  %v4718_v4 = vld [vmem:[%s5095_s8 + $0x12c] sm:$0xff]   ;;  %v4720_v6 = vld [vmem:[%s5095_s8 + $0x134] sm:$0xff]  }
  0x5e   : > { %4234 = vmatpush3.bf16.msra.mxu0 %v4690_v40  ;;  %4342 = vmatpush3.bf16.msra.mxu1 %v4690_v40  ;;  %v4721_v7 = vld [vmem:[%s5095_s8 + $0x78] sm:$0xff]   ;;  %v4723_v9 = vld [vmem:[%s5095_s8 + $0x80] sm:$0xff]   ;;  %v4725_v11 = vld [vmem:[%s5095_s8 + $0x88] sm:$0xff]  }
  0x5f   : > { %4443 = vmatprep.subr.bf16.mxu0 %v6049_v37  ;;  %4551 = vmatprep.subr.bf16.mxu1 %v6049_v37  ;;  %v4722_v8 = vld [vmem:[%s5095_s8 + $0x13c] sm:$0xff]   ;;  %v4724_v10 = vld [vmem:[%s5095_s8 + $0x144] sm:$0xff]   ;;  %v4726_v12 = vld [vmem:[%s5095_s8 + $0x14c] sm:$0xff]  }
  0x60   : > { %v4727_v13 = vld [vmem:[%s5095_s8 + $0x90] sm:$0xff]   ;;  %v4729_v15 = vld [vmem:[%s5095_s8 + $0x98] sm:$0xff]   ;;  %v4731_v17 = vld [vmem:[%s5095_s8 + $0xa0] sm:$0xff]  }
  0x61   : > { %4236 = vmatmul.mubr.msk.bf16.vlgmr.msra.gmra.mrb[0].mxu0 %vm1200_vm1, %v4691_v41  ;;  %4344 = vmatmul.mubr.msk.bf16.vlgmr.msra.gmra.mrb[0].mxu1 %vm1200_vm1, %v4692_v42  ;;  %v4728_v14 = vld [vmem:[%s5095_s8 + $0x154] sm:$0xff]   ;;  %v4730_v16 = vld [vmem:[%s5095_s8 + $0x15c] sm:$0xff]   ;;  %v4732_v18 = vld [vmem:[%s5095_s8 + $0x164] sm:$0xff]  }
  0x62   : > { %4444 = vmatpush3.bf16.msra.mxu0 %v4687_v36  ;;  %4552 = vmatpush3.bf16.msra.mxu1 %v4687_v36  ;;  %v4733_v19 = vld [vmem:[%s5095_s8 + $0xa8] sm:$0xff]   ;;  %v4735_v21 = vld [vmem:[%s5095_s8 + $0xb0] sm:$0xff]   ;;  %v4737_v23 = vld [vmem:[%s5095_s8 + $0xb8] sm:$0xff]  }
  0x63   : > { %4239 = vmatprep.mubr.msk.bf16.mxu0 %vm4816_vm0, %v6049_v37  ;;  %4347 = vmatprep.mubr.msk.bf16.mxu1 %vm4816_vm0, %v6049_v37  ;;  %v4734_v20 = vld [vmem:[%s5095_s8 + $0x16c] sm:$0xff]   ;;  %v4736_v22 = vld [vmem:[%s5095_s8 + $0x174] sm:$0xff]   ;;  %v4738_v24 = vld [vmem:[%s5095_s8 + $0x17c] sm:$0xff]  }
  0x64   : > { %4445 = vmatprep.subr.bf16.mxu0 %v6049_v37  ;;  %4553 = vmatprep.subr.bf16.mxu1 %v6049_v37  ;;  %v4739_v25 = vld [vmem:[%s5095_s8 + $0xc0] ss:$0 sps:$4 sm:$0xff]   ;;  %v4740_v26 = vld [vmem:[%s5095_s8 + $0x184] ss:$0 sps:$4 sm:$0xff]   ;;  %v4741_v27 = vld [vmem:[%s5095_s8 + $0x188] sm:$0xff]  }
  0x65   : > { %v4742_v28 = vld [vmem:[%s5095_s8 + $0x24c] sm:$0xff]   ;;  %v4744_v30 = vld [vmem:[%s5095_s8 + $0x254] sm:$0xff]  }
  0x66   : > { %4446 = vmatpush3.bf16.msra.mxu0 %v4688_v38  ;;  %4554 = vmatpush3.bf16.msra.mxu1 %v4688_v38  ;;  %v4743_v29 = vld [vmem:[%s5095_s8 + $0x190] sm:$0xff]   ;;  %v4745_v36 = vld [vmem:[%s5095_s8 + $0x198] sm:$0xff]  }
  0x67   : > { %4447 = vmatprep.subr.bf16.mxu0 %v6049_v37  ;;  %4555 = vmatprep.subr.bf16.mxu1 %v6049_v37  ;;  %v4746_v38 = vld [vmem:[%s5095_s8 + $0x25c] sm:$0xff]  }
  0x69   : > { %4240 = vmatmul.mubr.msk.bf16.gmra.mrb[4].mxu0 %vm1200_vm1, %v4693_v43  ;;  %4348 = vmatmul.mubr.msk.bf16.gmra.mrb[4].mxu1 %vm1200_vm1, %v4694_v44 }
  0x6a   : > { %4243 = vmatprep.mubr.msk.bf16.mxu0 %vm4816_vm0, %v6049_v37  ;;  %4351 = vmatprep.mubr.msk.bf16.mxu1 %vm4816_vm0, %v6049_v37 }
  0x6b   : > { %4448 = vmatpush3.bf16.msra.mxu0 %v4689_v39  ;;  %4556 = vmatpush3.bf16.msra.mxu1 %v4689_v39 }
  0x6c   : > { %4449 = vmatprep.subr.bf16.mxu0 %v6049_v37  ;;  %4557 = vmatprep.subr.bf16.mxu1 %v6049_v37 }
  0x6f   : > { %4450 = vmatpush3.bf16.msra.mxu0 %v4690_v40  ;;  %4558 = vmatpush3.bf16.msra.mxu1 %v4690_v40 }
  0x71   : > { %4244 = vmatmul.mubr.msk.bf16.gmra.mrb[8].mxu0 %vm1200_vm1, %v4695_v45  ;;  %4352 = vmatmul.mubr.msk.bf16.gmra.mrb[8].mxu1 %vm1200_vm1, %v4696_v46 }
  0x72   : > { %4247 = vmatprep.mubr.msk.bf16.mxu0 %vm4816_vm0, %v6049_v37  ;;  %4355 = vmatprep.mubr.msk.bf16.mxu1 %vm4816_vm0, %v6049_v37 }
  0x79   : > { %4248 = vmatmul.mubr.msk.bf16.gmra.mrb[12].mxu0 %vm1200_vm1, %v4697_v47  ;;  %4356 = vmatmul.mubr.msk.bf16.gmra.mrb[12].mxu1 %vm1200_vm1, %v4698_v48 }
  0x7a   : > { %4251 = vmatprep.mubr.msk.bf16.mxu0 %vm4816_vm0, %v6049_v37  ;;  %4359 = vmatprep.mubr.msk.bf16.mxu1 %vm4816_vm0, %v6049_v37 }
  0x81   : > { %4252 = vmatmul.mubr.msk.bf16.gmra.mrb[16].mxu0 %vm1200_vm1, %v4699_v49  ;;  %4360 = vmatmul.mubr.msk.bf16.gmra.mrb[16].mxu1 %vm1200_vm1, %v4700_v50  ;;  %v4747_v49 = vld [vmem:[%s5095_s8 + $0x1a0] sm:$0xff]  }
  0x82   : > { %4255 = vmatprep.mubr.msk.bf16.mxu0 %vm4816_vm0, %v6049_v37  ;;  %4363 = vmatprep.mubr.msk.bf16.mxu1 %vm4816_vm0, %v6049_v37  ;;  %v4748_v50 = vld [vmem:[%s5095_s8 + $0x264] sm:$0xff]  }
  0x89   : > { %4256 = vmatmul.mubr.msk.bf16.gmra.mrb[20].mxu0 %vm1200_vm1, %v4701_v51  ;;  %4364 = vmatmul.mubr.msk.bf16.gmra.mrb[20].mxu1 %vm1200_vm1, %v4702_v52 }
  0x8a   : > { %4259 = vmatprep.mubr.msk.bf16.mxu0 %vm4816_vm0, %v6049_v37  ;;  %4367 = vmatprep.mubr.msk.bf16.mxu1 %vm4816_vm0, %v6049_v37 }
  0x91   : > { %4260 = vmatmul.mubr.msk.bf16.gmra.mrb[24].mxu0 %vm1200_vm1, %v4703_v53  ;;  %4368 = vmatmul.mubr.msk.bf16.gmra.mrb[24].mxu1 %vm1200_vm1, %v4704_v54 }
  0x92   : > { %4263 = vmatprep.mubr.msk.bf16.mxu0 %vm4816_vm0, %v6049_v37  ;;  %4371 = vmatprep.mubr.msk.bf16.mxu1 %vm4816_vm0, %v6049_v37 }
  0x99   : > { %4264 = vmatmul.mubr.msk.bf16.gmra.mrb[28].mxu0 %vm1200_vm1, %v4705_v55  ;;  %4372 = vmatmul.mubr.msk.bf16.gmra.mrb[28].mxu1 %vm1200_vm1, %v4706_v56 }
  0x9a   : > { %4267 = vmatprep.mubr.msk.bf16.mxu0 %vm4816_vm0, %v6049_v37  ;;  %4375 = vmatprep.mubr.msk.bf16.mxu1 %vm4816_vm0, %v6049_v37 }
  0xa1   : > { %4268 = vmatmul.mubr.msk.bf16.gmra.mrb[32].mxu0 %vm1200_vm1, %v4707_v57  ;;  %4376 = vmatmul.mubr.msk.bf16.gmra.mrb[32].mxu1 %vm1200_vm1, %v4708_v58 }
  0xa2   : > { %4271 = vmatprep.mubr.msk.bf16.mxu0 %vm4816_vm0, %v6049_v37  ;;  %4379 = vmatprep.mubr.msk.bf16.mxu1 %vm4816_vm0, %v6049_v37 }
  0xa9   : > { %4272 = vmatmul.mubr.msk.bf16.gmra.mrb[36].mxu0 %vm1200_vm1, %v4709_v59  ;;  %4380 = vmatmul.mubr.msk.bf16.gmra.mrb[36].mxu1 %vm1200_vm1, %v4710_v60 }
  0xaa   : > { %4275 = vmatprep.mubr.msk.bf16.mxu0 %vm4816_vm0, %v6049_v37  ;;  %4383 = vmatprep.mubr.msk.bf16.mxu1 %vm4816_vm0, %v6049_v37 }
  0xb1   : > { %4276 = vmatmul.mubr.msk.bf16.gmra.mrb[40].mxu0 %vm1200_vm1, %v4711_v61  ;;  %4384 = vmatmul.mubr.msk.bf16.gmra.mrb[40].mxu1 %vm1200_vm1, %v4712_v62  ;;  %v4749_v61 = vld [vmem:[%s5095_s8 + $0x1a8] sm:$0xff]  }
  0xb2   : > { %4279 = vmatprep.mubr.msk.bf16.mxu0 %vm4816_vm0, %v6049_v37  ;;  %4387 = vmatprep.mubr.msk.bf16.mxu1 %vm4816_vm0, %v6049_v37  ;;  %v4750_v62 = vld [vmem:[%s5095_s8 + $0x26c] sm:$0xff]  }
  0xb9   : > { %4280 = vmatmul.mubr.msk.bf16.gmra.mrb[44].mxu0 %vm1200_vm1, %v4713_v63  ;;  %4388 = vmatmul.mubr.msk.bf16.gmra.mrb[44].mxu1 %vm1200_vm1, %v4714_v0 }
  0xba   : > { %4283 = vmatprep.mubr.msk.bf16.mxu0 %vm4816_vm0, %v6049_v37  ;;  %4391 = vmatprep.mubr.msk.bf16.mxu1 %vm4816_vm0, %v6049_v37 }
  0xc1   : > { %4284 = vmatmul.mubr.msk.bf16.gmra.mrb[48].mxu0 %vm1200_vm1, %v4715_v1  ;;  %4392 = vmatmul.mubr.msk.bf16.gmra.mrb[48].mxu1 %vm1200_vm1, %v4716_v2 }
  0xc2   : > { %4287 = vmatprep.mubr.msk.bf16.mxu0 %vm4816_vm0, %v6049_v37  ;;  %4395 = vmatprep.mubr.msk.bf16.mxu1 %vm4816_vm0, %v6049_v37 }
  0xc9   : > { %4288 = vmatmul.mubr.msk.bf16.gmra.mrb[52].mxu0 %vm1200_vm1, %v4717_v3  ;;  %4396 = vmatmul.mubr.msk.bf16.gmra.mrb[52].mxu1 %vm1200_vm1, %v4718_v4 }
  0xca   : > { %4291 = vmatprep.mubr.msk.bf16.mxu0 %vm4816_vm0, %v6049_v37  ;;  %4399 = vmatprep.mubr.msk.bf16.mxu1 %vm4816_vm0, %v6049_v37 }
  0xd1   : > { %4292 = vmatmul.mubr.msk.bf16.gmra.mrb[56].mxu0 %vm1200_vm1, %v4719_v5  ;;  %4400 = vmatmul.mubr.msk.bf16.gmra.mrb[56].mxu1 %vm1200_vm1, %v4720_v6 }
  0xd2   : > { %4295 = vmatprep.mubr.msk.bf16.mxu0 %vm4816_vm0, %v6049_v37  ;;  %4403 = vmatprep.mubr.msk.bf16.mxu1 %vm4816_vm0, %v6049_v37 }
  0xd9   : > { %4296 = vmatmul.mubr.msk.bf16.gmra.mrb[60].mxu0 %vm1200_vm1, %v4721_v7  ;;  %4404 = vmatmul.mubr.msk.bf16.gmra.mrb[60].mxu1 %vm1200_vm1, %v4722_v8 }
  0xda   : > { %4299 = vmatprep.mubr.msk.bf16.mxu0 %vm4816_vm0, %v6049_v37  ;;  %4407 = vmatprep.mubr.msk.bf16.mxu1 %vm4816_vm0, %v6049_v37 }
  0xe1   : > { %4300 = vmatmul.mubr.msk.bf16.gmra.mrb[64].mxu0 %vm1200_vm1, %v4723_v9  ;;  %4408 = vmatmul.mubr.msk.bf16.gmra.mrb[64].mxu1 %vm1200_vm1, %v4724_v10  ;;  %v4751_v9 = vld [vmem:[%s5095_s8 + $0x1b0] sm:$0xff]  }
  0xe2   : > { %4303 = vmatprep.mubr.msk.bf16.mxu0 %vm4816_vm0, %v6049_v37  ;;  %4411 = vmatprep.mubr.msk.bf16.mxu1 %vm4816_vm0, %v6049_v37  ;;  %v4752_v10 = vld [vmem:[%s5095_s8 + $0x274] sm:$0xff]  }
  0xe9   : > { %4304 = vmatmul.mubr.msk.bf16.gmra.mrb[68].mxu0 %vm1200_vm1, %v4725_v11  ;;  %4412 = vmatmul.mubr.msk.bf16.gmra.mrb[68].mxu1 %vm1200_vm1, %v4726_v12 }
  0xea   : > { %4307 = vmatprep.mubr.msk.bf16.mxu0 %vm4816_vm0, %v6049_v37  ;;  %4415 = vmatprep.mubr.msk.bf16.mxu1 %vm4816_vm0, %v6049_v37 }
  0xf1   : > { %4308 = vmatmul.mubr.msk.bf16.gmra.mrb[72].mxu0 %vm1200_vm1, %v4727_v13  ;;  %4416 = vmatmul.mubr.msk.bf16.gmra.mrb[72].mxu1 %vm1200_vm1, %v4728_v14 }
  0xf2   : > { %4311 = vmatprep.mubr.msk.bf16.mxu0 %vm4816_vm0, %v6049_v37  ;;  %4419 = vmatprep.mubr.msk.bf16.mxu1 %vm4816_vm0, %v6049_v37 }
  0xf9   : > { %4312 = vmatmul.mubr.msk.bf16.gmra.mrb[76].mxu0 %vm1200_vm1, %v4729_v15  ;;  %4420 = vmatmul.mubr.msk.bf16.gmra.mrb[76].mxu1 %vm1200_vm1, %v4730_v16 }
  0xfa   : > { %4315 = vmatprep.mubr.msk.bf16.mxu0 %vm4816_vm0, %v6049_v37  ;;  %4423 = vmatprep.mubr.msk.bf16.mxu1 %vm4816_vm0, %v6049_v37 }
 0x101   : > { %4316 = vmatmul.mubr.msk.bf16.gmra.mrb[80].mxu0 %vm1200_vm1, %v4731_v17  ;;  %4424 = vmatmul.mubr.msk.bf16.gmra.mrb[80].mxu1 %vm1200_vm1, %v4732_v18 }
 0x102   : > { %4319 = vmatprep.mubr.msk.bf16.mxu0 %vm4816_vm0, %v6049_v37  ;;  %4427 = vmatprep.mubr.msk.bf16.mxu1 %vm4816_vm0, %v6049_v37 }
 0x109   : > { %4320 = vmatmul.mubr.msk.bf16.gmra.mrb[84].mxu0 %vm1200_vm1, %v4733_v19  ;;  %4428 = vmatmul.mubr.msk.bf16.gmra.mrb[84].mxu1 %vm1200_vm1, %v4734_v20 }
 0x10a   : > { %4323 = vmatprep.mubr.msk.bf16.mxu0 %vm4816_vm0, %v6049_v37  ;;  %4431 = vmatprep.mubr.msk.bf16.mxu1 %vm4816_vm0, %v6049_v37 }
 0x111   : > { %4324 = vmatmul.mubr.msk.bf16.gmra.mrb[88].mxu0 %vm1200_vm1, %v4735_v21  ;;  %4432 = vmatmul.mubr.msk.bf16.gmra.mrb[88].mxu1 %vm1200_vm1, %v4736_v22  ;;  %v4753_v21 = vld [vmem:[%s5095_s8 + $0x1b8] sm:$0xff]  }
 0x112   : > { %4327 = vmatprep.mubr.msk.bf16.mxu0 %vm4816_vm0, %v6049_v37  ;;  %4435 = vmatprep.mubr.msk.bf16.mxu1 %vm4816_vm0, %v6049_v37  ;;  %v4754_v22 = vld [vmem:[%s5095_s8 + $0x27c] sm:$0xff]  }
 0x119   : > { %4328 = vmatmul.mubr.msk.bf16.gmra.mrb[92].mxu0 %vm1200_vm1, %v4737_v23  ;;  %4436 = vmatmul.mubr.msk.bf16.gmra.mrb[92].mxu1 %vm1200_vm1, %v4738_v24 }
 0x11a   : > { %4331 = vmatprep.mubr.msk.bf16.mxu0 %vm4816_vm0, %v6049_v37  ;;  %4439 = vmatprep.mubr.msk.bf16.mxu1 %vm4816_vm0, %v6049_v37 }
 0x121   : > { %4332 = vmatmul.mubr.msk.bf16.gmra.mrb[96].mxu0 %vm1200_vm1, %v4739_v25  ;;  %4440 = vmatmul.mubr.msk.bf16.gmra.mrb[96].mxu1 %vm1200_vm1, %v4740_v26 }
 0x122   : > { %4451 = vmatprep.mubr.msk.bf16.mxu0 %vm4816_vm0, %v6049_v37  ;;  %4559 = vmatprep.mubr.msk.bf16.mxu1 %vm4816_vm0, %v6049_v37 }
 0x129   : > { %4452 = vmatmul.mubr.msk.bf16.vlgmr.msra.gmra.mrb[100].mxu0 %vm1200_vm1, %v4741_v27  ;;  %4560 = vmatmul.mubr.msk.bf16.vlgmr.msra.gmra.mrb[100].mxu1 %vm1200_vm1, %v4742_v28 }
 0x12a   : > { %4455 = vmatprep.mubr.msk.bf16.mxu0 %vm4816_vm0, %v6049_v37  ;;  %4563 = vmatprep.mubr.msk.bf16.mxu1 %vm4816_vm0, %v6049_v37 }
 0x131   : > { %4456 = vmatmul.mubr.msk.bf16.gmra.mrb[104].mxu0 %vm1200_vm1, %v4743_v29  ;;  %4564 = vmatmul.mubr.msk.bf16.gmra.mrb[104].mxu1 %vm1200_vm1, %v4744_v30 }
 0x132   : > { %4459 = vmatprep.mubr.msk.bf16.mxu0 %vm4816_vm0, %v6049_v37  ;;  %4567 = vmatprep.mubr.msk.bf16.mxu1 %vm4816_vm0, %v6049_v37 }
 0x134   : > { %v5328_v31 = vpop.f32.mrb[0].mxu0  ;;  %v5330_v32 = vpop.f32.mrb[0].mxu1 }
 0x135   : > { %v4237_v34 = vpop.f32.mrb[1].mxu0  ;;  %v4345_v35 = vpop.f32.mrb[1].mxu1 }
 0x136   : > { %v5336_v39 = vpop.f32.mrb[2].mxu0  ;;  %v5338_v40 = vpop.f32.mrb[2].mxu1 }
 0x137   : > { %v4238_v42 = vpop.f32.mrb[3].mxu0  ;;  %v4346_v43 = vpop.f32.mrb[3].mxu1 }
 0x139   : > { %4460 = vmatmul.mubr.msk.bf16.gmra.mrb[108].mxu0 %vm1200_vm1, %v4745_v36  ;;  %4568 = vmatmul.mubr.msk.bf16.gmra.mrb[108].mxu1 %vm1200_vm1, %v4746_v38  ;;  %v4755_v36 = vld [vmem:[%s5095_s8 + $0x1c0] sm:$0xff]  }
 0x13a   : > { %4463 = vmatprep.mubr.msk.bf16.mxu0 %vm4816_vm0, %v6049_v37  ;;  %4571 = vmatprep.mubr.msk.bf16.mxu1 %vm4816_vm0, %v6049_v37  ;;  %v4756_v38 = vld [vmem:[%s5095_s8 + $0x284] sm:$0xff]  }
 0x13c   : > { %v5348_v44 = vpop.f32.mrb[4].mxu0  ;;  %v5350_v45 = vpop.f32.mrb[4].mxu1 }
 0x13d   : > { %v4241_v47 = vpop.f32.mrb[5].mxu0  ;;  %v4349_v48 = vpop.f32.mrb[5].mxu1 }
 0x13e   : > { %v5356_v51 = vpop.f32.mrb[6].mxu0  ;;  %v5358_v52 = vpop.f32.mrb[6].mxu1 }
 0x13f   : > { %v4242_v54 = vpop.f32.mrb[7].mxu0  ;;  %v4350_v55 = vpop.f32.mrb[7].mxu1 }
 0x141   : > { %4464 = vmatmul.mubr.msk.bf16.gmra.mrb[112].mxu0 %vm1200_vm1, %v4747_v49  ;;  %4572 = vmatmul.mubr.msk.bf16.gmra.mrb[112].mxu1 %vm1200_vm1, %v4748_v50 }
 0x142   : > { %4467 = vmatprep.mubr.msk.bf16.mxu0 %vm4816_vm0, %v6049_v37  ;;  %4575 = vmatprep.mubr.msk.bf16.mxu1 %vm4816_vm0, %v6049_v37 }
 0x144   : > { %v5368_v56 = vpop.f32.mrb[8].mxu0  ;;  %v5370_v57 = vpop.f32.mrb[8].mxu1 }
 0x145   : > { %v4245_v59 = vpop.f32.mrb[9].mxu0  ;;  %v4353_v60 = vpop.f32.mrb[9].mxu1 }
 0x146   : > { %v5376_v63 = vpop.f32.mrb[10].mxu0  ;;  %v5378_v0 = vpop.f32.mrb[10].mxu1 }
 0x147   : > { %v4246_v2 = vpop.f32.mrb[11].mxu0  ;;  %v4354_v3 = vpop.f32.mrb[11].mxu1 }
 0x149   : > { %4468 = vmatmul.mubr.msk.bf16.gmra.mrb[116].mxu0 %vm1200_vm1, %v4749_v61  ;;  %4576 = vmatmul.mubr.msk.bf16.gmra.mrb[116].mxu1 %vm1200_vm1, %v4750_v62  ;;  %v4757_v61 = vld [vmem:[%s5095_s8 + $0x1c8] sm:$0xff]  }
 0x14a   : > { %4471 = vmatprep.mubr.msk.bf16.mxu0 %vm4816_vm0, %v6049_v37  ;;  %4579 = vmatprep.mubr.msk.bf16.mxu1 %vm4816_vm0, %v6049_v37  ;;  %v4758_v62 = vld [vmem:[%s5095_s8 + $0x28c] sm:$0xff]  }
 0x14c   : > { %v5388_v4 = vpop.f32.mrb[12].mxu0  ;;  %v5390_v5 = vpop.f32.mrb[12].mxu1 }
 0x14d   : > { %v4249_v7 = vpop.f32.mrb[13].mxu0  ;;  %v4357_v8 = vpop.f32.mrb[13].mxu1 }
 0x14e   : > { %v5396_v11 = vpop.f32.mrb[14].mxu0  ;;  %v5398_v12 = vpop.f32.mrb[14].mxu1 }
 0x14f   : > { %v4250_v14 = vpop.f32.mrb[15].mxu0  ;;  %v4358_v15 = vpop.f32.mrb[15].mxu1 }
 0x151   : > { %4472 = vmatmul.mubr.msk.bf16.gmra.mrb[120].mxu0 %vm1200_vm1, %v4751_v9  ;;  %4580 = vmatmul.mubr.msk.bf16.gmra.mrb[120].mxu1 %vm1200_vm1, %v4752_v10 }
 0x152   : > { %4475 = vmatprep.mubr.msk.bf16.mxu0 %vm4816_vm0, %v6049_v37  ;;  %4583 = vmatprep.mubr.msk.bf16.mxu1 %vm4816_vm0, %v6049_v37 }
 0x154   : > { %v5408_v16 = vpop.f32.mrb[16].mxu0  ;;  %v5410_v17 = vpop.f32.mrb[16].mxu1 }
 0x155   : > { %v4253_v19 = vpop.f32.mrb[17].mxu0  ;;  %v4361_v20 = vpop.f32.mrb[17].mxu1 }
 0x156   : > { %v5416_v23 = vpop.f32.mrb[18].mxu0  ;;  %v5418_v24 = vpop.f32.mrb[18].mxu1 }
 0x157   : > { %v4254_v26 = vpop.f32.mrb[19].mxu0  ;;  %v4362_v27 = vpop.f32.mrb[19].mxu1 }
 0x159   : > { %4476 = vmatmul.mubr.msk.bf16.gmra.mrb[124].mxu0 %vm1200_vm1, %v4753_v21  ;;  %4584 = vmatmul.mubr.msk.bf16.gmra.mrb[124].mxu1 %vm1200_vm1, %v4754_v22  ;;  %v4759_v21 = vld [vmem:[%s5095_s8 + $0x1d0] sm:$0xff]  }
 0x15a   : > { %4479 = vmatprep.mubr.msk.bf16.mxu0 %vm4816_vm0, %v6049_v37  ;;  %4587 = vmatprep.mubr.msk.bf16.mxu1 %vm4816_vm0, %v6049_v37  ;;  %v4760_v22 = vld [vmem:[%s5095_s8 + $0x294] sm:$0xff]  }
 0x15c   : > { %v5428_v28 = vpop.f32.mrb[20].mxu0  ;;  %v5430_v29 = vpop.f32.mrb[20].mxu1 }
 0x15d   : > { %v4257_v34 = vpop.f32.mrb[21].mxu0  ;;  %v4365_v35 = vpop.f32.mrb[21].mxu1 }
 0x15e   : > { %v5436_v42 = vpop.f32.mrb[22].mxu0  ;;  %v5438_v43 = vpop.f32.mrb[22].mxu1 }
 0x15f   : > { %v4258_v48 = vpop.f32.mrb[23].mxu0  ;;  %v4366_v49 = vpop.f32.mrb[23].mxu1 }
 0x161   : > { %4480 = vmatmul.mubr.msk.bf16.gmra.mrb[128].mxu0 %vm1200_vm1, %v4755_v36  ;;  %4588 = vmatmul.mubr.msk.bf16.gmra.mrb[128].mxu1 %vm1200_vm1, %v4756_v38 }
 0x162   : > { %4483 = vmatprep.mubr.msk.bf16.mxu0 %vm4816_vm0, %v6049_v37  ;;  %4591 = vmatprep.mubr.msk.bf16.mxu1 %vm4816_vm0, %v6049_v37 }
 0x164   : > { %v5448_v50 = vpop.f32.mrb[24].mxu0  ;;  %v5450_v54 = vpop.f32.mrb[24].mxu1 }
 0x165   : > { %v4261_v59 = vpop.f32.mrb[25].mxu0  ;;  %v4369_v60 = vpop.f32.mrb[25].mxu1 }
 0x166   : > { %v5456_v2 = vpop.f32.mrb[26].mxu0  ;;  %v5458_v3 = vpop.f32.mrb[26].mxu1 }
 0x167   : > { %v4262_v8 = vpop.f32.mrb[27].mxu0  ;;  %v4370_v9 = vpop.f32.mrb[27].mxu1 }
 0x169   : > { %4484 = vmatmul.mubr.msk.bf16.gmra.mrb[132].mxu0 %vm1200_vm1, %v4757_v61  ;;  %4592 = vmatmul.mubr.msk.bf16.gmra.mrb[132].mxu1 %vm1200_vm1, %v4758_v62  ;;  %v4761_v61 = vld [vmem:[%s5095_s8 + $0x1d8] sm:$0xff]  }
 0x16a   : > { %4487 = vmatprep.mubr.msk.bf16.mxu0 %vm4816_vm0, %v6049_v37  ;;  %4595 = vmatprep.mubr.msk.bf16.mxu1 %vm4816_vm0, %v6049_v37  ;;  %v4762_v62 = vld [vmem:[%s5095_s8 + $0x29c] sm:$0xff]  }
 0x16c   : > { %v5468_v10 = vpop.f32.mrb[28].mxu0  ;;  %v5470_v14 = vpop.f32.mrb[28].mxu1 }
 0x16d   : > { %v4265_v19 = vpop.f32.mrb[29].mxu0  ;;  %v4373_v20 = vpop.f32.mrb[29].mxu1 }
 0x16e   : > { %v5476_v26 = vpop.f32.mrb[30].mxu0  ;;  %v5478_v27 = vpop.f32.mrb[30].mxu1 }
 0x16f   : > { %v4266_v35 = vpop.f32.mrb[31].mxu0  ;;  %v4374_v36 = vpop.f32.mrb[31].mxu1 }
 0x170   : > { %v6113_v36 = vmov 0.0  }
 0x171   : > { %4488 = vmatmul.mubr.msk.bf16.gmra.mrb[136].mxu0 %vm1200_vm1, %v4759_v21  ;;  %4596 = vmatmul.mubr.msk.bf16.gmra.mrb[136].mxu1 %vm1200_vm1, %v4760_v22 }
 0x172   : > { %4491 = vmatprep.mubr.msk.bf16.mxu0 %vm4816_vm0, %v6049_v37  ;;  %4599 = vmatprep.mubr.msk.bf16.mxu1 %vm4816_vm0, %v6049_v37 }
 0x174   : > { %v5488_v38 = vpop.f32.mrb[32].mxu0  ;;  %v5490_v48 = vpop.f32.mrb[32].mxu1 }
 0x175   : > { %v4269_v59 = vpop.f32.mrb[33].mxu0  ;;  %v4377_v60 = vpop.f32.mrb[33].mxu1 }
 0x176   : > { %v5496_v8 = vpop.f32.mrb[34].mxu0  ;;  %v5498_v9 = vpop.f32.mrb[34].mxu1 }
 0x177   : > { %v4270_v20 = vpop.f32.mrb[35].mxu0  ;;  %v4378_v21 = vpop.f32.mrb[35].mxu1 }
 0x178   : > { %v4763_v20 = vld [vmem:[%s5095_s8 + $0x1e0] sm:$0xff]  }
 0x179   : > { %4492 = vmatmul.mubr.msk.bf16.gmra.mrb[140].mxu0 %vm1200_vm1, %v4761_v61  ;;  %4600 = vmatmul.mubr.msk.bf16.gmra.mrb[140].mxu1 %vm1200_vm1, %v4762_v62  ;;  %v4764_v61 = vld [vmem:[%s5095_s8 + $0x2a4] sm:$0xff]  }
 0x17a   : > { %4495 = vmatprep.mubr.msk.bf16.mxu0 %vm4816_vm0, %v6049_v37  ;;  %4603 = vmatprep.mubr.msk.bf16.mxu1 %vm4816_vm0, %v6049_v37 }
 0x17c   : > { %v5508_v22 = vpop.f32.mrb[36].mxu0  ;;  %v5510_v35 = vpop.f32.mrb[36].mxu1 }
 0x17d   : > { %v4273_v59 = vpop.f32.mrb[37].mxu0  ;;  %v4381_v60 = vpop.f32.mrb[37].mxu1 }
 0x17e   : > { %v5516_v62 = vpop.f32.mrb[38].mxu0  ;;  %v5518_v21 = vpop.f32.mrb[38].mxu1 }
 0x17f   : > { %v4274_v49 = vpop.f32.mrb[39].mxu0  ;;  %v4382_v34 = vpop.f32.mrb[39].mxu1 }
 0x180   : > { %v4765_v34 = vld [vmem:[%s5095_s8 + $0x1e8] sm:$0xff]  }
 0x181   : > { %4496 = vmatmul.mubr.msk.bf16.gmra.mrb[144].mxu0 %vm1200_vm1, %v4763_v20  ;;  %4604 = vmatmul.mubr.msk.bf16.gmra.mrb[144].mxu1 %vm1200_vm1, %v4764_v61  ;;  %v4766_v20 = vld [vmem:[%s5095_s8 + $0x2ac] sm:$0xff]  }
 0x182   : > { %4499 = vmatprep.mubr.msk.bf16.mxu0 %vm4816_vm0, %v6049_v37  ;;  %4607 = vmatprep.mubr.msk.bf16.mxu1 %vm4816_vm0, %v6049_v37 }
 0x184   : > { %v5528_v59 = vpop.f32.mrb[40].mxu0  ;;  %v5530_v60 = vpop.f32.mrb[40].mxu1 }
 0x185   : > { %v4277_v19 = vpop.f32.mrb[41].mxu0  ;;  %v4385_v49 = vpop.f32.mrb[41].mxu1 }
 0x186   : > { %v5536_v61 = vpop.f32.mrb[42].mxu0  ;;  %v5538_v15 = vpop.f32.mrb[42].mxu1 }
 0x187   : > { %v4278_v55 = vpop.f32.mrb[43].mxu0  ;;  %v4386_v47 = vpop.f32.mrb[43].mxu1 }
 0x188   : > { %v4767_v47 = vld [vmem:[%s5095_s8 + $0x1f0] sm:$0xff]  }
 0x189   : > { %4500 = vmatmul.mubr.msk.bf16.gmra.mrb[148].mxu0 %vm1200_vm1, %v4765_v34  ;;  %4608 = vmatmul.mubr.msk.bf16.gmra.mrb[148].mxu1 %vm1200_vm1, %v4766_v20  ;;  %v4768_v34 = vld [vmem:[%s5095_s8 + $0x2b4] sm:$0xff]  }
 0x18a   : > { %4503 = vmatprep.mubr.msk.bf16.mxu0 %vm4816_vm0, %v6049_v37  ;;  %4611 = vmatprep.mubr.msk.bf16.mxu1 %vm4816_vm0, %v6049_v37 }
 0x18c   : > { %v5548_v19 = vpop.f32.mrb[44].mxu0  ;;  %v5550_v49 = vpop.f32.mrb[44].mxu1 }
 0x18d   : > { %v4281_v7 = vpop.f32.mrb[45].mxu0  ;;  %v4389_v55 = vpop.f32.mrb[45].mxu1 }
 0x18e   : > { %v5556_v20 = vpop.f32.mrb[46].mxu0  ;;  %v5558_v30 = vpop.f32.mrb[46].mxu1 }
 0x18f   : > { %6103 = vst [vmem:[#allocation3_spill] sm:$0xff] %v5556_v20  ;;  %6104 = vst [vmem:[#allocation4_spill] sm:$0xff] %v5558_v30  ;;  %v4282_v18 = vpop.f32.mrb[47].mxu0  ;;  %v4390_v13 = vpop.f32.mrb[47].mxu1 }
 0x190   : > { %v4769_v13 = vld [vmem:[%s5095_s8 + $0x1f8] sm:$0xff]  }
 0x191   : > { %4504 = vmatmul.mubr.msk.bf16.gmra.mrb[152].mxu0 %vm1200_vm1, %v4767_v47  ;;  %4612 = vmatmul.mubr.msk.bf16.gmra.mrb[152].mxu1 %vm1200_vm1, %v4768_v34  ;;  %v4770_v47 = vld [vmem:[%s5095_s8 + $0x2bc] sm:$0xff]  }
 0x192   : > { %4507 = vmatprep.mubr.msk.bf16.mxu0 %vm4816_vm0, %v6049_v37  ;;  %4615 = vmatprep.mubr.msk.bf16.mxu1 %vm4816_vm0, %v6049_v37 }
 0x194   : > { %v5568_v7 = vpop.f32.mrb[48].mxu0  ;;  %v5570_v55 = vpop.f32.mrb[48].mxu1 }
 0x195   : > { %6105 = vst [vmem:[#allocation5_spill] sm:$0xff] %v5568_v7  ;;  %6106 = vst [vmem:[#allocation6_spill] sm:$0xff] %v5570_v55  ;;  %v4285_v25 = vpop.f32.mrb[49].mxu0  ;;  %v4393_v18 = vpop.f32.mrb[49].mxu1 }
 0x196   : > { %v5576_v34 = vpop.f32.mrb[50].mxu0  ;;  %v5578_v6 = vpop.f32.mrb[50].mxu1 }
 0x197   : > { %6107 = vst [vmem:[#allocation7_spill] sm:$0xff] %v5576_v34  ;;  %6108 = vst [vmem:[#allocation8_spill] sm:$0xff] %v5578_v6  ;;  %v4286_v58 = vpop.f32.mrb[51].mxu0  ;;  %v4394_v53 = vpop.f32.mrb[51].mxu1 }
 0x198   : > { %v4771_v53 = vld [vmem:[%s5095_s8 + $0x200] sm:$0xff]  }
 0x199   : > { %4508 = vmatmul.mubr.msk.bf16.gmra.mrb[156].mxu0 %vm1200_vm1, %v4769_v13  ;;  %4616 = vmatmul.mubr.msk.bf16.gmra.mrb[156].mxu1 %vm1200_vm1, %v4770_v47  ;;  %v4772_v13 = vld [vmem:[%s5095_s8 + $0x2c4] sm:$0xff]  }
 0x19a   : > { %4511 = vmatprep.mubr.msk.bf16.mxu0 %vm4816_vm0, %v6049_v37  ;;  %4619 = vmatprep.mubr.msk.bf16.mxu1 %vm4816_vm0, %v6049_v37 }
 0x19c   : > { %v5588_v25 = vpop.f32.mrb[52].mxu0  ;;  %v5590_v18 = vpop.f32.mrb[52].mxu1 }
 0x19d   : > { %6109 = vst [vmem:[#allocation9_spill] sm:$0xff] %v5588_v25  ;;  %6110 = vst [vmem:[#allocation10_spill] sm:$0xff] %v5590_v18  ;;  %v4289_v1 = vpop.f32.mrb[53].mxu0  ;;  %v4397_v58 = vpop.f32.mrb[53].mxu1 }
 0x19e   : > { %v5596_v47 = vpop.f32.mrb[54].mxu0  ;;  %v5598_v46 = vpop.f32.mrb[54].mxu1 }
 0x19f   : > { %6111 = vst [vmem:[#allocation11_spill] sm:$0xff] %v5596_v47  ;;  %6112 = vst [vmem:[#allocation12_spill] sm:$0xff] %v5598_v46  ;;  %v4290_v33 = vpop.f32.mrb[55].mxu0  ;;  %v4398_v37 = vpop.f32.mrb[55].mxu1 }
 0x1a0   : > { %v4773_v37 = vld [vmem:[%s5095_s8 + $0x208] sm:$0xff]  }
 0x1a1   : > { %4512 = vmatmul.mubr.msk.bf16.gmra.mrb[160].mxu0 %vm1200_vm1, %v4771_v53  ;;  %4620 = vmatmul.mubr.msk.bf16.gmra.mrb[160].mxu1 %vm1200_vm1, %v4772_v13  ;;  %v4774_v53 = vld [vmem:[%s5095_s8 + $0x2cc] sm:$0xff]  }
 0x1a2   : > { %4515 = vmatprep.mubr.msk.bf16.mxu0 %vm4816_vm0, %v6113_v36  ;;  %4623 = vmatprep.mubr.msk.bf16.mxu1 %vm4816_vm0, %v6113_v36 }
 0x1a4   : > { %v5608_v1 = vpop.f32.mrb[56].mxu0  ;;  %v5610_v58 = vpop.f32.mrb[56].mxu1 }
 0x1a5   : > { %6114 = vst [vmem:[#allocation13_spill] sm:$0xff] %v5608_v1  ;;  %6115 = vst [vmem:[#allocation14_spill] sm:$0xff] %v5610_v58  ;;  %v4293_v41 = vpop.f32.mrb[57].mxu0  ;;  %v4401_v33 = vpop.f32.mrb[57].mxu1 }
 0x1a6   : > { %v5616_v13 = vpop.f32.mrb[58].mxu0  ;;  %v5618_v46 = vpop.f32.mrb[58].mxu1 }
 0x1a7   : > { %6116 = vst [vmem:[#allocation15_spill] sm:$0xff] %v5616_v13  ;;  %6117 = vst [vmem:[#allocation16_spill] sm:$0xff] %v5618_v46  ;;  %v4294_v25 = vpop.f32.mrb[59].mxu0  ;;  %v4402_v6 = vpop.f32.mrb[59].mxu1 }
 0x1a8   : > { %v4775_v6 = vld [vmem:[%s5095_s8 + $0x210] sm:$0xff]  }
 0x1a9   : > { %4516 = vmatmul.mubr.msk.bf16.gmra.mrb[164].mxu0 %vm1200_vm1, %v4773_v37  ;;  %4624 = vmatmul.mubr.msk.bf16.gmra.mrb[164].mxu1 %vm1200_vm1, %v4774_v53  ;;  %v4776_v37 = vld [vmem:[%s5095_s8 + $0x2d4] sm:$0xff]  }
 0x1aa   : > { %4519 = vmatprep.mubr.msk.bf16.mxu0 %vm4816_vm0, %v6113_v36  ;;  %4627 = vmatprep.mubr.msk.bf16.mxu1 %vm4816_vm0, %v6113_v36 }
 0x1ac   : > { %v5628_v41 = vpop.f32.mrb[60].mxu0  ;;  %v5630_v33 = vpop.f32.mrb[60].mxu1 }
 0x1ad   : > { %6118 = vst [vmem:[#allocation17_spill] sm:$0xff] %v5628_v41  ;;  %6119 = vst [vmem:[#allocation18_spill] sm:$0xff] %v5630_v33  ;;  %v4297_v47 = vpop.f32.mrb[61].mxu0  ;;  %v4405_v25 = vpop.f32.mrb[61].mxu1 }
 0x1ae   : > { %v5636_v53 = vpop.f32.mrb[62].mxu0  ;;  %v5638_v46 = vpop.f32.mrb[62].mxu1 }
 0x1af   : > { %6120 = vst [vmem:[#allocation19_spill] sm:$0xff] %v5636_v53  ;;  %6121 = vst [vmem:[#allocation20_spill] sm:$0xff] %v5638_v46  ;;  %v4298_v58 = vpop.f32.mrb[63].mxu0  ;;  %v4406_v1 = vpop.f32.mrb[63].mxu1 }
 0x1b0   : > { %v4777_v1 = vld [vmem:[%s5095_s8 + $0x218] sm:$0xff]  }
 0x1b1   : > { %4520 = vmatmul.mubr.msk.bf16.gmra.mrb[168].mxu0 %vm1200_vm1, %v4775_v6  ;;  %4628 = vmatmul.mubr.msk.bf16.gmra.mrb[168].mxu1 %vm1200_vm1, %v4776_v37  ;;  %v4778_v6 = vld [vmem:[%s5095_s8 + $0x2dc] sm:$0xff]  }
 0x1b2   : > { %4523 = vmatprep.mubr.msk.bf16.mxu0 %vm4816_vm0, %v6113_v36  ;;  %4631 = vmatprep.mubr.msk.bf16.mxu1 %vm4816_vm0, %v6113_v36 }
 0x1b4   : > { %v5648_v47 = vpop.f32.mrb[64].mxu0  ;;  %v5650_v25 = vpop.f32.mrb[64].mxu1 }
 0x1b5   : > { %6122 = vst [vmem:[#allocation21_spill] sm:$0xff] %v5648_v47  ;;  %6123 = vst [vmem:[#allocation22_spill] sm:$0xff] %v5650_v25  ;;  %v4301_v13 = vpop.f32.mrb[65].mxu0  ;;  %v4409_v58 = vpop.f32.mrb[65].mxu1 }
 0x1b6   : > { %v5656_v37 = vpop.f32.mrb[66].mxu0  ;;  %v5658_v46 = vpop.f32.mrb[66].mxu1 }
 0x1b7   : > { %6124 = vst [vmem:[#allocation23_spill] sm:$0xff] %v5656_v37  ;;  %6125 = vst [vmem:[#allocation24_spill] sm:$0xff] %v5658_v46  ;;  %v4302_v33 = vpop.f32.mrb[67].mxu0  ;;  %v4410_v41 = vpop.f32.mrb[67].mxu1 }
 0x1b8   : > { %v4779_v41 = vld [vmem:[%s5095_s8 + $0x220] sm:$0xff]  }
 0x1b9   : > { %4524 = vmatmul.mubr.msk.bf16.gmra.mrb[172].mxu0 %vm1200_vm1, %v4777_v1  ;;  %4632 = vmatmul.mubr.msk.bf16.gmra.mrb[172].mxu1 %vm1200_vm1, %v4778_v6  ;;  %v4780_v1 = vld [vmem:[%s5095_s8 + $0x2e4] sm:$0xff]  }
 0x1ba   : > { %4527 = vmatprep.mubr.msk.bf16.mxu0 %vm4816_vm0, %v6113_v36  ;;  %4635 = vmatprep.mubr.msk.bf16.mxu1 %vm4816_vm0, %v6113_v36 }
 0x1bc   : > { %v5668_v13 = vpop.f32.mrb[68].mxu0  ;;  %v5670_v58 = vpop.f32.mrb[68].mxu1 }
 0x1bd   : > { %6126 = vst [vmem:[#allocation25_spill] sm:$0xff] %v5668_v13  ;;  %6127 = vst [vmem:[#allocation26_spill] sm:$0xff] %v5670_v58  ;;  %v4305_v53 = vpop.f32.mrb[69].mxu0  ;;  %v4413_v33 = vpop.f32.mrb[69].mxu1 }
 0x1be   : > { %v5676_v6 = vpop.f32.mrb[70].mxu0  ;;  %v5678_v46 = vpop.f32.mrb[70].mxu1 }
 0x1bf   : > { %6128 = vst [vmem:[#allocation27_spill] sm:$0xff] %v5676_v6  ;;  %6129 = vst [vmem:[#allocation28_spill] sm:$0xff] %v5678_v46  ;;  %v4306_v25 = vpop.f32.mrb[71].mxu0  ;;  %v4414_v47 = vpop.f32.mrb[71].mxu1 }
 0x1c0   : > { %v4781_v47 = vld [vmem:[%s5095_s8 + $0x228] sm:$0xff]  }
 0x1c1   : > { %4528 = vmatmul.mubr.msk.bf16.gmra.mrb[176].mxu0 %vm1200_vm1, %v4779_v41  ;;  %4636 = vmatmul.mubr.msk.bf16.gmra.mrb[176].mxu1 %vm1200_vm1, %v4780_v1  ;;  %v4782_v41 = vld [vmem:[%s5095_s8 + $0x2ec] sm:$0xff]  }
 0x1c2   : > { %4531 = vmatprep.mubr.msk.bf16.mxu0 %vm4816_vm0, %v6113_v36  ;;  %4639 = vmatprep.mubr.msk.bf16.mxu1 %vm4816_vm0, %v6113_v36 }
 0x1c4   : > { %v5688_v53 = vpop.f32.mrb[72].mxu0  ;;  %v5690_v33 = vpop.f32.mrb[72].mxu1 }
 0x1c5   : > { %6130 = vst [vmem:[#allocation29_spill] sm:$0xff] %v5688_v53  ;;  %6131 = vst [vmem:[#allocation30_spill] sm:$0xff] %v5690_v33  ;;  %v4309_v37 = vpop.f32.mrb[73].mxu0  ;;  %v4417_v25 = vpop.f32.mrb[73].mxu1 }
 0x1c6   : > { %v5696_v1 = vpop.f32.mrb[74].mxu0  ;;  %v5698_v46 = vpop.f32.mrb[74].mxu1 }
 0x1c7   : > { %6132 = vst [vmem:[#allocation31_spill] sm:$0xff] %v5696_v1  ;;  %6133 = vst [vmem:[#allocation32_spill] sm:$0xff] %v5698_v46  ;;  %v4310_v58 = vpop.f32.mrb[75].mxu0  ;;  %v4418_v13 = vpop.f32.mrb[75].mxu1 }
 0x1c8   : > { %v4783_v13 = vld [vmem:[%s5095_s8 + $0x230] sm:$0xff]  }
 0x1c9   : > { %4532 = vmatmul.mubr.msk.bf16.gmra.mrb[180].mxu0 %vm1200_vm1, %v4781_v47  ;;  %4640 = vmatmul.mubr.msk.bf16.gmra.mrb[180].mxu1 %vm1200_vm1, %v4782_v41  ;;  %v4784_v47 = vld [vmem:[%s5095_s8 + $0x2f4] sm:$0xff]  }
 0x1ca   : > { %4535 = vmatprep.mubr.msk.bf16.mxu0 %vm4816_vm0, %v6113_v36  ;;  %4643 = vmatprep.mubr.msk.bf16.mxu1 %vm4816_vm0, %v6113_v36 }
 0x1cc   : > { %v5708_v37 = vpop.f32.mrb[76].mxu0  ;;  %v5710_v25 = vpop.f32.mrb[76].mxu1 }
 0x1cd   : > { %6134 = vst [vmem:[#allocation33_spill] sm:$0xff] %v5708_v37  ;;  %6135 = vst [vmem:[#allocation34_spill] sm:$0xff] %v5710_v25  ;;  %v4313_v6 = vpop.f32.mrb[77].mxu0  ;;  %v4421_v58 = vpop.f32.mrb[77].mxu1 }
 0x1ce   : > { %v5716_v41 = vpop.f32.mrb[78].mxu0  ;;  %v5718_v46 = vpop.f32.mrb[78].mxu1 }
 0x1cf   : > { %6136 = vst [vmem:[#allocation35_spill] sm:$0xff] %v5716_v41  ;;  %6137 = vst [vmem:[#allocation36_spill] sm:$0xff] %v5718_v46  ;;  %v4314_v33 = vpop.f32.mrb[79].mxu0  ;;  %v4422_v53 = vpop.f32.mrb[79].mxu1 }
 0x1d0   : > { %v4785_v53 = vld [vmem:[%s5095_s8 + $0x238] sm:$0xff]  }
 0x1d1   : > { %4536 = vmatmul.mubr.msk.bf16.gmra.mrb[184].mxu0 %vm1200_vm1, %v4783_v13  ;;  %4644 = vmatmul.mubr.msk.bf16.gmra.mrb[184].mxu1 %vm1200_vm1, %v4784_v47  ;;  %v4786_v13 = vld [vmem:[%s5095_s8 + $0x2fc] sm:$0xff]  }
 0x1d2   : > { %4539 = vmatprep.mubr.msk.bf16.mxu0 %vm4816_vm0, %v6113_v36  ;;  %4647 = vmatprep.mubr.msk.bf16.mxu1 %vm4816_vm0, %v6113_v36 }
 0x1d4   : > { %v5728_v6 = vpop.f32.mrb[80].mxu0  ;;  %v5730_v58 = vpop.f32.mrb[80].mxu1 }
 0x1d5   : > { %6138 = vst [vmem:[#allocation37_spill] sm:$0xff] %v5728_v6  ;;  %6139 = vst [vmem:[#allocation38_spill] sm:$0xff] %v5730_v58  ;;  %v4317_v1 = vpop.f32.mrb[81].mxu0  ;;  %v4425_v33 = vpop.f32.mrb[81].mxu1 }
 0x1d6   : > { %v5736_v47 = vpop.f32.mrb[82].mxu0  ;;  %v5738_v46 = vpop.f32.mrb[82].mxu1 }
 0x1d7   : > { %6140 = vst [vmem:[#allocation39_spill] sm:$0xff] %v5736_v47  ;;  %6141 = vst [vmem:[#allocation40_spill] sm:$0xff] %v5738_v46  ;;  %v4318_v25 = vpop.f32.mrb[83].mxu0  ;;  %v4426_v37 = vpop.f32.mrb[83].mxu1 }
 0x1d8   : > { %v4787_v37 = vld [vmem:[%s5095_s8 + $0x240] sm:$0xff]  }
 0x1d9   : > { %4540 = vmatmul.mubr.msk.bf16.gmra.mrb[188].mxu0 %vm1200_vm1, %v4785_v53  ;;  %4648 = vmatmul.mubr.msk.bf16.gmra.mrb[188].mxu1 %vm1200_vm1, %v4786_v13  ;;  %v4788_v53 = vld [vmem:[%s5095_s8 + $0x304] sm:$0xff]  }
 0x1da   : > { %4543 = vmatprep.mubr.msk.bf16.mxu0 %vm4816_vm0, %v6113_v36  ;;  %4651 = vmatprep.mubr.msk.bf16.mxu1 %vm4816_vm0, %v6113_v36 }
 0x1dc   : > { %v5748_v1 = vpop.f32.mrb[84].mxu0  ;;  %v5750_v33 = vpop.f32.mrb[84].mxu1 }
 0x1dd   : > { %6142 = vst [vmem:[#allocation41_spill] sm:$0xff] %v5748_v1  ;;  %6143 = vst [vmem:[#allocation42_spill] sm:$0xff] %v5750_v33  ;;  %v4321_v41 = vpop.f32.mrb[85].mxu0  ;;  %v4429_v25 = vpop.f32.mrb[85].mxu1 }
 0x1de   : > { %v5756_v13 = vpop.f32.mrb[86].mxu0  ;;  %v5758_v46 = vpop.f32.mrb[86].mxu1 }
 0x1df   : > { %6144 = vst [vmem:[#allocation43_spill] sm:$0xff] %v5756_v13  ;;  %6145 = vst [vmem:[#allocation44_spill] sm:$0xff] %v5758_v46  ;;  %v4322_v58 = vpop.f32.mrb[87].mxu0  ;;  %v4430_v6 = vpop.f32.mrb[87].mxu1  ;;  %v4790_v46 = vld [vmem:[%s5095_s8 + $0x30c] ss:$0 sps:$4 sm:$0xff]  }
 0x1e0   : > { %v4789_v6 = vld [vmem:[%s5095_s8 + $0x248] ss:$0 sps:$4 sm:$0xff]  }
 0x1e1   : > { %4544 = vmatmul.mubr.msk.bf16.gmra.mrb[192].mxu0 %vm1200_vm1, %v4787_v37  ;;  %4652 = vmatmul.mubr.msk.bf16.gmra.mrb[192].mxu1 %vm1200_vm1, %v4788_v53 }
 0x1e2   : > { %4547 = vmatprep.mubr.msk.bf16.mxu0 %vm4816_vm0, %v6113_v36  ;;  %4655 = vmatprep.mubr.msk.bf16.mxu1 %vm4816_vm0, %v6113_v36 }
 0x1e4   : > { %v5768_v41 = vpop.f32.mrb[88].mxu0  ;;  %v5770_v25 = vpop.f32.mrb[88].mxu1 }
 0x1e5   : > { %6146 = vst [vmem:[#allocation45_spill] sm:$0xff] %v5768_v41  ;;  %6147 = vst [vmem:[#allocation46_spill] sm:$0xff] %v5770_v25  ;;  %v4325_v47 = vpop.f32.mrb[89].mxu0  ;;  %v4433_v58 = vpop.f32.mrb[89].mxu1 }
 0x1e6   : > { %v5776_v37 = vpop.f32.mrb[90].mxu0  ;;  %v5778_v53 = vpop.f32.mrb[90].mxu1 }
 0x1e7   : > { %6148 = vst [vmem:[#allocation47_spill] sm:$0xff] %v5776_v37  ;;  %6149 = vst [vmem:[#allocation48_spill] sm:$0xff] %v5778_v53  ;;  %v4326_v33 = vpop.f32.mrb[91].mxu0  ;;  %v4434_v36 = vpop.f32.mrb[91].mxu1 }
 0x1e9   : > { %4548 = vmatmul.mubr.msk.bf16.gmra.mrb[196].mxu0 %vm1200_vm1, %v4789_v6  ;;  %4656 = vmatmul.mubr.msk.bf16.gmra.mrb[196].mxu1 %vm1200_vm1, %v4790_v46 }
 0x1ec   : > { %v5784_v1 = vpop.f32.mrb[92].mxu0  ;;  %v5786_v18 = vpop.f32.mrb[92].mxu1 }
 0x1ed   : > { %6150 = vst [vmem:[#allocation49_spill] sm:$0xff] %v5784_v1  ;;  %6151 = vst [vmem:[#allocation50_spill] sm:$0xff] %v5786_v18  ;;  %v4329_v58 = vpop.f32.mrb[93].mxu0  ;;  %v4437_v25 = vpop.f32.mrb[93].mxu1 }
 0x1ee   : > { %v5790_v41 = vpop.f32.mrb[94].mxu0  ;;  %v5792_v34 = vpop.f32.mrb[94].mxu1 }
 0x1ef   : > { %6152 = vst [vmem:[#allocation51_spill] sm:$0xff] %v5790_v41  ;;  %6153 = vst [vmem:[#allocation52_spill] sm:$0xff] %v5792_v34  ;;  %v4330_v6 = vpop.f32.mrb[95].mxu0  ;;  %v4438_v36 = vpop.f32.mrb[95].mxu1  ;;  %v5807_v41 = vld [vmem:[%s6047_s2] ss:$0 sm:$0xff] }
 0x1f4   : > { %v5796_v46 = vpop.f32.mrb[96].mxu0  ;;  %v5798_v13 = vpop.f32.mrb[96].mxu1 }
 0x1f5   : > { %6154 = vst [vmem:[#allocation53_spill] sm:$0xff] %v5796_v46  ;;  %6155 = vst [vmem:[#allocation54_spill] sm:$0xff] %v5798_v13  ;;  %v4333_v47 = vpop.f32.mrb[97].mxu0  ;;  %v4441_v58 = vpop.f32.mrb[97].mxu1 }
 0x1f6   : > { %v1505_v18 = vpop.f32.mrb[98].mxu0  ;;  %v1985_v25 = vpop.f32.mrb[98].mxu1 }
 0x1f7   : > { %v4334_v1 = vpop.f32.mrb[99].mxu0  ;;  %v4442_v37 = vpop.f32.mrb[99].mxu1  ;;  %v6156_v18 = vmax.f32 %v5328_v31, %v5330_v32 }
 0x1fc   : > { %v2270_v55 = vpop.f32.mrb[100].mxu0  ;;  %v2750_v33 = vpop.f32.mrb[100].mxu1 }
 0x1fd   : > { %v2997_v6 = vmax.f32 %v2270_v55, %v2750_v33  ;;  %v4453_v36 = vpop.f32.mrb[101].mxu0  ;;  %v4561_v34 = vpop.f32.mrb[101].mxu1  ;;  %v6157_v55 = vmax.f32 %v5336_v39, %v5338_v40  ;;  %v6158_v40 = vmax.f32 %v5348_v44, %v5350_v45 }
 0x1fe   : > { %v2273_v53 = vpop.f32.mrb[102].mxu0  ;;  %v2753_v47 = vpop.f32.mrb[102].mxu1 }
 0x1ff   : > { %v3046_v1 = vmax.f32 %v6156_v18, %v2997_v6  ;;  %v2998_v37 = vmax.f32 %v2273_v53, %v2753_v47  ;;  %v4454_v58 = vpop.f32.mrb[103].mxu0  ;;  %v4562_v25 = vpop.f32.mrb[103].mxu1 }
 0x201   : > { %v3102_v13 = vadd.f32 %v5807_v41, %v3046_v1  ;;  %v3047_v34 = vmax.f32 %v6157_v55, %v2998_v37  ;;  %v6159_v37 = vmax.f32 %v5356_v51, %v5358_v52 }
 0x203   : > { %v3103_v33 = vadd.f32 %v5807_v41, %v3047_v34  ;;  %v3151_v7 = vmax.f32 %v3102_v13, 0.0 }
 0x204   : > { %v2278_v36 = vpop.f32.mrb[104].mxu0  ;;  %v2758_v46 = vpop.f32.mrb[104].mxu1 }
 0x205   : > { %v3152_v30 = vmax.f32 %v3103_v33, 0.0  ;;  %v2999_v20 = vmax.f32 %v2278_v36, %v2758_v46  ;;  %v4457_v31 = vpop.f32.mrb[105].mxu0  ;;  %v4565_v32 = vpop.f32.mrb[105].mxu1 }
 0x206   : > { %v2281_v53 = vpop.f32.mrb[106].mxu0  ;;  %v2761_v6 = vpop.f32.mrb[106].mxu1  ;;  %v6160_v32 = vmax.f32 %v5368_v56, %v5370_v57 }
 0x207   : > { %v3971_v39 = vpack.c.bf16 %v3152_v30, %v3151_v7  ;;  %v3048_v47 = vmax.f32 %v6158_v40, %v2999_v20  ;;  %v3000_v18 = vmax.f32 %v2281_v53, %v2761_v6  ;;  %v4458_v1 = vpop.f32.mrb[107].mxu0  ;;  %v4566_v13 = vpop.f32.mrb[107].mxu1  ;;  %v6161_v40 = vmax.f32 %v5376_v63, %v5378_v0 }
 0x209   : > { %3972 = vst [vmem:[%s5820_s20] sm:$0xff] %v3971_v39   ;;  %v3104_v46 = vadd.f32 %v5807_v41, %v3048_v47  ;;  %v3049_v58 = vmax.f32 %v6159_v37, %v3000_v18 }
 0x20b   : > { %v3105_v25 = vadd.f32 %v5807_v41, %v3049_v58  ;;  %v3153_v30 = vmax.f32 %v3104_v46, 0.0 }
 0x20c   : > { %v2286_v55 = vpop.f32.mrb[108].mxu0  ;;  %v2766_v34 = vpop.f32.mrb[108].mxu1 }
 0x20d   : > { %v3154_v7 = vmax.f32 %v3105_v25, 0.0  ;;  %v3001_v33 = vmax.f32 %v2286_v55, %v2766_v34  ;;  %v4461_v44 = vpop.f32.mrb[109].mxu0  ;;  %v4569_v45 = vpop.f32.mrb[109].mxu1 }
 0x20e   : > { %v2289_v20 = vpop.f32.mrb[110].mxu0  ;;  %v2769_v36 = vpop.f32.mrb[110].mxu1  ;;  %v6163_v45 = vmax.f32 %v5396_v11, %v5398_v12 }
 0x20f   : > { %v3976_v31 = vpack.c.bf16 %v3154_v7, %v3153_v30  ;;  %v3050_v53 = vmax.f32 %v6160_v32, %v3001_v33  ;;  %v3002_v6 = vmax.f32 %v2289_v20, %v2769_v36  ;;  %v4462_v51 = vpop.f32.mrb[111].mxu0  ;;  %v4570_v52 = vpop.f32.mrb[111].mxu1  ;;  %v6162_v30 = vmax.f32 %v5388_v4, %v5390_v5 }
 0x211   : > { %4088 = vst [vmem:[%s5820_s20 + $0x8] sm:$0xff] %v3976_v31   ;;  %v3106_v39 = vadd.f32 %v5807_v41, %v3050_v53  ;;  %v3051_v47 = vmax.f32 %v6161_v40, %v3002_v6 }
 0x213   : > { %v3107_v18 = vadd.f32 %v5807_v41, %v3051_v47  ;;  %v3155_v46 = vmax.f32 %v3106_v39, 0.0  ;;  %v6164_v47 = vmax.f32 %v5408_v16, %v5410_v17 }
 0x214   : > { %v2294_v1 = vpop.f32.mrb[112].mxu0  ;;  %v2774_v13 = vpop.f32.mrb[112].mxu1 }
 0x215   : > { %v3156_v37 = vmax.f32 %v3107_v18, 0.0  ;;  %v3003_v58 = vmax.f32 %v2294_v1, %v2774_v13  ;;  %v4465_v56 = vpop.f32.mrb[113].mxu0  ;;  %v4573_v57 = vpop.f32.mrb[113].mxu1 }
 0x216   : > { %v2297_v25 = vpop.f32.mrb[114].mxu0  ;;  %v2777_v55 = vpop.f32.mrb[114].mxu1 }
 0x217   : > { %v3981_v34 = vpack.c.bf16 %v3156_v37, %v3155_v46  ;;  %v3052_v7 = vmax.f32 %v6162_v30, %v3003_v58  ;;  %v3004_v33 = vmax.f32 %v2297_v25, %v2777_v55  ;;  %v4466_v63 = vpop.f32.mrb[115].mxu0  ;;  %v4574_v0 = vpop.f32.mrb[115].mxu1  ;;  %v6165_v46 = vmax.f32 %v5416_v23, %v5418_v24 }
 0x218   : > { %v6166_v63 = vmax.f32 %v5428_v28, %v5430_v29 }
 0x219   : > { %4089 = vst [vmem:[%s5820_s20 + $0x10] sm:$0xff] %v3981_v34   ;;  %v3108_v44 = vadd.f32 %v5807_v41, %v3052_v7  ;;  %v3053_v20 = vmax.f32 %v6163_v45, %v3004_v33 }
 0x21b   : > { %v3109_v36 = vadd.f32 %v5807_v41, %v3053_v20  ;;  %v3157_v53 = vmax.f32 %v3108_v44, 0.0  ;;  %v6167_v20 = vmax.f32 %v5436_v42, %v5438_v43 }
 0x21c   : > { %v2302_v31 = vpop.f32.mrb[116].mxu0  ;;  %v2782_v32 = vpop.f32.mrb[116].mxu1 }
 0x21d   : > { %v3158_v6 = vmax.f32 %v3109_v36, 0.0  ;;  %v3005_v51 = vmax.f32 %v2302_v31, %v2782_v32  ;;  %v4469_v4 = vpop.f32.mrb[117].mxu0  ;;  %v4577_v5 = vpop.f32.mrb[117].mxu1 }
 0x21e   : > { %v2305_v52 = vpop.f32.mrb[118].mxu0  ;;  %v2785_v39 = vpop.f32.mrb[118].mxu1 }
 0x21f   : > { %v3986_v40 = vpack.c.bf16 %v3158_v6, %v3157_v53  ;;  %v3054_v18 = vmax.f32 %v6164_v47, %v3005_v51  ;;  %v3006_v1 = vmax.f32 %v2305_v52, %v2785_v39  ;;  %v4470_v11 = vpop.f32.mrb[119].mxu0  ;;  %v4578_v12 = vpop.f32.mrb[119].mxu1 }
 0x220   : > { %v6169_v11 = vmax.f32 %v5456_v2, %v5458_v3 }
 0x221   : > { %4090 = vst [vmem:[%s5820_s20 + $0x18] sm:$0xff] %v3986_v40   ;;  %v3110_v13 = vadd.f32 %v5807_v41, %v3054_v18  ;;  %v3055_v37 = vmax.f32 %v6165_v46, %v3006_v1  ;;  %v6168_v40 = vmax.f32 %v5448_v50, %v5450_v54 }
 0x223   : > { %v3111_v58 = vadd.f32 %v5807_v41, %v3055_v37  ;;  %v3159_v25 = vmax.f32 %v3110_v13, 0.0 }
 0x224   : > { %v2310_v56 = vpop.f32.mrb[120].mxu0  ;;  %v2790_v57 = vpop.f32.mrb[120].mxu1 }
 0x225   : > { %v3160_v55 = vmax.f32 %v3111_v58, 0.0  ;;  %v3007_v34 = vmax.f32 %v2310_v56, %v2790_v57  ;;  %v4473_v16 = vpop.f32.mrb[121].mxu0  ;;  %v4581_v17 = vpop.f32.mrb[121].mxu1 }
 0x226   : > { %v2313_v30 = vpop.f32.mrb[122].mxu0  ;;  %v2793_v7 = vpop.f32.mrb[122].mxu1  ;;  %v6170_v16 = vmax.f32 %v5468_v10, %v5470_v14 }
 0x227   : > { %v3991_v33 = vpack.c.bf16 %v3160_v55, %v3159_v25  ;;  %v3056_v0 = vmax.f32 %v6166_v63, %v3007_v34  ;;  %v3008_v44 = vmax.f32 %v2313_v30, %v2793_v7  ;;  %v4474_v23 = vpop.f32.mrb[123].mxu0  ;;  %v4582_v24 = vpop.f32.mrb[123].mxu1 }
 0x229   : > { %4091 = vst [vmem:[%s5820_s20 + $0x20] sm:$0xff] %v3991_v33   ;;  %v3112_v45 = vadd.f32 %v5807_v41, %v3056_v0  ;;  %v3057_v36 = vmax.f32 %v6167_v20, %v3008_v44  ;;  %v6171_v33 = vmax.f32 %v5476_v26, %v5478_v27 }
 0x22b   : > { %v3113_v31 = vadd.f32 %v5807_v41, %v3057_v36  ;;  %v3161_v6 = vmax.f32 %v3112_v45, 0.0 }
 0x22c   : > { %v2318_v32 = vpop.f32.mrb[124].mxu0  ;;  %v2798_v53 = vpop.f32.mrb[124].mxu1 }
 0x22d   : > { %v3162_v51 = vmax.f32 %v3113_v31, 0.0  ;;  %v3009_v4 = vmax.f32 %v2318_v32, %v2798_v53  ;;  %v4477_v28 = vpop.f32.mrb[125].mxu0  ;;  %v4585_v29 = vpop.f32.mrb[125].mxu1  ;;  %v6172_v53 = vmax.f32 %v5488_v38, %v5490_v48 }
 0x22e   : > { %v2321_v5 = vpop.f32.mrb[126].mxu0  ;;  %v2801_v52 = vpop.f32.mrb[126].mxu1  ;;  %v6173_v28 = vmax.f32 %v5496_v8, %v5498_v9 }
 0x22f   : > { %v3996_v39 = vpack.c.bf16 %v3162_v51, %v3161_v6  ;;  %v3058_v47 = vmax.f32 %v6168_v40, %v3009_v4  ;;  %v3010_v18 = vmax.f32 %v2321_v5, %v2801_v52  ;;  %v4478_v42 = vpop.f32.mrb[127].mxu0  ;;  %v4586_v43 = vpop.f32.mrb[127].mxu1 }
 0x231   : > { %4092 = vst [vmem:[%s5820_s20 + $0x28] sm:$0xff] %v3996_v39   ;;  %v3114_v1 = vadd.f32 %v5807_v41, %v3058_v47  ;;  %v3059_v12 = vmax.f32 %v6169_v11, %v3010_v18  ;;  %v6174_v11 = vmax.f32 %v5508_v22, %v5510_v35 }
 0x233   : > { %v3115_v13 = vadd.f32 %v5807_v41, %v3059_v12  ;;  %v3163_v58 = vmax.f32 %v3114_v1, 0.0 }
 0x234   : > { %v2326_v46 = vpop.f32.mrb[128].mxu0  ;;  %v2806_v37 = vpop.f32.mrb[128].mxu1 }
 0x235   : > { %v3164_v56 = vmax.f32 %v3115_v13, 0.0  ;;  %v3011_v57 = vmax.f32 %v2326_v46, %v2806_v37  ;;  %v4481_v50 = vpop.f32.mrb[129].mxu0  ;;  %v4589_v54 = vpop.f32.mrb[129].mxu1  ;;  %v6175_v37 = vmax.f32 %v5516_v62, %v5518_v21 }
 0x236   : > { %v2329_v25 = vpop.f32.mrb[130].mxu0  ;;  %v2809_v55 = vpop.f32.mrb[130].mxu1 }
 0x237   : > { %v4001_v34 = vpack.c.bf16 %v3164_v56, %v3163_v58  ;;  %v3060_v17 = vmax.f32 %v6170_v16, %v3011_v57  ;;  %v3012_v30 = vmax.f32 %v2329_v25, %v2809_v55  ;;  %v4482_v2 = vpop.f32.mrb[131].mxu0  ;;  %v4590_v3 = vpop.f32.mrb[131].mxu1 }
 0x239   : > { %4093 = vst [vmem:[%s5820_s20 + $0x30] sm:$0xff] %v4001_v34   ;;  %v3116_v7 = vadd.f32 %v5807_v41, %v3060_v17  ;;  %v3061_v63 = vmax.f32 %v6171_v33, %v3012_v30  ;;  %v6176_v30 = vmax.f32 %v5528_v59, %v5530_v60  ;;  %v6177_v33 = vmax.f32 %v5536_v61, %v5538_v15 }
 0x23b   : > { %v3117_v0 = vadd.f32 %v5807_v41, %v3061_v63  ;;  %v3165_v24 = vmax.f32 %v3116_v7, 0.0 }
 0x23c   : > { %v2334_v44 = vpop.f32.mrb[132].mxu0  ;;  %v2814_v23 = vpop.f32.mrb[132].mxu1 }
 0x23d   : > { %v3166_v45 = vmax.f32 %v3117_v0, 0.0  ;;  %v3013_v20 = vmax.f32 %v2334_v44, %v2814_v23  ;;  %v4485_v10 = vpop.f32.mrb[133].mxu0  ;;  %v4593_v14 = vpop.f32.mrb[133].mxu1 }
 0x23e   : > { %v2337_v36 = vpop.f32.mrb[134].mxu0  ;;  %v2817_v31 = vpop.f32.mrb[134].mxu1 }
 0x23f   : > { %v4006_v32 = vpack.c.bf16 %v3166_v45, %v3165_v24  ;;  %v3062_v6 = vmax.f32 %v6172_v53, %v3013_v20  ;;  %v3014_v51 = vmax.f32 %v2337_v36, %v2817_v31  ;;  %v4486_v26 = vpop.f32.mrb[135].mxu0  ;;  %v4594_v27 = vpop.f32.mrb[135].mxu1  ;;  %v6178_v31 = vmax.f32 %v5548_v19, %v5550_v49 }
 0x240   : > { %v6180_v26 = vld [vmem:[#allocation4_spill] sm:$0xff] }
 0x241   : > { %4094 = vst [vmem:[%s5820_s20 + $0x38] sm:$0xff] %v4006_v32   ;;  %v3118_v4 = vadd.f32 %v5807_v41, %v3062_v6  ;;  %v3063_v29 = vmax.f32 %v6173_v28, %v3014_v51  ;;  %v6179_v51 = vld [vmem:[#allocation3_spill] sm:$0xff] }
 0x242   : > { %v6181_v27 = vmax.f32 %v6179_v51, %v6180_v26 }
 0x243   : > { %v3119_v5 = vadd.f32 %v5807_v41, %v3063_v29  ;;  %v3167_v40 = vmax.f32 %v3118_v4, 0.0 }
 0x244   : > { %v2342_v52 = vpop.f32.mrb[136].mxu0  ;;  %v2822_v39 = vpop.f32.mrb[136].mxu1 }
 0x245   : > { %v3168_v47 = vmax.f32 %v3119_v5, 0.0  ;;  %v3015_v18 = vmax.f32 %v2342_v52, %v2822_v39  ;;  %v4489_v38 = vpop.f32.mrb[137].mxu0  ;;  %v4597_v48 = vpop.f32.mrb[137].mxu1 }
 0x246   : > { %v2345_v42 = vpop.f32.mrb[138].mxu0  ;;  %v2825_v43 = vpop.f32.mrb[138].mxu1  ;;  %v6182_v48 = vld [vmem:[#allocation5_spill] sm:$0xff] }
 0x247   : > { %v4011_v1 = vpack.c.bf16 %v3168_v47, %v3167_v40  ;;  %v3064_v12 = vmax.f32 %v6174_v11, %v3015_v18  ;;  %v3016_v13 = vmax.f32 %v2345_v42, %v2825_v43  ;;  %v4490_v8 = vpop.f32.mrb[139].mxu0  ;;  %v4598_v9 = vpop.f32.mrb[139].mxu1  ;;  %v6183_v42 = vld [vmem:[#allocation6_spill] sm:$0xff] }
 0x248   : > { %v6184_v43 = vmax.f32 %v6182_v48, %v6183_v42  ;;  %v6185_v9 = vld [vmem:[#allocation7_spill] sm:$0xff] }
 0x249   : > { %4095 = vst [vmem:[%s5820_s20 + $0x40] sm:$0xff] %v4011_v1   ;;  %v3120_v46 = vadd.f32 %v5807_v41, %v3064_v12  ;;  %v3065_v58 = vmax.f32 %v6175_v37, %v3016_v13 }
 0x24b   : > { %v3121_v56 = vadd.f32 %v5807_v41, %v3065_v58  ;;  %v3169_v54 = vmax.f32 %v3120_v46, 0.0  ;;  %v6186_v46 = vld [vmem:[#allocation8_spill] sm:$0xff] }
 0x24c   : > { %v2350_v57 = vpop.f32.mrb[140].mxu0  ;;  %v2830_v50 = vpop.f32.mrb[140].mxu1  ;;  %v6187_v37 = vmax.f32 %v6185_v9, %v6186_v46 }
 0x24d   : > { %v3170_v25 = vmax.f32 %v3121_v56, 0.0  ;;  %v3017_v55 = vmax.f32 %v2350_v57, %v2830_v50  ;;  %v4493_v22 = vpop.f32.mrb[141].mxu0  ;;  %v4601_v35 = vpop.f32.mrb[141].mxu1 }
 0x24e   : > { %v2353_v34 = vpop.f32.mrb[142].mxu0  ;;  %v2833_v16 = vpop.f32.mrb[142].mxu1 }
 0x24f   : > { %v4016_v17 = vpack.c.bf16 %v3170_v25, %v3169_v54  ;;  %v3066_v2 = vmax.f32 %v6176_v30, %v3017_v55  ;;  %v3018_v3 = vmax.f32 %v2353_v34, %v2833_v16  ;;  %v4494_v62 = vpop.f32.mrb[143].mxu0  ;;  %v4602_v21 = vpop.f32.mrb[143].mxu1  ;;  %v6188_v30 = vld [vmem:[#allocation9_spill] sm:$0xff] }
 0x251   : > { %4096 = vst [vmem:[%s5820_s20 + $0x48] sm:$0xff] %v4016_v17   ;;  %v3122_v7 = vadd.f32 %v5807_v41, %v3066_v2  ;;  %v3067_v63 = vmax.f32 %v6177_v33, %v3018_v3  ;;  %v6189_v2 = vld [vmem:[#allocation10_spill] sm:$0xff] }
 0x252   : > { %v6190_v3 = vmax.f32 %v6188_v30, %v6189_v2 }
 0x253   : > { %v3123_v0 = vadd.f32 %v5807_v41, %v3067_v63  ;;  %v3171_v24 = vmax.f32 %v3122_v7, 0.0 }
 0x254   : > { %v2358_v44 = vpop.f32.mrb[144].mxu0  ;;  %v2838_v23 = vpop.f32.mrb[144].mxu1 }
 0x255   : > { %v3172_v45 = vmax.f32 %v3123_v0, 0.0  ;;  %v3019_v20 = vmax.f32 %v2358_v44, %v2838_v23  ;;  %v4497_v59 = vpop.f32.mrb[145].mxu0  ;;  %v4605_v60 = vpop.f32.mrb[145].mxu1  ;;  %v6191_v0 = vld [vmem:[#allocation11_spill] sm:$0xff]  ;;  %v6192_v44 = vld [vmem:[#allocation12_spill] sm:$0xff] }
 0x256   : > { %v2361_v10 = vpop.f32.mrb[146].mxu0  ;;  %v2841_v14 = vpop.f32.mrb[146].mxu1  ;;  %v6193_v23 = vmax.f32 %v6191_v0, %v6192_v44 }
 0x257   : > { %v4021_v36 = vpack.c.bf16 %v3172_v45, %v3171_v24  ;;  %v3068_v32 = vmax.f32 %v6178_v31, %v3019_v20  ;;  %v3020_v53 = vmax.f32 %v2361_v10, %v2841_v14  ;;  %v4498_v15 = vpop.f32.mrb[147].mxu0  ;;  %v4606_v61 = vpop.f32.mrb[147].mxu1 }
 0x258   : > { %v6194_v61 = vld [vmem:[#allocation13_spill] sm:$0xff] }
 0x259   : > { %4097 = vst [vmem:[%s5820_s20 + $0x50] sm:$0xff] %v4021_v36   ;;  %v3124_v6 = vadd.f32 %v5807_v41, %v3068_v32  ;;  %v3069_v4 = vmax.f32 %v6181_v27, %v3020_v53 }
 0x25b   : > { %v3125_v28 = vadd.f32 %v5807_v41, %v3069_v4  ;;  %v3173_v52 = vmax.f32 %v3124_v6, 0.0  ;;  %v6195_v6 = vld [vmem:[#allocation14_spill] sm:$0xff] }
 0x25c   : > { %v2366_v29 = vpop.f32.mrb[148].mxu0  ;;  %v2846_v5 = vpop.f32.mrb[148].mxu1  ;;  %v6196_v51 = vmax.f32 %v6194_v61, %v6195_v6 }
 0x25d   : > { %v3174_v39 = vmax.f32 %v3125_v28, 0.0  ;;  %v3021_v40 = vmax.f32 %v2366_v29, %v2846_v5  ;;  %v4501_v19 = vpop.f32.mrb[149].mxu0  ;;  %v4609_v49 = vpop.f32.mrb[149].mxu1  ;;  %v6197_v5 = vld [vmem:[#allocation15_spill] sm:$0xff] }
 0x25e   : > { %v2369_v47 = vpop.f32.mrb[150].mxu0  ;;  %v2849_v18 = vpop.f32.mrb[150].mxu1 }
 0x25f   : > { %v4026_v38 = vpack.c.bf16 %v3174_v39, %v3173_v52  ;;  %v3070_v1 = vmax.f32 %v6184_v43, %v3021_v40  ;;  %v3022_v11 = vmax.f32 %v2369_v47, %v2849_v18  ;;  %v4502_v12 = vpop.f32.mrb[151].mxu0  ;;  %v4610_v13 = vpop.f32.mrb[151].mxu1  ;;  %v6198_v52 = vld [vmem:[#allocation16_spill] sm:$0xff] }
 0x260   : > { %v6199_v39 = vmax.f32 %v6197_v5, %v6198_v52  ;;  %v6200_v13 = vld [vmem:[#allocation17_spill] sm:$0xff] }
 0x261   : > { %4098 = vst [vmem:[%s5820_s20 + $0x58] sm:$0xff] %v4026_v38   ;;  %v3126_v8 = vadd.f32 %v5807_v41, %v3070_v1  ;;  %v3071_v58 = vmax.f32 %v6187_v37, %v3022_v11 }
 0x263   : > { %v3127_v56 = vadd.f32 %v5807_v41, %v3071_v58  ;;  %v3175_v54 = vmax.f32 %v3126_v8, 0.0  ;;  %v6201_v8 = vld [vmem:[#allocation18_spill] sm:$0xff] }
 0x264   : > { %v2374_v57 = vpop.f32.mrb[152].mxu0  ;;  %v2854_v50 = vpop.f32.mrb[152].mxu1  ;;  %v6202_v9 = vmax.f32 %v6200_v13, %v6201_v8 }
 0x265   : > { %v3176_v25 = vmax.f32 %v3127_v56, 0.0  ;;  %v3023_v55 = vmax.f32 %v2374_v57, %v2854_v50  ;;  %v4505_v22 = vpop.f32.mrb[153].mxu0  ;;  %v4613_v35 = vpop.f32.mrb[153].mxu1  ;;  %v6203_v50 = vld [vmem:[#allocation19_spill] sm:$0xff] }
 0x266   : > { %v2377_v34 = vpop.f32.mrb[154].mxu0  ;;  %v2857_v16 = vpop.f32.mrb[154].mxu1 }
 0x267   : > { %v4031_v17 = vpack.c.bf16 %v3176_v25, %v3175_v54  ;;  %v3072_v62 = vmax.f32 %v6190_v3, %v3023_v55  ;;  %v3024_v21 = vmax.f32 %v2377_v34, %v2857_v16  ;;  %v4506_v7 = vpop.f32.mrb[155].mxu0  ;;  %v4614_v33 = vpop.f32.mrb[155].mxu1  ;;  %v6204_v54 = vld [vmem:[#allocation20_spill] sm:$0xff] }
 0x268   : > { %v6205_v25 = vmax.f32 %v6203_v50, %v6204_v54  ;;  %v6206_v33 = vld [vmem:[#allocation21_spill] sm:$0xff] }
 0x269   : > { %4099 = vst [vmem:[%s5820_s20 + $0x60] sm:$0xff] %v4031_v17   ;;  %v3128_v63 = vadd.f32 %v5807_v41, %v3072_v62  ;;  %v3073_v24 = vmax.f32 %v6193_v23, %v3024_v21 }
 0x26b   : > { %v3129_v45 = vadd.f32 %v5807_v41, %v3073_v24  ;;  %v3177_v60 = vmax.f32 %v3128_v63, 0.0  ;;  %v6207_v63 = vld [vmem:[#allocation22_spill] sm:$0xff] }
 0x26c   : > { %v2382_v20 = vpop.f32.mrb[156].mxu0  ;;  %v2862_v59 = vpop.f32.mrb[156].mxu1  ;;  %v6208_v0 = vmax.f32 %v6206_v33, %v6207_v63 }
 0x26d   : > { %v3178_v10 = vmax.f32 %v3129_v45, 0.0  ;;  %v3025_v14 = vmax.f32 %v2382_v20, %v2862_v59  ;;  %v4509_v36 = vpop.f32.mrb[157].mxu0  ;;  %v4617_v31 = vpop.f32.mrb[157].mxu1  ;;  %v6209_v59 = vld [vmem:[#allocation23_spill] sm:$0xff] }
 0x26e   : > { %v2385_v32 = vpop.f32.mrb[158].mxu0  ;;  %v2865_v53 = vpop.f32.mrb[158].mxu1 }
 0x26f   : > { %v4036_v15 = vpack.c.bf16 %v3178_v10, %v3177_v60  ;;  %v3074_v26 = vmax.f32 %v6196_v51, %v3025_v14  ;;  %v3026_v27 = vmax.f32 %v2385_v32, %v2865_v53  ;;  %v4510_v4 = vpop.f32.mrb[159].mxu0  ;;  %v4618_v28 = vpop.f32.mrb[159].mxu1  ;;  %v6210_v60 = vld [vmem:[#allocation24_spill] sm:$0xff] }
 0x270   : > { %v6211_v10 = vmax.f32 %v6209_v59, %v6210_v60  ;;  %v6212_v28 = vld [vmem:[#allocation25_spill] sm:$0xff] }
 0x271   : > { %4100 = vst [vmem:[%s5820_s20 + $0x68] sm:$0xff] %v4036_v15   ;;  %v3130_v29 = vadd.f32 %v5807_v41, %v3074_v26  ;;  %v3075_v40 = vmax.f32 %v6199_v39, %v3026_v27 }
 0x273   : > { %v3131_v19 = vadd.f32 %v5807_v41, %v3075_v40  ;;  %v3179_v18 = vmax.f32 %v3130_v29, 0.0  ;;  %v6213_v29 = vld [vmem:[#allocation26_spill] sm:$0xff] }
 0x274   : > { %v2390_v49 = vpop.f32.mrb[160].mxu0  ;;  %v2870_v47 = vpop.f32.mrb[160].mxu1  ;;  %v6214_v5 = vmax.f32 %v6212_v28, %v6213_v29 }
 0x275   : > { %v3180_v38 = vmax.f32 %v3131_v19, 0.0  ;;  %v3027_v48 = vmax.f32 %v2390_v49, %v2870_v47  ;;  %v4513_v42 = vpop.f32.mrb[161].mxu0  ;;  %v4621_v43 = vpop.f32.mrb[161].mxu1  ;;  %v6215_v47 = vld [vmem:[#allocation27_spill] sm:$0xff] }
 0x276   : > { %v2393_v1 = vpop.f32.mrb[162].mxu0  ;;  %v2873_v11 = vpop.f32.mrb[162].mxu1 }
 0x277   : > { %v4041_v12 = vpack.c.bf16 %v3180_v38, %v3179_v18  ;;  %v3076_v46 = vmax.f32 %v6202_v9, %v3027_v48  ;;  %v3028_v37 = vmax.f32 %v2393_v1, %v2873_v11  ;;  %v4514_v58 = vpop.f32.mrb[163].mxu0  ;;  %v4622_v56 = vpop.f32.mrb[163].mxu1  ;;  %v6216_v18 = vld [vmem:[#allocation28_spill] sm:$0xff] }
 0x278   : > { %v6217_v38 = vmax.f32 %v6215_v47, %v6216_v18  ;;  %v6218_v56 = vld [vmem:[#allocation29_spill] sm:$0xff] }
 0x279   : > { %4101 = vst [vmem:[%s5820_s20 + $0x70] sm:$0xff] %v4041_v12   ;;  %v3132_v57 = vadd.f32 %v5807_v41, %v3076_v46  ;;  %v3077_v55 = vmax.f32 %v6205_v25, %v3028_v37 }
 0x27b   : > { %v3133_v22 = vadd.f32 %v5807_v41, %v3077_v55  ;;  %v3181_v16 = vmax.f32 %v3132_v57, 0.0  ;;  %v6219_v57 = vld [vmem:[#allocation30_spill] sm:$0xff] }
 0x27c   : > { %v2398_v35 = vpop.f32.mrb[164].mxu0  ;;  %v2878_v34 = vpop.f32.mrb[164].mxu1  ;;  %v6220_v50 = vmax.f32 %v6218_v56, %v6219_v57 }
 0x27d   : > { %v3182_v17 = vmax.f32 %v3133_v22, 0.0  ;;  %v3029_v30 = vmax.f32 %v2398_v35, %v2878_v34  ;;  %v4517_v2 = vpop.f32.mrb[165].mxu0  ;;  %v4625_v3 = vpop.f32.mrb[165].mxu1  ;;  %v6221_v34 = vld [vmem:[#allocation31_spill] sm:$0xff] }
 0x27e   : > { %v2401_v62 = vpop.f32.mrb[166].mxu0  ;;  %v2881_v21 = vpop.f32.mrb[166].mxu1 }
 0x27f   : > { %v4046_v7 = vpack.c.bf16 %v3182_v17, %v3181_v16  ;;  %v3078_v44 = vmax.f32 %v6208_v0, %v3029_v30  ;;  %v3030_v23 = vmax.f32 %v2401_v62, %v2881_v21  ;;  %v4518_v24 = vpop.f32.mrb[167].mxu0  ;;  %v4626_v45 = vpop.f32.mrb[167].mxu1  ;;  %v6222_v16 = vld [vmem:[#allocation32_spill] sm:$0xff] }
 0x280   : > { %v6223_v17 = vmax.f32 %v6221_v34, %v6222_v16  ;;  %v6224_v45 = vld [vmem:[#allocation33_spill] sm:$0xff] }
 0x281   : > { %4102 = vst [vmem:[%s5820_s20 + $0x78] sm:$0xff] %v4046_v7   ;;  %v3134_v20 = vadd.f32 %v5807_v41, %v3078_v44  ;;  %v3079_v14 = vmax.f32 %v6211_v10, %v3030_v23 }
 0x283   : > { %v3135_v36 = vadd.f32 %v5807_v41, %v3079_v14  ;;  %v3183_v53 = vmax.f32 %v3134_v20, 0.0  ;;  %v6225_v20 = vld [vmem:[#allocation34_spill] sm:$0xff] }
 0x284   : > { %v2406_v31 = vpop.f32.mrb[168].mxu0  ;;  %v2886_v32 = vpop.f32.mrb[168].mxu1  ;;  %v6226_v59 = vmax.f32 %v6224_v45, %v6225_v20 }
 0x285   : > { %v3184_v15 = vmax.f32 %v3135_v36, 0.0  ;;  %v3031_v61 = vmax.f32 %v2406_v31, %v2886_v32  ;;  %v4521_v6 = vpop.f32.mrb[169].mxu0  ;;  %v4629_v51 = vpop.f32.mrb[169].mxu1  ;;  %v6227_v32 = vld [vmem:[#allocation35_spill] sm:$0xff] }
 0x286   : > { %v2409_v26 = vpop.f32.mrb[170].mxu0  ;;  %v2889_v27 = vpop.f32.mrb[170].mxu1 }
 0x287   : > { %v4051_v4 = vpack.c.bf16 %v3184_v15, %v3183_v53  ;;  %v3080_v52 = vmax.f32 %v6214_v5, %v3031_v61  ;;  %v3032_v39 = vmax.f32 %v2409_v26, %v2889_v27  ;;  %v4522_v40 = vpop.f32.mrb[171].mxu0  ;;  %v4630_v19 = vpop.f32.mrb[171].mxu1  ;;  %v6228_v53 = vld [vmem:[#allocation36_spill] sm:$0xff] }
 0x288   : > { %v6229_v15 = vmax.f32 %v6227_v32, %v6228_v53  ;;  %v6230_v19 = vld [vmem:[#allocation37_spill] sm:$0xff] }
 0x289   : > { %4103 = vst [vmem:[%s5820_s20 + $0x80] sm:$0xff] %v4051_v4   ;;  %v3136_v49 = vadd.f32 %v5807_v41, %v3080_v52  ;;  %v3081_v48 = vmax.f32 %v6217_v38, %v3032_v39 }
 0x28b   : > { %v3137_v42 = vadd.f32 %v5807_v41, %v3081_v48  ;;  %v3185_v11 = vmax.f32 %v3136_v49, 0.0  ;;  %v6231_v49 = vld [vmem:[#allocation38_spill] sm:$0xff] }
 0x28c   : > { %v2414_v43 = vpop.f32.mrb[172].mxu0  ;;  %v2894_v1 = vpop.f32.mrb[172].mxu1  ;;  %v6232_v47 = vmax.f32 %v6230_v19, %v6231_v49 }
 0x28d   : > { %v3186_v12 = vmax.f32 %v3137_v42, 0.0  ;;  %v3033_v13 = vmax.f32 %v2414_v43, %v2894_v1  ;;  %v4525_v8 = vpop.f32.mrb[173].mxu0  ;;  %v4633_v9 = vpop.f32.mrb[173].mxu1  ;;  %v6233_v1 = vld [vmem:[#allocation39_spill] sm:$0xff] }
 0x28e   : > { %v2417_v46 = vpop.f32.mrb[174].mxu0  ;;  %v2897_v37 = vpop.f32.mrb[174].mxu1 }
 0x28f   : > { %v4056_v58 = vpack.c.bf16 %v3186_v12, %v3185_v11  ;;  %v3082_v54 = vmax.f32 %v6220_v50, %v3033_v13  ;;  %v3034_v25 = vmax.f32 %v2417_v46, %v2897_v37  ;;  %v4526_v55 = vpop.f32.mrb[175].mxu0  ;;  %v4634_v22 = vpop.f32.mrb[175].mxu1  ;;  %v6234_v11 = vld [vmem:[#allocation40_spill] sm:$0xff] }
 0x290   : > { %v6235_v12 = vmax.f32 %v6233_v1, %v6234_v11  ;;  %v6236_v22 = vld [vmem:[#allocation41_spill] sm:$0xff] }
 0x291   : > { %4104 = vst [vmem:[%s5820_s20 + $0x88] sm:$0xff] %v4056_v58   ;;  %v3138_v35 = vadd.f32 %v5807_v41, %v3082_v54  ;;  %v3083_v30 = vmax.f32 %v6223_v17, %v3034_v25 }
 0x293   : > { %v3139_v2 = vadd.f32 %v5807_v41, %v3083_v30  ;;  %v3187_v21 = vmax.f32 %v3138_v35, 0.0  ;;  %v6237_v35 = vld [vmem:[#allocation42_spill] sm:$0xff] }
 0x294   : > { %v2422_v3 = vpop.f32.mrb[176].mxu0  ;;  %v2902_v62 = vpop.f32.mrb[176].mxu1  ;;  %v6238_v34 = vmax.f32 %v6236_v22, %v6237_v35 }
 0x295   : > { %v3188_v7 = vmax.f32 %v3139_v2, 0.0  ;;  %v3035_v33 = vmax.f32 %v2422_v3, %v2902_v62  ;;  %v4529_v63 = vpop.f32.mrb[177].mxu0  ;;  %v4637_v0 = vpop.f32.mrb[177].mxu1  ;;  %v6239_v62 = vld [vmem:[#allocation43_spill] sm:$0xff] }
 0x296   : > { %v2425_v44 = vpop.f32.mrb[178].mxu0  ;;  %v2905_v23 = vpop.f32.mrb[178].mxu1 }
 0x297   : > { %v4061_v24 = vpack.c.bf16 %v3188_v7, %v3187_v21  ;;  %v3084_v60 = vmax.f32 %v6226_v59, %v3035_v33  ;;  %v3036_v10 = vmax.f32 %v2425_v44, %v2905_v23  ;;  %v4530_v14 = vpop.f32.mrb[179].mxu0  ;;  %v4638_v36 = vpop.f32.mrb[179].mxu1  ;;  %v6240_v21 = vld [vmem:[#allocation44_spill] sm:$0xff] }
 0x298   : > { %v6241_v7 = vmax.f32 %v6239_v62, %v6240_v21  ;;  %v6242_v36 = vld [vmem:[#allocation45_spill] sm:$0xff] }
 0x299   : > { %4105 = vst [vmem:[%s5820_s20 + $0x90] sm:$0xff] %v4061_v24   ;;  %v3140_v31 = vadd.f32 %v5807_v41, %v3084_v60  ;;  %v3085_v61 = vmax.f32 %v6229_v15, %v3036_v10 }
 0x29b   : > { %v3141_v6 = vadd.f32 %v5807_v41, %v3085_v61  ;;  %v3189_v27 = vmax.f32 %v3140_v31, 0.0  ;;  %v6243_v31 = vld [vmem:[#allocation46_spill] sm:$0xff] }
 0x29c   : > { %v2430_v51 = vpop.f32.mrb[180].mxu0  ;;  %v2910_v26 = vpop.f32.mrb[180].mxu1  ;;  %v6244_v32 = vmax.f32 %v6242_v36, %v6243_v31 }
 0x29d   : > { %v3190_v4 = vmax.f32 %v3141_v6, 0.0  ;;  %v3037_v28 = vmax.f32 %v2430_v51, %v2910_v26  ;;  %v4533_v29 = vpop.f32.mrb[181].mxu0  ;;  %v4641_v5 = vpop.f32.mrb[181].mxu1  ;;  %v6245_v26 = vld [vmem:[#allocation47_spill] sm:$0xff] }
 0x29e   : > { %v2433_v52 = vpop.f32.mrb[182].mxu0  ;;  %v2913_v39 = vpop.f32.mrb[182].mxu1 }
 0x29f   : > { %v4066_v40 = vpack.c.bf16 %v3190_v4, %v3189_v27  ;;  %v3086_v18 = vmax.f32 %v6232_v47, %v3037_v28  ;;  %v3038_v38 = vmax.f32 %v2433_v52, %v2913_v39  ;;  %v4534_v48 = vpop.f32.mrb[183].mxu0  ;;  %v4642_v42 = vpop.f32.mrb[183].mxu1  ;;  %v6246_v27 = vld [vmem:[#allocation48_spill] sm:$0xff] }
 0x2a0   : > { %v6247_v4 = vmax.f32 %v6245_v26, %v6246_v27  ;;  %v6248_v42 = vld [vmem:[#allocation49_spill] sm:$0xff] }
 0x2a1   : > { %4106 = vst [vmem:[%s5820_s20 + $0x98] sm:$0xff] %v4066_v40   ;;  %v3142_v43 = vadd.f32 %v5807_v41, %v3086_v18  ;;  %v3087_v13 = vmax.f32 %v6235_v12, %v3038_v38 }
 0x2a3   : > { %v3143_v8 = vadd.f32 %v5807_v41, %v3087_v13  ;;  %v3191_v37 = vmax.f32 %v3142_v43, 0.0  ;;  %v6249_v43 = vld [vmem:[#allocation50_spill] sm:$0xff] }
 0x2a4   : > { %v2438_v9 = vpop.f32.mrb[184].mxu0  ;;  %v2918_v46 = vpop.f32.mrb[184].mxu1  ;;  %v6250_v1 = vmax.f32 %v6248_v42, %v6249_v43 }
 0x2a5   : > { %v3192_v58 = vmax.f32 %v3143_v8, 0.0  ;;  %v3039_v56 = vmax.f32 %v2438_v9, %v2918_v46  ;;  %v4537_v57 = vpop.f32.mrb[185].mxu0  ;;  %v4645_v50 = vpop.f32.mrb[185].mxu1  ;;  %v6251_v46 = vld [vmem:[#allocation51_spill] sm:$0xff] }
 0x2a6   : > { %v2441_v54 = vpop.f32.mrb[186].mxu0  ;;  %v2921_v25 = vpop.f32.mrb[186].mxu1 }
 0x2a7   : > { %v4071_v55 = vpack.c.bf16 %v3192_v58, %v3191_v37  ;;  %v3088_v16 = vmax.f32 %v6238_v34, %v3039_v56  ;;  %v3040_v17 = vmax.f32 %v2441_v54, %v2921_v25  ;;  %v4538_v30 = vpop.f32.mrb[187].mxu0  ;;  %v4646_v2 = vpop.f32.mrb[187].mxu1  ;;  %v6252_v37 = vld [vmem:[#allocation52_spill] sm:$0xff] }
 0x2a8   : > { %v6253_v58 = vmax.f32 %v6251_v46, %v6252_v37  ;;  %v6254_v2 = vld [vmem:[#allocation53_spill] sm:$0xff] }
 0x2a9   : > { %4107 = vst [vmem:[%s5820_s20 + $0xa0] sm:$0xff] %v4071_v55   ;;  %v3144_v3 = vadd.f32 %v5807_v41, %v3088_v16  ;;  %v3089_v33 = vmax.f32 %v6241_v7, %v3040_v17 }
 0x2ab   : > { %v3145_v63 = vadd.f32 %v5807_v41, %v3089_v33  ;;  %v3193_v23 = vmax.f32 %v3144_v3, 0.0  ;;  %v6255_v3 = vld [vmem:[#allocation54_spill] sm:$0xff] }
 0x2ac   : > { %v2446_v0 = vpop.f32.mrb[188].mxu0  ;;  %v2926_v44 = vpop.f32.mrb[188].mxu1  ;;  %v6256_v62 = vmax.f32 %v6254_v2, %v6255_v3 }
 0x2ad   : > { %v3194_v24 = vmax.f32 %v3145_v63, 0.0  ;;  %v3041_v45 = vmax.f32 %v2446_v0, %v2926_v44  ;;  %v4541_v20 = vpop.f32.mrb[189].mxu0  ;;  %v4649_v59 = vpop.f32.mrb[189].mxu1 }
 0x2ae   : > { %v2449_v60 = vpop.f32.mrb[190].mxu0  ;;  %v2929_v10 = vpop.f32.mrb[190].mxu1 }
 0x2af   : > { %v4076_v14 = vpack.c.bf16 %v3194_v24, %v3193_v23  ;;  %v3090_v53 = vmax.f32 %v6244_v32, %v3041_v45  ;;  %v3042_v15 = vmax.f32 %v2449_v60, %v2929_v10  ;;  %v4542_v61 = vpop.f32.mrb[191].mxu0  ;;  %v4650_v6 = vpop.f32.mrb[191].mxu1 }
 0x2b1   : > { %4108 = vst [vmem:[%s5820_s20 + $0xa8] sm:$0xff] %v4076_v14   ;;  %v3146_v51 = vadd.f32 %v5807_v41, %v3090_v53  ;;  %v3091_v28 = vmax.f32 %v6247_v4, %v3042_v15 }
 0x2b3   : > { %v3147_v29 = vadd.f32 %v5807_v41, %v3091_v28  ;;  %v3195_v39 = vmax.f32 %v3146_v51, 0.0 }
 0x2b4   : > { %v2454_v5 = vpop.f32.mrb[192].mxu0  ;;  %v2934_v52 = vpop.f32.mrb[192].mxu1 }
 0x2b5   : > { %v3196_v40 = vmax.f32 %v3147_v29, 0.0  ;;  %v3043_v19 = vmax.f32 %v2454_v5, %v2934_v52  ;;  %v4545_v49 = vpop.f32.mrb[193].mxu0  ;;  %v4653_v47 = vpop.f32.mrb[193].mxu1 }
 0x2b6   : > { %v2457_v18 = vpop.f32.mrb[194].mxu0  ;;  %v2937_v38 = vpop.f32.mrb[194].mxu1 }
 0x2b7   : > { %v4081_v48 = vpack.c.bf16 %v3196_v40, %v3195_v39  ;;  %v3092_v11 = vmax.f32 %v6250_v1, %v3043_v19  ;;  %v3044_v12 = vmax.f32 %v2457_v18, %v2937_v38  ;;  %v4546_v13 = vpop.f32.mrb[195].mxu0  ;;  %v4654_v8 = vpop.f32.mrb[195].mxu1 }
 0x2b9   : > { %4109 = vst [vmem:[%s5820_s20 + $0xb0] sm:$0xff] %v4081_v48   ;;  %v3148_v9 = vadd.f32 %v5807_v41, %v3092_v11  ;;  %v3093_v56 = vmax.f32 %v6253_v58, %v3044_v12 }
 0x2bb   : > { %v3149_v57 = vadd.f32 %v5807_v41, %v3093_v56  ;;  %v3197_v25 = vmax.f32 %v3148_v9, 0.0 }
 0x2bc   : > { %v2462_v50 = vpop.f32.mrb[196].mxu0  ;;  %v2942_v54 = vpop.f32.mrb[196].mxu1 }
 0x2bd   : > { %v3198_v55 = vmax.f32 %v3149_v57, 0.0  ;;  %v3045_v22 = vmax.f32 %v2462_v50, %v2942_v54  ;;  %v4549_v35 = vpop.f32.mrb[197].mxu0  ;;  %v4657_v34 = vpop.f32.mrb[197].mxu1 }
 0x2be   : > { %v2465_v16 = vpop.f32.mrb[198].mxu0  ;;  %v2945_v17 = vpop.f32.mrb[198].mxu1 }
 0x2bf   : > { %v4086_v30 = vpack.c.bf16 %v3198_v55, %v3197_v25  ;;  %v3094_v21 = vmax.f32 %v6256_v62, %v3045_v22  ;;  %v4550_v7 = vpop.f32.mrb[199].mxu0  ;;  %v4658_v33 = vpop.f32.mrb[199].mxu1 }
 0x2c1   : > { %4110 = vst [vmem:[%s5820_s20 + $0xb8] sm:$0xff] %v4086_v30   ;;  %v3150_v63 = vadd.f32 %v5807_v41, %v3094_v21 }
 0x2c3   : > { %v3199_v0 = vmax.f32 %v3150_v63, 0.0 }
 0x2c5   : > { %v3967_v44 = vpack.c.bf16 %v3199_v0, %v3199_v0 }
 0x2c7   : > { %3445 = vst [vmem:[%s5820_s20 + $0xc0] sm:$0xf] %v3967_v44 }
 0x2c8 PF: > { %p10_p9 = scmp.ge.s32.totalorder %s4854_s16, 4   ;;  %s6257_s12 = smov %s4809_s13 }
 0x2c9   : > { %s6258_s13 = smov %s4863_s19  ;;  %s6259_s14 = smov %s4854_s16 }
 0x2ca   :  { %12 = sbr.rel (!%p10_p9) target bundleno = 2 (0x2), region = 111 }

// kernel: net_forward.3
= control target key start
LH: loop header
LB: loop body
LE: loop exit
PB: predicated region body
PF: predicated region fallthrough
CT: control target
= control target key end

     0   :  { %14 = vsyncpa [#allocation5], 0  ;;  %s19161_s0 = inlined_call_operand.vmem [shape: bf16[4,576,288], index: 0, kind: input, shape index: {}]   ;;  %s19162_s1 = inlined_call_operand.vmem [shape: bf16[288,64], index: 1, kind: input, shape index: {}]   ;;  %s19163_s2 = inlined_call_operand.vmem [shape: f32[1,64], index: 2, kind: input, shape index: {}]   ;;  %s19164_s3 = inlined_call_operand.vmem [shape: bf16[2304,600], index: 3, kind: input, shape index: {}]   ;;  %s19165_s4 = inlined_call_operand.vmem [shape: f32[1,600], index: 4, kind: input, shape index: {}]   ;;  %s19166_s5 = inlined_call_operand.vmem [shape: bf16[600,120], index: 5, kind: input, shape index: {}]   ;;  %s19167_s6 = inlined_call_operand.vmem [shape: f32[1,120], index: 6, kind: input, shape index: {}]   ;;  %s19168_s7 = inlined_call_operand.vmem [shape: bf16[120,128], index: 7, kind: input, shape index: {}]   ;;  %s19169_s8 = inlined_call_operand.vmem [shape: f32[1,128], index: 8, kind: input, shape index: {}]   ;;  %s19170_s9 = inlined_call_operand.hbm [shape: f32[16,128], index: 9, kind: output, shape index: {}]  }
   0x1   :  { %16 = vsyncpa [#allocation5 + $0x1], 0  ;;  %s14561_s30 = smov 0   ;;  %s14563_s10 = smov 0  }
   0x2   :  { %s14565_s11 = smov 0   ;;  %s14567_s12 = smov 0  }
   0x3 LB: > { %s10789_s13 = sadd.s32 4294967295, %s14504_s12   ;;  %s10790_s14 = sadd.s32 4294967294, %s14504_s12   ;;  %s14504_s12 = sphi %s14567_s12, %s19423_s12   ;;  %s14500_s11 = sphi %s14565_s11, %s19422_s11   ;;  %s14496_s10 = sphi %s14563_s10, %s19421_s10   ;;  %s14492_s30 = sphi %s14561_s30, %s19420_s30  }
   0x4   : > { %s14584_s15 = sadd.s32 1, %s14504_s12   ;;  %s29_s16 = sadd.s32 1, %s14500_s11 }
   0x5   : > { %s26_s17 = ssub.s32 %s14504_s12, %s14584_s15  ;;  %p36_p0 = scmp.ne.s32.totalorder %s14500_s11, %s14496_s10 }
   0x6   : > { %p27_p1 = scmp.eq.s32.totalorder %s26_s17, 0  ;;  %p37_p2 = scmp.eq.s32.totalorder %s14504_s12, 0 }
   0x7   : > { %p234_p3 = scmp.eq.s32.totalorder %s10789_s13, 1  ;;  %p239_p4 = scmp.ne.s32.totalorder %s14496_s10, %s14492_s30 }
   0x8   : > { %s14597_s18 = scalar_select %p27_p1, %s14500_s11, %s29_s16  }
   0x9   : > { %p38_p5 = por %p37_p2, %p36_p0  ;;  %p14599_p6 = por %p234_p3, %p36_p0 }
   0xa   : > { %p240_p7 = scmp.eq.s32.totalorder %s10790_s14, 1  ;;  %p10792_p9 = scmp.ge.s32.totalorder %s14504_s12, 2 }
   0xc   : > { %p14603_p8 = por %p240_p7, %p239_p4  ;;  %280 = sbr.rel (%p10792_p9) target bundleno = 193 (0xc1), region = 48 }
  0x13   : > { %283 = sbr.rel (!%p38_p5) target bundleno = 193 (0xc1), region = 52  ;;  %s285_s21 = sand.u32 (%p38_p5), 1, %s14500_s11  }
  0x14   : > { %s13015_s22 = smul.u32 (%p38_p5), 1728, %s285_s21 }
  0x15   : > { %s13024_s23 = smul.u32 (%p38_p5), 432, %s14504_s12 }
  0x16   : > { %s14620_s27 = scalar_lea.vmem (%p38_p5), [#allocation3], %s13015_s22 }
  0x17   : > { %s14615_s26 = scalar_lea.vmem (%p38_p5), %s19161_s0, %s13024_s23 }
  0x18   : > { %v306_v0 = vld [vmem:[%s14615_s26] sm:$0xff] (%p38_p5)  ;;  %v308_v1 = vld [vmem:[%s14615_s26 + $0xc] sm:$0xff] (%p38_p5)  ;;  %v310_v2 = vld [vmem:[%s14615_s26 + $0x18] sm:$0xff] (%p38_p5) }
  0x19   : > { %307 = vst [vmem:[%s14620_s27] sm:$0xff] (%p38_p5), %v306_v0  ;;  %309 = vst [vmem:[%s14620_s27 + $0xc] sm:$0xff] (%p38_p5), %v308_v1  ;;  %v312_v3 = vld [vmem:[%s14615_s26 + $0x24] sm:$0xff] (%p38_p5)  ;;  %v314_v4 = vld [vmem:[%s14615_s26 + $0x30] sm:$0xff] (%p38_p5) }
  0x1a   : > { %311 = vst [vmem:[%s14620_s27 + $0x18] sm:$0xff] %v310_v2  ;;  %v316_v5 = vld [vmem:[%s14615_s26 + $0x3c] sm:$0xff]  ;;  %313 = vst [vmem:[%s14620_s27 + $0x24] sm:$0xff] %v312_v3  ;;  %v318_v6 = vld [vmem:[%s14615_s26 + $0x48] sm:$0xff] }
  0x1b   : > { %315 = vst [vmem:[%s14620_s27 + $0x30] sm:$0xff] %v314_v4  ;;  %317 = vst [vmem:[%s14620_s27 + $0x3c] sm:$0xff] %v316_v5  ;;  %v320_v7 = vld [vmem:[%s14615_s26 + $0x54] sm:$0xff]  ;;  %v322_v8 = vld [vmem:[%s14615_s26 + $0x60] sm:$0xff] }
  0x1c   : > { %319 = vst [vmem:[%s14620_s27 + $0x48] sm:$0xff] %v318_v6  ;;  %321 = vst [vmem:[%s14620_s27 + $0x54] sm:$0xff] %v320_v7  ;;  %v324_v9 = vld [vmem:[%s14615_s26 + $0x6c] sm:$0xff]  ;;  %v326_v10 = vld [vmem:[%s14615_s26 + $0x78] sm:$0xff] }
  0x1d   : > { %323 = vst [vmem:[%s14620_s27 + $0x60] sm:$0xff] %v322_v8  ;;  %v328_v11 = vld [vmem:[%s14615_s26 + $0x84] sm:$0xff]  ;;  %325 = vst [vmem:[%s14620_s27 + $0x6c] sm:$0xff] %v324_v9  ;;  %v330_v12 = vld [vmem:[%s14615_s26 + $0x90] sm:$0xff] }
  0x1e   : > { %327 = vst [vmem:[%s14620_s27 + $0x78] sm:$0xff] %v326_v10  ;;  %329 = vst [vmem:[%s14620_s27 + $0x84] sm:$0xff] %v328_v11  ;;  %v332_v13 = vld [vmem:[%s14615_s26 + $0x9c] sm:$0xff]  ;;  %v334_v14 = vld [vmem:[%s14615_s26 + $0xa8] sm:$0xff] }
  0x1f   : > { %331 = vst [vmem:[%s14620_s27 + $0x90] sm:$0xff] %v330_v12  ;;  %333 = vst [vmem:[%s14620_s27 + $0x9c] sm:$0xff] %v332_v13  ;;  %v336_v15 = vld [vmem:[%s14615_s26 + $0xb4] sm:$0xff]  ;;  %v338_v16 = vld [vmem:[%s14615_s26 + $0xc0] sm:$0xff] }
  0x20   : > { %335 = vst [vmem:[%s14620_s27 + $0xa8] sm:$0xff] %v334_v14  ;;  %v340_v17 = vld [vmem:[%s14615_s26 + $0xcc] sm:$0xff]  ;;  %337 = vst [vmem:[%s14620_s27 + $0xb4] sm:$0xff] %v336_v15  ;;  %v342_v18 = vld [vmem:[%s14615_s26 + $0xd8] sm:$0xff] }
  0x21   : > { %339 = vst [vmem:[%s14620_s27 + $0xc0] sm:$0xff] %v338_v16  ;;  %341 = vst [vmem:[%s14620_s27 + $0xcc] sm:$0xff] %v340_v17  ;;  %v344_v19 = vld [vmem:[%s14615_s26 + $0xe4] sm:$0xff]  ;;  %v346_v20 = vld [vmem:[%s14615_s26 + $0xf0] sm:$0xff] }
  0x22   : > { %343 = vst [vmem:[%s14620_s27 + $0xd8] sm:$0xff] %v342_v18  ;;  %345 = vst [vmem:[%s14620_s27 + $0xe4] sm:$0xff] %v344_v19  ;;  %v348_v21 = vld [vmem:[%s14615_s26 + $0xfc] sm:$0xff]  ;;  %v350_v22 = vld [vmem:[%s14615_s26 + $0x108] sm:$0xff] }
  0x23   : > { %347 = vst [vmem:[%s14620_s27 + $0xf0] sm:$0xff] %v346_v20  ;;  %v352_v23 = vld [vmem:[%s14615_s26 + $0x114] sm:$0xff]  ;;  %349 = vst [vmem:[%s14620_s27 + $0xfc] sm:$0xff] %v348_v21  ;;  %v354_v24 = vld [vmem:[%s14615_s26 + $0x120] sm:$0xff] }
  0x24   : > { %351 = vst [vmem:[%s14620_s27 + $0x108] sm:$0xff] %v350_v22  ;;  %353 = vst [vmem:[%s14620_s27 + $0x114] sm:$0xff] %v352_v23  ;;  %v356_v25 = vld [vmem:[%s14615_s26 + $0x12c] sm:$0xff]  ;;  %v358_v26 = vld [vmem:[%s14615_s26 + $0x138] sm:$0xff] }
  0x25   : > { %355 = vst [vmem:[%s14620_s27 + $0x120] sm:$0xff] %v354_v24  ;;  %357 = vst [vmem:[%s14620_s27 + $0x12c] sm:$0xff] %v356_v25  ;;  %v360_v27 = vld [vmem:[%s14615_s26 + $0x144] sm:$0xff]  ;;  %v362_v28 = vld [vmem:[%s14615_s26 + $0x150] sm:$0xff] }
  0x26   : > { %359 = vst [vmem:[%s14620_s27 + $0x138] sm:$0xff] %v358_v26  ;;  %v364_v29 = vld [vmem:[%s14615_s26 + $0x15c] sm:$0xff]  ;;  %361 = vst [vmem:[%s14620_s27 + $0x144] sm:$0xff] %v360_v27  ;;  %v366_v30 = vld [vmem:[%s14615_s26 + $0x168] sm:$0xff] }
  0x27   : > { %363 = vst [vmem:[%s14620_s27 + $0x150] sm:$0xff] %v362_v28  ;;  %365 = vst [vmem:[%s14620_s27 + $0x15c] sm:$0xff] %v364_v29  ;;  %v368_v31 = vld [vmem:[%s14615_s26 + $0x174] sm:$0xff]  ;;  %v370_v32 = vld [vmem:[%s14615_s26 + $0x180] sm:$0xff] }
  0x28   : > { %367 = vst [vmem:[%s14620_s27 + $0x168] sm:$0xff] %v366_v30  ;;  %369 = vst [vmem:[%s14620_s27 + $0x174] sm:$0xff] %v368_v31  ;;  %v372_v33 = vld [vmem:[%s14615_s26 + $0x18c] sm:$0xff]  ;;  %v374_v34 = vld [vmem:[%s14615_s26 + $0x198] sm:$0xff] }
  0x29   : > { %371 = vst [vmem:[%s14620_s27 + $0x180] sm:$0xff] %v370_v32  ;;  %v376_v35 = vld [vmem:[%s14615_s26 + $0x1a4] sm:$0xff]  ;;  %373 = vst [vmem:[%s14620_s27 + $0x18c] sm:$0xff] %v372_v33  ;;  %v380_v37 = vld [vmem:[%s14615_s26 + $0x36c] sm:$0xff] }
  0x2a   : > { %375 = vst [vmem:[%s14620_s27 + $0x198] sm:$0xff] %v374_v34  ;;  %377 = vst [vmem:[%s14620_s27 + $0x1a4] sm:$0xff] %v376_v35  ;;  %v378_v36 = vld [vmem:[%s14615_s26 + $0x360] sm:$0xff]  ;;  %v382_v38 = vld [vmem:[%s14615_s26 + $0x378] sm:$0xff] }
  0x2b   : > { %379 = vst [vmem:[%s14620_s27 + $0x1b0] sm:$0xff] %v378_v36  ;;  %381 = vst [vmem:[%s14620_s27 + $0x1bc] sm:$0xff] %v380_v37  ;;  %v384_v39 = vld [vmem:[%s14615_s26 + $0x384] sm:$0xff]  ;;  %v386_v40 = vld [vmem:[%s14615_s26 + $0x390] sm:$0xff] }
  0x2c   : > { %383 = vst [vmem:[%s14620_s27 + $0x1c8] sm:$0xff] %v382_v38  ;;  %v388_v41 = vld [vmem:[%s14615_s26 + $0x39c] sm:$0xff]  ;;  %385 = vst [vmem:[%s14620_s27 + $0x1d4] sm:$0xff] %v384_v39  ;;  %v390_v42 = vld [vmem:[%s14615_s26 + $0x3a8] sm:$0xff] }
  0x2d   : > { %387 = vst [vmem:[%s14620_s27 + $0x1e0] sm:$0xff] %v386_v40  ;;  %389 = vst [vmem:[%s14620_s27 + $0x1ec] sm:$0xff] %v388_v41  ;;  %v392_v43 = vld [vmem:[%s14615_s26 + $0x3b4] sm:$0xff]  ;;  %v394_v44 = vld [vmem:[%s14615_s26 + $0x3c0] sm:$0xff] }
  0x2e   : > { %391 = vst [vmem:[%s14620_s27 + $0x1f8] sm:$0xff] %v390_v42  ;;  %393 = vst [vmem:[%s14620_s27 + $0x204] sm:$0xff] %v392_v43  ;;  %v396_v45 = vld [vmem:[%s14615_s26 + $0x3cc] sm:$0xff]  ;;  %v398_v46 = vld [vmem:[%s14615_s26 + $0x3d8] sm:$0xff] }
  0x2f   : > { %395 = vst [vmem:[%s14620_s27 + $0x210] sm:$0xff] %v394_v44  ;;  %v400_v47 = vld [vmem:[%s14615_s26 + $0x3e4] sm:$0xff]  ;;  %397 = vst [vmem:[%s14620_s27 + $0x21c] sm:$0xff] %v396_v45  ;;  %v402_v48 = vld [vmem:[%s14615_s26 + $0x3f0] sm:$0xff] }
  0x30   : > { %399 = vst [vmem:[%s14620_s27 + $0x228] sm:$0xff] %v398_v46  ;;  %401 = vst [vmem:[%s14620_s27 + $0x234] sm:$0xff] %v400_v47  ;;  %v404_v49 = vld [vmem:[%s14615_s26 + $0x3fc] sm:$0xff]  ;;  %v406_v50 = vld [vmem:[%s14615_s26 + $0x408] sm:$0xff] }
  0x31   : > { %403 = vst [vmem:[%s14620_s27 + $0x240] sm:$0xff] %v402_v48  ;;  %405 = vst [vmem:[%s14620_s27 + $0x24c] sm:$0xff] %v404_v49  ;;  %v408_v51 = vld [vmem:[%s14615_s26 + $0x414] sm:$0xff]  ;;  %v410_v52 = vld [vmem:[%s14615_s26 + $0x420] sm:$0xff] }
  0x32   : > { %407 = vst [vmem:[%s14620_s27 + $0x258] sm:$0xff] %v406_v50  ;;  %v412_v53 = vld [vmem:[%s14615_s26 + $0x42c] sm:$0xff]  ;;  %409 = vst [vmem:[%s14620_s27 + $0x264] sm:$0xff] %v408_v51  ;;  %v414_v54 = vld [vmem:[%s14615_s26 + $0x438] sm:$0xff] }
  0x33   : > { %411 = vst [vmem:[%s14620_s27 + $0x270] sm:$0xff] %v410_v52  ;;  %413 = vst [vmem:[%s14620_s27 + $0x27c] sm:$0xff] %v412_v53  ;;  %v416_v55 = vld [vmem:[%s14615_s26 + $0x444] sm:$0xff]  ;;  %v418_v56 = vld [vmem:[%s14615_s26 + $0x450] sm:$0xff] }
  0x34   : > { %415 = vst [vmem:[%s14620_s27 + $0x288] sm:$0xff] %v414_v54  ;;  %417 = vst [vmem:[%s14620_s27 + $0x294] sm:$0xff] %v416_v55  ;;  %v420_v57 = vld [vmem:[%s14615_s26 + $0x45c] sm:$0xff]  ;;  %v422_v58 = vld [vmem:[%s14615_s26 + $0x468] sm:$0xff] }
  0x35   : > { %419 = vst [vmem:[%s14620_s27 + $0x2a0] sm:$0xff] %v418_v56  ;;  %v424_v59 = vld [vmem:[%s14615_s26 + $0x474] sm:$0xff]  ;;  %421 = vst [vmem:[%s14620_s27 + $0x2ac] sm:$0xff] %v420_v57  ;;  %v426_v60 = vld [vmem:[%s14615_s26 + $0x480] sm:$0xff] }
  0x36   : > { %423 = vst [vmem:[%s14620_s27 + $0x2b8] sm:$0xff] %v422_v58  ;;  %425 = vst [vmem:[%s14620_s27 + $0x2c4] sm:$0xff] %v424_v59  ;;  %v428_v61 = vld [vmem:[%s14615_s26 + $0x48c] sm:$0xff]  ;;  %v430_v62 = vld [vmem:[%s14615_s26 + $0x498] sm:$0xff] }
  0x37   : > { %427 = vst [vmem:[%s14620_s27 + $0x2d0] sm:$0xff] %v426_v60  ;;  %429 = vst [vmem:[%s14620_s27 + $0x2dc] sm:$0xff] %v428_v61  ;;  %v432_v63 = vld [vmem:[%s14615_s26 + $0x4a4] sm:$0xff]  ;;  %v434_v0 = vld [vmem:[%s14615_s26 + $0x4b0] sm:$0xff] }
  0x38   : > { %431 = vst [vmem:[%s14620_s27 + $0x2e8] sm:$0xff] %v430_v62  ;;  %v436_v1 = vld [vmem:[%s14615_s26 + $0x4bc] sm:$0xff]  ;;  %433 = vst [vmem:[%s14620_s27 + $0x2f4] sm:$0xff] %v432_v63  ;;  %v438_v2 = vld [vmem:[%s14615_s26 + $0x4c8] sm:$0xff] }
  0x39   : > { %435 = vst [vmem:[%s14620_s27 + $0x300] sm:$0xff] %v434_v0  ;;  %437 = vst [vmem:[%s14620_s27 + $0x30c] sm:$0xff] %v436_v1  ;;  %v440_v3 = vld [vmem:[%s14615_s26 + $0x4d4] sm:$0xff]  ;;  %v442_v4 = vld [vmem:[%s14615_s26 + $0x4e0] sm:$0xff] }
  0x3a   : > { %439 = vst [vmem:[%s14620_s27 + $0x318] sm:$0xff] %v438_v2  ;;  %441 = vst [vmem:[%s14620_s27 + $0x324] sm:$0xff] %v440_v3  ;;  %v444_v5 = vld [vmem:[%s14615_s26 + $0x4ec] sm:$0xff]  ;;  %v446_v6 = vld [vmem:[%s14615_s26 + $0x4f8] sm:$0xff] }
  0x3b   : > { %443 = vst [vmem:[%s14620_s27 + $0x330] sm:$0xff] %v442_v4  ;;  %v448_v7 = vld [vmem:[%s14615_s26 + $0x504] sm:$0xff]  ;;  %445 = vst [vmem:[%s14620_s27 + $0x33c] sm:$0xff] %v444_v5  ;;  %v452_v9 = vld [vmem:[%s14615_s26 + $0x6cc] sm:$0xff] }
  0x3c   : > { %447 = vst [vmem:[%s14620_s27 + $0x348] sm:$0xff] %v446_v6  ;;  %449 = vst [vmem:[%s14620_s27 + $0x354] sm:$0xff] %v448_v7  ;;  %v450_v8 = vld [vmem:[%s14615_s26 + $0x6c0] sm:$0xff]  ;;  %v454_v10 = vld [vmem:[%s14615_s26 + $0x6d8] sm:$0xff] }
  0x3d   : > { %451 = vst [vmem:[%s14620_s27 + $0x360] sm:$0xff] %v450_v8  ;;  %453 = vst [vmem:[%s14620_s27 + $0x36c] sm:$0xff] %v452_v9  ;;  %v456_v11 = vld [vmem:[%s14615_s26 + $0x6e4] sm:$0xff]  ;;  %v458_v12 = vld [vmem:[%s14615_s26 + $0x6f0] sm:$0xff] }
  0x3e   : > { %455 = vst [vmem:[%s14620_s27 + $0x378] sm:$0xff] %v454_v10  ;;  %v460_v13 = vld [vmem:[%s14615_s26 + $0x6fc] sm:$0xff]  ;;  %457 = vst [vmem:[%s14620_s27 + $0x384] sm:$0xff] %v456_v11  ;;  %v462_v14 = vld [vmem:[%s14615_s26 + $0x708] sm:$0xff] }
  0x3f   : > { %459 = vst [vmem:[%s14620_s27 + $0x390] sm:$0xff] %v458_v12  ;;  %461 = vst [vmem:[%s14620_s27 + $0x39c] sm:$0xff] %v460_v13  ;;  %v464_v15 = vld [vmem:[%s14615_s26 + $0x714] sm:$0xff]  ;;  %v466_v16 = vld [vmem:[%s14615_s26 + $0x720] sm:$0xff] }
  0x40   : > { %463 = vst [vmem:[%s14620_s27 + $0x3a8] sm:$0xff] %v462_v14  ;;  %465 = vst [vmem:[%s14620_s27 + $0x3b4] sm:$0xff] %v464_v15  ;;  %v468_v17 = vld [vmem:[%s14615_s26 + $0x72c] sm:$0xff]  ;;  %v470_v18 = vld [vmem:[%s14615_s26 + $0x738] sm:$0xff] }
  0x41   : > { %467 = vst [vmem:[%s14620_s27 + $0x3c0] sm:$0xff] %v466_v16  ;;  %v472_v19 = vld [vmem:[%s14615_s26 + $0x744] sm:$0xff]  ;;  %469 = vst [vmem:[%s14620_s27 + $0x3cc] sm:$0xff] %v468_v17  ;;  %v474_v20 = vld [vmem:[%s14615_s26 + $0x750] sm:$0xff] }
  0x42   : > { %471 = vst [vmem:[%s14620_s27 + $0x3d8] sm:$0xff] %v470_v18  ;;  %473 = vst [vmem:[%s14620_s27 + $0x3e4] sm:$0xff] %v472_v19  ;;  %v476_v21 = vld [vmem:[%s14615_s26 + $0x75c] sm:$0xff]  ;;  %v478_v22 = vld [vmem:[%s14615_s26 + $0x768] sm:$0xff] }
  0x43   : > { %475 = vst [vmem:[%s14620_s27 + $0x3f0] sm:$0xff] %v474_v20  ;;  %477 = vst [vmem:[%s14620_s27 + $0x3fc] sm:$0xff] %v476_v21  ;;  %v480_v23 = vld [vmem:[%s14615_s26 + $0x774] sm:$0xff]  ;;  %v482_v24 = vld [vmem:[%s14615_s26 + $0x780] sm:$0xff] }
  0x44   : > { %479 = vst [vmem:[%s14620_s27 + $0x408] sm:$0xff] %v478_v22  ;;  %v484_v25 = vld [vmem:[%s14615_s26 + $0x78c] sm:$0xff]  ;;  %481 = vst [vmem:[%s14620_s27 + $0x414] sm:$0xff] %v480_v23  ;;  %v486_v26 = vld [vmem:[%s14615_s26 + $0x798] sm:$0xff] }
  0x45   : > { %483 = vst [vmem:[%s14620_s27 + $0x420] sm:$0xff] %v482_v24  ;;  %485 = vst [vmem:[%s14620_s27 + $0x42c] sm:$0xff] %v484_v25  ;;  %v488_v27 = vld [vmem:[%s14615_s26 + $0x7a4] sm:$0xff]  ;;  %v490_v28 = vld [vmem:[%s14615_s26 + $0x7b0] sm:$0xff] }
  0x46   : > { %487 = vst [vmem:[%s14620_s27 + $0x438] sm:$0xff] %v486_v26  ;;  %489 = vst [vmem:[%s14620_s27 + $0x444] sm:$0xff] %v488_v27  ;;  %v492_v29 = vld [vmem:[%s14615_s26 + $0x7bc] sm:$0xff]  ;;  %v494_v30 = vld [vmem:[%s14615_s26 + $0x7c8] sm:$0xff] }
  0x47   : > { %491 = vst [vmem:[%s14620_s27 + $0x450] sm:$0xff] %v490_v28  ;;  %v496_v31 = vld [vmem:[%s14615_s26 + $0x7d4] sm:$0xff]  ;;  %493 = vst [vmem:[%s14620_s27 + $0x45c] sm:$0xff] %v492_v29  ;;  %v498_v32 = vld [vmem:[%s14615_s26 + $0x7e0] sm:$0xff] }
  0x48   : > { %495 = vst [vmem:[%s14620_s27 + $0x468] sm:$0xff] %v494_v30  ;;  %497 = vst [vmem:[%s14620_s27 + $0x474] sm:$0xff] %v496_v31  ;;  %v500_v33 = vld [vmem:[%s14615_s26 + $0x7ec] sm:$0xff]  ;;  %v502_v34 = vld [vmem:[%s14615_s26 + $0x7f8] sm:$0xff] }
  0x49   : > { %499 = vst [vmem:[%s14620_s27 + $0x480] sm:$0xff] %v498_v32  ;;  %501 = vst [vmem:[%s14620_s27 + $0x48c] sm:$0xff] %v500_v33  ;;  %v504_v35 = vld [vmem:[%s14615_s26 + $0x804] sm:$0xff]  ;;  %v506_v36 = vld [vmem:[%s14615_s26 + $0x810] sm:$0xff] }
  0x4a   : > { %503 = vst [vmem:[%s14620_s27 + $0x498] sm:$0xff] %v502_v34  ;;  %v508_v37 = vld [vmem:[%s14615_s26 + $0x81c] sm:$0xff]  ;;  %505 = vst [vmem:[%s14620_s27 + $0x4a4] sm:$0xff] %v504_v35  ;;  %v510_v38 = vld [vmem:[%s14615_s26 + $0x828] sm:$0xff] }
  0x4b   : > { %507 = vst [vmem:[%s14620_s27 + $0x4b0] sm:$0xff] %v506_v36  ;;  %509 = vst [vmem:[%s14620_s27 + $0x4bc] sm:$0xff] %v508_v37  ;;  %v512_v39 = vld [vmem:[%s14615_s26 + $0x834] sm:$0xff]  ;;  %v514_v40 = vld [vmem:[%s14615_s26 + $0x840] sm:$0xff] }
  0x4c   : > { %511 = vst [vmem:[%s14620_s27 + $0x4c8] sm:$0xff] %v510_v38  ;;  %513 = vst [vmem:[%s14620_s27 + $0x4d4] sm:$0xff] %v512_v39  ;;  %v516_v41 = vld [vmem:[%s14615_s26 + $0x84c] sm:$0xff]  ;;  %v518_v42 = vld [vmem:[%s14615_s26 + $0x858] sm:$0xff] }
  0x4d   : > { %515 = vst [vmem:[%s14620_s27 + $0x4e0] sm:$0xff] %v514_v40  ;;  %v520_v43 = vld [vmem:[%s14615_s26 + $0x864] sm:$0xff]  ;;  %517 = vst [vmem:[%s14620_s27 + $0x4ec] sm:$0xff] %v516_v41  ;;  %v524_v45 = vld [vmem:[%s14615_s26 + $0xa2c] sm:$0xff] }
  0x4e   : > { %519 = vst [vmem:[%s14620_s27 + $0x4f8] sm:$0xff] %v518_v42  ;;  %521 = vst [vmem:[%s14620_s27 + $0x504] sm:$0xff] %v520_v43  ;;  %v522_v44 = vld [vmem:[%s14615_s26 + $0xa20] sm:$0xff]  ;;  %v526_v46 = vld [vmem:[%s14615_s26 + $0xa38] sm:$0xff] }
  0x4f   : > { %523 = vst [vmem:[%s14620_s27 + $0x510] sm:$0xff] %v522_v44  ;;  %525 = vst [vmem:[%s14620_s27 + $0x51c] sm:$0xff] %v524_v45  ;;  %v528_v47 = vld [vmem:[%s14615_s26 + $0xa44] sm:$0xff]  ;;  %v530_v48 = vld [vmem:[%s14615_s26 + $0xa50] sm:$0xff] }
  0x50   : > { %527 = vst [vmem:[%s14620_s27 + $0x528] sm:$0xff] %v526_v46  ;;  %v532_v49 = vld [vmem:[%s14615_s26 + $0xa5c] sm:$0xff]  ;;  %529 = vst [vmem:[%s14620_s27 + $0x534] sm:$0xff] %v528_v47  ;;  %v534_v50 = vld [vmem:[%s14615_s26 + $0xa68] sm:$0xff] }
  0x51   : > { %531 = vst [vmem:[%s14620_s27 + $0x540] sm:$0xff] %v530_v48  ;;  %533 = vst [vmem:[%s14620_s27 + $0x54c] sm:$0xff] %v532_v49  ;;  %v536_v51 = vld [vmem:[%s14615_s26 + $0xa74] sm:$0xff]  ;;  %v538_v52 = vld [vmem:[%s14615_s26 + $0xa80] sm:$0xff] }
  0x52   : > { %535 = vst [vmem:[%s14620_s27 + $0x558] sm:$0xff] %v534_v50  ;;  %537 = vst [vmem:[%s14620_s27 + $0x564] sm:$0xff] %v536_v51  ;;  %v540_v53 = vld [vmem:[%s14615_s26 + $0xa8c] sm:$0xff]  ;;  %v542_v54 = vld [vmem:[%s14615_s26 + $0xa98] sm:$0xff] }
  0x53   : > { %539 = vst [vmem:[%s14620_s27 + $0x570] sm:$0xff] %v538_v52  ;;  %v544_v55 = vld [vmem:[%s14615_s26 + $0xaa4] sm:$0xff]  ;;  %541 = vst [vmem:[%s14620_s27 + $0x57c] sm:$0xff] %v540_v53  ;;  %v546_v56 = vld [vmem:[%s14615_s26 + $0xab0] sm:$0xff] }
  0x54   : > { %543 = vst [vmem:[%s14620_s27 + $0x588] sm:$0xff] %v542_v54  ;;  %545 = vst [vmem:[%s14620_s27 + $0x594] sm:$0xff] %v544_v55  ;;  %v548_v57 = vld [vmem:[%s14615_s26 + $0xabc] sm:$0xff]  ;;  %v550_v58 = vld [vmem:[%s14615_s26 + $0xac8] sm:$0xff] }
  0x55   : > { %547 = vst [vmem:[%s14620_s27 + $0x5a0] sm:$0xff] %v546_v56  ;;  %549 = vst [vmem:[%s14620_s27 + $0x5ac] sm:$0xff] %v548_v57  ;;  %v552_v59 = vld [vmem:[%s14615_s26 + $0xad4] sm:$0xff]  ;;  %v554_v60 = vld [vmem:[%s14615_s26 + $0xae0] sm:$0xff] }
  0x56   : > { %551 = vst [vmem:[%s14620_s27 + $0x5b8] sm:$0xff] %v550_v58  ;;  %v556_v61 = vld [vmem:[%s14615_s26 + $0xaec] sm:$0xff]  ;;  %553 = vst [vmem:[%s14620_s27 + $0x5c4] sm:$0xff] %v552_v59  ;;  %v558_v62 = vld [vmem:[%s14615_s26 + $0xaf8] sm:$0xff] }
  0x57   : > { %555 = vst [vmem:[%s14620_s27 + $0x5d0] sm:$0xff] %v554_v60  ;;  %557 = vst [vmem:[%s14620_s27 + $0x5dc] sm:$0xff] %v556_v61  ;;  %v560_v63 = vld [vmem:[%s14615_s26 + $0xb04] sm:$0xff]  ;;  %v562_v0 = vld [vmem:[%s14615_s26 + $0xb10] sm:$0xff] }
  0x58   : > { %559 = vst [vmem:[%s14620_s27 + $0x5e8] sm:$0xff] %v558_v62  ;;  %561 = vst [vmem:[%s14620_s27 + $0x5f4] sm:$0xff] %v560_v63  ;;  %v564_v1 = vld [vmem:[%s14615_s26 + $0xb1c] sm:$0xff]  ;;  %v566_v2 = vld [vmem:[%s14615_s26 + $0xb28] sm:$0xff] }
  0x59   : > { %563 = vst [vmem:[%s14620_s27 + $0x600] sm:$0xff] %v562_v0  ;;  %v568_v3 = vld [vmem:[%s14615_s26 + $0xb34] sm:$0xff]  ;;  %565 = vst [vmem:[%s14620_s27 + $0x60c] sm:$0xff] %v564_v1  ;;  %v570_v4 = vld [vmem:[%s14615_s26 + $0xb40] sm:$0xff] }
  0x5a   : > { %567 = vst [vmem:[%s14620_s27 + $0x618] sm:$0xff] %v566_v2  ;;  %569 = vst [vmem:[%s14620_s27 + $0x624] sm:$0xff] %v568_v3  ;;  %v572_v5 = vld [vmem:[%s14615_s26 + $0xb4c] sm:$0xff]  ;;  %v574_v6 = vld [vmem:[%s14615_s26 + $0xb58] sm:$0xff] }
  0x5b   : > { %571 = vst [vmem:[%s14620_s27 + $0x630] sm:$0xff] %v570_v4  ;;  %573 = vst [vmem:[%s14620_s27 + $0x63c] sm:$0xff] %v572_v5  ;;  %v576_v7 = vld [vmem:[%s14615_s26 + $0xb64] sm:$0xff]  ;;  %v578_v8 = vld [vmem:[%s14615_s26 + $0xb70] sm:$0xff] }
  0x5c   : > { %575 = vst [vmem:[%s14620_s27 + $0x648] sm:$0xff] %v574_v6  ;;  %v580_v9 = vld [vmem:[%s14615_s26 + $0xb7c] sm:$0xff]  ;;  %577 = vst [vmem:[%s14620_s27 + $0x654] sm:$0xff] %v576_v7  ;;  %v582_v10 = vld [vmem:[%s14615_s26 + $0xb88] sm:$0xff] }
  0x5d   : > { %579 = vst [vmem:[%s14620_s27 + $0x660] sm:$0xff] %v578_v8  ;;  %581 = vst [vmem:[%s14620_s27 + $0x66c] sm:$0xff] %v580_v9  ;;  %v584_v11 = vld [vmem:[%s14615_s26 + $0xb94] sm:$0xff]  ;;  %v586_v12 = vld [vmem:[%s14615_s26 + $0xba0] sm:$0xff] }
  0x5e   : > { %583 = vst [vmem:[%s14620_s27 + $0x678] sm:$0xff] %v582_v10  ;;  %585 = vst [vmem:[%s14620_s27 + $0x684] sm:$0xff] %v584_v11  ;;  %v588_v13 = vld [vmem:[%s14615_s26 + $0xbac] sm:$0xff]  ;;  %v590_v14 = vld [vmem:[%s14615_s26 + $0xbb8] sm:$0xff] }
  0x5f   : > { %587 = vst [vmem:[%s14620_s27 + $0x690] sm:$0xff] %v586_v12  ;;  %v592_v15 = vld [vmem:[%s14615_s26 + $0xbc4] sm:$0xff]  ;;  %589 = vst [vmem:[%s14620_s27 + $0x69c] sm:$0xff] %v588_v13  ;;  %v10796_v17 = vld [vmem:[%s14615_s26 + $0x14] sm:$0xf] }
  0x60   : > { %591 = vst [vmem:[%s14620_s27 + $0x6a8] sm:$0xff] %v590_v14  ;;  %593 = vst [vmem:[%s14620_s27 + $0x6b4] sm:$0xff] %v592_v15  ;;  %v10794_v16 = vld [vmem:[%s14615_s26 + $0x8] sm:$0xf]  ;;  %v10798_v18 = vld [vmem:[%s14615_s26 + $0x20] sm:$0xf] }
  0x61   : > { %10795 = vst [vmem:[%s14620_s27 + $0x8] sm:$0xf] %v10794_v16  ;;  %10797 = vst [vmem:[%s14620_s27 + $0x14] sm:$0xf] %v10796_v17  ;;  %v10800_v19 = vld [vmem:[%s14615_s26 + $0x2c] sm:$0xf] }
  0x62   : > { %10799 = vst [vmem:[%s14620_s27 + $0x20] sm:$0xf] %v10798_v18  ;;  %v10802_v20 = vld [vmem:[%s14615_s26 + $0x38] sm:$0xf]  ;;  %v10804_v21 = vld [vmem:[%s14615_s26 + $0x44] sm:$0xf] }
  0x63   : > { %10801 = vst [vmem:[%s14620_s27 + $0x2c] sm:$0xf] %v10800_v19  ;;  %10803 = vst [vmem:[%s14620_s27 + $0x38] sm:$0xf] %v10802_v20  ;;  %v10806_v22 = vld [vmem:[%s14615_s26 + $0x50] sm:$0xf] }
  0x64   : > { %10805 = vst [vmem:[%s14620_s27 + $0x44] sm:$0xf] %v10804_v21  ;;  %v10808_v23 = vld [vmem:[%s14615_s26 + $0x5c] sm:$0xf]  ;;  %v10810_v24 = vld [vmem:[%s14615_s26 + $0x68] sm:$0xf] }
  0x65   : > { %10807 = vst [vmem:[%s14620_s27 + $0x50] sm:$0xf] %v10806_v22  ;;  %10809 = vst [vmem:[%s14620_s27 + $0x5c] sm:$0xf] %v10808_v23  ;;  %v10812_v25 = vld [vmem:[%s14615_s26 + $0x74] sm:$0xf] }
  0x66   : > { %10811 = vst [vmem:[%s14620_s27 + $0x68] sm:$0xf] %v10810_v24  ;;  %v10814_v26 = vld [vmem:[%s14615_s26 + $0x80] sm:$0xf]  ;;  %v10816_v27 = vld [vmem:[%s14615_s26 + $0x8c] sm:$0xf] }
  0x67   : > { %10813 = vst [vmem:[%s14620_s27 + $0x74] sm:$0xf] %v10812_v25  ;;  %10815 = vst [vmem:[%s14620_s27 + $0x80] sm:$0xf] %v10814_v26  ;;  %v10818_v28 = vld [vmem:[%s14615_s26 + $0x98] sm:$0xf] }
  0x68   : > { %10817 = vst [vmem:[%s14620_s27 + $0x8c] sm:$0xf] %v10816_v27  ;;  %v10820_v29 = vld [vmem:[%s14615_s26 + $0xa4] sm:$0xf]  ;;  %v10822_v30 = vld [vmem:[%s14615_s26 + $0xb0] sm:$0xf] }
  0x69   : > { %10819 = vst [vmem:[%s14620_s27 + $0x98] sm:$0xf] %v10818_v28  ;;  %10821 = vst [vmem:[%s14620_s27 + $0xa4] sm:$0xf] %v10820_v29  ;;  %v10824_v31 = vld [vmem:[%s14615_s26 + $0xbc] sm:$0xf] }
  0x6a   : > { %10823 = vst [vmem:[%s14620_s27 + $0xb0] sm:$0xf] %v10822_v30  ;;  %v10826_v32 = vld [vmem:[%s14615_s26 + $0xc8] sm:$0xf]  ;;  %v10828_v33 = vld [vmem:[%s14615_s26 + $0xd4] sm:$0xf] }
  0x6b   : > { %10825 = vst [vmem:[%s14620_s27 + $0xbc] sm:$0xf] %v10824_v31  ;;  %10827 = vst [vmem:[%s14620_s27 + $0xc8] sm:$0xf] %v10826_v32  ;;  %v10830_v34 = vld [vmem:[%s14615_s26 + $0xe0] sm:$0xf] }
  0x6c   : > { %10829 = vst [vmem:[%s14620_s27 + $0xd4] sm:$0xf] %v10828_v33  ;;  %v10832_v35 = vld [vmem:[%s14615_s26 + $0xec] sm:$0xf]  ;;  %v10834_v36 = vld [vmem:[%s14615_s26 + $0xf8] sm:$0xf] }
  0x6d   : > { %10831 = vst [vmem:[%s14620_s27 + $0xe0] sm:$0xf] %v10830_v34  ;;  %10833 = vst [vmem:[%s14620_s27 + $0xec] sm:$0xf] %v10832_v35  ;;  %v10836_v37 = vld [vmem:[%s14615_s26 + $0x104] sm:$0xf] }
  0x6e   : > { %10835 = vst [vmem:[%s14620_s27 + $0xf8] sm:$0xf] %v10834_v36  ;;  %v10838_v38 = vld [vmem:[%s14615_s26 + $0x110] sm:$0xf]  ;;  %v10840_v39 = vld [vmem:[%s14615_s26 + $0x11c] sm:$0xf] }
  0x6f   : > { %10837 = vst [vmem:[%s14620_s27 + $0x104] sm:$0xf] %v10836_v37  ;;  %10839 = vst [vmem:[%s14620_s27 + $0x110] sm:$0xf] %v10838_v38  ;;  %v10842_v40 = vld [vmem:[%s14615_s26 + $0x128] sm:$0xf] }
  0x70   : > { %10841 = vst [vmem:[%s14620_s27 + $0x11c] sm:$0xf] %v10840_v39  ;;  %v10844_v41 = vld [vmem:[%s14615_s26 + $0x134] sm:$0xf]  ;;  %v10846_v42 = vld [vmem:[%s14615_s26 + $0x140] sm:$0xf] }
  0x71   : > { %10843 = vst [vmem:[%s14620_s27 + $0x128] sm:$0xf] %v10842_v40  ;;  %10845 = vst [vmem:[%s14620_s27 + $0x134] sm:$0xf] %v10844_v41  ;;  %v10848_v43 = vld [vmem:[%s14615_s26 + $0x14c] sm:$0xf] }
  0x72   : > { %10847 = vst [vmem:[%s14620_s27 + $0x140] sm:$0xf] %v10846_v42  ;;  %v10850_v44 = vld [vmem:[%s14615_s26 + $0x158] sm:$0xf]  ;;  %v10852_v45 = vld [vmem:[%s14615_s26 + $0x164] sm:$0xf] }
  0x73   : > { %10849 = vst [vmem:[%s14620_s27 + $0x14c] sm:$0xf] %v10848_v43  ;;  %10851 = vst [vmem:[%s14620_s27 + $0x158] sm:$0xf] %v10850_v44  ;;  %v10854_v46 = vld [vmem:[%s14615_s26 + $0x170] sm:$0xf] }
  0x74   : > { %10853 = vst [vmem:[%s14620_s27 + $0x164] sm:$0xf] %v10852_v45  ;;  %v10856_v47 = vld [vmem:[%s14615_s26 + $0x17c] sm:$0xf]  ;;  %v10858_v48 = vld [vmem:[%s14615_s26 + $0x188] sm:$0xf] }
  0x75   : > { %10855 = vst [vmem:[%s14620_s27 + $0x170] sm:$0xf] %v10854_v46  ;;  %10857 = vst [vmem:[%s14620_s27 + $0x17c] sm:$0xf] %v10856_v47  ;;  %v10860_v49 = vld [vmem:[%s14615_s26 + $0x194] sm:$0xf] }
  0x76   : > { %10859 = vst [vmem:[%s14620_s27 + $0x188] sm:$0xf] %v10858_v48  ;;  %v10862_v50 = vld [vmem:[%s14615_s26 + $0x1a0] sm:$0xf]  ;;  %v10864_v51 = vld [vmem:[%s14615_s26 + $0x1ac] sm:$0xf] }
  0x77   : > { %10861 = vst [vmem:[%s14620_s27 + $0x194] sm:$0xf] %v10860_v49  ;;  %10863 = vst [vmem:[%s14620_s27 + $0x1a0] sm:$0xf] %v10862_v50  ;;  %v10866_v52 = vld [vmem:[%s14615_s26 + $0x368] sm:$0xf] }
  0x78   : > { %10865 = vst [vmem:[%s14620_s27 + $0x1ac] sm:$0xf] %v10864_v51  ;;  %v10868_v53 = vld [vmem:[%s14615_s26 + $0x374] sm:$0xf]  ;;  %v10870_v54 = vld [vmem:[%s14615_s26 + $0x380] sm:$0xf] }
  0x79   : > { %10867 = vst [vmem:[%s14620_s27 + $0x1b8] sm:$0xf] %v10866_v52  ;;  %10869 = vst [vmem:[%s14620_s27 + $0x1c4] sm:$0xf] %v10868_v53  ;;  %v10872_v55 = vld [vmem:[%s14615_s26 + $0x38c] sm:$0xf] }
  0x7a   : > { %10871 = vst [vmem:[%s14620_s27 + $0x1d0] sm:$0xf] %v10870_v54  ;;  %v10874_v56 = vld [vmem:[%s14615_s26 + $0x398] sm:$0xf]  ;;  %v10876_v57 = vld [vmem:[%s14615_s26 + $0x3a4] sm:$0xf] }
  0x7b   : > { %10873 = vst [vmem:[%s14620_s27 + $0x1dc] sm:$0xf] %v10872_v55  ;;  %10875 = vst [vmem:[%s14620_s27 + $0x1e8] sm:$0xf] %v10874_v56  ;;  %v10878_v58 = vld [vmem:[%s14615_s26 + $0x3b0] sm:$0xf] }
  0x7c   : > { %10877 = vst [vmem:[%s14620_s27 + $0x1f4] sm:$0xf] %v10876_v57  ;;  %v10880_v59 = vld [vmem:[%s14615_s26 + $0x3bc] sm:$0xf]  ;;  %v10882_v60 = vld [vmem:[%s14615_s26 + $0x3c8] sm:$0xf] }
  0x7d   : > { %10879 = vst [vmem:[%s14620_s27 + $0x200] sm:$0xf] %v10878_v58  ;;  %10881 = vst [vmem:[%s14620_s27 + $0x20c] sm:$0xf] %v10880_v59  ;;  %v10884_v61 = vld [vmem:[%s14615_s26 + $0x3d4] sm:$0xf] }
  0x7e   : > { %10883 = vst [vmem:[%s14620_s27 + $0x218] sm:$0xf] %v10882_v60  ;;  %v10886_v62 = vld [vmem:[%s14615_s26 + $0x3e0] sm:$0xf]  ;;  %v10888_v63 = vld [vmem:[%s14615_s26 + $0x3ec] sm:$0xf] }
  0x7f   : > { %10885 = vst [vmem:[%s14620_s27 + $0x224] sm:$0xf] %v10884_v61  ;;  %10887 = vst [vmem:[%s14620_s27 + $0x230] sm:$0xf] %v10886_v62  ;;  %v10890_v0 = vld [vmem:[%s14615_s26 + $0x3f8] sm:$0xf] }
  0x80   : > { %10889 = vst [vmem:[%s14620_s27 + $0x23c] sm:$0xf] %v10888_v63  ;;  %v10892_v1 = vld [vmem:[%s14615_s26 + $0x404] sm:$0xf]  ;;  %v10894_v2 = vld [vmem:[%s14615_s26 + $0x410] sm:$0xf] }
  0x81   : > { %10891 = vst [vmem:[%s14620_s27 + $0x248] sm:$0xf] %v10890_v0  ;;  %10893 = vst [vmem:[%s14620_s27 + $0x254] sm:$0xf] %v10892_v1  ;;  %v10896_v3 = vld [vmem:[%s14615_s26 + $0x41c] sm:$0xf] }
  0x82   : > { %10895 = vst [vmem:[%s14620_s27 + $0x260] sm:$0xf] %v10894_v2  ;;  %v10898_v4 = vld [vmem:[%s14615_s26 + $0x428] sm:$0xf]  ;;  %v10900_v5 = vld [vmem:[%s14615_s26 + $0x434] sm:$0xf] }
  0x83   : > { %10897 = vst [vmem:[%s14620_s27 + $0x26c] sm:$0xf] %v10896_v3  ;;  %10899 = vst [vmem:[%s14620_s27 + $0x278] sm:$0xf] %v10898_v4  ;;  %v10902_v6 = vld [vmem:[%s14615_s26 + $0x440] sm:$0xf] }
  0x84   : > { %10901 = vst [vmem:[%s14620_s27 + $0x284] sm:$0xf] %v10900_v5  ;;  %v10904_v7 = vld [vmem:[%s14615_s26 + $0x44c] sm:$0xf]  ;;  %v10906_v8 = vld [vmem:[%s14615_s26 + $0x458] sm:$0xf] }
  0x85   : > { %10903 = vst [vmem:[%s14620_s27 + $0x290] sm:$0xf] %v10902_v6  ;;  %10905 = vst [vmem:[%s14620_s27 + $0x29c] sm:$0xf] %v10904_v7  ;;  %v10908_v9 = vld [vmem:[%s14615_s26 + $0x464] sm:$0xf] }
  0x86   : > { %10907 = vst [vmem:[%s14620_s27 + $0x2a8] sm:$0xf] %v10906_v8  ;;  %v10910_v10 = vld [vmem:[%s14615_s26 + $0x470] sm:$0xf]  ;;  %v10912_v11 = vld [vmem:[%s14615_s26 + $0x47c] sm:$0xf] }
  0x87   : > { %10909 = vst [vmem:[%s14620_s27 + $0x2b4] sm:$0xf] %v10908_v9  ;;  %10911 = vst [vmem:[%s14620_s27 + $0x2c0] sm:$0xf] %v10910_v10  ;;  %v10914_v12 = vld [vmem:[%s14615_s26 + $0x488] sm:$0xf] }
  0x88   : > { %10913 = vst [vmem:[%s14620_s27 + $0x2cc] sm:$0xf] %v10912_v11  ;;  %v10916_v13 = vld [vmem:[%s14615_s26 + $0x494] sm:$0xf]  ;;  %v10918_v14 = vld [vmem:[%s14615_s26 + $0x4a0] sm:$0xf] }
  0x89   : > { %10915 = vst [vmem:[%s14620_s27 + $0x2d8] sm:$0xf] %v10914_v12  ;;  %10917 = vst [vmem:[%s14620_s27 + $0x2e4] sm:$0xf] %v10916_v13  ;;  %v10920_v15 = vld [vmem:[%s14615_s26 + $0x4ac] sm:$0xf] }
  0x8a   : > { %10919 = vst [vmem:[%s14620_s27 + $0x2f0] sm:$0xf] %v10918_v14  ;;  %v10922_v16 = vld [vmem:[%s14615_s26 + $0x4b8] sm:$0xf]  ;;  %v10924_v17 = vld [vmem:[%s14615_s26 + $0x4c4] sm:$0xf] }
  0x8b   : > { %10921 = vst [vmem:[%s14620_s27 + $0x2fc] sm:$0xf] %v10920_v15  ;;  %10923 = vst [vmem:[%s14620_s27 + $0x308] sm:$0xf] %v10922_v16  ;;  %v10926_v18 = vld [vmem:[%s14615_s26 + $0x4d0] sm:$0xf] }
  0x8c   : > { %10925 = vst [vmem:[%s14620_s27 + $0x314] sm:$0xf] %v10924_v17  ;;  %v10928_v19 = vld [vmem:[%s14615_s26 + $0x4dc] sm:$0xf]  ;;  %v10930_v20 = vld [vmem:[%s14615_s26 + $0x4e8] sm:$0xf] }
  0x8d   : > { %10927 = vst [vmem:[%s14620_s27 + $0x320] sm:$0xf] %v10926_v18  ;;  %10929 = vst [vmem:[%s14620_s27 + $0x32c] sm:$0xf] %v10928_v19  ;;  %v10932_v21 = vld [vmem:[%s14615_s26 + $0x4f4] sm:$0xf] }
  0x8e   : > { %10931 = vst [vmem:[%s14620_s27 + $0x338] sm:$0xf] %v10930_v20  ;;  %v10934_v22 = vld [vmem:[%s14615_s26 + $0x500] sm:$0xf]  ;;  %v10936_v23 = vld [vmem:[%s14615_s26 + $0x50c] sm:$0xf] }
  0x8f   : > { %10933 = vst [vmem:[%s14620_s27 + $0x344] sm:$0xf] %v10932_v21  ;;  %10935 = vst [vmem:[%s14620_s27 + $0x350] sm:$0xf] %v10934_v22  ;;  %v10938_v24 = vld [vmem:[%s14615_s26 + $0x6c8] sm:$0xf] }
  0x90   : > { %10937 = vst [vmem:[%s14620_s27 + $0x35c] sm:$0xf] %v10936_v23  ;;  %v10940_v25 = vld [vmem:[%s14615_s26 + $0x6d4] sm:$0xf]  ;;  %v10942_v26 = vld [vmem:[%s14615_s26 + $0x6e0] sm:$0xf] }
  0x91   : > { %10939 = vst [vmem:[%s14620_s27 + $0x368] sm:$0xf] %v10938_v24  ;;  %10941 = vst [vmem:[%s14620_s27 + $0x374] sm:$0xf] %v10940_v25  ;;  %v10944_v27 = vld [vmem:[%s14615_s26 + $0x6ec] sm:$0xf] }
  0x92   : > { %10943 = vst [vmem:[%s14620_s27 + $0x380] sm:$0xf] %v10942_v26  ;;  %v10946_v28 = vld [vmem:[%s14615_s26 + $0x6f8] sm:$0xf]  ;;  %v10948_v29 = vld [vmem:[%s14615_s26 + $0x704] sm:$0xf] }
  0x93   : > { %10945 = vst [vmem:[%s14620_s27 + $0x38c] sm:$0xf] %v10944_v27  ;;  %10947 = vst [vmem:[%s14620_s27 + $0x398] sm:$0xf] %v10946_v28  ;;  %v10950_v30 = vld [vmem:[%s14615_s26 + $0x710] sm:$0xf] }
  0x94   : > { %10949 = vst [vmem:[%s14620_s27 + $0x3a4] sm:$0xf] %v10948_v29  ;;  %v10952_v31 = vld [vmem:[%s14615_s26 + $0x71c] sm:$0xf]  ;;  %v10954_v32 = vld [vmem:[%s14615_s26 + $0x728] sm:$0xf] }
  0x95   : > { %10951 = vst [vmem:[%s14620_s27 + $0x3b0] sm:$0xf] %v10950_v30  ;;  %10953 = vst [vmem:[%s14620_s27 + $0x3bc] sm:$0xf] %v10952_v31  ;;  %v10956_v33 = vld [vmem:[%s14615_s26 + $0x734] sm:$0xf] }
  0x96   : > { %10955 = vst [vmem:[%s14620_s27 + $0x3c8] sm:$0xf] %v10954_v32  ;;  %v10958_v34 = vld [vmem:[%s14615_s26 + $0x740] sm:$0xf]  ;;  %v10960_v35 = vld [vmem:[%s14615_s26 + $0x74c] sm:$0xf] }
  0x97   : > { %10957 = vst [vmem:[%s14620_s27 + $0x3d4] sm:$0xf] %v10956_v33  ;;  %10959 = vst [vmem:[%s14620_s27 + $0x3e0] sm:$0xf] %v10958_v34  ;;  %v10962_v36 = vld [vmem:[%s14615_s26 + $0x758] sm:$0xf] }
  0x98   : > { %10961 = vst [vmem:[%s14620_s27 + $0x3ec] sm:$0xf] %v10960_v35  ;;  %v10964_v37 = vld [vmem:[%s14615_s26 + $0x764] sm:$0xf]  ;;  %v10966_v38 = vld [vmem:[%s14615_s26 + $0x770] sm:$0xf] }
  0x99   : > { %10963 = vst [vmem:[%s14620_s27 + $0x3f8] sm:$0xf] %v10962_v36  ;;  %10965 = vst [vmem:[%s14620_s27 + $0x404] sm:$0xf] %v10964_v37  ;;  %v10968_v39 = vld [vmem:[%s14615_s26 + $0x77c] sm:$0xf] }
  0x9a   : > { %10967 = vst [vmem:[%s14620_s27 + $0x410] sm:$0xf] %v10966_v38  ;;  %v10970_v40 = vld [vmem:[%s14615_s26 + $0x788] sm:$0xf]  ;;  %v10972_v41 = vld [vmem:[%s14615_s26 + $0x794] sm:$0xf] }
  0x9b   : > { %10969 = vst [vmem:[%s14620_s27 + $0x41c] sm:$0xf] %v10968_v39  ;;  %10971 = vst [vmem:[%s14620_s27 + $0x428] sm:$0xf] %v10970_v40  ;;  %v10974_v42 = vld [vmem:[%s14615_s26 + $0x7a0] sm:$0xf] }
  0x9c   : > { %10973 = vst [vmem:[%s14620_s27 + $0x434] sm:$0xf] %v10972_v41  ;;  %v10976_v43 = vld [vmem:[%s14615_s26 + $0x7ac] sm:$0xf]  ;;  %v10978_v44 = vld [vmem:[%s14615_s26 + $0x7b8] sm:$0xf] }
  0x9d   : > { %10975 = vst [vmem:[%s14620_s27 + $0x440] sm:$0xf] %v10974_v42  ;;  %10977 = vst [vmem:[%s14620_s27 + $0x44c] sm:$0xf] %v10976_v43  ;;  %v10980_v45 = vld [vmem:[%s14615_s26 + $0x7c4] sm:$0xf] }
  0x9e   : > { %10979 = vst [vmem:[%s14620_s27 + $0x458] sm:$0xf] %v10978_v44  ;;  %v10982_v46 = vld [vmem:[%s14615_s26 + $0x7d0] sm:$0xf]  ;;  %v10984_v47 = vld [vmem:[%s14615_s26 + $0x7dc] sm:$0xf] }
  0x9f   : > { %10981 = vst [vmem:[%s14620_s27 + $0x464] sm:$0xf] %v10980_v45  ;;  %10983 = vst [vmem:[%s14620_s27 + $0x470] sm:$0xf] %v10982_v46  ;;  %v10986_v48 = vld [vmem:[%s14615_s26 + $0x7e8] sm:$0xf] }
  0xa0   : > { %10985 = vst [vmem:[%s14620_s27 + $0x47c] sm:$0xf] %v10984_v47  ;;  %v10988_v49 = vld [vmem:[%s14615_s26 + $0x7f4] sm:$0xf]  ;;  %v10990_v50 = vld [vmem:[%s14615_s26 + $0x800] sm:$0xf] }
  0xa1   : > { %10987 = vst [vmem:[%s14620_s27 + $0x488] sm:$0xf] %v10986_v48  ;;  %10989 = vst [vmem:[%s14620_s27 + $0x494] sm:$0xf] %v10988_v49  ;;  %v10992_v51 = vld [vmem:[%s14615_s26 + $0x80c] sm:$0xf] }
  0xa2   : > { %10991 = vst [vmem:[%s14620_s27 + $0x4a0] sm:$0xf] %v10990_v50  ;;  %v10994_v52 = vld [vmem:[%s14615_s26 + $0x818] sm:$0xf]  ;;  %v10996_v53 = vld [vmem:[%s14615_s26 + $0x824] sm:$0xf] }
  0xa3   : > { %10993 = vst [vmem:[%s14620_s27 + $0x4ac] sm:$0xf] %v10992_v51  ;;  %10995 = vst [vmem:[%s14620_s27 + $0x4b8] sm:$0xf] %v10994_v52  ;;  %v10998_v54 = vld [vmem:[%s14615_s26 + $0x830] sm:$0xf] }
  0xa4   : > { %10997 = vst [vmem:[%s14620_s27 + $0x4c4] sm:$0xf] %v10996_v53  ;;  %v11000_v55 = vld [vmem:[%s14615_s26 + $0x83c] sm:$0xf]  ;;  %v11002_v56 = vld [vmem:[%s14615_s26 + $0x848] sm:$0xf] }
  0xa5   : > { %10999 = vst [vmem:[%s14620_s27 + $0x4d0] sm:$0xf] %v10998_v54  ;;  %11001 = vst [vmem:[%s14620_s27 + $0x4dc] sm:$0xf] %v11000_v55  ;;  %v11004_v57 = vld [vmem:[%s14615_s26 + $0x854] sm:$0xf] }
  0xa6   : > { %11003 = vst [vmem:[%s14620_s27 + $0x4e8] sm:$0xf] %v11002_v56  ;;  %v11006_v58 = vld [vmem:[%s14615_s26 + $0x860] sm:$0xf]  ;;  %v11008_v59 = vld [vmem:[%s14615_s26 + $0x86c] sm:$0xf] }
  0xa7   : > { %11005 = vst [vmem:[%s14620_s27 + $0x4f4] sm:$0xf] %v11004_v57  ;;  %11007 = vst [vmem:[%s14620_s27 + $0x500] sm:$0xf] %v11006_v58  ;;  %v11010_v60 = vld [vmem:[%s14615_s26 + $0xa28] sm:$0xf] }
  0xa8   : > { %11009 = vst [vmem:[%s14620_s27 + $0x50c] sm:$0xf] %v11008_v59  ;;  %v11012_v61 = vld [vmem:[%s14615_s26 + $0xa34] sm:$0xf]  ;;  %v11014_v62 = vld [vmem:[%s14615_s26 + $0xa40] sm:$0xf] }
  0xa9   : > { %11011 = vst [vmem:[%s14620_s27 + $0x518] sm:$0xf] %v11010_v60  ;;  %11013 = vst [vmem:[%s14620_s27 + $0x524] sm:$0xf] %v11012_v61  ;;  %v11016_v63 = vld [vmem:[%s14615_s26 + $0xa4c] sm:$0xf] }
  0xaa   : > { %11015 = vst [vmem:[%s14620_s27 + $0x530] sm:$0xf] %v11014_v62  ;;  %v11018_v0 = vld [vmem:[%s14615_s26 + $0xa58] sm:$0xf]  ;;  %v11020_v1 = vld [vmem:[%s14615_s26 + $0xa64] sm:$0xf] }
  0xab   : > { %11017 = vst [vmem:[%s14620_s27 + $0x53c] sm:$0xf] %v11016_v63  ;;  %11019 = vst [vmem:[%s14620_s27 + $0x548] sm:$0xf] %v11018_v0  ;;  %v11022_v2 = vld [vmem:[%s14615_s26 + $0xa70] sm:$0xf] }
  0xac   : > { %11021 = vst [vmem:[%s14620_s27 + $0x554] sm:$0xf] %v11020_v1  ;;  %v11024_v3 = vld [vmem:[%s14615_s26 + $0xa7c] sm:$0xf]  ;;  %v11026_v4 = vld [vmem:[%s14615_s26 + $0xa88] sm:$0xf] }
  0xad   : > { %11023 = vst [vmem:[%s14620_s27 + $0x560] sm:$0xf] %v11022_v2  ;;  %11025 = vst [vmem:[%s14620_s27 + $0x56c] sm:$0xf] %v11024_v3  ;;  %v11028_v5 = vld [vmem:[%s14615_s26 + $0xa94] sm:$0xf] }
  0xae   : > { %11027 = vst [vmem:[%s14620_s27 + $0x578] sm:$0xf] %v11026_v4  ;;  %v11030_v6 = vld [vmem:[%s14615_s26 + $0xaa0] sm:$0xf]  ;;  %v11032_v7 = vld [vmem:[%s14615_s26 + $0xaac] sm:$0xf] }
  0xaf   : > { %11029 = vst [vmem:[%s14620_s27 + $0x584] sm:$0xf] %v11028_v5  ;;  %11031 = vst [vmem:[%s14620_s27 + $0x590] sm:$0xf] %v11030_v6  ;;  %v11034_v8 = vld [vmem:[%s14615_s26 + $0xab8] sm:$0xf] }
  0xb0   : > { %11033 = vst [vmem:[%s14620_s27 + $0x59c] sm:$0xf] %v11032_v7  ;;  %v11036_v9 = vld [vmem:[%s14615_s26 + $0xac4] sm:$0xf]  ;;  %v11038_v10 = vld [vmem:[%s14615_s26 + $0xad0] sm:$0xf] }
  0xb1   : > { %11035 = vst [vmem:[%s14620_s27 + $0x5a8] sm:$0xf] %v11034_v8  ;;  %11037 = vst [vmem:[%s14620_s27 + $0x5b4] sm:$0xf] %v11036_v9  ;;  %v11040_v11 = vld [vmem:[%s14615_s26 + $0xadc] sm:$0xf] }
  0xb2   : > { %11039 = vst [vmem:[%s14620_s27 + $0x5c0] sm:$0xf] %v11038_v10  ;;  %v11042_v12 = vld [vmem:[%s14615_s26 + $0xae8] sm:$0xf]  ;;  %v11044_v13 = vld [vmem:[%s14615_s26 + $0xaf4] sm:$0xf] }
  0xb3   : > { %11041 = vst [vmem:[%s14620_s27 + $0x5cc] sm:$0xf] %v11040_v11  ;;  %11043 = vst [vmem:[%s14620_s27 + $0x5d8] sm:$0xf] %v11042_v12  ;;  %v11046_v14 = vld [vmem:[%s14615_s26 + $0xb00] sm:$0xf] }
  0xb4   : > { %11045 = vst [vmem:[%s14620_s27 + $0x5e4] sm:$0xf] %v11044_v13  ;;  %v11048_v15 = vld [vmem:[%s14615_s26 + $0xb0c] sm:$0xf]  ;;  %v11050_v16 = vld [vmem:[%s14615_s26 + $0xb18] sm:$0xf] }
  0xb5   : > { %11047 = vst [vmem:[%s14620_s27 + $0x5f0] sm:$0xf] %v11046_v14  ;;  %11049 = vst [vmem:[%s14620_s27 + $0x5fc] sm:$0xf] %v11048_v15  ;;  %v11052_v17 = vld [vmem:[%s14615_s26 + $0xb24] sm:$0xf] }
  0xb6   : > { %11051 = vst [vmem:[%s14620_s27 + $0x608] sm:$0xf] %v11050_v16  ;;  %v11054_v18 = vld [vmem:[%s14615_s26 + $0xb30] sm:$0xf]  ;;  %v11056_v19 = vld [vmem:[%s14615_s26 + $0xb3c] sm:$0xf] }
  0xb7   : > { %11053 = vst [vmem:[%s14620_s27 + $0x614] sm:$0xf] %v11052_v17  ;;  %11055 = vst [vmem:[%s14620_s27 + $0x620] sm:$0xf] %v11054_v18  ;;  %v11058_v20 = vld [vmem:[%s14615_s26 + $0xb48] sm:$0xf] }
  0xb8   : > { %11057 = vst [vmem:[%s14620_s27 + $0x62c] sm:$0xf] %v11056_v19  ;;  %v11060_v21 = vld [vmem:[%s14615_s26 + $0xb54] sm:$0xf]  ;;  %v11062_v22 = vld [vmem:[%s14615_s26 + $0xb60] sm:$0xf] }
  0xb9   : > { %11059 = vst [vmem:[%s14620_s27 + $0x638] sm:$0xf] %v11058_v20  ;;  %11061 = vst [vmem:[%s14620_s27 + $0x644] sm:$0xf] %v11060_v21  ;;  %v11064_v23 = vld [vmem:[%s14615_s26 + $0xb6c] sm:$0xf] }
  0xba   : > { %11063 = vst [vmem:[%s14620_s27 + $0x650] sm:$0xf] %v11062_v22  ;;  %v11066_v24 = vld [vmem:[%s14615_s26 + $0xb78] sm:$0xf]  ;;  %v11068_v25 = vld [vmem:[%s14615_s26 + $0xb84] sm:$0xf] }
  0xbb   : > { %11065 = vst [vmem:[%s14620_s27 + $0x65c] sm:$0xf] %v11064_v23  ;;  %11067 = vst [vmem:[%s14620_s27 + $0x668] sm:$0xf] %v11066_v24  ;;  %v11070_v26 = vld [vmem:[%s14615_s26 + $0xb90] sm:$0xf] }
  0xbc   : > { %11069 = vst [vmem:[%s14620_s27 + $0x674] sm:$0xf] %v11068_v25  ;;  %v11072_v27 = vld [vmem:[%s14615_s26 + $0xb9c] sm:$0xf]  ;;  %v11074_v28 = vld [vmem:[%s14615_s26 + $0xba8] sm:$0xf] }
  0xbd   : > { %11071 = vst [vmem:[%s14620_s27 + $0x680] sm:$0xf] %v11070_v26  ;;  %11073 = vst [vmem:[%s14620_s27 + $0x68c] sm:$0xf] %v11072_v27  ;;  %v11076_v29 = vld [vmem:[%s14615_s26 + $0xbb4] sm:$0xf] }
  0xbe   : > { %11075 = vst [vmem:[%s14620_s27 + $0x698] sm:$0xf] %v11074_v28  ;;  %v11078_v30 = vld [vmem:[%s14615_s26 + $0xbc0] sm:$0xf]  ;;  %v11080_v31 = vld [vmem:[%s14615_s26 + $0xbcc] sm:$0xf] }
  0xbf   : > { %11077 = vst [vmem:[%s14620_s27 + $0x6a4] sm:$0xf] %v11076_v29  ;;  %11079 = vst [vmem:[%s14620_s27 + $0x6b0] sm:$0xf] %v11078_v30 }
  0xc0   : > { %11081 = vst [vmem:[%s14620_s27 + $0x6bc] sm:$0xf] %v11080_v31 }
  0xc1 PF: > { %p11082_p10 = scmp.ge.s32.totalorder %s14504_s12, 1  ;;  %p893_p11 = scmp.lt.s32.totalorder %s14504_s12, 3 }
  0xc3   : > { %p894_p12 = pnand %p11082_p10, %p893_p11 }
  0xc5   : > { %897 = sbr.rel (%p894_p12) target bundleno = 2281 (0x8e9), region = 78 }
  0xcc   : > { %v15200_v32 = vld [vmem:[%s19162_s1] sm:$0xff]   ;;  %v14506_v33 = vmov 0   ;;  %s15209_s17 = sand.u32 1, %s14496_s10   ;;  %v15215_v35 = vld [vmem:[%s19162_s1 + $0x8] sm:$0xff]   ;;  %vm1423_vm0 = vcmask 261120   ;;  %v15234_v38 = vld [vmem:[%s19162_s1 + $0x10] sm:$0xff]  }
  0xcd   : > { %1478 = vmatprep.subr.bf16.mxu0 %v14506_v33  ;;  %v15206_v34 = vld [vmem:[%s19162_s1 + $0x80] sm:$0xff]   ;;  %s13017_s23 = smul.u32 1728, %s15209_s17  ;;  %v15223_v36 = vld [vmem:[%s19162_s1 + $0x88] sm:$0xff]   ;;  %v15246_v41 = vld [vmem:[%s19162_s1 + $0x18] sm:$0xff]   ;;  %vm4272_vm1 = vcmask 523264   ;;  %s14507_s25 = smov 64  }
  0xce   : > { %1479 = vmatpush1.bf16.msra.mxu0 %v15200_v32  ;;  %12719 = vmatprep.subr.bf16.mxu1 %v15206_v34  ;;  %v15257_v42 = vld [vmem:[%s19162_s1 + $0x20] sm:$0xff]   ;;  %v15268_v45 = vld [vmem:[%s19162_s1 + $0x28] sm:$0xff]   ;;  %v15279_v46 = vld [vmem:[%s19162_s1 + $0x30] sm:$0xff]   ;;  %vm4278_vm2 = vcmask 1048064   ;;  %vm10467_vm3 = vcmask 1043456   ;;  %vm14509_vm4 = vmmov 0  }
  0xcf   : > { %1480 = vmatprep.subr.bf16.mxu0 %v14506_v33  ;;  %12720 = vmatpush3.bf16.msra.mxu1 %v15206_v34  ;;  %s15227_s26 = scalar_lea.vmem [#allocation3], %s13017_s23  ;;  %v15290_v49 = vld [vmem:[%s19162_s1 + $0x38] sm:$0xff]   ;;  %v15301_v50 = vld [vmem:[%s19162_s1 + $0x40] sm:$0xff]   ;;  %v15313_v54 = vld [vmem:[%s19162_s1 + $0x48] sm:$0xff]   ;;  %vm10463_vm5 = vcmask 719872   ;;  %vm10659_vm6 = vcmask 982016  }
  0xd0   : > { %12721 = vmatprep.subr.bf16.mxu1 %v15223_v36  ;;  %v13066_v37 = vld [vmem:[%s15227_s26 + $0x8] ss:$12 sps:$4 sm:$0xff]   ;;  %v13068_v39 = vld [vmem:[%s15227_s26 + $0x20] ss:$12 sps:$4 sm:$0xff]   ;;  %v13070_v40 = vld [vmem:[%s15227_s26 + $0x38] ss:$12 sps:$4 sm:$0xff]  }
  0xd1   : > { %12723 = vmatprep.mubr.msk.bf16.mxu1 %vm1423_vm0, %v13066_v37  ;;  %v13072_v43 = vld [vmem:[%s15227_s26 + $0x50] ss:$12 sps:$4 sm:$0xff]   ;;  %v13074_v44 = vld [vmem:[%s15227_s26 + $0x68] ss:$12 sps:$4 sm:$0xff]   ;;  %v13076_v47 = vld [vmem:[%s15227_s26 + $0x80] ss:$12 sps:$4 sm:$0xff]  }
  0xd2   : > { %1481 = vmatpush1.bf16.msra.mxu0 %v15215_v35  ;;  %v13078_v48 = vld [vmem:[%s15227_s26 + $0x98] ss:$12 sps:$4 sm:$0xff]   ;;  %v13080_v51 = vld [vmem:[%s15227_s26 + $0xb0] ss:$12 sps:$4 sm:$0xff]   ;;  %v13082_v52 = vld [vmem:[%s15227_s26 + $0xc8] ss:$12 sps:$4 sm:$0xff]  }
  0xd3   : > { %1482 = vmatprep.subr.bf16.mxu0 %v14506_v33  ;;  %12722 = vmatpush3.bf16.msra.mxu1 %v15223_v36  ;;  %v13096_v53 = vld [vmem:[%s15227_s26 + $0x4] ss:$12 sps:$4 sm:$0xff]   ;;  %v13084_v56 = vld [vmem:[%s15227_s26 + $0xe0] ss:$12 sps:$4 sm:$0xff]   ;;  %v13090_v61 = vld [vmem:[%s15227_s26 + $0x128] ss:$12 sps:$4 sm:$0xff]  }
  0xd4   : > { %2229 = vmatprep.subr.bf16.mxu1 %v14506_v33  ;;  %1510 = vmatprep.mubr.bf16.mxu0 %v13096_v53  ;;  %v15324_v55 = vld [vmem:[%s19162_s1 + $0x50] sm:$0xff]   ;;  %v15335_v58 = vld [vmem:[%s19162_s1 + $0x58] sm:$0xff]   ;;  %v15346_v59 = vld [vmem:[%s19162_s1 + $0x60] sm:$0xff]   ;;  %s11083_s23 = sshll.u32 %s15209_s17, 3  ;;  %s10708_s21 = scalar_lea.sflag [#allocation5], %s15209_s17 }
  0xd5   : > { %v13086_v57 = vld [vmem:[%s15227_s26 + $0xf8] ss:$12 sps:$4 sm:$0xff]   ;;  %v13088_v60 = vld [vmem:[%s15227_s26 + $0x110] ss:$12 sps:$4 sm:$0xff]   ;;  %v13092_v0 = vld [vmem:[%s15227_s26 + $0x140] ss:$12 sps:$4 sm:$0xff]  }
  0xd6   : > { %1483 = vmatpush1.bf16.msra.mxu0 %v15234_v38  ;;  %12724 = vmatmul.mubr.msk.bf16.vlgmr.msra.gmra.mrb[0].mxu1 %vm1423_vm0, %v13068_v39  ;;  %v15357_v62 = vld [vmem:[%s19162_s1 + $0x68] sm:$0xff]   ;;  %v15368_v63 = vld [vmem:[%s19162_s1 + $0x70] sm:$0xff]   ;;  %v15379_v2 = vld [vmem:[%s19162_s1 + $0x78] sm:$0xff]   ;;  %s934_s27 = scalar_lea.vmem [#allocation4], %s11083_s23  ;;  %s14510_s22 = smov [#allocation4]  }
  0xd7   : > { %1484 = vmatprep.subr.bf16.mxu0 %v14506_v33  ;;  %2230 = vmatpush1.bf16.msra.mxu1 %v15200_v32  ;;  %v13097_v1 = vld [vmem:[%s15227_s26 + $0x158] ss:$12 sps:$4 sm:$0xff]   ;;  %v13094_v3 = vld [vmem:[%s15227_s26] ss:$12 sps:$4 sm:$0xff]   ;;  %v13099_v4 = vld [vmem:[%s15227_s26 + $0x1c] ss:$12 sps:$4 sm:$0xff]  }
  0xd8   : > { %12727 = vmatprep.mubr.msk.bf16.mxu1 %vm1423_vm0, %v13070_v40  ;;  %2231 = vmatprep.subr.bf16.mxu1 %v14506_v33  ;;  %v13098_v5 = vld [vmem:[%s15227_s26 + $0x170] ss:$12 sps:$4 sm:$0xff]   ;;  %v13102_v6 = vld [vmem:[%s15227_s26 + $0x188] ss:$12 sps:$4 sm:$0xff]   ;;  %v13101_v7 = vld [vmem:[%s15227_s26 + $0x18] ss:$12 sps:$4 sm:$0xff]  }
  0xd9   : > { %v13104_v8 = vld [vmem:[%s15227_s26 + $0x34] ss:$12 sps:$4 sm:$0xff]   ;;  %v13106_v11 = vld [vmem:[%s15227_s26 + $0x30] ss:$12 sps:$4 sm:$0xff]   ;;  %v13110_v12 = vld [vmem:[%s15227_s26 + $0x4c] ss:$12 sps:$4 sm:$0xff]  }
  0xda   : > { %1485 = vmatpush1.bf16.msra.mxu0 %v15246_v41  ;;  %v13103_v9 = vld [vmem:[%s15227_s26 + $0x1a0] ss:$12 sps:$4 sm:$0xff]   ;;  %v13107_v13 = vld [vmem:[%s15227_s26 + $0x1b0] ss:$12 sps:$4 sm:$0xff]   ;;  %v13112_v15 = vld [vmem:[%s15227_s26 + $0x48] ss:$12 sps:$4 sm:$0xff]  }
  0xdb   : > { %1486 = vmatprep.subr.bf16.mxu0 %v14506_v33  ;;  %2232 = vmatpush1.bf16.msra.mxu1 %v15215_v35  ;;  %v13109_v10 = vld [vmem:[%s15227_s26 + $0x1b4] ss:$12 sps:$4 sm:$0xff]   ;;  %v13113_v14 = vld [vmem:[%s15227_s26 + $0x1cc] ss:$12 sps:$4 sm:$0xff]   ;;  %v13116_v17 = vld [vmem:[%s15227_s26 + $0x64] ss:$12 sps:$4 sm:$0xff]  }
  0xdc   : > { %2233 = vmatprep.subr.bf16.mxu1 %v14506_v33  ;;  %v13115_v16 = vld [vmem:[%s15227_s26 + $0x1c8] ss:$12 sps:$4 sm:$0xff]   ;;  %v13119_v18 = vld [vmem:[%s15227_s26 + $0x1e4] ss:$12 sps:$4 sm:$0xff]   ;;  %v13118_v19 = vld [vmem:[%s15227_s26 + $0x60] ss:$12 sps:$4 sm:$0xff]  }
  0xdd   : > { %v13122_v20 = vld [vmem:[%s15227_s26 + $0x7c] ss:$12 sps:$4 sm:$0xff]   ;;  %v13121_v21 = vld [vmem:[%s15227_s26 + $0x1e0] ss:$12 sps:$4 sm:$0xff]   ;;  %v13124_v23 = vld [vmem:[%s15227_s26 + $0x78] ss:$12 sps:$4 sm:$0xff]  }
  0xde   : > { %1487 = vmatpush1.bf16.msra.mxu0 %v15257_v42  ;;  %12728 = vmatmul.mubr.msk.bf16.gmra.mrb[4].mxu1 %vm1423_vm0, %v13072_v43  ;;  %v13125_v22 = vld [vmem:[%s15227_s26 + $0x1fc] ss:$12 sps:$4 sm:$0xff]   ;;  %v13128_v24 = vld [vmem:[%s15227_s26 + $0x94] ss:$12 sps:$4 sm:$0xff]   ;;  %v13127_v25 = vld [vmem:[%s15227_s26 + $0x1f8] ss:$12 sps:$4 sm:$0xff]  }
  0xdf   : > { %1488 = vmatprep.subr.bf16.mxu0 %v14506_v33  ;;  %2234 = vmatpush1.bf16.msra.mxu1 %v15234_v38  ;;  %v13131_v26 = vld [vmem:[%s15227_s26 + $0x214] ss:$12 sps:$4 sm:$0xff]   ;;  %v13130_v27 = vld [vmem:[%s15227_s26 + $0x90] ss:$12 sps:$4 sm:$0xff]   ;;  %v13134_v28 = vld [vmem:[%s15227_s26 + $0xac] ss:$12 sps:$4 sm:$0xff]  }
  0xe0   : > { %12731 = vmatprep.mubr.msk.bf16.mxu1 %vm1423_vm0, %v13074_v44  ;;  %2235 = vmatprep.subr.bf16.mxu1 %v14506_v33  ;;  %v13133_v29 = vld [vmem:[%s15227_s26 + $0x210] ss:$12 sps:$4 sm:$0xff]   ;;  %v13137_v30 = vld [vmem:[%s15227_s26 + $0x22c] ss:$12 sps:$4 sm:$0xff]   ;;  %v13136_v31 = vld [vmem:[%s15227_s26 + $0xa8] ss:$12 sps:$4 sm:$0xff]  }
  0xe1   : > { %v13146_v37 = vld [vmem:[%s15227_s26 + $0xdc] ss:$12 sps:$4 sm:$0xff]   ;;  %v13148_v40 = vld [vmem:[%s15227_s26 + $0xd8] ss:$12 sps:$4 sm:$0xff]   ;;  %v13155_v43 = vld [vmem:[%s15227_s26 + $0x274] ss:$12 sps:$4 sm:$0xff]  }
  0xe2   : > { %1489 = vmatpush1.bf16.msra.mxu0 %v15268_v45  ;;  %v13149_v39 = vld [vmem:[%s15227_s26 + $0x25c] ss:$12 sps:$4 sm:$0xff]   ;;  %s10721_s28 = sshll.u32 %s934_s27, 4  ;;  %s14446_s23 = sshll.u32 %s14510_s22, 4  ;;  %s19119_s28 = int_to_ptr.vmem [resolvable:$true] %s10721_s28  ;;  %s14447_s23 = int_to_ptr.vmem [resolvable:$false] %s14446_s23 }
  0xe3   : > { %1490 = vmatprep.subr.bf16.mxu0 %v14506_v33  ;;  %2236 = vmatpush1.bf16.msra.mxu1 %v15246_v41  ;;  %v13154_v44 = vld [vmem:[%s15227_s26 + $0xf0] ss:$12 sps:$4 sm:$0xff]   ;;  %p14449_p2 = scmp.lt.s32.totalorder %s19119_s28, %s14447_s23 }
  0xe4   : > { %2237 = vmatprep.subr.bf16.mxu1 %v14506_v33  ;;  %v13170_v53 = vld [vmem:[%s15227_s26 + $0x13c] ss:$12 sps:$4 sm:$0xff]  }
  0xe6   : > { %1491 = vmatpush1.bf16.msra.mxu0 %v15279_v46  ;;  %12732 = vmatmul.mubr.msk.bf16.gmra.mrb[8].mxu1 %vm1423_vm0, %v13076_v47  ;;  %v13161_v47 = vld [vmem:[%s15227_s26 + $0x28c] ss:$12 sps:$4 sm:$0xff]  }
  0xe7   : > { %1492 = vmatprep.subr.bf16.mxu0 %v14506_v33  ;;  %2238 = vmatpush1.bf16.msra.mxu1 %v15257_v42 }
  0xe8   : > { %12735 = vmatprep.mubr.msk.bf16.mxu1 %vm1423_vm0, %v13078_v48  ;;  %2239 = vmatprep.subr.bf16.mxu1 %v14506_v33  ;;  %v13160_v48 = vld [vmem:[%s15227_s26 + $0x108] ss:$12 sps:$4 sm:$0xff]  }
  0xea   : > { %1493 = vmatpush1.bf16.msra.mxu0 %v15290_v49 }
  0xeb   : > { %1494 = vmatprep.subr.bf16.mxu0 %v14506_v33  ;;  %2240 = vmatpush1.bf16.msra.mxu1 %v15268_v45 }
  0xec   : > { %2241 = vmatprep.subr.bf16.mxu1 %v14506_v33 }
  0xee   : > { %1495 = vmatpush1.bf16.msra.mxu0 %v15301_v50  ;;  %12736 = vmatmul.mubr.msk.bf16.gmra.mrb[12].mxu1 %vm1423_vm0, %v13080_v51  ;;  %v13167_v51 = vld [vmem:[%s15227_s26 + $0x2a4] ss:$12 sps:$4 sm:$0xff]  }
  0xef   : > { %1496 = vmatprep.subr.bf16.mxu0 %v14506_v33  ;;  %2242 = vmatpush1.bf16.msra.mxu1 %v15279_v46 }
  0xf0   : > { %12739 = vmatprep.mubr.msk.bf16.mxu1 %vm1423_vm0, %v13082_v52  ;;  %2243 = vmatprep.subr.bf16.mxu1 %v14506_v33  ;;  %v13166_v52 = vld [vmem:[%s15227_s26 + $0x120] ss:$12 sps:$4 sm:$0xff]  }
  0xf2   : > { %1497 = vmatpush1.bf16.msra.mxu0 %v15313_v54 }
  0xf3   : > { %1498 = vmatprep.subr.bf16.mxu0 %v14506_v33  ;;  %2244 = vmatpush1.bf16.msra.mxu1 %v15290_v49 }
  0xf4   : > { %2245 = vmatprep.subr.bf16.mxu1 %v14506_v33 }
  0xf6   : > { %1499 = vmatpush1.bf16.msra.mxu0 %v15324_v55  ;;  %12740 = vmatmul.mubr.msk.bf16.gmra.mrb[16].mxu1 %vm1423_vm0, %v13084_v56  ;;  %v13172_v56 = vld [vmem:[%s15227_s26 + $0x138] ss:$12 sps:$4 sm:$0xff]  }
  0xf7   : > { %1500 = vmatprep.subr.bf16.mxu0 %v14506_v33  ;;  %2246 = vmatpush1.bf16.msra.mxu1 %v15301_v50 }
  0xf8   : > { %12743 = vmatprep.mubr.msk.bf16.mxu1 %vm1423_vm0, %v13086_v57  ;;  %2247 = vmatprep.subr.bf16.mxu1 %v14506_v33  ;;  %v13176_v57 = vld [vmem:[%s15227_s26 + $0x154] ss:$12 sps:$4 sm:$0xff]  }
  0xfa   : > { %1501 = vmatpush1.bf16.msra.mxu0 %v15335_v58 }
  0xfb   : > { %1502 = vmatprep.subr.bf16.mxu0 %v14506_v33  ;;  %2248 = vmatpush1.bf16.msra.mxu1 %v15313_v54 }
  0xfc   : > { %2249 = vmatprep.subr.bf16.mxu1 %v14506_v33 }
  0xfe   : > { %1503 = vmatpush1.bf16.msra.mxu0 %v15346_v59  ;;  %12744 = vmatmul.mubr.msk.bf16.gmra.mrb[20].mxu1 %vm1423_vm0, %v13088_v60  ;;  %v13178_v60 = vld [vmem:[%s15227_s26 + $0x150] ss:$12 sps:$4 sm:$0xff]  }
  0xff   : > { %1504 = vmatprep.subr.bf16.mxu0 %v14506_v33  ;;  %2250 = vmatpush1.bf16.msra.mxu1 %v15324_v55 }
 0x100   : > { %12747 = vmatprep.mubr.msk.bf16.mxu1 %vm1423_vm0, %v13090_v61  ;;  %2251 = vmatprep.subr.bf16.mxu1 %v14506_v33  ;;  %v13182_v61 = vld [vmem:[%s15227_s26 + $0x16c] ss:$12 sps:$4 sm:$0xff]  }
 0x102   : > { %1505 = vmatpush1.bf16.msra.mxu0 %v15357_v62 }
 0x103   : > { %1506 = vmatprep.subr.bf16.mxu0 %v14506_v33  ;;  %2252 = vmatpush1.bf16.msra.mxu1 %v15335_v58 }
 0x104   : > { %2253 = vmatprep.subr.bf16.mxu1 %v14506_v33 }
 0x106   : > { %1507 = vmatpush1.bf16.msra.mxu0 %v15368_v63  ;;  %12748 = vmatmul.mubr.msk.bf16.gmra.mrb[24].mxu1 %vm1423_vm0, %v13092_v0  ;;  %v13184_v0 = vld [vmem:[%s15227_s26 + $0x168] ss:$12 sps:$4 sm:$0xff]  }
 0x107   : > { %1508 = vmatprep.subr.bf16.mxu0 %v14506_v33  ;;  %12751 = vmatprep.mubr.msk.bf16.mxu1 %vm1423_vm0, %v13097_v1  ;;  %v13188_v1 = vld [vmem:[%s15227_s26 + $0x184] ss:$12 sps:$4 sm:$0xff]  }
 0x108   : > { %2254 = vmatpush1.bf16.msra.mxu1 %v15346_v59 }
 0x109   : > { %2255 = vmatprep.subr.bf16.mxu1 %v14506_v33 }
 0x10a   : > { %1509 = vmatpush1.bf16.msra.mxu0 %v15379_v2 }
 0x10b   : > { %12759 = vmatprep.subr.bf16.mxu0 %v15206_v34 }
 0x10c   : > { %2256 = vmatpush1.bf16.msra.mxu1 %v15357_v62 }
 0x10d   : > { %1511 = vmatmul.mubr.bf16.vlgmr.msra.gmra.mrb[0].mxu0 %v13094_v3  ;;  %2257 = vmatprep.subr.bf16.mxu1 %v14506_v33  ;;  %v13191_v3 = vld [vmem:[%s15227_s26 + $0x304] ss:$12 sps:$4 sm:$0xff]  }
 0x10e   : > { %1518 = vmatprep.mubr.bf16.mxu0 %v13099_v4  ;;  %12760 = vmatpush3.bf16.msra.mxu0 %v15206_v34  ;;  %v13190_v4 = vld [vmem:[%s15227_s26 + $0x180] ss:$12 sps:$4 sm:$0xff]  }
 0x10f   : > { %12752 = vmatmul.mubr.msk.bf16.gmra.mrb[28].mxu1 %vm1423_vm0, %v13098_v5  ;;  %12761 = vmatprep.subr.bf16.mxu0 %v15223_v36  ;;  %v13194_v5 = vld [vmem:[%s15227_s26 + $0x19c] ss:$12 sps:$4 sm:$0xff]  }
 0x110   : > { %12755 = vmatprep.mubr.msk.bf16.mxu1 %vm1423_vm0, %v13102_v6  ;;  %2258 = vmatpush1.bf16.msra.mxu1 %v15368_v63  ;;  %v13193_v6 = vld [vmem:[%s15227_s26 + $0x300] ss:$12 sps:$4 sm:$0xff]  }
 0x111   : > { %2259 = vmatprep.subr.bf16.mxu1 %v14506_v33 }
 0x112   : > { %12762 = vmatpush3.bf16.msra.mxu0 %v15223_v36  ;;  %v13142_v36 = vld [vmem:[%s15227_s26 + $0xc0] ss:$12 sps:$4 sm:$0xff]  }
 0x113   : > { %12799 = vmatprep.subr.bf16.mxu0 %v15206_v34  ;;  %v13139_v34 = vld [vmem:[%s15227_s26 + $0x228] ss:$12 sps:$4 sm:$0xff]  }
 0x114   : > { %2260 = vmatpush1.bf16.msra.mxu1 %v15379_v2 }
 0x115   : > { %1519 = vmatmul.mubr.bf16.gmra.mrb[4].mxu0 %v13101_v7  ;;  %2980 = vmatprep.subr.bf16.mxu1 %v14506_v33  ;;  %v13197_v7 = vld [vmem:[%s15227_s26 + $0x31c] ss:$12 sps:$4 sm:$0xff]  }
 0x116   : > { %1526 = vmatprep.mubr.bf16.mxu0 %v13104_v8  ;;  %v13196_v8 = vld [vmem:[%s15227_s26 + $0x198] ss:$12 sps:$4 sm:$0xff]  }
 0x117   : > { %12756 = vmatmul.mubr.msk.bf16.gmra.mrb[32].mxu1 %vm1423_vm0, %v13103_v9  ;;  %v13200_v9 = vld [vmem:[%s15227_s26 + $0x1b8] ss:$12 sps:$4 sm:$0xff]  }
 0x118   : > { %2261 = vmatprep.mubr.bf16.mxu1 %v13109_v10  ;;  %v13199_v10 = vld [vmem:[%s15227_s26 + $0x318] ss:$12 sps:$4 sm:$0xff]  }
 0x11d   : > { %1527 = vmatmul.mubr.bf16.gmra.mrb[8].mxu0 %v13106_v11  ;;  %v13201_v11 = vld [vmem:[%s15227_s26 + $0x334] ss:$12 sps:$4 sm:$0xff]  }
 0x11e   : > { %1534 = vmatprep.mubr.bf16.mxu0 %v13110_v12  ;;  %v13203_v12 = vld [vmem:[%s15227_s26 + $0x1d0] ss:$12 sps:$4 sm:$0xff]  }
 0x11f   : > { %2262 = vmatmul.mubr.bf16.vlgmr.msra.gmra.mrb[36].mxu1 %v13107_v13  ;;  %v13205_v13 = vld [vmem:[%s15227_s26 + $0x1e8] ss:$12 sps:$4 sm:$0xff]  }
 0x120   : > { %2981 = vmatpush1.bf16.msra.mxu1 %v15200_v32  ;;  %2269 = vmatprep.mubr.bf16.mxu1 %v13113_v14  ;;  %v13140_v32 = vld [vmem:[%s15227_s26 + $0xc4] ss:$12 sps:$4 sm:$0xff]  }
 0x121   : > { %2982 = vmatprep.subr.bf16.mxu1 %v14506_v33  ;;  %v13204_v14 = vld [vmem:[%s15227_s26 + $0x330] ss:$12 sps:$4 sm:$0xff]  }
 0x124   : > { %2983 = vmatpush1.bf16.msra.mxu1 %v15215_v35  ;;  %v13143_v35 = vld [vmem:[%s15227_s26 + $0x244] ss:$12 sps:$4 sm:$0xff]  }
 0x125   : > { %1535 = vmatmul.mubr.bf16.gmra.mrb[12].mxu0 %v13112_v15  ;;  %2984 = vmatprep.subr.bf16.mxu1 %v14506_v33  ;;  %v13206_v15 = vld [vmem:[%s15227_s26 + $0x34c] ss:$12 sps:$4 sm:$0xff]  }
 0x126   : > { %1542 = vmatprep.mubr.bf16.mxu0 %v13116_v17  ;;  %v13208_v17 = vld [vmem:[%s15227_s26 + $0x200] ss:$12 sps:$4 sm:$0xff]  }
 0x127   : > { %2270 = vmatmul.mubr.bf16.gmra.mrb[40].mxu1 %v13115_v16  ;;  %v15515_v16 = vld [vmem:[%s19162_s1 + $0x80] sm:$0xff]  }
 0x128   : > { %2277 = vmatprep.mubr.bf16.mxu1 %v13119_v18  ;;  %2985 = vmatpush1.bf16.msra.mxu1 %v15234_v38  ;;  %v13145_v38 = vld [vmem:[%s15227_s26 + $0x240] ss:$12 sps:$4 sm:$0xff]   ;;  %v14423_v18 = vld [vmem:[%s19162_s1 + $0x88] sm:$0xff]  }
 0x129   : > { %2986 = vmatprep.subr.bf16.mxu1 %v14506_v33 }
 0x12c   : > { %2987 = vmatpush1.bf16.msra.mxu1 %v15246_v41  ;;  %v13152_v41 = vld [vmem:[%s15227_s26 + $0xf4] ss:$12 sps:$4 sm:$0xff]  }
 0x12d   : > { %1543 = vmatmul.mubr.bf16.gmra.mrb[16].mxu0 %v13118_v19  ;;  %2988 = vmatprep.subr.bf16.mxu1 %v14506_v33  ;;  %v13210_v19 = vld [vmem:[%s15227_s26 + $0x218] ss:$12 sps:$4 sm:$0xff]  }
 0x12e   : > { %1550 = vmatprep.mubr.bf16.mxu0 %v13122_v20  ;;  %v13209_v20 = vld [vmem:[%s15227_s26 + $0x348] ss:$12 sps:$4 sm:$0xff]  }
 0x12f   : > { %2278 = vmatmul.mubr.bf16.gmra.mrb[44].mxu1 %v13121_v21  ;;  %v13214_v21 = vld [vmem:[%s15227_s26 + $0x364] ss:$12 sps:$4 sm:$0xff]  }
 0x130   : > { %2285 = vmatprep.mubr.bf16.mxu1 %v13125_v22  ;;  %2989 = vmatpush1.bf16.msra.mxu1 %v15257_v42  ;;  %v13151_v42 = vld [vmem:[%s15227_s26 + $0x258] ss:$12 sps:$4 sm:$0xff]   ;;  %v13211_v22 = vld [vmem:[%s15227_s26 + $0x230] ss:$12 sps:$4 sm:$0xff]  }
 0x131   : > { %2990 = vmatprep.subr.bf16.mxu1 %v14506_v33 }
 0x134   : > { %2991 = vmatpush1.bf16.msra.mxu1 %v15268_v45  ;;  %v13158_v45 = vld [vmem:[%s15227_s26 + $0x10c] ss:$12 sps:$4 sm:$0xff]  }
 0x135   : > { %1551 = vmatmul.mubr.bf16.gmra.mrb[20].mxu0 %v13124_v23  ;;  %2992 = vmatprep.subr.bf16.mxu1 %v14506_v33  ;;  %v13215_v23 = vld [vmem:[%s15227_s26 + $0x248] ss:$12 sps:$4 sm:$0xff]  }
 0x136   : > { %1558 = vmatprep.mubr.bf16.mxu0 %v13128_v24 }
 0x137   : > { %2286 = vmatmul.mubr.bf16.gmra.mrb[48].mxu1 %v13127_v25 }
 0x138   : > { %2293 = vmatprep.mubr.bf16.mxu1 %v13131_v26  ;;  %2993 = vmatpush1.bf16.msra.mxu1 %v15279_v46  ;;  %v13157_v46 = vld [vmem:[%s15227_s26 + $0x270] ss:$12 sps:$4 sm:$0xff]   ;;  %v13212_v26 = vld [vmem:[%s15227_s26 + $0x360] ss:$12 sps:$4 sm:$0xff]  }
 0x139   : > { %2994 = vmatprep.subr.bf16.mxu1 %v14506_v33 }
 0x13c   : > { %2995 = vmatpush1.bf16.msra.mxu1 %v15290_v49  ;;  %v13164_v49 = vld [vmem:[%s15227_s26 + $0x124] ss:$12 sps:$4 sm:$0xff]  }
 0x13d   : > { %1559 = vmatmul.mubr.bf16.gmra.mrb[24].mxu0 %v13130_v27  ;;  %2996 = vmatprep.subr.bf16.mxu1 %v14506_v33 }
 0x13e   : > { %1566 = vmatprep.mubr.bf16.mxu0 %v13134_v28  ;;  %v13217_v28 = vld [vmem:[%s15227_s26 + $0x37c] ss:$12 sps:$4 sm:$0xff]  }
 0x13f   : > { %2294 = vmatmul.mubr.bf16.gmra.mrb[52].mxu1 %v13133_v29 }
 0x140   : > { %2301 = vmatprep.mubr.bf16.mxu1 %v13137_v30  ;;  %2997 = vmatpush1.bf16.msra.mxu1 %v15301_v50  ;;  %v13163_v50 = vld [vmem:[%s15227_s26 + $0x288] ss:$12 sps:$4 sm:$0xff]   ;;  %v13216_v30 = vld [vmem:[%s15227_s26 + $0x260] ss:$12 sps:$4 sm:$0xff]  }
 0x141   : > { %2998 = vmatprep.subr.bf16.mxu1 %v14506_v33 }
 0x144   : > { %2999 = vmatpush1.bf16.msra.mxu1 %v15313_v54  ;;  %v13169_v54 = vld [vmem:[%s15227_s26 + $0x2a0] ss:$12 sps:$4 sm:$0xff]  }
 0x145   : > { %1567 = vmatmul.mubr.bf16.gmra.mrb[28].mxu0 %v13136_v31  ;;  %3000 = vmatprep.subr.bf16.mxu1 %v14506_v33  ;;  %v15546_v31 = vld [vmem:[%s19162_s1] sm:$0xff]  }
 0x146   : > { %1574 = vmatprep.mubr.bf16.mxu0 %v13140_v32  ;;  %v13220_v32 = vld [vmem:[%s15227_s26 + $0x278] ss:$12 sps:$4 sm:$0xff]  }
 0x147   : > { %2302 = vmatmul.mubr.bf16.gmra.mrb[56].mxu1 %v13139_v34 }
 0x148   : > { %2309 = vmatprep.mubr.bf16.mxu1 %v13143_v35  ;;  %3001 = vmatpush1.bf16.msra.mxu1 %v15324_v55  ;;  %v13173_v55 = vld [vmem:[%s15227_s26 + $0x2bc] ss:$12 sps:$4 sm:$0xff]  }
 0x149   : > { %3002 = vmatprep.subr.bf16.mxu1 %v14506_v33 }
 0x14c   : > { %3003 = vmatpush1.bf16.msra.mxu1 %v15335_v58  ;;  %v13175_v58 = vld [vmem:[%s15227_s26 + $0x2b8] ss:$12 sps:$4 sm:$0xff]  }
 0x14d   : > { %1575 = vmatmul.mubr.bf16.gmra.mrb[32].mxu0 %v13142_v36  ;;  %3004 = vmatprep.subr.bf16.mxu1 %v14506_v33  ;;  %v13219_v36 = vld [vmem:[%s15227_s26 + $0x378] ss:$12 sps:$4 sm:$0xff]  }
 0x14e   : > { %1582 = vmatprep.mubr.bf16.mxu0 %v13146_v37 }
 0x14f   : > { %2310 = vmatmul.mubr.bf16.gmra.mrb[60].mxu1 %v13145_v38  ;;  %v15561_v38 = vld [vmem:[%s19162_s1 + $0x8] sm:$0xff]  }
 0x150   : > { %2317 = vmatprep.mubr.bf16.mxu1 %v13149_v39  ;;  %3005 = vmatpush1.bf16.msra.mxu1 %v15346_v59  ;;  %v13179_v59 = vld [vmem:[%s15227_s26 + $0x2d4] ss:$12 sps:$4 sm:$0xff]  }
 0x151   : > { %3006 = vmatprep.subr.bf16.mxu1 %v14506_v33  ;;  %v13222_v39 = vld [vmem:[%s15227_s26 + $0x394] ss:$12 sps:$4 sm:$0xff]  }
 0x154   : > { %3007 = vmatpush1.bf16.msra.mxu1 %v15357_v62  ;;  %v13181_v62 = vld [vmem:[%s15227_s26 + $0x2d0] ss:$12 sps:$4 sm:$0xff]  }
 0x155   : > { %1583 = vmatmul.mubr.bf16.gmra.mrb[36].mxu0 %v13148_v40  ;;  %3008 = vmatprep.subr.bf16.mxu1 %v14506_v33 }
 0x156   : > { %1590 = vmatprep.mubr.bf16.mxu0 %v13152_v41  ;;  %v13221_v41 = vld [vmem:[%s15227_s26 + $0x290] ss:$12 sps:$4 sm:$0xff]  }
 0x157   : > { %2318 = vmatmul.mubr.bf16.gmra.mrb[64].mxu1 %v13151_v42  ;;  %v15574_v42 = vld [vmem:[%s19162_s1 + $0x10] sm:$0xff]  }
 0x158   : > { %2325 = vmatprep.mubr.bf16.mxu1 %v13155_v43  ;;  %3009 = vmatpush1.bf16.msra.mxu1 %v15368_v63  ;;  %v13185_v63 = vld [vmem:[%s15227_s26 + $0x2ec] ss:$12 sps:$4 sm:$0xff]   ;;  %v13225_v43 = vld [vmem:[%s15227_s26 + $0x2a8] ss:$12 sps:$4 sm:$0xff]  }
 0x159   : > { %3010 = vmatprep.subr.bf16.mxu1 %v14506_v33 }
 0x15c   : > { %3011 = vmatpush1.bf16.msra.mxu1 %v15379_v2  ;;  %v13187_v2 = vld [vmem:[%s15227_s26 + $0x2e8] ss:$12 sps:$4 sm:$0xff]  }
 0x15d   : > { %1591 = vmatmul.mubr.bf16.gmra.mrb[40].mxu0 %v13154_v44  ;;  %12915 = vmatprep.subr.bf16.mxu1 %v14506_v33 }
 0x15e   : > { %1598 = vmatprep.mubr.bf16.mxu0 %v13158_v45 }
 0x15f   : > { %2326 = vmatmul.mubr.bf16.gmra.mrb[68].mxu1 %v13157_v46  ;;  %v13224_v46 = vld [vmem:[%s15227_s26 + $0x390] ss:$12 sps:$4 sm:$0xff]  }
 0x160   : > { %2333 = vmatprep.mubr.bf16.mxu1 %v13161_v47 }
 0x165   : > { %1599 = vmatmul.mubr.bf16.gmra.mrb[44].mxu0 %v13160_v48  ;;  %v13227_v48 = vld [vmem:[%s15227_s26 + $0x3ac] ss:$12 sps:$4 sm:$0xff]  }
 0x166   : > { %1606 = vmatprep.mubr.bf16.mxu0 %v13164_v49  ;;  %v15590_v49 = vld [vmem:[%s19162_s1 + $0x18] sm:$0xff]  }
 0x167   : > { %2334 = vmatmul.mubr.bf16.gmra.mrb[72].mxu1 %v13163_v50 }
 0x168   : > { %2341 = vmatprep.mubr.bf16.mxu1 %v13167_v51  ;;  %v13226_v51 = vld [vmem:[%s15227_s26 + $0x2c0] ss:$12 sps:$4 sm:$0xff]  }
 0x16d   : > { %1607 = vmatmul.mubr.bf16.gmra.mrb[48].mxu0 %v13166_v52  ;;  %v13230_v52 = vld [vmem:[%s15227_s26 + $0x2d8] ss:$12 sps:$4 sm:$0xff]  }
 0x16e   : > { %1614 = vmatprep.mubr.bf16.mxu0 %v13170_v53  ;;  %v15603_v53 = vld [vmem:[%s19162_s1 + $0x20] sm:$0xff]  }
 0x16f   : > { %2342 = vmatmul.mubr.bf16.gmra.mrb[76].mxu1 %v13169_v54 }
 0x170   : > { %2349 = vmatprep.mubr.bf16.mxu1 %v13173_v55 }
 0x175   : > { %1615 = vmatmul.mubr.bf16.gmra.mrb[52].mxu0 %v13172_v56  ;;  %v13229_v56 = vld [vmem:[%s15227_s26 + $0x3a8] ss:$12 sps:$4 sm:$0xff]  }
 0x176   : > { %1622 = vmatprep.mubr.bf16.mxu0 %v13176_v57 }
 0x177   : > { %2350 = vmatmul.mubr.bf16.gmra.mrb[80].mxu1 %v13175_v58  ;;  %v13232_v58 = vld [vmem:[%s15227_s26 + $0x3c4] ss:$12 sps:$4 sm:$0xff]  }
 0x178   : > { %2357 = vmatprep.mubr.bf16.mxu1 %v13179_v59  ;;  %v15618_v59 = vld [vmem:[%s19162_s1 + $0x28] sm:$0xff]  }
 0x17d   : > { %1623 = vmatmul.mubr.bf16.gmra.mrb[56].mxu0 %v13178_v60 }
 0x17e   : > { %1630 = vmatprep.mubr.bf16.mxu0 %v13182_v61  ;;  %v13231_v61 = vld [vmem:[%s15227_s26 + $0x2f0] ss:$12 sps:$4 sm:$0xff]  }
 0x17f   : > { %2358 = vmatmul.mubr.bf16.gmra.mrb[84].mxu1 %v13181_v62  ;;  %v13235_v62 = vld [vmem:[%s15227_s26 + $0x308] ss:$12 sps:$4 sm:$0xff]  }
 0x180   : > { %2365 = vmatprep.mubr.bf16.mxu1 %v13185_v63  ;;  %v15631_v63 = vld [vmem:[%s19162_s1 + $0x30] sm:$0xff]  }
 0x185   : > { %1631 = vmatmul.mubr.bf16.gmra.mrb[60].mxu0 %v13184_v0 }
 0x186   : > { %1638 = vmatprep.mubr.bf16.mxu0 %v13188_v1 }
 0x187   : > { %2366 = vmatmul.mubr.bf16.gmra.mrb[88].mxu1 %v13187_v2  ;;  %v13234_v2 = vld [vmem:[%s15227_s26 + $0x3c0] ss:$12 sps:$4 sm:$0xff]  }
 0x188   : > { %2373 = vmatprep.mubr.bf16.mxu1 %v13191_v3 }
 0x18d   : > { %1639 = vmatmul.mubr.bf16.gmra.mrb[64].mxu0 %v13190_v4  ;;  %v13237_v4 = vld [vmem:[%s15227_s26 + $0x3dc] ss:$12 sps:$4 sm:$0xff]  }
 0x18e   : > { %1646 = vmatprep.mubr.bf16.mxu0 %v13194_v5  ;;  %v15646_v5 = vld [vmem:[%s19162_s1 + $0x38] sm:$0xff]  }
 0x18f   : > { %2374 = vmatmul.mubr.bf16.gmra.mrb[92].mxu1 %v13193_v6 }
 0x190   : > { %2381 = vmatprep.mubr.bf16.mxu1 %v13197_v7  ;;  %v13236_v7 = vld [vmem:[%s15227_s26 + $0x320] ss:$12 sps:$4 sm:$0xff]  }
 0x195   : > { %1647 = vmatmul.mubr.bf16.gmra.mrb[68].mxu0 %v13196_v8  ;;  %v13240_v8 = vld [vmem:[%s15227_s26 + $0x338] ss:$12 sps:$4 sm:$0xff]  }
 0x196   : > { %12763 = vmatprep.mubr.msk.bf16.mxu0 %vm1423_vm0, %v13200_v9  ;;  %v15659_v9 = vld [vmem:[%s19162_s1 + $0x40] sm:$0xff]  }
 0x197   : > { %2382 = vmatmul.mubr.bf16.gmra.mrb[96].mxu1 %v13199_v10 }
 0x198   : > { %2389 = vmatprep.mubr.bf16.mxu1 %v13201_v11 }
 0x19d   : > { %12764 = vmatmul.mubr.msk.bf16.vlgmr.msra.gmra.mrb[72].mxu0 %vm1423_vm0, %v13203_v12  ;;  %v13239_v12 = vld [vmem:[%s15227_s26 + $0x3d8] ss:$12 sps:$4 sm:$0xff]  }
 0x19e   : > { %12767 = vmatprep.mubr.msk.bf16.mxu0 %vm1423_vm0, %v13205_v13  ;;  %12800 = vmatpush3.bf16.msra.mxu0 %v15515_v16 }
 0x19f   : > { %2390 = vmatmul.mubr.bf16.gmra.mrb[100].mxu1 %v13204_v14  ;;  %12801 = vmatprep.subr.bf16.mxu0 %v14423_v18  ;;  %v13242_v14 = vld [vmem:[%s15227_s26 + $0x3f4] ss:$12 sps:$4 sm:$0xff]  }
 0x1a0   : > { %2397 = vmatprep.mubr.bf16.mxu1 %v13206_v15  ;;  %v15674_v15 = vld [vmem:[%s19162_s1 + $0x48] sm:$0xff]  }
 0x1a2   : > { %12802 = vmatpush3.bf16.msra.mxu0 %v14423_v18  ;;  %v13241_v18 = vld [vmem:[%s15227_s26 + $0x350] ss:$12 sps:$4 sm:$0xff]  }
 0x1a3   : > { %3731 = vmatprep.subr.bf16.mxu0 %v14506_v33 }
 0x1a5   : > { %12768 = vmatmul.mubr.msk.bf16.gmra.mrb[76].mxu0 %vm1423_vm0, %v13208_v17 }
 0x1a6   : > { %12771 = vmatprep.mubr.msk.bf16.mxu0 %vm1423_vm0, %v13210_v19  ;;  %v13245_v19 = vld [vmem:[%s15227_s26 + $0x368] ss:$12 sps:$4 sm:$0xff]  }
 0x1a7   : > { %2398 = vmatmul.mubr.bf16.gmra.mrb[104].mxu1 %v13209_v20  ;;  %v15687_v20 = vld [vmem:[%s19162_s1 + $0x50] sm:$0xff]  }
 0x1a8   : > { %3012 = vmatprep.mubr.bf16.mxu1 %v13214_v21 }
 0x1a9   : > { %v15530_v24 = vpop.f32.mrb[0].mxu1 }
 0x1aa   : > { %v15532_v25 = vpop.f32.mrb[1].mxu1 }
 0x1ab   : > { %v15535_v27 = vpop.f32.mrb[2].mxu1 }
 0x1ac   : > { %v15538_v29 = vpop.f32.mrb[3].mxu1 }
 0x1ad   : > { %12772 = vmatmul.mubr.msk.bf16.gmra.mrb[80].mxu0 %vm1423_vm0, %v13211_v22 }
 0x1ae   : > { %12775 = vmatprep.mubr.msk.bf16.mxu0 %vm1423_vm0, %v13215_v23  ;;  %v13244_v23 = vld [vmem:[%s15227_s26 + $0x3f0] ss:$12 sps:$4 sm:$0xff]  }
 0x1af   : > { %3013 = vmatmul.mubr.bf16.vlgmr.msra.gmra.mrb[108].mxu1 %v13212_v26 }
 0x1b0   : > { %12931 = vmatpush1.bf16.msra.mxu1 %v15546_v31  ;;  %3020 = vmatprep.mubr.bf16.mxu1 %v13217_v28  ;;  %v13246_v28 = vld [vmem:[%s15227_s26 + $0x40c] ss:$12 sps:$4 sm:$0xff]  }
 0x1b1   : > { %12916 = vmatprep.subr.bf16.mxu1 %v14506_v33  ;;  %v15551_v34 = vpop.f32.mrb[4].mxu1 }
 0x1b2   : > { %v15553_v35 = vpop.f32.mrb[5].mxu1 }
 0x1b3   : > { %v15556_v37 = vpop.f32.mrb[6].mxu1 }
 0x1b4   : > { %12932 = vmatpush1.bf16.msra.mxu1 %v15561_v38  ;;  %v15565_v40 = vpop.f32.mrb[7].mxu1 }
 0x1b5   : > { %12776 = vmatmul.mubr.msk.bf16.gmra.mrb[84].mxu0 %vm1423_vm0, %v13216_v30  ;;  %12917 = vmatprep.subr.bf16.mxu1 %v14506_v33  ;;  %v15702_v30 = vld [vmem:[%s19162_s1 + $0x58] sm:$0xff]  }
 0x1b6   : > { %12779 = vmatprep.mubr.msk.bf16.mxu0 %vm1423_vm0, %v13220_v32 }
 0x1b7   : > { %3021 = vmatmul.mubr.bf16.gmra.mrb[112].mxu1 %v13219_v36  ;;  %v13248_v36 = vld [vmem:[%s15227_s26 + $0x380] ss:$12 sps:$4 sm:$0xff]  }
 0x1b8   : > { %3028 = vmatprep.mubr.bf16.mxu1 %v13222_v39  ;;  %12933 = vmatpush1.bf16.msra.mxu1 %v15574_v42 }
 0x1b9   : > { %12918 = vmatprep.subr.bf16.mxu1 %v14506_v33  ;;  %v15579_v44 = vpop.f32.mrb[8].mxu1 }
 0x1ba   : > { %v15581_v45 = vpop.f32.mrb[9].mxu1 }
 0x1bb   : > { %v15584_v47 = vpop.f32.mrb[10].mxu1 }
 0x1bc   : > { %12934 = vmatpush1.bf16.msra.mxu1 %v15590_v49  ;;  %v15593_v50 = vpop.f32.mrb[11].mxu1 }
 0x1bd   : > { %12780 = vmatmul.mubr.msk.bf16.gmra.mrb[88].mxu0 %vm1423_vm0, %v13221_v41  ;;  %12919 = vmatprep.subr.bf16.mxu1 %v14506_v33  ;;  %v13250_v41 = vld [vmem:[%s15227_s26 + $0x398] ss:$12 sps:$4 sm:$0xff]  }
 0x1be   : > { %12783 = vmatprep.mubr.msk.bf16.mxu0 %vm1423_vm0, %v13225_v43  ;;  %v15715_v43 = vld [vmem:[%s19162_s1 + $0x60] sm:$0xff]  }
 0x1bf   : > { %3029 = vmatmul.mubr.bf16.gmra.mrb[116].mxu1 %v13224_v46 }
 0x1c0   : > { %3036 = vmatprep.mubr.bf16.mxu1 %v13227_v48  ;;  %12935 = vmatpush1.bf16.msra.mxu1 %v15603_v53 }
 0x1c1   : > { %12920 = vmatprep.subr.bf16.mxu1 %v14506_v33  ;;  %v15607_v54 = vpop.f32.mrb[12].mxu1 }
 0x1c2   : > { %v15609_v55 = vpop.f32.mrb[13].mxu1 }
 0x1c3   : > { %v15612_v57 = vpop.f32.mrb[14].mxu1 }
 0x1c4   : > { %12936 = vmatpush1.bf16.msra.mxu1 %v15618_v59  ;;  %v15621_v60 = vpop.f32.mrb[15].mxu1 }
 0x1c5   : > { %12784 = vmatmul.mubr.msk.bf16.gmra.mrb[92].mxu0 %vm1423_vm0, %v13226_v51  ;;  %12921 = vmatprep.subr.bf16.mxu1 %v14506_v33 }
 0x1c6   : > { %12787 = vmatprep.mubr.msk.bf16.mxu0 %vm1423_vm0, %v13230_v52 }
 0x1c7   : > { %3037 = vmatmul.mubr.bf16.gmra.mrb[120].mxu1 %v13229_v56 }
 0x1c8   : > { %3044 = vmatprep.mubr.bf16.mxu1 %v13232_v58  ;;  %12937 = vmatpush1.bf16.msra.mxu1 %v15631_v63 }
 0x1c9   : > { %12922 = vmatprep.subr.bf16.mxu1 %v14506_v33  ;;  %v15635_v0 = vpop.f32.mrb[16].mxu1 }
 0x1ca   : > { %v15637_v1 = vpop.f32.mrb[17].mxu1 }
 0x1cb   : > { %v15640_v3 = vpop.f32.mrb[18].mxu1 }
 0x1cc   : > { %12938 = vmatpush1.bf16.msra.mxu1 %v15646_v5  ;;  %v15649_v6 = vpop.f32.mrb[19].mxu1 }
 0x1cd   : > { %12788 = vmatmul.mubr.msk.bf16.gmra.mrb[96].mxu0 %vm1423_vm0, %v13231_v61  ;;  %12923 = vmatprep.subr.bf16.mxu1 %v14506_v33  ;;  %v13249_v61 = vld [vmem:[%s15227_s26 + $0x408] ss:$12 sps:$4 sm:$0xff]  }
 0x1ce   : > { %12791 = vmatprep.mubr.msk.bf16.mxu0 %vm1423_vm0, %v13235_v62 }
 0x1cf   : > { %3045 = vmatmul.mubr.bf16.gmra.mrb[124].mxu1 %v13234_v2 }
 0x1d0   : > { %3052 = vmatprep.mubr.bf16.mxu1 %v13237_v4  ;;  %12939 = vmatpush1.bf16.msra.mxu1 %v15659_v9  ;;  %v13251_v4 = vld [vmem:[%s15227_s26 + $0x424] ss:$12 sps:$4 sm:$0xff]  }
 0x1d1   : > { %12924 = vmatprep.subr.bf16.mxu1 %v14506_v33  ;;  %v15663_v10 = vpop.f32.mrb[20].mxu1 }
 0x1d2   : > { %v15665_v11 = vpop.f32.mrb[21].mxu1 }
 0x1d3   : > { %v15668_v13 = vpop.f32.mrb[22].mxu1 }
 0x1d4   : > { %12940 = vmatpush1.bf16.msra.mxu1 %v15674_v15  ;;  %v15677_v17 = vpop.f32.mrb[23].mxu1 }
 0x1d5   : > { %12792 = vmatmul.mubr.msk.bf16.gmra.mrb[100].mxu0 %vm1423_vm0, %v13236_v7  ;;  %12925 = vmatprep.subr.bf16.mxu1 %v14506_v33 }
 0x1d6   : > { %12795 = vmatprep.mubr.msk.bf16.mxu0 %vm1423_vm0, %v13240_v8 }
 0x1d7   : > { %3053 = vmatmul.mubr.bf16.gmra.mrb[128].mxu1 %v13239_v12  ;;  %v13255_v12 = vld [vmem:[%s15227_s26 + $0x3c8] ss:$12 sps:$4 sm:$0xff]  }
 0x1d8   : > { %3060 = vmatprep.mubr.bf16.mxu1 %v13242_v14  ;;  %12941 = vmatpush1.bf16.msra.mxu1 %v15687_v20  ;;  %v15751_v14 = vld [vmem:[%s19162_s1 + $0x70] sm:$0xff]  }
 0x1d9   : > { %12926 = vmatprep.subr.bf16.mxu1 %v14506_v33  ;;  %v15691_v21 = vpop.f32.mrb[24].mxu1 }
 0x1da   : > { %v15693_v22 = vpop.f32.mrb[25].mxu1 }
 0x1db   : > { %v15696_v26 = vpop.f32.mrb[26].mxu1 }
 0x1dc   : > { %12942 = vmatpush1.bf16.msra.mxu1 %v15702_v30  ;;  %v15705_v32 = vpop.f32.mrb[27].mxu1 }
 0x1dd   : > { %12796 = vmatmul.mubr.msk.bf16.gmra.mrb[104].mxu0 %vm1423_vm0, %v13241_v18  ;;  %12927 = vmatprep.subr.bf16.mxu1 %v14506_v33 }
 0x1de   : > { %12803 = vmatprep.mubr.msk.bf16.mxu0 %vm1423_vm0, %v13245_v19 }
 0x1df   : > { %3061 = vmatmul.mubr.bf16.gmra.mrb[132].mxu1 %v13244_v23 }
 0x1e0   : > { %v1512_v39 = vpop.f32.mrb[0].mxu0  ;;  %3068 = vmatprep.mubr.bf16.mxu1 %v13246_v28  ;;  %12943 = vmatpush1.bf16.msra.mxu1 %v15715_v43 }
 0x1e1   : > { %v15719_v46 = vadd.f32 %v15532_v25, %v1512_v39  ;;  %v1514_v48 = vpop.f32.mrb[1].mxu0  ;;  %12928 = vmatprep.subr.bf16.mxu1 %v14506_v33  ;;  %v15736_v25 = vld [vmem:[%s19162_s1 + $0x68] sm:$0xff]   ;;  %v13254_v39 = vld [vmem:[%s15227_s26 + $0x420] ss:$12 sps:$4 sm:$0xff]  }
 0x1e2   : > { %v15722_v51 = vpop.f32.mrb[28].mxu1  ;;  %v1515_v52 = vpop.f32.mrb[2].mxu0  ;;  %v13256_v48 = vld [vmem:[%s15227_s26 + $0x43c] ss:$12 sps:$4 sm:$0xff]  }
 0x1e3   : > { %v15725_v56 = vadd.f32 %v15538_v29, %v1515_v52  ;;  %v15727_v58 = vpop.f32.mrb[29].mxu1  ;;  %v1517_v62 = vpop.f32.mrb[3].mxu0  ;;  %v13253_v29 = vld [vmem:[%s15227_s26 + $0x3b0] ss:$12 sps:$4 sm:$0xff]   ;;  %v15774_v52 = vld [vmem:[%s19162_s1 + $0x78] sm:$0xff]  }
 0x1e4   : > { %v15730_v2 = vpop.f32.mrb[30].mxu1  ;;  %12944 = vmatpush1.bf16.msra.mxu1 %v15736_v25  ;;  %v13260_v62 = vld [vmem:[%s15227_s26 + $0x3f8] ss:$12 sps:$4 sm:$0xff]  }
 0x1e5   : > { %v15739_v7 = vpop.f32.mrb[31].mxu1  ;;  %12804 = vmatmul.mubr.msk.bf16.vlgmr.msra.gmra.mrb[108].mxu0 %vm1423_vm0, %v13248_v36  ;;  %12929 = vmatprep.subr.bf16.mxu1 %v14506_v33 }
 0x1e6   : > { %12807 = vmatprep.mubr.msk.bf16.mxu0 %vm1423_vm0, %v13250_v41  ;;  %3732 = vmatpush1.bf16.msra.mxu0 %v15546_v31 }
 0x1e7   : > { %3069 = vmatmul.mubr.bf16.gmra.mrb[136].mxu1 %v13249_v61  ;;  %3733 = vmatprep.subr.bf16.mxu0 %v14506_v33 }
 0x1e8   : > { %v1520_v8 = vpop.f32.mrb[4].mxu0  ;;  %3076 = vmatprep.mubr.bf16.mxu1 %v13251_v4  ;;  %12945 = vmatpush1.bf16.msra.mxu1 %v15751_v14 }
 0x1e9   : > { %v15755_v18 = vadd.f32 %v15530_v24, %v1520_v8  ;;  %v1522_v31 = vpop.f32.mrb[5].mxu0  ;;  %12930 = vmatprep.subr.bf16.mxu1 %v14506_v33 }
 0x1ea   : > { %v15758_v19 = vpop.f32.mrb[32].mxu1  ;;  %v1523_v23 = vpop.f32.mrb[6].mxu0  ;;  %3734 = vmatpush1.bf16.msra.mxu0 %v15561_v38  ;;  %v13259_v31 = vld [vmem:[%s15227_s26 + $0x438] ss:$12 sps:$4 sm:$0xff]  }
 0x1eb   : > { %v15762_v28 = vadd.f32 %v15535_v27, %v1523_v23  ;;  %v15764_v36 = vpop.f32.mrb[33].mxu1  ;;  %v1525_v41 = vpop.f32.mrb[7].mxu0  ;;  %3735 = vmatprep.subr.bf16.mxu0 %v14506_v33  ;;  %v13258_v27 = vld [vmem:[%s15227_s26 + $0x3e0] ss:$12 sps:$4 sm:$0xff]  }
 0x1ec   : > { %v15768_v24 = vpop.f32.mrb[34].mxu1  ;;  %12946 = vmatpush1.bf16.msra.mxu1 %v15774_v52 }
 0x1ed   : > { %v15777_v38 = vpop.f32.mrb[35].mxu1  ;;  %12808 = vmatmul.mubr.msk.bf16.gmra.mrb[112].mxu0 %vm1423_vm0, %v13253_v29  ;;  %12839 = vmatprep.subr.bf16.mxu1 %v15515_v16 }
 0x1ee   : > { %12811 = vmatprep.mubr.msk.bf16.mxu0 %vm1423_vm0, %v13255_v12  ;;  %3736 = vmatpush1.bf16.msra.mxu0 %v15574_v42 }
 0x1ef   : > { %3077 = vmatmul.mubr.bf16.gmra.mrb[140].mxu1 %v13254_v39  ;;  %3737 = vmatprep.subr.bf16.mxu0 %v14506_v33 }
 0x1f0   : > { %v1528_v61 = vpop.f32.mrb[8].mxu0  ;;  %3084 = vmatprep.mubr.bf16.mxu1 %v13256_v48  ;;  %v13265_v48 = vld [vmem:[%s15227_s26 + $0x428] ss:$12 sps:$4 sm:$0xff]  }
 0x1f1   : > { %v15787_v4 = vadd.f32 %v15553_v35, %v1528_v61  ;;  %v1530_v8 = vpop.f32.mrb[9].mxu0  ;;  %v13261_v35 = vld [vmem:[%s15227_s26 + $0x454] ss:$12 sps:$4 sm:$0xff]  }
 0x1f2   : > { %v15789_v29 = vpop.f32.mrb[36].mxu1  ;;  %v1531_v16 = vpop.f32.mrb[10].mxu0  ;;  %3738 = vmatpush1.bf16.msra.mxu0 %v15590_v49 }
 0x1f3   : > { %v15793_v42 = vadd.f32 %v15565_v40, %v1531_v16  ;;  %v2265_v12 = vpop.f32.mrb[37].mxu1  ;;  %v1533_v23 = vpop.f32.mrb[11].mxu0  ;;  %3739 = vmatprep.subr.bf16.mxu0 %v14506_v33  ;;  %v13263_v40 = vld [vmem:[%s15227_s26 + $0x410] ss:$12 sps:$4 sm:$0xff]  }
 0x1f4   : > { %v15797_v39 = vpop.f32.mrb[38].mxu1  ;;  %v13264_v12 = vld [vmem:[%s15227_s26 + $0x450] ss:$12 sps:$4 sm:$0xff]  }
 0x1f5   : > { %19222 = vst [vmem:[#allocation7_spill] sm:$0xff] %v15793_v42  ;;  %v2268_v41 = vpop.f32.mrb[39].mxu1  ;;  %12812 = vmatmul.mubr.msk.bf16.gmra.mrb[116].mxu0 %vm1423_vm0, %v13258_v27 }
 0x1f6   : > { %12815 = vmatprep.mubr.msk.bf16.mxu0 %vm1423_vm0, %v13260_v62  ;;  %3740 = vmatpush1.bf16.msra.mxu0 %v15603_v53  ;;  %v13270_v41 = vld [vmem:[%s15227_s26 + $0x458] ss:$12 sps:$4 sm:$0xff]  }
 0x1f7   : > { %3085 = vmatmul.mubr.bf16.gmra.mrb[144].mxu1 %v13259_v31  ;;  %3741 = vmatprep.subr.bf16.mxu0 %v14506_v33 }
 0x1f8   : > { %v1536_v49 = vpop.f32.mrb[12].mxu0  ;;  %3092 = vmatprep.mubr.bf16.mxu1 %v13261_v35 }
 0x1f9   : > { %v15807_v61 = vadd.f32 %v15551_v34, %v1536_v49  ;;  %v1538_v8 = vpop.f32.mrb[13].mxu0  ;;  %v13266_v34 = vld [vmem:[%s15227_s26 + $0x46c] ss:$12 sps:$4 sm:$0xff]  }
 0x1fa   : > { %v15809_v16 = vpop.f32.mrb[40].mxu1  ;;  %v1539_v27 = vpop.f32.mrb[14].mxu0  ;;  %3742 = vmatpush1.bf16.msra.mxu0 %v15618_v59 }
 0x1fb   : > { %v15813_v53 = vadd.f32 %v15556_v37, %v1539_v27  ;;  %v2273_v62 = vpop.f32.mrb[41].mxu1  ;;  %v1541_v31 = vpop.f32.mrb[15].mxu0  ;;  %3743 = vmatprep.subr.bf16.mxu0 %v14506_v33  ;;  %v13268_v37 = vld [vmem:[%s15227_s26 + $0x440] ss:$12 sps:$4 sm:$0xff]  }
 0x1fc   : > { %v15817_v23 = vpop.f32.mrb[42].mxu1  ;;  %v13269_v62 = vld [vmem:[%s15227_s26 + $0x468] ss:$12 sps:$4 sm:$0xff]  }
 0x1fd   : > { %v2276_v35 = vpop.f32.mrb[43].mxu1  ;;  %12816 = vmatmul.mubr.msk.bf16.gmra.mrb[120].mxu0 %vm1423_vm0, %v13263_v40 }
 0x1fe   : > { %12819 = vmatprep.mubr.msk.bf16.mxu0 %vm1423_vm0, %v13265_v48  ;;  %3744 = vmatpush1.bf16.msra.mxu0 %v15631_v63  ;;  %v13275_v35 = vld [vmem:[%s15227_s26 + $0x488] ss:$12 sps:$4 sm:$0xff]  }
 0x1ff   : > { %3093 = vmatmul.mubr.bf16.gmra.mrb[148].mxu1 %v13264_v12  ;;  %3745 = vmatprep.subr.bf16.mxu0 %v14506_v33 }
 0x200   : > { %v1544_v59 = vpop.f32.mrb[16].mxu0  ;;  %3100 = vmatprep.mubr.bf16.mxu1 %v13266_v34 }
 0x201   : > { %v15827_v49 = vadd.f32 %v15581_v45, %v1544_v59  ;;  %v1546_v8 = vpop.f32.mrb[17].mxu0  ;;  %v13271_v45 = vld [vmem:[%s15227_s26 + $0x484] ss:$12 sps:$4 sm:$0xff]  }
 0x202   : > { %v15829_v27 = vpop.f32.mrb[44].mxu1  ;;  %v1547_v40 = vpop.f32.mrb[18].mxu0  ;;  %3746 = vmatpush1.bf16.msra.mxu0 %v15646_v5 }
 0x203   : > { %v15833_v63 = vadd.f32 %v15593_v50, %v1547_v40  ;;  %v2281_v48 = vpop.f32.mrb[45].mxu1  ;;  %v1549_v12 = vpop.f32.mrb[19].mxu0  ;;  %3747 = vmatprep.subr.bf16.mxu0 %v14506_v33  ;;  %v13273_v50 = vld [vmem:[%s15227_s26 + $0x470] ss:$12 sps:$4 sm:$0xff]  }
 0x204   : > { %v15837_v31 = vpop.f32.mrb[46].mxu1  ;;  %v13274_v48 = vld [vmem:[%s15227_s26 + $0x480] ss:$12 sps:$4 sm:$0xff]  }
 0x205   : > { %v2284_v34 = vpop.f32.mrb[47].mxu1  ;;  %12820 = vmatmul.mubr.msk.bf16.gmra.mrb[124].mxu0 %vm1423_vm0, %v13268_v37 }
 0x206   : > { %12823 = vmatprep.mubr.msk.bf16.mxu0 %vm1423_vm0, %v13270_v41  ;;  %3748 = vmatpush1.bf16.msra.mxu0 %v15659_v9  ;;  %v13280_v34 = vld [vmem:[%s15227_s26 + $0x4b8] ss:$12 sps:$4 sm:$0xff]  }
 0x207   : > { %3101 = vmatmul.mubr.bf16.gmra.mrb[152].mxu1 %v13269_v62  ;;  %3749 = vmatprep.subr.bf16.mxu0 %v14506_v33 }
 0x208   : > { %v1552_v5 = vpop.f32.mrb[20].mxu0  ;;  %3108 = vmatprep.mubr.bf16.mxu1 %v13271_v45 }
 0x209   : > { %v15847_v59 = vadd.f32 %v15579_v44, %v1552_v5  ;;  %v1554_v8 = vpop.f32.mrb[21].mxu0  ;;  %v13276_v44 = vld [vmem:[%s15227_s26 + $0x49c] ss:$12 sps:$4 sm:$0xff]  }
 0x20a   : > { %v15849_v40 = vpop.f32.mrb[48].mxu1  ;;  %v1555_v37 = vpop.f32.mrb[22].mxu0  ;;  %3750 = vmatpush1.bf16.msra.mxu0 %v15674_v15 }
 0x20b   : > { %v15853_v9 = vadd.f32 %v15584_v47, %v1555_v37  ;;  %v2289_v41 = vpop.f32.mrb[49].mxu1  ;;  %v1557_v62 = vpop.f32.mrb[23].mxu0  ;;  %3751 = vmatprep.subr.bf16.mxu0 %v14506_v33  ;;  %v13278_v47 = vld [vmem:[%s15227_s26 + $0x4a0] ss:$12 sps:$4 sm:$0xff]  }
 0x20c   : > { %v15857_v12 = vpop.f32.mrb[50].mxu1  ;;  %v13279_v41 = vld [vmem:[%s15227_s26 + $0x498] ss:$12 sps:$4 sm:$0xff]  }
 0x20d   : > { %v2292_v45 = vpop.f32.mrb[51].mxu1  ;;  %12824 = vmatmul.mubr.msk.bf16.gmra.mrb[128].mxu0 %vm1423_vm0, %v13273_v50 }
 0x20e   : > { %12827 = vmatprep.mubr.msk.bf16.mxu0 %vm1423_vm0, %v13275_v35  ;;  %3752 = vmatpush1.bf16.msra.mxu0 %v15687_v20  ;;  %v13285_v45 = vld [vmem:[%s15227_s26 + $0x4e8] ss:$12 sps:$4 sm:$0xff]  }
 0x20f   : > { %3109 = vmatmul.mubr.bf16.gmra.mrb[156].mxu1 %v13274_v48  ;;  %3753 = vmatprep.subr.bf16.mxu0 %v14506_v33 }
 0x210   : > { %v1560_v15 = vpop.f32.mrb[24].mxu0  ;;  %3116 = vmatprep.mubr.bf16.mxu1 %v13276_v44 }
 0x211   : > { %v15867_v5 = vadd.f32 %v15609_v55, %v1560_v15  ;;  %v1562_v8 = vpop.f32.mrb[25].mxu0  ;;  %v13281_v55 = vld [vmem:[%s15227_s26 + $0x4b4] ss:$12 sps:$4 sm:$0xff]  }
 0x212   : > { %v15869_v37 = vpop.f32.mrb[52].mxu1  ;;  %v1563_v50 = vpop.f32.mrb[26].mxu0  ;;  %3754 = vmatpush1.bf16.msra.mxu0 %v15702_v30 }
 0x213   : > { %v15873_v20 = vadd.f32 %v15621_v60, %v1563_v50  ;;  %v2297_v35 = vpop.f32.mrb[53].mxu1  ;;  %v1565_v48 = vpop.f32.mrb[27].mxu0  ;;  %3755 = vmatprep.subr.bf16.mxu0 %v14506_v33  ;;  %v13283_v60 = vld [vmem:[%s15227_s26 + $0x4d0] ss:$12 sps:$4 sm:$0xff]  }
 0x214   : > { %v15877_v62 = vpop.f32.mrb[54].mxu1  ;;  %v13284_v35 = vld [vmem:[%s15227_s26 + $0x4b0] ss:$12 sps:$4 sm:$0xff]  }
 0x215   : > { %19223 = vst [vmem:[#allocation8_spill] sm:$0xff] %v15873_v20  ;;  %v2300_v44 = vpop.f32.mrb[55].mxu1  ;;  %12828 = vmatmul.mubr.msk.bf16.gmra.mrb[132].mxu0 %vm1423_vm0, %v13278_v47 }
 0x216   : > { %12831 = vmatprep.mubr.msk.bf16.mxu0 %vm1423_vm0, %v13280_v34  ;;  %3756 = vmatpush1.bf16.msra.mxu0 %v15715_v43  ;;  %v13292_v44 = vld [vmem:[%s15227_s26 + $0x514] ss:$12 sps:$4 sm:$0xff]  }
 0x217   : > { %3117 = vmatmul.mubr.bf16.gmra.mrb[160].mxu1 %v13279_v41  ;;  %3757 = vmatprep.subr.bf16.mxu0 %v14506_v33 }
 0x218   : > { %v1568_v30 = vpop.f32.mrb[28].mxu0  ;;  %3124 = vmatprep.mubr.bf16.mxu1 %v13281_v55 }
 0x219   : > { %v15887_v15 = vadd.f32 %v15607_v54, %v1568_v30  ;;  %v1570_v8 = vpop.f32.mrb[29].mxu0  ;;  %v13286_v54 = vld [vmem:[%s15227_s26 + $0x4cc] ss:$12 sps:$4 sm:$0xff]  }
 0x21a   : > { %v15889_v50 = vpop.f32.mrb[56].mxu1  ;;  %v1571_v47 = vpop.f32.mrb[30].mxu0  ;;  %3758 = vmatpush1.bf16.msra.mxu0 %v15736_v25 }
 0x21b   : > { %v15893_v43 = vadd.f32 %v15612_v57, %v1571_v47  ;;  %v2305_v34 = vpop.f32.mrb[57].mxu1  ;;  %v1573_v41 = vpop.f32.mrb[31].mxu0  ;;  %3759 = vmatprep.subr.bf16.mxu0 %v14506_v33  ;;  %v13288_v57 = vld [vmem:[%s15227_s26 + $0x500] ss:$12 sps:$4 sm:$0xff]  }
 0x21c   : > { %v15897_v48 = vpop.f32.mrb[58].mxu1  ;;  %v13293_v41 = vld [vmem:[%s15227_s26 + $0x4e4] ss:$12 sps:$4 sm:$0xff]  }
 0x21d   : > { %v2308_v55 = vpop.f32.mrb[59].mxu1  ;;  %12832 = vmatmul.mubr.msk.bf16.gmra.mrb[136].mxu0 %vm1423_vm0, %v13283_v60 }
 0x21e   : > { %12835 = vmatprep.mubr.msk.bf16.mxu0 %vm1423_vm0, %v13285_v45  ;;  %3760 = vmatpush1.bf16.msra.mxu0 %v15751_v14 }
 0x21f   : > { %3125 = vmatmul.mubr.bf16.gmra.mrb[164].mxu1 %v13284_v35  ;;  %3761 = vmatprep.subr.bf16.mxu0 %v14506_v33  ;;  %v13289_v33 = vld [vmem:[%s15227_s26 + $0x4c8] ss:$12 sps:$4 sm:$0xff]  }
 0x220   : > { %v1576_v25 = vpop.f32.mrb[32].mxu0  ;;  %3132 = vmatprep.mubr.bf16.mxu1 %v13286_v54  ;;  %v13290_v54 = vld [vmem:[%s15227_s26 + $0x510] ss:$12 sps:$4 sm:$0xff]  }
 0x221   : > { %v15907_v30 = vadd.f32 %v15637_v1, %v1576_v25  ;;  %v1578_v8 = vpop.f32.mrb[33].mxu0 }
 0x222   : > { %v15909_v47 = vpop.f32.mrb[60].mxu1  ;;  %v1579_v60 = vpop.f32.mrb[34].mxu0  ;;  %3762 = vmatpush1.bf16.msra.mxu0 %v15774_v52  ;;  %v13296_v52 = vld [vmem:[%s15227_s26 + $0x52c] ss:$12 sps:$4 sm:$0xff]  }
 0x223   : > { %19224 = vst [vmem:[#allocation9_spill] sm:$0xff] %v15907_v30  ;;  %v15913_v14 = vadd.f32 %v15649_v6, %v1579_v60  ;;  %v2313_v45 = vpop.f32.mrb[61].mxu1  ;;  %v1581_v34 = vpop.f32.mrb[35].mxu0  ;;  %v13295_v8 = vld [vmem:[%s15227_s26 + $0x4e0] ss:$12 sps:$4 sm:$0xff]  }
 0x224   : > { %v15916_v35 = vpop.f32.mrb[62].mxu1  ;;  %v13298_v34 = vld [vmem:[%s15227_s26 + $0x4fc] ss:$12 sps:$4 sm:$0xff]  }
 0x225   : > { %19225 = vst [vmem:[#allocation10_spill] sm:$0xff] %v15913_v14  ;;  %v2316_v1 = vpop.f32.mrb[63].mxu1  ;;  %12836 = vmatmul.mubr.msk.bf16.gmra.mrb[140].mxu0 %vm1423_vm0, %v13288_v57 }
 0x226   : > { %3763 = vmatprep.mubr.bf16.mxu0 %v13292_v44 }
 0x227   : > { %3133 = vmatmul.mubr.bf16.gmra.mrb[168].mxu1 %v13289_v33 }
 0x228   : > { %v1584_v55 = vpop.f32.mrb[36].mxu0  ;;  %3140 = vmatprep.mubr.bf16.mxu1 %v13293_v41 }
 0x229   : > { %v15923_v6 = vadd.f32 %v15635_v0, %v1584_v55  ;;  %v1586_v25 = vpop.f32.mrb[37].mxu0  ;;  %v13300_v0 = vld [vmem:[%s15227_s26 + $0x528] ss:$12 sps:$4 sm:$0xff]  }
 0x22a   : > { %v15926_v60 = vpop.f32.mrb[64].mxu1  ;;  %v1587_v45 = vpop.f32.mrb[38].mxu0  ;;  %v13302_v25 = vld [vmem:[%s15227_s26 + $0x544] ss:$12 sps:$4 sm:$0xff]  }
 0x22b   : > { %19226 = vst [vmem:[#allocation11_spill] sm:$0xff] %v15923_v6  ;;  %v15930_v57 = vadd.f32 %v15640_v3, %v1587_v45  ;;  %v2321_v44 = vpop.f32.mrb[65].mxu1  ;;  %v1589_v33 = vpop.f32.mrb[39].mxu0  ;;  %v13301_v3 = vld [vmem:[%s15227_s26 + $0x4f8] ss:$12 sps:$4 sm:$0xff]  }
 0x22c   : > { %v15932_v41 = vpop.f32.mrb[66].mxu1  ;;  %v13307_v33 = vld [vmem:[%s15227_s26 + $0x694] ss:$12 sps:$4 sm:$0xff]  }
 0x22d   : > { %19227 = vst [vmem:[#allocation12_spill] sm:$0xff] %v15930_v57  ;;  %v2324_v1 = vpop.f32.mrb[67].mxu1  ;;  %3764 = vmatmul.mubr.bf16.vlgmr.msra.gmra.mrb[144].mxu0 %v13290_v54 }
 0x22e   : > { %3771 = vmatprep.mubr.bf16.mxu0 %v13296_v52 }
 0x22f   : > { %3141 = vmatmul.mubr.bf16.gmra.mrb[172].mxu1 %v13295_v8 }
 0x230   : > { %v1592_v55 = vpop.f32.mrb[40].mxu0  ;;  %3148 = vmatprep.mubr.bf16.mxu1 %v13298_v34 }
 0x231   : > { %v15937_v14 = vadd.f32 %v15665_v11, %v1592_v55  ;;  %v1594_v30 = vpop.f32.mrb[41].mxu0  ;;  %v13304_v11 = vld [vmem:[%s15227_s26 + $0x540] ss:$12 sps:$4 sm:$0xff]   ;;  %v13308_v55 = vld [vmem:[%s15227_s26 + $0x55c] ss:$12 sps:$4 sm:$0xff]  }
 0x232   : > { %v15940_v45 = vpop.f32.mrb[68].mxu1  ;;  %v1595_v44 = vpop.f32.mrb[42].mxu0 }
 0x233   : > { %19228 = vst [vmem:[#allocation13_spill] sm:$0xff] %v15937_v14  ;;  %v15944_v54 = vadd.f32 %v15677_v17, %v1595_v44  ;;  %v2329_v52 = vpop.f32.mrb[69].mxu1  ;;  %v1597_v8 = vpop.f32.mrb[43].mxu0  ;;  %v13305_v17 = vld [vmem:[%s15227_s26 + $0x690] ss:$12 sps:$4 sm:$0xff]  }
 0x234   : > { %v15946_v34 = vpop.f32.mrb[70].mxu1  ;;  %v13311_v8 = vld [vmem:[%s15227_s26 + $0x6ac] ss:$12 sps:$4 sm:$0xff]  }
 0x235   : > { %19229 = vst [vmem:[#allocation14_spill] sm:$0xff] %v15944_v54  ;;  %v2332_v1 = vpop.f32.mrb[71].mxu1  ;;  %3772 = vmatmul.mubr.bf16.gmra.mrb[148].mxu0 %v13300_v0 }
 0x236   : > { %3779 = vmatprep.mubr.bf16.mxu0 %v13302_v25 }
 0x237   : > { %3149 = vmatmul.mubr.bf16.gmra.mrb[176].mxu1 %v13301_v3 }
 0x238   : > { %v1600_v30 = vpop.f32.mrb[44].mxu0  ;;  %3891 = vmatprep.mubr.bf16.mxu1 %v13307_v33 }
 0x239   : > { %v15951_v14 = vadd.f32 %v15663_v10, %v1600_v30  ;;  %v1602_v57 = vpop.f32.mrb[45].mxu0  ;;  %v13310_v10 = vld [vmem:[%s15227_s26 + $0x558] ss:$12 sps:$4 sm:$0xff]  }
 0x23a   : > { %v15954_v44 = vpop.f32.mrb[72].mxu1  ;;  %v1603_v52 = vpop.f32.mrb[46].mxu0  ;;  %v14440_v57 = vld [vmem:[%s19162_s1 + $0x80] sm:$0xff]  }
 0x23b   : > { %19230 = vst [vmem:[#allocation15_spill] sm:$0xff] %v15951_v14  ;;  %v15958_v1 = vadd.f32 %v15668_v13, %v1603_v52  ;;  %v2337_v0 = vpop.f32.mrb[73].mxu1  ;;  %v1605_v25 = vpop.f32.mrb[47].mxu0  ;;  %v13314_v13 = vld [vmem:[%s15227_s26 + $0x574] ss:$12 sps:$4 sm:$0xff]  }
 0x23c   : > { %v15960_v3 = vpop.f32.mrb[74].mxu1  ;;  %v13313_v25 = vld [vmem:[%s15227_s26 + $0x6a8] ss:$12 sps:$4 sm:$0xff]  }
 0x23d   : > { %19231 = vst [vmem:[#allocation16_spill] sm:$0xff] %v15958_v1  ;;  %v2340_v33 = vpop.f32.mrb[75].mxu1  ;;  %3780 = vmatmul.mubr.bf16.gmra.mrb[152].mxu0 %v13304_v11  ;;  %v14441_v11 = vld [vmem:[%s19162_s1 + $0x88] sm:$0xff]  }
 0x23e   : > { %3787 = vmatprep.mubr.bf16.mxu0 %v13308_v55  ;;  %v13317_v33 = vld [vmem:[%s15227_s26 + $0x518] ss:$12 sps:$4 sm:$0xff]  }
 0x23f   : > { %3892 = vmatmul.mubr.bf16.vlgmr.msra.gmra.mrb[180].mxu1 %v13305_v17  ;;  %v13319_v1 = vld [vmem:[%s15227_s26 + $0x58c] ss:$12 sps:$4 sm:$0xff]  }
 0x240   : > { %12840 = vmatpush3.bf16.msra.mxu1 %v14440_v57  ;;  %v1608_v30 = vpop.f32.mrb[48].mxu0  ;;  %3899 = vmatprep.mubr.bf16.mxu1 %v13311_v8 }
 0x241   : > { %v15968_v52 = vadd.f32 %v15693_v22, %v1608_v30  ;;  %v1610_v0 = vpop.f32.mrb[49].mxu0  ;;  %12841 = vmatprep.subr.bf16.mxu1 %v14441_v11 }
 0x242   : > { %v15974_v55 = vpop.f32.mrb[76].mxu1  ;;  %v1611_v17 = vpop.f32.mrb[50].mxu0 }
 0x243   : > { %19232 = vst [vmem:[#allocation17_spill] sm:$0xff] %v15968_v52  ;;  %v15978_v8 = vadd.f32 %v15705_v32, %v1611_v17  ;;  %v2345_v57 = vpop.f32.mrb[77].mxu1  ;;  %v1613_v22 = vpop.f32.mrb[51].mxu0  ;;  %v13316_v52 = vld [vmem:[%s15227_s26 + $0x570] ss:$12 sps:$4 sm:$0xff]  }
 0x244   : > { %v15980_v30 = vpop.f32.mrb[78].mxu1  ;;  %12842 = vmatpush3.bf16.msra.mxu1 %v14441_v11  ;;  %v13318_v17 = vld [vmem:[%s15227_s26 + $0x530] ss:$12 sps:$4 sm:$0xff]   ;;  %v13322_v11 = vld [vmem:[%s15227_s26 + $0x548] ss:$12 sps:$4 sm:$0xff]  }
 0x245   : > { %19233 = vst [vmem:[#allocation18_spill] sm:$0xff] %v15978_v8  ;;  %v2348_v0 = vpop.f32.mrb[79].mxu1  ;;  %3788 = vmatmul.mubr.bf16.gmra.mrb[156].mxu0 %v13310_v10 }
 0x246   : > { %3795 = vmatprep.mubr.bf16.mxu0 %v13314_v13 }
 0x247   : > { %3900 = vmatmul.mubr.bf16.gmra.mrb[184].mxu1 %v13313_v25 }
 0x248   : > { %v1616_v54 = vpop.f32.mrb[52].mxu0  ;;  %12843 = vmatprep.mubr.msk.bf16.mxu1 %vm1423_vm0, %v13317_v33 }
 0x249   : > { %v15986_v14 = vadd.f32 %v15691_v21, %v1616_v54  ;;  %v1618_v32 = vpop.f32.mrb[53].mxu0  ;;  %v13321_v21 = vld [vmem:[%s15227_s26 + $0x588] ss:$12 sps:$4 sm:$0xff]  }
 0x24a   : > { %v15989_v57 = vpop.f32.mrb[80].mxu1  ;;  %v1619_v22 = vpop.f32.mrb[54].mxu0  ;;  %v13324_v32 = vld [vmem:[%s15227_s26 + $0x5a4] ss:$12 sps:$4 sm:$0xff]  }
 0x24b   : > { %19234 = vst [vmem:[#allocation19_spill] sm:$0xff] %v15986_v14  ;;  %v15993_v10 = vadd.f32 %v15696_v26, %v1619_v22  ;;  %v2353_v13 = vpop.f32.mrb[81].mxu1  ;;  %v1621_v25 = vpop.f32.mrb[55].mxu0  ;;  %v13323_v22 = vld [vmem:[%s15227_s26 + $0x560] ss:$12 sps:$4 sm:$0xff]  }
 0x24c   : > { %v15995_v33 = vpop.f32.mrb[82].mxu1 }
 0x24d   : > { %19235 = vst [vmem:[#allocation20_spill] sm:$0xff] %v15993_v10  ;;  %v2356_v0 = vpop.f32.mrb[83].mxu1  ;;  %3796 = vmatmul.mubr.bf16.gmra.mrb[160].mxu0 %v13316_v52  ;;  %v13327_v52 = vld [vmem:[%s15227_s26 + $0x578] ss:$12 sps:$4 sm:$0xff]  }
 0x24e   : > { %3803 = vmatprep.mubr.bf16.mxu0 %v13319_v1 }
 0x24f   : > { %12844 = vmatmul.mubr.msk.bf16.vlgmr.msra.gmra.mrb[188].mxu1 %vm1423_vm0, %v13318_v17 }
 0x250   : > { %v1624_v54 = vpop.f32.mrb[56].mxu0  ;;  %12847 = vmatprep.mubr.msk.bf16.mxu1 %vm1423_vm0, %v13322_v11 }
 0x251   : > { %v16002_v8 = vadd.f32 %v15727_v58, %v1624_v54  ;;  %v1626_v26 = vpop.f32.mrb[57].mxu0  ;;  %v13326_v58 = vld [vmem:[%s15227_s26 + $0x5a0] ss:$12 sps:$4 sm:$0xff]  }
 0x252   : > { %v16005_v13 = vpop.f32.mrb[84].mxu1  ;;  %v1627_v25 = vpop.f32.mrb[58].mxu0  ;;  %v13329_v26 = vld [vmem:[%s15227_s26 + $0x5bc] ss:$12 sps:$4 sm:$0xff]  }
 0x253   : > { %19236 = vst [vmem:[#allocation21_spill] sm:$0xff] %v16002_v8  ;;  %v16009_v1 = vadd.f32 %v15739_v7, %v1627_v25  ;;  %v2361_v17 = vpop.f32.mrb[85].mxu1  ;;  %v1629_v0 = vpop.f32.mrb[59].mxu0  ;;  %v13328_v25 = vld [vmem:[%s15227_s26 + $0x590] ss:$12 sps:$4 sm:$0xff]  }
 0x254   : > { %v16011_v11 = vpop.f32.mrb[86].mxu1 }
 0x255   : > { %19237 = vst [vmem:[#allocation22_spill] sm:$0xff] %v16009_v1  ;;  %v2364_v10 = vpop.f32.mrb[87].mxu1  ;;  %3804 = vmatmul.mubr.bf16.gmra.mrb[164].mxu0 %v13321_v21 }
 0x256   : > { %3811 = vmatprep.mubr.bf16.mxu0 %v13324_v32  ;;  %v13332_v10 = vld [vmem:[%s15227_s26 + $0x5a8] ss:$12 sps:$4 sm:$0xff]  }
 0x257   : > { %12848 = vmatmul.mubr.msk.bf16.gmra.mrb[192].mxu1 %vm1423_vm0, %v13323_v22 }
 0x258   : > { %v1632_v54 = vpop.f32.mrb[60].mxu0  ;;  %12851 = vmatprep.mubr.msk.bf16.mxu1 %vm1423_vm0, %v13327_v52 }
 0x259   : > { %v16018_v8 = vadd.f32 %v15722_v51, %v1632_v54  ;;  %v1634_v7 = vpop.f32.mrb[61].mxu0  ;;  %v13331_v51 = vld [vmem:[%s15227_s26 + $0x5b8] ss:$12 sps:$4 sm:$0xff]  }
 0x25a   : > { %v16021_v17 = vpop.f32.mrb[88].mxu1  ;;  %v1635_v0 = vpop.f32.mrb[62].mxu0  ;;  %v13334_v7 = vld [vmem:[%s15227_s26 + $0x5d4] ss:$12 sps:$4 sm:$0xff]  }
 0x25b   : > { %19238 = vst [vmem:[#allocation23_spill] sm:$0xff] %v16018_v8  ;;  %v16025_v21 = vadd.f32 %v15730_v2, %v1635_v0  ;;  %v2369_v32 = vpop.f32.mrb[89].mxu1  ;;  %v1637_v22 = vpop.f32.mrb[63].mxu0  ;;  %v13333_v0 = vld [vmem:[%s15227_s26 + $0x5c0] ss:$12 sps:$4 sm:$0xff]  }
 0x25c   : > { %v16027_v52 = vpop.f32.mrb[90].mxu1 }
 0x25d   : > { %19239 = vst [vmem:[#allocation24_spill] sm:$0xff] %v16025_v21  ;;  %v2372_v1 = vpop.f32.mrb[91].mxu1  ;;  %3812 = vmatmul.mubr.bf16.gmra.mrb[168].mxu0 %v13326_v58 }
 0x25e   : > { %3819 = vmatprep.mubr.bf16.mxu0 %v13329_v26  ;;  %v13337_v1 = vld [vmem:[%s15227_s26 + $0x5d8] ss:$12 sps:$4 sm:$0xff]  }
 0x25f   : > { %12852 = vmatmul.mubr.msk.bf16.gmra.mrb[196].mxu1 %vm1423_vm0, %v13328_v25 }
 0x260   : > { %v1640_v54 = vpop.f32.mrb[64].mxu0  ;;  %12855 = vmatprep.mubr.msk.bf16.mxu1 %vm1423_vm0, %v13332_v10 }
 0x261   : > { %v16034_v8 = vadd.f32 %v15764_v36, %v1640_v54  ;;  %v1642_v2 = vpop.f32.mrb[65].mxu0  ;;  %v13336_v36 = vld [vmem:[%s15227_s26 + $0x5d0] ss:$12 sps:$4 sm:$0xff]  }
 0x262   : > { %v16037_v32 = vpop.f32.mrb[92].mxu1  ;;  %v1643_v22 = vpop.f32.mrb[66].mxu0  ;;  %v13339_v2 = vld [vmem:[%s15227_s26 + $0x5ec] ss:$12 sps:$4 sm:$0xff]  }
 0x263   : > { %19240 = vst [vmem:[#allocation25_spill] sm:$0xff] %v16034_v8  ;;  %v16041_v58 = vadd.f32 %v15777_v38, %v1643_v22  ;;  %v2377_v26 = vpop.f32.mrb[93].mxu1  ;;  %v1645_v25 = vpop.f32.mrb[67].mxu0  ;;  %v13338_v22 = vld [vmem:[%s15227_s26 + $0x5f0] ss:$12 sps:$4 sm:$0xff]  }
 0x264   : > { %v16043_v10 = vpop.f32.mrb[94].mxu1 }
 0x265   : > { %19241 = vst [vmem:[#allocation26_spill] sm:$0xff] %v16041_v58  ;;  %v2380_v21 = vpop.f32.mrb[95].mxu1  ;;  %3820 = vmatmul.mubr.bf16.gmra.mrb[172].mxu0 %v13331_v51 }
 0x266   : > { %3827 = vmatprep.mubr.bf16.mxu0 %v13334_v7  ;;  %v13342_v21 = vld [vmem:[%s15227_s26 + $0x608] ss:$12 sps:$4 sm:$0xff]  }
 0x267   : > { %12856 = vmatmul.mubr.msk.bf16.gmra.mrb[200].mxu1 %vm1423_vm0, %v13333_v0 }
 0x268   : > { %v1648_v54 = vpop.f32.mrb[68].mxu0  ;;  %12859 = vmatprep.mubr.msk.bf16.mxu1 %vm1423_vm0, %v13337_v1 }
 0x269   : > { %v16050_v8 = vadd.f32 %v15758_v19, %v1648_v54  ;;  %v1650_v38 = vpop.f32.mrb[69].mxu0  ;;  %v13341_v19 = vld [vmem:[%s15227_s26 + $0x5e8] ss:$12 sps:$4 sm:$0xff]  }
 0x26a   : > { %v16053_v26 = vpop.f32.mrb[96].mxu1  ;;  %v1651_v25 = vpop.f32.mrb[70].mxu0  ;;  %v13344_v38 = vld [vmem:[%s15227_s26 + $0x604] ss:$12 sps:$4 sm:$0xff]  }
 0x26b   : > { %19242 = vst [vmem:[#allocation27_spill] sm:$0xff] %v16050_v8  ;;  %v16057_v51 = vadd.f32 %v15768_v24, %v1651_v25  ;;  %v2385_v7 = vpop.f32.mrb[97].mxu1  ;;  %v1653_v0 = vpop.f32.mrb[71].mxu0  ;;  %v13343_v25 = vld [vmem:[%s15227_s26 + $0x620] ss:$12 sps:$4 sm:$0xff]  }
 0x26c   : > { %v16059_v1 = vpop.f32.mrb[98].mxu1 }
 0x26d   : > { %19243 = vst [vmem:[#allocation28_spill] sm:$0xff] %v16057_v51  ;;  %v2388_v58 = vpop.f32.mrb[99].mxu1  ;;  %3828 = vmatmul.mubr.bf16.gmra.mrb[176].mxu0 %v13336_v36  ;;  %v13347_v36 = vld [vmem:[%s15227_s26 + $0x638] ss:$12 sps:$4 sm:$0xff]  }
 0x26e   : > { %3835 = vmatprep.mubr.bf16.mxu0 %v13339_v2 }
 0x26f   : > { %12860 = vmatmul.mubr.msk.bf16.gmra.mrb[204].mxu1 %vm1423_vm0, %v13338_v22 }
 0x270   : > { %v12765_v54 = vpop.f32.mrb[72].mxu0  ;;  %12863 = vmatprep.mubr.msk.bf16.mxu1 %vm1423_vm0, %v13342_v21 }
 0x271   : > { %v16066_v8 = vadd.f32 %v12765_v54, %v15809_v16  ;;  %v2440_v24 = vpop.f32.mrb[73].mxu0  ;;  %v13349_v54 = vld [vmem:[%s15227_s26 + $0x61c] ss:$12 sps:$4 sm:$0xff]  }
 0x272   : > { %v16069_v7 = vpop.f32.mrb[100].mxu1  ;;  %v16072_v0 = vadd.f32 %v2440_v24, %v15789_v29  ;;  %v12766_v58 = vpop.f32.mrb[74].mxu0 }
 0x273   : > { %v2393_v22 = vpop.f32.mrb[101].mxu1  ;;  %v16078_v21 = vadd.f32 %v12766_v58, %v15817_v23  ;;  %v2443_v16 = vpop.f32.mrb[75].mxu0  ;;  %v13346_v58 = vld [vmem:[%s15227_s26 + $0x600] ss:$12 sps:$4 sm:$0xff]  }
 0x274   : > { %19244 = vst [vmem:[#allocation29_spill] sm:$0xff] %v16072_v0  ;;  %v16082_v51 = vpop.f32.mrb[102].mxu1  ;;  %v16085_v29 = vadd.f32 %v2443_v16, %v15797_v39  ;;  %v13348_v0 = vld [vmem:[%s15227_s26 + $0x650] ss:$12 sps:$4 sm:$0xff]  }
 0x275   : > { %v2396_v2 = vpop.f32.mrb[103].mxu1  ;;  %3836 = vmatmul.mubr.bf16.gmra.mrb[180].mxu0 %v13341_v19 }
 0x276   : > { %19245 = vst [vmem:[#allocation30_spill] sm:$0xff] %v16085_v29  ;;  %3843 = vmatprep.mubr.bf16.mxu0 %v13344_v38  ;;  %v13352_v38 = vld [vmem:[%s15227_s26 + $0x668] ss:$12 sps:$4 sm:$0xff]  }
 0x277   : > { %12864 = vmatmul.mubr.msk.bf16.gmra.mrb[208].mxu1 %vm1423_vm0, %v13343_v25 }
 0x278   : > { %v12769_v22 = vpop.f32.mrb[76].mxu0  ;;  %12867 = vmatprep.mubr.msk.bf16.mxu1 %vm1423_vm0, %v13347_v36 }
 0x279   : > { %v16096_v39 = vadd.f32 %v12769_v22, %v15849_v40  ;;  %v2456_v16 = vpop.f32.mrb[77].mxu0  ;;  %v13354_v22 = vld [vmem:[%s15227_s26 + $0x634] ss:$12 sps:$4 sm:$0xff]  }
 0x27a   : > { %v16099_v24 = vpop.f32.mrb[104].mxu1  ;;  %v16102_v19 = vadd.f32 %v2456_v16, %v15829_v27  ;;  %v12770_v2 = vpop.f32.mrb[78].mxu0 }
 0x27b   : > { %v2401_v23 = vpop.f32.mrb[105].mxu1  ;;  %v16108_v36 = vadd.f32 %v12770_v2, %v15857_v12  ;;  %v2459_v40 = vpop.f32.mrb[79].mxu0 }
 0x27c   : > { %19246 = vst [vmem:[#allocation31_spill] sm:$0xff] %v16102_v19  ;;  %v16112_v29 = vpop.f32.mrb[106].mxu1  ;;  %v16115_v27 = vadd.f32 %v2459_v40, %v15837_v31  ;;  %v13351_v23 = vld [vmem:[%s15227_s26 + $0x618] ss:$12 sps:$4 sm:$0xff]   ;;  %v13353_v19 = vld [vmem:[%s15227_s26 + $0x680] ss:$12 sps:$4 sm:$0xff]  }
 0x27d   : > { %v2404_v25 = vpop.f32.mrb[107].mxu1  ;;  %3844 = vmatmul.mubr.bf16.gmra.mrb[184].mxu0 %v13346_v58 }
 0x27e   : > { %19247 = vst [vmem:[#allocation32_spill] sm:$0xff] %v16115_v27  ;;  %3851 = vmatprep.mubr.bf16.mxu0 %v13349_v54  ;;  %v13357_v54 = vld [vmem:[%s15227_s26 + $0x698] ss:$12 sps:$4 sm:$0xff]  }
 0x27f   : > { %12868 = vmatmul.mubr.msk.bf16.gmra.mrb[212].mxu1 %vm1423_vm0, %v13348_v0  ;;  %v13358_v0 = vld [vmem:[%s15227_s26 + $0x6b0] ss:$12 sps:$4 sm:$0xff]  }
 0x280   : > { %v12773_v2 = vpop.f32.mrb[80].mxu0  ;;  %12871 = vmatprep.mubr.msk.bf16.mxu1 %vm1423_vm0, %v13352_v38 }
 0x281   : > { %v16126_v31 = vadd.f32 %v12773_v2, %v15889_v50  ;;  %v2472_v40 = vpop.f32.mrb[81].mxu0  ;;  %v13359_v2 = vld [vmem:[%s15227_s26 + $0x64c] ss:$12 sps:$4 sm:$0xff]  }
 0x282   : > { %v16130_v16 = vadd.f32 %v2472_v40, %v15869_v37  ;;  %v16132_v58 = vpop.f32.mrb[108].mxu1  ;;  %v12774_v25 = vpop.f32.mrb[82].mxu0 }
 0x283   : > { %v16138_v38 = vadd.f32 %v12774_v25, %v15897_v48  ;;  %v3016_v12 = vpop.f32.mrb[109].mxu1  ;;  %v2475_v50 = vpop.f32.mrb[83].mxu0 }
 0x284   : > { %v16143_v37 = vadd.f32 %v2475_v50, %v15877_v62  ;;  %v16145_v40 = vpop.f32.mrb[110].mxu1  ;;  %v13356_v12 = vld [vmem:[%s15227_s26 + $0x630] ss:$12 sps:$4 sm:$0xff]  }
 0x285   : > { %v3019_v42 = vpop.f32.mrb[111].mxu1  ;;  %3852 = vmatmul.mubr.bf16.gmra.mrb[188].mxu0 %v13351_v23 }
 0x286   : > { %19248 = vst [vmem:[#allocation33_spill] sm:$0xff] %v16143_v37  ;;  %3859 = vmatprep.mubr.bf16.mxu0 %v13354_v22 }
 0x287   : > { %12872 = vmatmul.mubr.msk.bf16.gmra.mrb[216].mxu1 %vm1423_vm0, %v13353_v19 }
 0x288   : > { %v12777_v25 = vpop.f32.mrb[84].mxu0  ;;  %12875 = vmatprep.mubr.msk.bf16.mxu1 %vm1423_vm0, %v13357_v54 }
 0x289   : > { %v16156_v62 = vadd.f32 %v12777_v25, %v15926_v60  ;;  %v2488_v50 = vpop.f32.mrb[85].mxu0 }
 0x28a   : > { %v16160_v27 = vadd.f32 %v2488_v50, %v15909_v47  ;;  %v16162_v42 = vpop.f32.mrb[112].mxu1  ;;  %v12778_v23 = vpop.f32.mrb[86].mxu0 }
 0x28b   : > { %v16167_v22 = vadd.f32 %v12778_v23, %v15932_v41  ;;  %v3024_v54 = vpop.f32.mrb[113].mxu1  ;;  %v2491_v48 = vpop.f32.mrb[87].mxu0  ;;  %v13361_v41 = vld [vmem:[%s15227_s26 + $0x648] ss:$12 sps:$4 sm:$0xff]  }
 0x28c   : > { %v16172_v25 = vadd.f32 %v2491_v48, %v15916_v35  ;;  %v16174_v47 = vpop.f32.mrb[114].mxu1  ;;  %v13362_v54 = vld [vmem:[%s15227_s26 + $0x664] ss:$12 sps:$4 sm:$0xff]  }
 0x28d   : > { %19249 = vst [vmem:[#allocation34_spill] sm:$0xff] %v16167_v22  ;;  %v3027_v37 = vpop.f32.mrb[115].mxu1  ;;  %3860 = vmatmul.mubr.bf16.gmra.mrb[192].mxu0 %v13356_v12 }
 0x28e   : > { %19250 = vst [vmem:[#allocation35_spill] sm:$0xff] %v16172_v25  ;;  %3867 = vmatprep.mubr.bf16.mxu0 %v13359_v2 }
 0x28f   : > { %12876 = vmatmul.mubr.msk.bf16.gmra.mrb[220].mxu1 %vm1423_vm0, %v13358_v0 }
 0x290   : > { %v12781_v23 = vpop.f32.mrb[88].mxu0 }
 0x291   : > { %v16184_v60 = vadd.f32 %v12781_v23, %v15954_v44  ;;  %v2504_v35 = vpop.f32.mrb[89].mxu0  ;;  %v13454_v44 = vld [vmem:[%s19164_s3 + $0x234] ss:$20 sps:$4 sm:$0xff]  }
 0x292   : > { %v16187_v48 = vadd.f32 %v2504_v35, %v15940_v45  ;;  %v16189_v50 = vpop.f32.mrb[116].mxu1  ;;  %v12782_v37 = vpop.f32.mrb[90].mxu0 }
 0x293   : > { %19251 = vst [vmem:[#allocation36_spill] sm:$0xff] %v16184_v60  ;;  %v16194_v0 = vadd.f32 %v12782_v37, %v15960_v3  ;;  %v3032_v12 = vpop.f32.mrb[117].mxu1  ;;  %v2507_v19 = vpop.f32.mrb[91].mxu0  ;;  %v13364_v3 = vld [vmem:[%s15227_s26 + $0x660] ss:$12 sps:$4 sm:$0xff]  }
 0x294   : > { %19252 = vst [vmem:[#allocation37_spill] sm:$0xff] %v16187_v48  ;;  %v16199_v25 = vadd.f32 %v2507_v19, %v15946_v34  ;;  %v16201_v45 = vpop.f32.mrb[118].mxu1  ;;  %v13365_v12 = vld [vmem:[%s15227_s26 + $0x67c] ss:$12 sps:$4 sm:$0xff]  }
 0x295   : > { %19253 = vst [vmem:[#allocation38_spill] sm:$0xff] %v16194_v0  ;;  %v3035_v22 = vpop.f32.mrb[119].mxu1  ;;  %3868 = vmatmul.mubr.bf16.gmra.mrb[196].mxu0 %v13361_v41 }
 0x296   : > { %19255 = vst [vmem:[#allocation39_spill] sm:$0xff] %v16199_v25  ;;  %3875 = vmatprep.mubr.bf16.mxu0 %v13362_v54 }
 0x298   : > { %v12785_v37 = vpop.f32.mrb[92].mxu0 }
 0x299   : > { %v16210_v6 = vadd.f32 %v12785_v37, %v15989_v57  ;;  %v2520_v23 = vpop.f32.mrb[93].mxu0 }
 0x29a   : > { %v16213_v34 = vadd.f32 %v2520_v23, %v15974_v55  ;;  %v16215_v19 = vpop.f32.mrb[120].mxu1  ;;  %v12786_v20 = vpop.f32.mrb[94].mxu0 }
 0x29b   : > { %19258 = vst [vmem:[#allocation40_spill] sm:$0xff] %v16210_v6  ;;  %v16220_v60 = vadd.f32 %v12786_v20, %v15995_v33  ;;  %v3040_v54 = vpop.f32.mrb[121].mxu1  ;;  %v2523_v0 = vpop.f32.mrb[95].mxu0  ;;  %v13367_v20 = vld [vmem:[%s15227_s26 + $0x678] ss:$12 sps:$4 sm:$0xff]   ;;  %s14448_s26 = scalar_lea.vmem %s14447_s23, 256 }
 0x29c   : > { %19259 = vst [vmem:[#allocation41_spill] sm:$0xff] %v16213_v34  ;;  %v16225_v37 = vadd.f32 %v2523_v0, %v15980_v30  ;;  %v16227_v25 = vpop.f32.mrb[122].mxu1 }
 0x29d   : > { %19261 = vst [vmem:[#allocation42_spill] sm:$0xff] %v16220_v60  ;;  %v3043_v2 = vpop.f32.mrb[123].mxu1  ;;  %3876 = vmatmul.mubr.bf16.gmra.mrb[200].mxu0 %v13364_v3 }
 0x29e   : > { %19263 = vst [vmem:[#allocation43_spill] sm:$0xff] %v16225_v37  ;;  %3883 = vmatprep.mubr.bf16.mxu0 %v13365_v12 }
 0x2a0   : > { %v12789_v33 = vpop.f32.mrb[96].mxu0 }
 0x2a1   : > { %v16235_v54 = vadd.f32 %v12789_v33, %v16021_v17  ;;  %v2536_v57 = vpop.f32.mrb[97].mxu0 }
 0x2a2   : > { %v16238_v30 = vadd.f32 %v2536_v57, %v16005_v13  ;;  %v16240_v0 = vpop.f32.mrb[124].mxu1  ;;  %v12790_v22 = vpop.f32.mrb[98].mxu0 }
 0x2a3   : > { %19266 = vst [vmem:[#allocation44_spill] sm:$0xff] %v16235_v54  ;;  %v16245_v3 = vadd.f32 %v12790_v22, %v16027_v52  ;;  %v3048_v23 = vpop.f32.mrb[125].mxu1  ;;  %v2539_v12 = vpop.f32.mrb[99].mxu0 }
 0x2a4   : > { %19267 = vst [vmem:[#allocation45_spill] sm:$0xff] %v16238_v30  ;;  %v16250_v17 = vadd.f32 %v2539_v12, %v16011_v11  ;;  %v16252_v33 = vpop.f32.mrb[126].mxu1 }
 0x2a5   : > { %19268 = vst [vmem:[#allocation46_spill] sm:$0xff] %v16245_v3  ;;  %v3051_v55 = vpop.f32.mrb[127].mxu1  ;;  %3884 = vmatmul.mubr.bf16.gmra.mrb[204].mxu0 %v13367_v20 }
 0x2a6   : > { %19270 = vst [vmem:[#allocation47_spill] sm:$0xff] %v16250_v17 }
 0x2a8   : > { %v12793_v52 = vpop.f32.mrb[100].mxu0 }
 0x2a9   : > { %v16259_v22 = vadd.f32 %v12793_v52, %v16053_v26  ;;  %v2552_v23 = vpop.f32.mrb[101].mxu0 }
 0x2aa   : > { %v16262_v60 = vadd.f32 %v2552_v23, %v16037_v32  ;;  %v3054_v11 = vpop.f32.mrb[128].mxu1  ;;  %v12794_v12 = vpop.f32.mrb[102].mxu0 }
 0x2ab   : > { %19273 = vst [vmem:[#allocation48_spill] sm:$0xff] %v16259_v22  ;;  %v16267_v57 = vadd.f32 %v12794_v12, %v16059_v1  ;;  %v3056_v55 = vpop.f32.mrb[129].mxu1  ;;  %v2555_v20 = vpop.f32.mrb[103].mxu0 }
 0x2ac   : > { %19274 = vst [vmem:[#allocation49_spill] sm:$0xff] %v16262_v60  ;;  %v16272_v26 = vadd.f32 %v2555_v20, %v16043_v10  ;;  %v3057_v52 = vpop.f32.mrb[130].mxu1 }
 0x2ad   : > { %19276 = vst [vmem:[#allocation50_spill] sm:$0xff] %v16267_v57  ;;  %v3059_v13 = vpop.f32.mrb[131].mxu1 }
 0x2ae   : > { %19278 = vst [vmem:[#allocation51_spill] sm:$0xff] %v16272_v26 }
 0x2b0   : > { %v12797_v30 = vpop.f32.mrb[104].mxu0 }
 0x2b1   : > { %v16279_v1 = vadd.f32 %v12797_v30, %v16099_v24  ;;  %v2568_v12 = vpop.f32.mrb[105].mxu0 }
 0x2b2   : > { %v16282_v55 = vadd.f32 %v2568_v12, %v16069_v7  ;;  %v3062_v3 = vpop.f32.mrb[132].mxu1  ;;  %v12798_v22 = vpop.f32.mrb[106].mxu0 }
 0x2b3   : > { %19281 = vst [vmem:[#allocation52_spill] sm:$0xff] %v16279_v1  ;;  %v16287_v14 = vadd.f32 %v12798_v22, %v16112_v29  ;;  %v3064_v13 = vpop.f32.mrb[133].mxu1  ;;  %v2571_v23 = vpop.f32.mrb[107].mxu0 }
 0x2b4   : > { %19282 = vst [vmem:[#allocation53_spill] sm:$0xff] %v16282_v55  ;;  %v16292_v24 = vadd.f32 %v2571_v23, %v16082_v51  ;;  %v3065_v30 = vpop.f32.mrb[134].mxu1 }
 0x2b5   : > { %19284 = vst [vmem:[#allocation54_spill] sm:$0xff] %v16287_v14  ;;  %v3067_v32 = vpop.f32.mrb[135].mxu1 }
 0x2b6   : > { %19286 = vst [vmem:[#allocation55_spill] sm:$0xff] %v16292_v24 }
 0x2b8   : > { %v12805_v20 = vpop.f32.mrb[108].mxu0 }
 0x2b9   : > { %v16299_v29 = vadd.f32 %v12805_v20, %v16162_v42  ;;  %v3191_v22 = vpop.f32.mrb[109].mxu0 }
 0x2ba   : > { %v3070_v13 = vpop.f32.mrb[136].mxu1  ;;  %v16302_v60 = vadd.f32 %v3191_v22, %v16132_v58  ;;  %v12806_v57 = vpop.f32.mrb[110].mxu0 }
 0x2bb   : > { %v3072_v51 = vpop.f32.mrb[137].mxu1  ;;  %v16305_v23 = vadd.f32 %v12806_v57, %v16174_v47  ;;  %v3194_v54 = vpop.f32.mrb[111].mxu0 }
 0x2bc   : > { %v3073_v12 = vpop.f32.mrb[138].mxu1  ;;  %v16308_v32 = vadd.f32 %v3194_v54, %v16145_v40 }
 0x2bd   : > { %v3075_v17 = vpop.f32.mrb[139].mxu1 }
 0x2c0   : > { %v12809_v24 = vpop.f32.mrb[112].mxu0 }
 0x2c1   : > { %v16311_v42 = vadd.f32 %v12809_v24, %v16215_v19  ;;  %v3207_v20 = vpop.f32.mrb[113].mxu0 }
 0x2c2   : > { %v3078_v26 = vpop.f32.mrb[140].mxu1  ;;  %v16314_v58 = vadd.f32 %v3207_v20, %v16189_v50  ;;  %v12810_v22 = vpop.f32.mrb[114].mxu0 }
 0x2c3   : > { %v3080_v51 = vpop.f32.mrb[141].mxu1  ;;  %v16317_v47 = vadd.f32 %v12810_v22, %v16227_v25  ;;  %v3210_v57 = vpop.f32.mrb[115].mxu0 }
 0x2c4   : > { %v3081_v14 = vpop.f32.mrb[142].mxu1  ;;  %v16320_v40 = vadd.f32 %v3210_v57, %v16201_v45 }
 0x2c5   : > { %v3083_v54 = vpop.f32.mrb[143].mxu1 }
 0x2c8   : > { %v12813_v17 = vpop.f32.mrb[116].mxu0 }
 0x2c9   : > { %v16322_v7 = vadd.f32 %v12813_v17, %v3054_v11  ;;  %v3223_v19 = vpop.f32.mrb[117].mxu0 }
 0x2ca   : > { %v3086_v24 = vpop.f32.mrb[144].mxu1  ;;  %v16325_v55 = vadd.f32 %v3223_v19, %v16240_v0  ;;  %v12814_v50 = vpop.f32.mrb[118].mxu0 }
 0x2cb   : > { %v3088_v20 = vpop.f32.mrb[145].mxu1  ;;  %v16327_v51 = vadd.f32 %v12814_v50, %v3057_v52  ;;  %v3226_v25 = vpop.f32.mrb[119].mxu0 }
 0x2cc   : > { %v3089_v22 = vpop.f32.mrb[146].mxu1  ;;  %v16330_v2 = vadd.f32 %v3226_v25, %v16252_v33  ;;  %v13368_v33 = vld [vmem:[%s19164_s3 + $0x8] ss:$20 sps:$4 sm:$0xff]  }
 0x2cd   : > { %v3091_v45 = vpop.f32.mrb[147].mxu1 }
 0x2d0   : > { %v12817_v57 = vpop.f32.mrb[120].mxu0 }
 0x2d1   : > { %v16332_v54 = vadd.f32 %v12817_v57, %v3070_v13  ;;  %v3239_v11 = vpop.f32.mrb[121].mxu0  ;;  %v13370_v13 = vld [vmem:[%s19164_s3 + $0xc] ss:$20 sps:$4 sm:$0xff]  }
 0x2d2   : > { %v3094_v17 = vpop.f32.mrb[148].mxu1  ;;  %v16334_v1 = vadd.f32 %v3239_v11, %v3062_v3  ;;  %v12818_v10 = vpop.f32.mrb[122].mxu0  ;;  %9422 = vmatprep.subr.bf16.mxu0 %v13370_v13  ;;  %v13371_v13 = vld [vmem:[%s19164_s3 + $0x30] ss:$20 sps:$4 sm:$0xff]  }
 0x2d3   : > { %v3096_v0 = vpop.f32.mrb[149].mxu1  ;;  %v16336_v19 = vadd.f32 %v12818_v10, %v3073_v12  ;;  %v3242_v20 = vpop.f32.mrb[123].mxu0  ;;  %9423 = vmatpush1.bf16.msra.mxu0 %v13368_v33 }
 0x2d4   : > { %v3097_v52 = vpop.f32.mrb[150].mxu1  ;;  %v16338_v50 = vadd.f32 %v3242_v20, %v3065_v30 }
 0x2d5   : > { %v3099_v6 = vpop.f32.mrb[151].mxu1 }
 0x2d8   : > { %v12821_v3 = vpop.f32.mrb[124].mxu0 }
 0x2d9   : > { %v16346_v25 = vadd.f32 %v12821_v3, %v3086_v24  ;;  %v3255_v10 = vpop.f32.mrb[125].mxu0  ;;  %v13373_v24 = vld [vmem:[%s19164_s3 + $0x34] ss:$20 sps:$4 sm:$0xff]  }
 0x2da   : > { %v3102_v12 = vpop.f32.mrb[152].mxu1  ;;  %v16348_v45 = vadd.f32 %v3255_v10, %v3078_v26  ;;  %v12822_v30 = vpop.f32.mrb[126].mxu0  ;;  %9424 = vmatprep.subr.bf16.mxu0 %v13373_v24  ;;  %v13374_v24 = vld [vmem:[%s19164_s3 + $0x58] ss:$20 sps:$4 sm:$0xff]  }
 0x2db   : > { %19289 = vst [vmem:[#allocation56_spill] sm:$0xff] %v16346_v25  ;;  %v3104_v57 = vpop.f32.mrb[153].mxu1  ;;  %v16350_v6 = vadd.f32 %v12822_v30, %v3089_v22  ;;  %v3258_v11 = vpop.f32.mrb[127].mxu0  ;;  %9425 = vmatpush1.bf16.msra.mxu0 %v13371_v13 }
 0x2dc   : > { %v3105_v0 = vpop.f32.mrb[154].mxu1  ;;  %v16352_v20 = vadd.f32 %v3258_v11, %v3081_v14 }
 0x2dd   : > { %19290 = vst [vmem:[#allocation57_spill] sm:$0xff] %v16350_v6  ;;  %v3107_v37 = vpop.f32.mrb[155].mxu1 }
 0x2de   : > { %19291 = vst [vmem:[#allocation58_spill] sm:$0xff] %v16352_v20 }
 0x2e0   : > { %v12825_v26 = vpop.f32.mrb[128].mxu0 }
 0x2e1   : > { %v16360_v33 = vadd.f32 %v12825_v26, %v3102_v12  ;;  %v3271_v22 = vpop.f32.mrb[129].mxu0  ;;  %v13376_v12 = vld [vmem:[%s19164_s3 + $0x5c] ss:$20 sps:$4 sm:$0xff]  }
 0x2e2   : > { %v3110_v3 = vpop.f32.mrb[156].mxu1  ;;  %v16362_v10 = vadd.f32 %v3271_v22, %v3094_v17  ;;  %v12826_v14 = vpop.f32.mrb[130].mxu0  ;;  %9426 = vmatprep.subr.bf16.mxu0 %v13376_v12 }
 0x2e3   : > { %19292 = vst [vmem:[#allocation59_spill] sm:$0xff] %v16360_v33  ;;  %v3112_v30 = vpop.f32.mrb[157].mxu1  ;;  %v16364_v37 = vadd.f32 %v12826_v14, %v3105_v0  ;;  %v3274_v57 = vpop.f32.mrb[131].mxu0  ;;  %9427 = vmatpush1.bf16.msra.mxu0 %v13374_v24  ;;  %v13380_v24 = vld [vmem:[%s19164_s3 + $0x80] ss:$20 sps:$4 sm:$0xff]  }
 0x2e4   : > { %19293 = vst [vmem:[#allocation60_spill] sm:$0xff] %v16362_v10  ;;  %v3113_v11 = vpop.f32.mrb[158].mxu1  ;;  %v16366_v41 = vadd.f32 %v3274_v57, %v3097_v52  ;;  %v13379_v52 = vld [vmem:[%s19164_s3 + $0x4] ss:$20 sps:$4 sm:$0xff]   ;;  %v13412_v10 = vld [vmem:[%s19164_s3 + $0x11c] ss:$20 sps:$4 sm:$0xff]  }
 0x2e5   : > { %19294 = vst [vmem:[#allocation61_spill] sm:$0xff] %v16364_v37  ;;  %v3115_v34 = vpop.f32.mrb[159].mxu1  ;;  %9053 = vmatprep.subr.bf16.mxu1 %v13379_v52 }
 0x2e6   : > { %19295 = vst [vmem:[#allocation62_spill] sm:$0xff] %v16366_v41  ;;  %v13377_v34 = vld [vmem:[%s19164_s3] ss:$20 sps:$4 sm:$0xff]  }
 0x2e7   : > { %9054 = vmatpush1.bf16.msra.mxu1 %v13377_v34 }
 0x2e8   : > { %v12829_v13 = vpop.f32.mrb[132].mxu0 }
 0x2e9   : > { %v3287_v17 = vpop.f32.mrb[133].mxu0 }
 0x2ea   : > { %v3118_v26 = vpop.f32.mrb[160].mxu1  ;;  %v16374_v22 = vadd.f32 %v3287_v17, %v3110_v3  ;;  %v12830_v0 = vpop.f32.mrb[134].mxu0  ;;  %v13382_v17 = vld [vmem:[%s19164_s3 + $0x84] ss:$20 sps:$4 sm:$0xff]  }
 0x2eb   : > { %v16382_v14 = vadd.f32 %v12829_v13, %v3118_v26  ;;  %v3120_v30 = vpop.f32.mrb[161].mxu1  ;;  %v3290_v57 = vpop.f32.mrb[135].mxu0  ;;  %9428 = vmatprep.subr.bf16.mxu0 %v13382_v17  ;;  %v13383_v13 = vld [vmem:[%s19164_s3 + $0x28] ss:$20 sps:$4 sm:$0xff]  }
 0x2ec   : > { %19296 = vst [vmem:[#allocation63_spill] sm:$0xff] %v16374_v22  ;;  %v3121_v37 = vpop.f32.mrb[162].mxu1  ;;  %v16384_v33 = vadd.f32 %v3290_v57, %v3113_v11  ;;  %9429 = vmatpush1.bf16.msra.mxu0 %v13380_v24  ;;  %v13388_v24 = vld [vmem:[%s19164_s3 + $0x54] ss:$20 sps:$4 sm:$0xff]  }
 0x2ed   : > { %19297 = vst [vmem:[#allocation64_spill] sm:$0xff] %v16382_v14  ;;  %v16386_v3 = vadd.f32 %v12830_v0, %v3121_v37  ;;  %v3123_v12 = vpop.f32.mrb[163].mxu1  ;;  %v13385_v37 = vld [vmem:[%s19164_s3 + $0x2c] ss:$20 sps:$4 sm:$0xff]   ;;  %v13386_v14 = vld [vmem:[%s19164_s3 + $0x50] ss:$20 sps:$4 sm:$0xff]  }
 0x2ee   : > { %19298 = vst [vmem:[#allocation65_spill] sm:$0xff] %v16384_v33  ;;  %9055 = vmatprep.subr.bf16.mxu1 %v13385_v37  ;;  %v13391_v37 = vld [vmem:[%s19164_s3 + $0xac] ss:$20 sps:$4 sm:$0xff]  }
 0x2ef   : > { %19299 = vst [vmem:[#allocation66_spill] sm:$0xff] %v16386_v3  ;;  %9056 = vmatpush1.bf16.msra.mxu1 %v13383_v13  ;;  %v13389_v13 = vld [vmem:[%s19164_s3 + $0xa8] ss:$20 sps:$4 sm:$0xff]   ;;  %9430 = vmatprep.subr.bf16.mxu0 %v13391_v37 }
 0x2f0   : > { %v12833_v11 = vpop.f32.mrb[136].mxu0  ;;  %9057 = vmatprep.subr.bf16.mxu1 %v13388_v24  ;;  %9431 = vmatpush1.bf16.msra.mxu0 %v13389_v13  ;;  %v13397_v13 = vld [vmem:[%s19164_s3 + $0xa4] ss:$20 sps:$4 sm:$0xff]   ;;  %v13406_v37 = vld [vmem:[%s19164_s3 + $0xfc] ss:$20 sps:$4 sm:$0xff]  }
 0x2f1   : > { %v3303_v26 = vpop.f32.mrb[137].mxu0 }
 0x2f2   : > { %v3126_v0 = vpop.f32.mrb[164].mxu1  ;;  %v12834_v34 = vpop.f32.mrb[138].mxu0 }
 0x2f3   : > { %v16400_v52 = vadd.f32 %v3303_v26, %v3126_v0  ;;  %v3128_v30 = vpop.f32.mrb[165].mxu1  ;;  %v3306_v57 = vpop.f32.mrb[139].mxu0  ;;  %9058 = vmatpush1.bf16.msra.mxu1 %v13386_v14  ;;  %v13392_v0 = vld [vmem:[%s19164_s3 + $0x78] ss:$20 sps:$4 sm:$0xff]   ;;  %v13395_v14 = vld [vmem:[%s19164_s3 + $0xa0] ss:$20 sps:$4 sm:$0xff]  }
 0x2f4   : > { %v3129_v12 = vpop.f32.mrb[166].mxu1 }
 0x2f5   : > { %19300 = vst [vmem:[#allocation67_spill] sm:$0xff] %v16400_v52  ;;  %v16402_v17 = vadd.f32 %v3306_v57, %v3129_v12  ;;  %v3131_v3 = vpop.f32.mrb[167].mxu1 }
 0x2f6   : > { %v13394_v3 = vld [vmem:[%s19164_s3 + $0x7c] ss:$20 sps:$4 sm:$0xff]  }
 0x2f7   : > { %19301 = vst [vmem:[#allocation68_spill] sm:$0xff] %v16402_v17  ;;  %9059 = vmatprep.subr.bf16.mxu1 %v13394_v3 }
 0x2f8   : > { %v12837_v26 = vpop.f32.mrb[140].mxu0  ;;  %9060 = vmatpush1.bf16.msra.mxu1 %v13392_v0  ;;  %v13404_v0 = vld [vmem:[%s19164_s3 + $0xf8] ss:$20 sps:$4 sm:$0xff]  }
 0x2f9   : > { %v3319_v30 = vpop.f32.mrb[141].mxu0  ;;  %9061 = vmatprep.subr.bf16.mxu1 %v13397_v13 }
 0x2fa   : > { %v3134_v57 = vpop.f32.mrb[168].mxu1  ;;  %v12838_v12 = vpop.f32.mrb[142].mxu0 }
 0x2fb   : > { %v16422_v17 = vadd.f32 %v12833_v11, %v3134_v57  ;;  %v3136_v52 = vpop.f32.mrb[169].mxu1  ;;  %v3322_v24 = vpop.f32.mrb[143].mxu0  ;;  %v13398_v11 = vld [vmem:[%s19164_s3 + $0xd0] ss:$20 sps:$4 sm:$0xff]   ;;  %v13409_v57 = vld [vmem:[%s19164_s3 + $0xf4] ss:$20 sps:$4 sm:$0xff]  }
 0x2fc   : > { %v3137_v33 = vpop.f32.mrb[170].mxu1  ;;  %v13400_v52 = vld [vmem:[%s19164_s3 + $0xd4] ss:$20 sps:$4 sm:$0xff]   ;;  %9062 = vmatpush1.bf16.msra.mxu1 %v13395_v14 }
 0x2fd   : > { %19302 = vst [vmem:[#allocation69_spill] sm:$0xff] %v16422_v17  ;;  %v16424_v22 = vadd.f32 %v12834_v34, %v3137_v33  ;;  %v3139_v41 = vpop.f32.mrb[171].mxu1  ;;  %9432 = vmatprep.subr.bf16.mxu0 %v13400_v52  ;;  %v13401_v34 = vld [vmem:[%s19164_s3 + $0xc8] ss:$20 sps:$4 sm:$0xff]  }
 0x2fe   : > { %v13403_v41 = vld [vmem:[%s19164_s3 + $0xcc] ss:$20 sps:$4 sm:$0xff]   ;;  %9433 = vmatpush1.bf16.msra.mxu0 %v13398_v11  ;;  %v13407_v11 = vld [vmem:[%s19164_s3 + $0xf0] ss:$20 sps:$4 sm:$0xff]  }
 0x2ff   : > { %19303 = vst [vmem:[#allocation70_spill] sm:$0xff] %v16424_v22  ;;  %9063 = vmatprep.subr.bf16.mxu1 %v13403_v41  ;;  %9434 = vmatprep.subr.bf16.mxu0 %v13406_v37 }
 0x300   : > { %v16441_v33 = vpop.f32.mrb[144].mxu0  ;;  %9064 = vmatpush1.bf16.msra.mxu1 %v13401_v34  ;;  %v13418_v34 = vld [vmem:[%s19164_s3 + $0x144] ss:$20 sps:$4 sm:$0xff]  }
 0x301   : > { %v3767_v3 = vpop.f32.mrb[145].mxu0  ;;  %9065 = vmatprep.subr.bf16.mxu1 %v13409_v57  ;;  %v13419_v57 = vld [vmem:[%s19164_s3 + $0x148] ss:$20 sps:$4 sm:$0xff]  }
 0x302   : > { %v3142_v14 = vpop.f32.mrb[172].mxu1  ;;  %v16455_v13 = vpop.f32.mrb[146].mxu0  ;;  %9435 = vmatpush1.bf16.msra.mxu0 %v13404_v0 }
 0x303   : > { %v16457_v52 = vadd.f32 %v3319_v30, %v3142_v14  ;;  %v3144_v22 = vpop.f32.mrb[173].mxu1  ;;  %v3770_v17 = vpop.f32.mrb[147].mxu0  ;;  %v13421_v14 = vld [vmem:[%s19164_s3 + $0x14c] ss:$20 sps:$4 sm:$0xff]  }
 0x304   : > { %v3145_v35 = vpop.f32.mrb[174].mxu1  ;;  %v13413_v22 = vld [vmem:[%s19164_s3 + $0x120] ss:$20 sps:$4 sm:$0xff]   ;;  %v13415_v17 = vld [vmem:[%s19164_s3 + $0x124] ss:$20 sps:$4 sm:$0xff]   ;;  %9066 = vmatpush1.bf16.msra.mxu1 %v13407_v11 }
 0x305   : > { %19304 = vst [vmem:[#allocation71_spill] sm:$0xff] %v16457_v52  ;;  %v16462_v41 = vadd.f32 %v3322_v24, %v3145_v35  ;;  %v3147_v3 = vpop.f32.mrb[175].mxu1  ;;  %v13410_v35 = vld [vmem:[%s19164_s3 + $0x118] ss:$20 sps:$4 sm:$0xff]   ;;  %9436 = vmatprep.subr.bf16.mxu0 %v13415_v17  ;;  %9067 = vmatprep.subr.bf16.mxu1 %v13412_v10  ;;  %v13416_v17 = vld [vmem:[%s19164_s3 + $0x140] ss:$20 sps:$4 sm:$0xff]  }
 0x306   : > { %9437 = vmatpush1.bf16.msra.mxu0 %v13413_v22 }
 0x307   : > { %19305 = vst [vmem:[#allocation72_spill] sm:$0xff] %v16462_v41  ;;  %9438 = vmatprep.subr.bf16.mxu0 %v13421_v14 }
 0x308   : > { %v16473_v30 = vpop.f32.mrb[148].mxu0  ;;  %9068 = vmatpush1.bf16.msra.mxu1 %v13410_v35  ;;  %v13425_v35 = vld [vmem:[%s19164_s3 + $0x170] ss:$20 sps:$4 sm:$0xff]  }
 0x309   : > { %v3775_v24 = vpop.f32.mrb[149].mxu0  ;;  %9069 = vmatprep.subr.bf16.mxu1 %v13418_v34  ;;  %v13430_v34 = vld [vmem:[%s19164_s3 + $0x194] ss:$20 sps:$4 sm:$0xff]  }
 0x30a   : > { %v3150_v37 = vpop.f32.mrb[176].mxu1  ;;  %v16481_v0 = vpop.f32.mrb[150].mxu0  ;;  %v13427_v24 = vld [vmem:[%s19164_s3 + $0x174] ss:$20 sps:$4 sm:$0xff]   ;;  %9439 = vmatpush1.bf16.msra.mxu0 %v13419_v57  ;;  %v13431_v57 = vld [vmem:[%s19164_s3 + $0x198] ss:$20 sps:$4 sm:$0xff]  }
 0x30b   : > { %v16489_v11 = vadd.f32 %v12837_v26, %v3150_v37  ;;  %v3152_v3 = vpop.f32.mrb[177].mxu1  ;;  %v3778_v10 = vpop.f32.mrb[151].mxu0  ;;  %v13424_v26 = vld [vmem:[%s19164_s3 + $0x16c] ss:$20 sps:$4 sm:$0xff]   ;;  %9440 = vmatprep.subr.bf16.mxu0 %v13427_v24  ;;  %v13433_v37 = vld [vmem:[%s19164_s3 + $0x19c] ss:$20 sps:$4 sm:$0xff]  }
 0x30c   : > { %v3153_v22 = vpop.f32.mrb[178].mxu1  ;;  %9070 = vmatpush1.bf16.msra.mxu1 %v13416_v17 }
 0x30d   : > { %19306 = vst [vmem:[#allocation73_spill] sm:$0xff] %v16489_v11  ;;  %v16497_v41 = vadd.f32 %v12838_v12, %v3153_v22  ;;  %v3155_v52 = vpop.f32.mrb[179].mxu1  ;;  %v13422_v12 = vld [vmem:[%s19164_s3 + $0x168] ss:$20 sps:$4 sm:$0xff]   ;;  %9071 = vmatprep.subr.bf16.mxu1 %v13424_v26  ;;  %v13439_v22 = vld [vmem:[%s19164_s3 + $0x1c4] ss:$20 sps:$4 sm:$0xff]  }
 0x30e   : > { %9441 = vmatpush1.bf16.msra.mxu0 %v13425_v35  ;;  %v13428_v35 = vld [vmem:[%s19164_s3 + $0x190] ss:$20 sps:$4 sm:$0xff]  }
 0x30f   : > { %19307 = vst [vmem:[#allocation74_spill] sm:$0xff] %v16497_v41  ;;  %9442 = vmatprep.subr.bf16.mxu0 %v13433_v37  ;;  %v13436_v37 = vld [vmem:[%s19164_s3 + $0x1bc] ss:$20 sps:$4 sm:$0xff]   ;;  %v13437_v41 = vld [vmem:[%s19164_s3 + $0x1c0] ss:$20 sps:$4 sm:$0xff]  }
 0x310   : > { %v16508_v14 = vpop.f32.mrb[152].mxu0  ;;  %9072 = vmatpush1.bf16.msra.mxu1 %v13422_v12  ;;  %v13445_v12 = vld [vmem:[%s19164_s3 + $0x1ec] ss:$20 sps:$4 sm:$0xff]  }
 0x311   : > { %v3783_v52 = vpop.f32.mrb[153].mxu0  ;;  %9073 = vmatprep.subr.bf16.mxu1 %v13430_v34  ;;  %v13434_v34 = vld [vmem:[%s19164_s3 + $0x1b8] ss:$20 sps:$4 sm:$0xff]  }
 0x312   : > { %v16519_v3 = vpop.f32.mrb[180].mxu1  ;;  %v16521_v10 = vpop.f32.mrb[154].mxu0  ;;  %9443 = vmatpush1.bf16.msra.mxu0 %v13431_v57 }
 0x313   : > { %19308 = vst [vmem:[#allocation75_spill] sm:$0xff] %v16519_v3  ;;  %v3895_v17 = vpop.f32.mrb[181].mxu1  ;;  %v3786_v24 = vpop.f32.mrb[155].mxu0  ;;  %9444 = vmatprep.subr.bf16.mxu0 %v13439_v22  ;;  %v13443_v22 = vld [vmem:[%s19164_s3 + $0x1e8] ss:$20 sps:$4 sm:$0xff]  }
 0x314   : > { %v16526_v26 = vpop.f32.mrb[182].mxu1  ;;  %9074 = vmatpush1.bf16.msra.mxu1 %v13428_v35  ;;  %v13442_v24 = vld [vmem:[%s19164_s3 + $0x1e4] ss:$20 sps:$4 sm:$0xff]  }
 0x315   : > { %19309 = vst [vmem:[#allocation76_spill] sm:$0xff] %v16526_v26  ;;  %v3898_v52 = vpop.f32.mrb[183].mxu1  ;;  %9075 = vmatprep.subr.bf16.mxu1 %v13436_v37 }
 0x316   : > { %9445 = vmatpush1.bf16.msra.mxu0 %v13437_v41  ;;  %v13440_v41 = vld [vmem:[%s19164_s3 + $0x1e0] ss:$20 sps:$4 sm:$0xff]  }
 0x317   : > { %9446 = vmatprep.subr.bf16.mxu0 %v13445_v12  ;;  %v13448_v12 = vld [vmem:[%s19164_s3 + $0x20c] ss:$20 sps:$4 sm:$0xff]  }
 0x318   : > { %v16540_v17 = vpop.f32.mrb[156].mxu0  ;;  %9076 = vmatpush1.bf16.msra.mxu1 %v13434_v34 }
 0x319   : > { %v3791_v57 = vpop.f32.mrb[157].mxu0  ;;  %9077 = vmatprep.subr.bf16.mxu1 %v13442_v24  ;;  %v13446_v24 = vld [vmem:[%s19164_s3 + $0x208] ss:$20 sps:$4 sm:$0xff]  }
 0x31a   : > { %v16551_v52 = vpop.f32.mrb[184].mxu1  ;;  %v16553_v26 = vpop.f32.mrb[158].mxu0  ;;  %9447 = vmatpush1.bf16.msra.mxu0 %v13443_v22  ;;  %v13449_v22 = vld [vmem:[%s19164_s3 + $0x210] ss:$20 sps:$4 sm:$0xff]  }
 0x31b   : > { %19310 = vst [vmem:[#allocation77_spill] sm:$0xff] %v16551_v52  ;;  %v3903_v35 = vpop.f32.mrb[185].mxu1  ;;  %v3794_v11 = vpop.f32.mrb[159].mxu0 }
 0x31c   : > { %v16555_v3 = vpop.f32.mrb[186].mxu1  ;;  %9078 = vmatpush1.bf16.msra.mxu1 %v13440_v41  ;;  %v13451_v11 = vld [vmem:[%s19164_s3 + $0x214] ss:$20 sps:$4 sm:$0xff]  }
 0x31d   : > { %19311 = vst [vmem:[#allocation78_spill] sm:$0xff] %v16555_v3  ;;  %v3906_v37 = vpop.f32.mrb[187].mxu1  ;;  %9079 = vmatprep.subr.bf16.mxu1 %v13448_v12  ;;  %9448 = vmatprep.subr.bf16.mxu0 %v13451_v11  ;;  %v16591_v11 = vld [vmem:[%s19163_s2] ss:$0 sm:$0xff] }
 0x31e   : > { %9449 = vmatpush1.bf16.msra.mxu0 %v13449_v22 }
 0x320   : > { %v16560_v57 = vpop.f32.mrb[160].mxu0  ;;  %9080 = vmatpush1.bf16.msra.mxu1 %v13446_v24 }
 0x321   : > { %v3799_v6 = vpop.f32.mrb[161].mxu0  ;;  %9081 = vmatprep.subr.bf16.mxu1 %v13454_v44  ;;  %v19316_v44 = vld [vmem:[#allocation30_spill] sm:$0xff] }
 0x322   : > { %v12845_v34 = vpop.f32.mrb[188].mxu1  ;;  %v16568_v35 = vpop.f32.mrb[162].mxu0 }
 0x323   : > { %v3951_v6 = vadd.f32 %v12845_v34, %v16473_v30  ;;  %v3942_v41 = vpop.f32.mrb[189].mxu1  ;;  %v3802_v37 = vpop.f32.mrb[163].mxu0  ;;  %v13457_v30 = vld [vmem:[%s19164_s3 + $0x23c] ss:$20 sps:$4 sm:$0xff]  }
 0x324   : > { %v3943_v3 = vadd.f32 %v3942_v41, %v16441_v33  ;;  %v12846_v52 = vpop.f32.mrb[190].mxu1  ;;  %9450 = vmatprep.subr.bf16.mxu0 %v13457_v30  ;;  %v13461_v30 = vld [vmem:[%s19164_s3 + $0x260] ss:$20 sps:$4 sm:$0xff]  }
 0x325   : > { %v4123_v25 = vmax.f32 %v16299_v29, %v3951_v6  ;;  %v3954_v20 = vadd.f32 %v12846_v52, %v16481_v0  ;;  %v3945_v48 = vpop.f32.mrb[191].mxu1  ;;  %v13452_v29 = vld [vmem:[%s19164_s3 + $0x230] ss:$20 sps:$4 sm:$0xff]   ;;  %v13455_v0 = vld [vmem:[%s19164_s3 + $0x238] ss:$20 sps:$4 sm:$0xff]   ;;  %v19312_v52 = vmax.f32 %v15755_v18, %v16066_v8  ;;  %v19315_v6 = vmax.f32 %v15762_v28, %v16078_v21 }
 0x326   : > { %v4121_v12 = vmax.f32 %v16302_v60, %v3943_v3  ;;  %v3946_v33 = vadd.f32 %v3945_v48, %v16455_v13  ;;  %v19313_v48 = vld [vmem:[#allocation29_spill] sm:$0xff]  ;;  %9082 = vmatpush1.bf16.msra.mxu1 %v13452_v29  ;;  %9451 = vmatpush1.bf16.msra.mxu0 %v13455_v0  ;;  %v13458_v21 = vld [vmem:[%s19164_s3 + $0x258] ss:$20 sps:$4 sm:$0xff]  }
 0x327   : > { %v4159_v34 = vmax.f32 %v19312_v52, %v4123_v25  ;;  %v4124_v60 = vmax.f32 %v16305_v23, %v3954_v20  ;;  %v19314_v13 = vmax.f32 %v15719_v46, %v19313_v48  ;;  %v13460_v8 = vld [vmem:[%s19164_s3 + $0x25c] ss:$20 sps:$4 sm:$0xff]   ;;  %v13463_v46 = vld [vmem:[%s19164_s3 + $0x264] ss:$20 sps:$4 sm:$0xff]   ;;  %v19317_v23 = vmax.f32 %v15725_v56, %v19316_v44 }
 0x328   : > { %v4122_v24 = vmax.f32 %v16308_v32, %v3946_v33  ;;  %v3805_v22 = vpop.f32.mrb[164].mxu0  ;;  %9083 = vmatprep.subr.bf16.mxu1 %v13460_v8  ;;  %9452 = vmatprep.subr.bf16.mxu0 %v13463_v46  ;;  %v19319_v8 = vld [vmem:[#allocation31_spill] sm:$0xff] }
 0x329   : > { %v4157_v3 = vmax.f32 %v19314_v13, %v4121_v12  ;;  %v4160_v41 = vmax.f32 %v19315_v6, %v4124_v60  ;;  %v3807_v37 = vpop.f32.mrb[165].mxu0  ;;  %v4202_v18 = vadd.f32 %v16591_v11, %v4159_v34  ;;  %v13466_v6 = vld [vmem:[%s19164_s3 + $0x284] ss:$20 sps:$4 sm:$0xff]   ;;  %v19320_v46 = vmax.f32 %v15787_v4, %v19319_v8 }
 0x32a   : > { %v4158_v32 = vmax.f32 %v19317_v23, %v4122_v24  ;;  %v12849_v25 = vpop.f32.mrb[192].mxu1  ;;  %v3808_v20 = vpop.f32.mrb[166].mxu0  ;;  %9084 = vmatpush1.bf16.msra.mxu1 %v13458_v21  ;;  %9453 = vmatpush1.bf16.msra.mxu0 %v13461_v30 }
 0x32b   : > { %v4200_v28 = vadd.f32 %v16591_v11, %v4157_v3  ;;  %v3967_v12 = vadd.f32 %v12849_v25, %v16540_v17  ;;  %v3958_v33 = vpop.f32.mrb[193].mxu1  ;;  %v4203_v29 = vadd.f32 %v16591_v11, %v4160_v41  ;;  %v3810_v0 = vpop.f32.mrb[167].mxu0  ;;  %v4238_v56 = vmax.f32 %v4202_v18, 0.0  ;;  %9094 = vmatprep.subr.bf16.mxu1 %v13466_v6  ;;  %v19322_v25 = vld [vmem:[#allocation7_spill] sm:$0xff] }
 0x32c   : > { %v3959_v52 = vadd.f32 %v3958_v33, %v16508_v14  ;;  %v12850_v34 = vpop.f32.mrb[194].mxu1  ;;  %v4201_v17 = vadd.f32 %v16591_v11, %v4158_v32  ;;  %v13469_v14 = vld [vmem:[%s19164_s3 + $0x28c] ss:$20 sps:$4 sm:$0xff]   ;;  %v19321_v32 = vmax.f32 %v15813_v53, %v16108_v36 }
 0x32d   : > { %v4236_v60 = vmax.f32 %v4200_v28, 0.0  ;;  %v4127_v48 = vmax.f32 %v16311_v42, %v3967_v12  ;;  %v3970_v13 = vadd.f32 %v12850_v34, %v16553_v26  ;;  %v3961_v3 = vpop.f32.mrb[195].mxu1  ;;  %v4239_v24 = vmax.f32 %v4203_v29, 0.0  ;;  %4280 = vst.msk [vmem:[#allocation2 + $0x8] sm:$0xff] %vm4272_vm1, %v4238_v56  ;;  %9463 = vmatprep.subr.bf16.mxu0 %v13469_v14  ;;  %v19323_v28 = vld [vmem:[#allocation32_spill] sm:$0xff] }
 0x32e   : > { %v4125_v41 = vmax.f32 %v16314_v58, %v3959_v52  ;;  %v3962_v42 = vadd.f32 %v3961_v3, %v16521_v10  ;;  %v19318_v26 = vmax.f32 %v15807_v61, %v16096_v39  ;;  %v4237_v10 = vmax.f32 %v4201_v17, 0.0 }
 0x32f   : > { %4273 = vst.msk [vmem:[#allocation2] sm:$0xff] %vm4272_vm1, %v4236_v60  ;;  %v4128_v18 = vmax.f32 %v16317_v47, %v3970_v13  ;;  %4282 = vrot.lane.b32.xlu0 %v4239_v24, %s14507_s25  ;;  %v19324_v21 = vmax.f32 %v19322_v25, %v19323_v28 }
 0x330   : > { %v4163_v37 = vmax.f32 %v19318_v26, %v4127_v48  ;;  %v4161_v44 = vmax.f32 %v19320_v46, %v4125_v41  ;;  %v4126_v58 = vmax.f32 %v16320_v40, %v3962_v42  ;;  %v3813_v23 = vpop.f32.mrb[168].mxu0 }
 0x331   : > { %v4164_v61 = vmax.f32 %v19321_v32, %v4128_v18  ;;  %v3815_v39 = vpop.f32.mrb[169].mxu0 }
 0x332   : > { %v4206_v47 = vadd.f32 %v16591_v11, %v4163_v37  ;;  %v4162_v30 = vmax.f32 %v19324_v21, %v4126_v58  ;;  %v12853_v12 = vpop.f32.mrb[196].mxu1  ;;  %v3816_v33 = vpop.f32.mrb[170].mxu0  ;;  %v4204_v4 = vadd.f32 %v16591_v11, %v4161_v44 }
 0x333   : > { %v3983_v29 = vadd.f32 %v12853_v12, %v3805_v22  ;;  %v3974_v40 = vpop.f32.mrb[197].mxu1  ;;  %4275 = vrot.lane.b32.xlu0 %v4237_v10, %s14507_s25  ;;  %v4207_v0 = vadd.f32 %v16591_v11, %v4164_v61  ;;  %v3818_v56 = vpop.f32.mrb[171].mxu0 }
 0x334   : > { %v4242_v53 = vmax.f32 %v4206_v47, 0.0  ;;  %v3975_v36 = vadd.f32 %v3974_v40, %v16560_v57  ;;  %v12854_v52 = vpop.f32.mrb[198].mxu1  ;;  %v4240_v34 = vmax.f32 %v4204_v4, 0.0  ;;  %v4205_v24 = vadd.f32 %v16591_v11, %v4162_v30 }
 0x335   : > { %v4131_v60 = vmax.f32 %v16322_v7, %v3983_v29  ;;  %v3986_v48 = vadd.f32 %v12854_v52, %v3808_v20  ;;  %v3977_v13 = vpop.f32.mrb[199].mxu1  ;;  %v4243_v3 = vmax.f32 %v4207_v0, 0.0  ;;  %v19325_v57 = vmax.f32 %v15847_v59, %v16126_v31  ;;  %v19328_v31 = vld [vmem:[#allocation33_spill] sm:$0xff] }
 0x336   : > { %4292 = vst.msk [vmem:[#allocation2 + $0x18] sm:$0xff] %vm4272_vm1, %v4242_v53  ;;  %v4129_v22 = vmax.f32 %v16325_v55, %v3975_v36  ;;  %v3978_v17 = vadd.f32 %v3977_v13, %v16568_v35  ;;  %4286 = vst.msk [vmem:[#allocation2 + $0x10] sm:$0xff] %vm4272_vm1, %v4240_v34  ;;  %v19326_v7 = vmax.f32 %v15827_v49, %v16130_v16  ;;  %v4241_v37 = vmax.f32 %v4205_v24, 0.0 }
 0x337   : > { %v4167_v6 = vmax.f32 %v19325_v57, %v4131_v60  ;;  %v4132_v14 = vmax.f32 %v16327_v51, %v3986_v48  ;;  %4294 = vrot.lane.b32.xlu1 %v4243_v3, %s14507_s25  ;;  %v19327_v55 = vmax.f32 %v15853_v9, %v16138_v38  ;;  %v19329_v51 = vmax.f32 %v15833_v63, %v19328_v31 }
 0x338   : > { %v4165_v20 = vmax.f32 %v19326_v7, %v4129_v22  ;;  %v4130_v41 = vmax.f32 %v16330_v2, %v3978_v17  ;;  %v3821_v42 = vpop.f32.mrb[172].mxu0 }
 0x339   : > { %v4168_v35 = vmax.f32 %v19327_v55, %v4132_v14  ;;  %v3823_v26 = vpop.f32.mrb[173].mxu0  ;;  %v4210_v59 = vadd.f32 %v16591_v11, %v4167_v6 }
 0x33a   : > { %v4166_v18 = vmax.f32 %v19329_v51, %v4130_v41  ;;  %v12857_v8 = vpop.f32.mrb[200].mxu1  ;;  %v3824_v46 = vpop.f32.mrb[174].mxu0  ;;  %v4208_v49 = vadd.f32 %v16591_v11, %v4165_v20  ;;  %v19337_v20 = vld [vmem:[#allocation9_spill] sm:$0xff]  ;;  %v19341_v51 = vld [vmem:[#allocation10_spill] sm:$0xff] }
 0x33b   : > { %v3999_v16 = vadd.f32 %v12857_v8, %v3821_v42  ;;  %v3990_v44 = vpop.f32.mrb[201].mxu1  ;;  %4288 = vrot.lane.b32.xlu1 %v4241_v37, %s14507_s25  ;;  %v4211_v2 = vadd.f32 %v16591_v11, %v4168_v35  ;;  %v3826_v9 = vpop.f32.mrb[175].mxu0  ;;  %v4246_v38 = vmax.f32 %v4210_v59, 0.0  ;;  %v19338_v41 = vld [vmem:[#allocation37_spill] sm:$0xff]  ;;  %v19340_v35 = vld [vmem:[#allocation58_spill] sm:$0xff] }
 0x33c   : > { %v3991_v58 = vadd.f32 %v3990_v44, %v3813_v23  ;;  %v12858_v10 = vpop.f32.mrb[202].mxu1  ;;  %v4209_v32 = vadd.f32 %v16591_v11, %v4166_v18  ;;  %v4244_v61 = vmax.f32 %v4208_v49, 0.0  ;;  %v19330_v23 = vmax.f32 %v15887_v15, %v16156_v62  ;;  %v19334_v62 = vld [vmem:[#allocation8_spill] sm:$0xff]  ;;  %v19342_v18 = vld [vmem:[#allocation39_spill] sm:$0xff] }
 0x33d   : > { %v4135_v63 = vmax.f32 %v16332_v54, %v3999_v16  ;;  %v4002_v39 = vadd.f32 %v12858_v10, %v3824_v46  ;;  %v3993_v47 = vpop.f32.mrb[203].mxu1  ;;  %v4247_v25 = vmax.f32 %v4211_v2, 0.0  ;;  %4304 = vst.msk [vmem:[#allocation2 + $0x28] sm:$0xff] %vm4272_vm1, %v4246_v38  ;;  %v19331_v54 = vmax.f32 %v15867_v5, %v16160_v27  ;;  %v19344_v44 = vld [vmem:[#allocation56_spill] sm:$0xff] }
 0x33e   : > { %v4133_v28 = vmax.f32 %v16334_v1, %v3991_v58  ;;  %v3994_v21 = vadd.f32 %v3993_v47, %v3816_v33  ;;  %v4245_v30 = vmax.f32 %v4209_v32, 0.0  ;;  %4298 = vst.msk [vmem:[#allocation2 + $0x20] sm:$0xff] %vm4272_vm1, %v4244_v61  ;;  %v19332_v33 = vld [vmem:[#allocation34_spill] sm:$0xff]  ;;  %v19339_v42 = vmax.f32 %v19337_v20, %v19338_v41 }
 0x33f   : > { %v4171_v12 = vmax.f32 %v19330_v23, %v4135_v63  ;;  %v4136_v4 = vmax.f32 %v16336_v19, %v4002_v39  ;;  %4306 = vrot.lane.b32.xlu0 %v4247_v25, %s14507_s25  ;;  %v19333_v0 = vmax.f32 %v15893_v43, %v19332_v33  ;;  %v19335_v19 = vld [vmem:[#allocation35_spill] sm:$0xff]  ;;  %v19346_v39 = vld [vmem:[#allocation36_spill] sm:$0xff] }
 0x340   : > { %v4169_v29 = vmax.f32 %v19331_v54, %v4133_v28  ;;  %v4134_v40 = vmax.f32 %v16338_v50, %v3994_v21  ;;  %4300 = vrot.lane.b32.xlu1 %v4245_v30, %s14507_s25  ;;  %v3829_v1 = vpop.f32.mrb[176].mxu0  ;;  %v19336_v36 = vmax.f32 %v19334_v62, %v19335_v19  ;;  %v19345_v63 = vld [vmem:[#allocation11_spill] sm:$0xff]  ;;  %v19348_v28 = vld [vmem:[#allocation57_spill] sm:$0xff]  ;;  %v19352_v19 = vld [vmem:[#allocation60_spill] sm:$0xff] }
 0x341   : > { %v4172_v56 = vmax.f32 %v19333_v0, %v4136_v4  ;;  %v3831_v53 = vpop.f32.mrb[177].mxu0  ;;  %v4214_v15 = vadd.f32 %v16591_v11, %v4171_v12  ;;  %v19347_v47 = vmax.f32 %v19345_v63, %v19346_v39  ;;  %v19349_v12 = vld [vmem:[#allocation12_spill] sm:$0xff]  ;;  %v19350_v4 = vld [vmem:[#allocation38_spill] sm:$0xff] }
 0x342   : > { %v4170_v52 = vmax.f32 %v19336_v36, %v4134_v40  ;;  %v12861_v34 = vpop.f32.mrb[204].mxu1  ;;  %v3832_v60 = vpop.f32.mrb[178].mxu0  ;;  %v4212_v5 = vadd.f32 %v16591_v11, %v4169_v29  ;;  %v19351_v54 = vmax.f32 %v19349_v12, %v19350_v4  ;;  %v19368_v4 = vld [vmem:[#allocation63_spill] sm:$0xff] }
 0x343   : > { %v4006_v27 = vpop.f32.mrb[205].mxu1  ;;  %v4215_v50 = vadd.f32 %v16591_v11, %v4172_v56  ;;  %v3834_v48 = vpop.f32.mrb[179].mxu0  ;;  %v4250_v13 = vmax.f32 %v4214_v15, 0.0 }
 0x344   : > { %v4007_v3 = vadd.f32 %v4006_v27, %v3829_v1  ;;  %v12862_v24 = vpop.f32.mrb[206].mxu1  ;;  %v4213_v43 = vadd.f32 %v16591_v11, %v4170_v52  ;;  %v4248_v22 = vmax.f32 %v4212_v5, 0.0  ;;  %v19354_v48 = vld [vmem:[#allocation41_spill] sm:$0xff] }
 0x345   : > { %v4009_v17 = vpop.f32.mrb[207].mxu1  ;;  %v4251_v57 = vmax.f32 %v4215_v50, 0.0  ;;  %4316 = vst.msk [vmem:[#allocation2 + $0x38] sm:$0xff] %vm4272_vm1, %v4250_v13  ;;  %v19353_v50 = vld [vmem:[#allocation13_spill] sm:$0xff] }
 0x346   : > { %v4137_v6 = vmax.f32 %v16348_v45, %v4007_v3  ;;  %v4010_v14 = vadd.f32 %v4009_v17, %v3832_v60  ;;  %v4249_v7 = vmax.f32 %v4213_v43, 0.0  ;;  %4310 = vst.msk [vmem:[#allocation2 + $0x30] sm:$0xff] %vm4272_vm1, %v4248_v22  ;;  %v19343_v45 = vmax.f32 %v19341_v51, %v19342_v18  ;;  %v19357_v17 = vld [vmem:[#allocation14_spill] sm:$0xff] }
 0x347   : > { %4318 = vrot.lane.b32.xlu0 %v4251_v57, %s14507_s25  ;;  %v19355_v13 = vmax.f32 %v19353_v50, %v19354_v48  ;;  %v19358_v57 = vld [vmem:[#allocation43_spill] sm:$0xff]  ;;  %v19375_v48 = vld [vmem:[#allocation65_spill] sm:$0xff] }
 0x348   : > { %v4173_v55 = vmax.f32 %v19339_v42, %v4137_v6  ;;  %v4138_v26 = vmax.f32 %v19340_v35, %v4010_v14  ;;  %4312 = vrot.lane.b32.xlu1 %v4249_v7, %s14507_s25  ;;  %v3837_v37 = vpop.f32.mrb[180].mxu0  ;;  %v19359_v6 = vmax.f32 %v19357_v17, %v19358_v57  ;;  %v19378_v57 = vld [vmem:[#allocation76_spill] sm:$0xff] }
 0x349   : > { %v4015_v59 = vadd.f32 %v12861_v34, %v3837_v37  ;;  %v3839_v31 = vpop.f32.mrb[181].mxu0 }
 0x34a   : > { %v4174_v8 = vmax.f32 %v19343_v45, %v4138_v26  ;;  %v3840_v46 = vpop.f32.mrb[182].mxu0  ;;  %v12865_v49 = vpop.f32.mrb[208].mxu1  ;;  %v4216_v16 = vadd.f32 %v16591_v11, %v4173_v55 }
 0x34b   : > { %v4139_v2 = vmax.f32 %v19344_v44, %v4015_v59  ;;  %v4018_v9 = vadd.f32 %v12862_v24, %v3840_v46  ;;  %v3842_v38 = vpop.f32.mrb[183].mxu0  ;;  %v4022_v58 = vpop.f32.mrb[209].mxu1  ;;  %v19356_v24 = vld [vmem:[#allocation62_spill] sm:$0xff]  ;;  %v19360_v59 = vld [vmem:[#allocation59_spill] sm:$0xff] }
 0x34c   : > { %v4217_v10 = vadd.f32 %v16591_v11, %v4174_v8  ;;  %v12866_v32 = vpop.f32.mrb[210].mxu1  ;;  %v4252_v61 = vmax.f32 %v4216_v16, 0.0  ;;  %v19361_v16 = vld [vmem:[#allocation15_spill] sm:$0xff] }
 0x34d   : > { %v4175_v25 = vmax.f32 %v19347_v47, %v4139_v2  ;;  %v4140_v21 = vmax.f32 %v19348_v28, %v4018_v9  ;;  %v4025_v30 = vpop.f32.mrb[211].mxu1  ;;  %v19364_v9 = vld [vmem:[#allocation61_spill] sm:$0xff] }
 0x34e   : > { %v4253_v23 = vmax.f32 %v4217_v10, 0.0  ;;  %4322 = vst.msk [vmem:[#allocation2 + $0x40] sm:$0xff] %vm4272_vm1, %v4252_v61  ;;  %v19365_v10 = vld [vmem:[#allocation16_spill] sm:$0xff] }
 0x34f   : > { %v4176_v29 = vmax.f32 %v19351_v54, %v4140_v21  ;;  %v4218_v40 = vadd.f32 %v16591_v11, %v4175_v25 }
 0x350   : > { %4324 = vrot.lane.b32.xlu1 %v4253_v23, %s14507_s25  ;;  %v3845_v1 = vpop.f32.mrb[184].mxu0 }
 0x351   : > { %v4023_v33 = vadd.f32 %v4022_v58, %v3845_v1  ;;  %v3847_v0 = vpop.f32.mrb[185].mxu0  ;;  %v4219_v56 = vadd.f32 %v16591_v11, %v4176_v29  ;;  %v4254_v53 = vmax.f32 %v4218_v40, 0.0  ;;  %v19369_v29 = vld [vmem:[#allocation77_spill] sm:$0xff] }
 0x352   : > { %v3848_v15 = vpop.f32.mrb[186].mxu0  ;;  %v16739_v62 = vpop.f32.mrb[212].mxu1 }
 0x353   : > { %v4141_v36 = vmax.f32 %v19352_v19, %v4023_v33  ;;  %v4026_v52 = vadd.f32 %v4025_v30, %v3848_v15  ;;  %v4255_v34 = vmax.f32 %v4219_v56, 0.0  ;;  %v3850_v60 = vpop.f32.mrb[187].mxu0  ;;  %v4038_v5 = vpop.f32.mrb[213].mxu1  ;;  %4328 = vst.msk [vmem:[#allocation2 + $0x48] sm:$0xff] %vm4272_vm1, %v4254_v53  ;;  %v19370_v53 = vld [vmem:[#allocation75_spill] sm:$0xff] }
 0x354   : > { %v16743_v27 = vpop.f32.mrb[214].mxu1 }
 0x355   : > { %v4177_v3 = vmax.f32 %v19355_v13, %v4141_v36  ;;  %v4142_v43 = vmax.f32 %v19356_v24, %v4026_v52  ;;  %4330 = vrot.lane.b32.xlu0 %v4255_v34, %s14507_s25  ;;  %v4041_v22 = vpop.f32.mrb[215].mxu1  ;;  %v19371_v36 = vld [vmem:[#allocation17_spill] sm:$0xff] }
 0x356   : > { %v19372_v52 = vld [vmem:[#allocation45_spill] sm:$0xff] }
 0x357   : > { %v4178_v14 = vmax.f32 %v19359_v6, %v4142_v43  ;;  %v4220_v7 = vadd.f32 %v16591_v11, %v4177_v3  ;;  %v19373_v34 = vmax.f32 %v19371_v36, %v19372_v52  ;;  %v19376_v3 = vld [vmem:[#allocation78_spill] sm:$0xff] }
 0x358   : > { %v3853_v20 = vpop.f32.mrb[188].mxu0  ;;  %v19400_v52 = vld [vmem:[#allocation66_spill] sm:$0xff] }
 0x359   : > { %v4031_v41 = vadd.f32 %v12865_v49, %v3853_v20  ;;  %v3855_v42 = vpop.f32.mrb[189].mxu0  ;;  %v4221_v55 = vadd.f32 %v16591_v11, %v4178_v14  ;;  %v4256_v35 = vmax.f32 %v4220_v7, 0.0  ;;  %v19362_v49 = vld [vmem:[#allocation40_spill] sm:$0xff]  ;;  %v19379_v14 = vld [vmem:[#allocation27_spill] sm:$0xff] }
 0x35a   : > { %v3856_v26 = vpop.f32.mrb[190].mxu0  ;;  %v16755_v37 = vpop.f32.mrb[216].mxu1  ;;  %v19363_v44 = vmax.f32 %v19361_v16, %v19362_v49  ;;  %v19380_v7 = vld [vmem:[#allocation52_spill] sm:$0xff]  ;;  %v19382_v42 = vld [vmem:[#allocation18_spill] sm:$0xff] }
 0x35b   : > { %v4143_v31 = vmax.f32 %v19360_v59, %v4031_v41  ;;  %v4034_v51 = vadd.f32 %v12866_v32, %v3856_v26  ;;  %v4257_v18 = vmax.f32 %v4221_v55, 0.0  ;;  %v16758_v45 = vpop.f32.mrb[217].mxu1  ;;  %v3858_v8 = vpop.f32.mrb[191].mxu0  ;;  %4334 = vst.msk [vmem:[#allocation2 + $0x50] sm:$0xff] %vm4272_vm1, %v4256_v35  ;;  %v19366_v32 = vld [vmem:[#allocation42_spill] sm:$0xff]  ;;  %v19381_v20 = vmax.f32 %v19379_v14, %v19380_v7  ;;  %v19383_v55 = vld [vmem:[#allocation47_spill] sm:$0xff] }
 0x35c   : > { %v16761_v46 = vpop.f32.mrb[218].mxu1  ;;  %v19367_v61 = vmax.f32 %v19365_v10, %v19366_v32  ;;  %v19384_v35 = vmax.f32 %v19382_v42, %v19383_v55  ;;  %v19385_v59 = vld [vmem:[#allocation74_spill] sm:$0xff]  ;;  %v19387_v8 = vld [vmem:[#allocation53_spill] sm:$0xff] }
 0x35d   : > { %v4179_v2 = vmax.f32 %v19363_v44, %v4143_v31  ;;  %v4144_v38 = vmax.f32 %v19364_v9, %v4034_v51  ;;  %4336 = vrot.lane.b32.xlu1 %v4257_v18, %s14507_s25  ;;  %v16768_v58 = vpop.f32.mrb[219].mxu1  ;;  %v19386_v18 = vld [vmem:[#allocation25_spill] sm:$0xff]  ;;  %v19389_v44 = vld [vmem:[#allocation72_spill] sm:$0xff]  ;;  %v19391_v10 = vld [vmem:[#allocation54_spill] sm:$0xff] }
 0x35e   : > { %v19388_v16 = vmax.f32 %v19386_v18, %v19387_v8  ;;  %v19406_v42 = vld [vmem:[#allocation49_spill] sm:$0xff] }
 0x35f   : > { %v4180_v63 = vmax.f32 %v19367_v61, %v4144_v38  ;;  %v4222_v39 = vadd.f32 %v16591_v11, %v4179_v2  ;;  %v19390_v38 = vld [vmem:[#allocation28_spill] sm:$0xff] }
 0x360   : > { %v3861_v47 = vpop.f32.mrb[192].mxu0  ;;  %v19392_v32 = vmax.f32 %v19390_v38, %v19391_v10  ;;  %v19412_v38 = vld [vmem:[#allocation69_spill] sm:$0xff] }
 0x361   : > { %v4039_v25 = vadd.f32 %v4038_v5, %v3861_v47  ;;  %v3863_v28 = vpop.f32.mrb[193].mxu0  ;;  %v4223_v21 = vadd.f32 %v16591_v11, %v4180_v63  ;;  %v4258_v30 = vmax.f32 %v4222_v39, 0.0  ;;  %v19374_v5 = vld [vmem:[#allocation73_spill] sm:$0xff] }
 0x362   : > { %v12877_v23 = vpop.f32.mrb[220].mxu1  ;;  %v3864_v12 = vpop.f32.mrb[194].mxu0  ;;  %v19393_v28 = vld [vmem:[#allocation26_spill] sm:$0xff] }
 0x363   : > { %v4145_v54 = vmax.f32 %v19368_v4, %v4039_v25  ;;  %v4079_v40 = vadd.f32 %v12877_v23, %v19369_v29  ;;  %v4042_v1 = vadd.f32 %v4041_v22, %v3864_v12  ;;  %v4070_v33 = vpop.f32.mrb[221].mxu1  ;;  %v4259_v0 = vmax.f32 %v4223_v21, 0.0  ;;  %v3866_v56 = vpop.f32.mrb[195].mxu0  ;;  %4340 = vst.msk [vmem:[#allocation2 + $0x58] sm:$0xff] %vm4272_vm1, %v4258_v30  ;;  %v19377_v22 = vld [vmem:[#allocation71_spill] sm:$0xff]  ;;  %v19396_v29 = vld [vmem:[#allocation64_spill] sm:$0xff] }
 0x364   : > { %v4071_v15 = vadd.f32 %v4070_v33, %v19370_v53  ;;  %v12878_v19 = vpop.f32.mrb[222].mxu1  ;;  %v19394_v21 = vld [vmem:[#allocation55_spill] sm:$0xff] }
 0x365   : > { %v4181_v60 = vmax.f32 %v19373_v34, %v4145_v54  ;;  %v4155_v50 = vmax.f32 %v19374_v5, %v4079_v40  ;;  %v4146_v13 = vmax.f32 %v19375_v48, %v4042_v1  ;;  %v4082_v24 = vadd.f32 %v12878_v19, %v19376_v3  ;;  %v4073_v43 = vpop.f32.mrb[223].mxu1  ;;  %4342 = vrot.lane.b32.xlu0 %v4259_v0, %s14507_s25  ;;  %v19397_v53 = vld [vmem:[#allocation19_spill] sm:$0xff] }
 0x366   : > { %v4153_v17 = vmax.f32 %v19377_v22, %v4071_v15  ;;  %v4074_v6 = vadd.f32 %v4073_v43, %v19378_v57  ;;  %v19395_v30 = vmax.f32 %v19393_v28, %v19394_v21  ;;  %v19398_v15 = vld [vmem:[#allocation44_spill] sm:$0xff]  ;;  %v19404_v57 = vld [vmem:[#allocation67_spill] sm:$0xff] }
 0x367   : > { %v4191_v41 = vmax.f32 %v19381_v20, %v4155_v50  ;;  %v4182_v26 = vmax.f32 %v19384_v35, %v4146_v13  ;;  %v4156_v31 = vmax.f32 %v19385_v59, %v4082_v24  ;;  %v4224_v51 = vadd.f32 %v16591_v11, %v4181_v60  ;;  %v19401_v60 = vld [vmem:[#allocation20_spill] sm:$0xff] }
 0x368   : > { %v4189_v49 = vmax.f32 %v19388_v16, %v4153_v17  ;;  %v4154_v2 = vmax.f32 %v19389_v44, %v4074_v6  ;;  %v3869_v9 = vpop.f32.mrb[196].mxu0  ;;  %v19399_v19 = vmax.f32 %v19397_v53, %v19398_v15  ;;  %v19414_v28 = vld [vmem:[#allocation48_spill] sm:$0xff] }
 0x369   : > { %v4192_v61 = vmax.f32 %v19392_v32, %v4156_v31  ;;  %v4047_v63 = vadd.f32 %v16739_v62, %v3869_v9  ;;  %v3871_v39 = vpop.f32.mrb[197].mxu0  ;;  %v4225_v47 = vadd.f32 %v16591_v11, %v4182_v26  ;;  %v4260_v25 = vmax.f32 %v4224_v51, 0.0  ;;  %v19408_v26 = vld [vmem:[#allocation68_spill] sm:$0xff]  ;;  %v19410_v31 = vld [vmem:[#allocation51_spill] sm:$0xff] }
 0x36a   : > { %v4190_v23 = vmax.f32 %v19395_v30, %v4154_v2  ;;  %v3872_v12 = vpop.f32.mrb[198].mxu0  ;;  %v4232_v4 = vadd.f32 %v16591_v11, %v4189_v49  ;;  %v4234_v54 = vadd.f32 %v16591_v11, %v4191_v41  ;;  %v19405_v41 = vld [vmem:[#allocation21_spill] sm:$0xff] }
 0x36b   : > { %v4147_v40 = vmax.f32 %v19396_v29, %v4047_v63  ;;  %v4050_v1 = vadd.f32 %v16743_v27, %v3872_v12  ;;  %v4261_v33 = vmax.f32 %v4225_v47, 0.0  ;;  %v3874_v0 = vpop.f32.mrb[199].mxu0  ;;  %4346 = vst.msk [vmem:[#allocation2 + $0x60] sm:$0xff] %vm4272_vm1, %v4260_v25  ;;  %v19402_v27 = vld [vmem:[#allocation46_spill] sm:$0xff]  ;;  %v19407_v55 = vmax.f32 %v19405_v41, %v19406_v42  ;;  %v19413_v25 = vld [vmem:[#allocation23_spill] sm:$0xff] }
 0x36c   : > { %v4268_v62 = vmax.f32 %v4232_v4, 0.0  ;;  %v4270_v56 = vmax.f32 %v4234_v54, 0.0  ;;  %v19403_v5 = vmax.f32 %v19401_v60, %v19402_v27  ;;  %v4233_v39 = vadd.f32 %v16591_v11, %v4190_v23  ;;  %v19417_v4 = vld [vmem:[#allocation24_spill] sm:$0xff]  ;;  %v19418_v54 = vld [vmem:[#allocation50_spill] sm:$0xff] }
 0x36d   : > { %v4183_v36 = vmax.f32 %v19399_v19, %v4147_v40  ;;  %v4148_v34 = vmax.f32 %v19400_v52, %v4050_v1  ;;  %4348 = vrot.lane.b32.xlu1 %v4261_v33, %s14507_s25  ;;  %v19415_v21 = vmax.f32 %v19413_v25, %v19414_v28  ;;  %v19419_v29 = vmax.f32 %v19417_v4, %v19418_v54  ;;  %v13482_v42 = vld [vmem:[%s19164_s3 + $0x2f8] ss:$20 sps:$4 sm:$0xff]   ;;  %v13512_v28 = vld [vmem:[%s19164_s3 + $0x3c0] ss:$20 sps:$4 sm:$0xff]   ;;  %v13518_v4 = vld [vmem:[%s19164_s3 + $0x3e8] ss:$20 sps:$4 sm:$0xff]  }
 0x36e   : > { %4370 = vst.msk [vmem:[#allocation2 + $0x80] sm:$0xff] %vm4272_vm1, %v4268_v62  ;;  %4376 = vst.msk [vmem:[#allocation2 + $0x88] sm:$0xff] %vm4272_vm1, %v4270_v56  ;;  %v4269_v1 = vmax.f32 %v4233_v39, 0.0  ;;  %v4235_v62 = vadd.f32 %v16591_v11, %v4192_v61  ;;  %v13464_v61 = vld [vmem:[%s19164_s3 + $0x280] ss:$20 sps:$4 sm:$0xff]  }
 0x36f   : > { %v4184_v50 = vmax.f32 %v19403_v5, %v4148_v34  ;;  %v4226_v48 = vadd.f32 %v16591_v11, %v4183_v36  ;;  %v13467_v34 = vld [vmem:[%s19164_s3 + $0x288] ss:$20 sps:$4 sm:$0xff]   ;;  %v13472_v5 = vld [vmem:[%s19164_s3 + $0x2ac] ss:$20 sps:$4 sm:$0xff]   ;;  %v13521_v54 = vld [vmem:[%s19164_s3 + $0x3f0] ss:$20 sps:$4 sm:$0xff]  }
 0x370   : > { %v3877_v13 = vpop.f32.mrb[200].mxu0  ;;  %v4271_v56 = vmax.f32 %v4235_v62, 0.0  ;;  %v13509_v39 = vld [vmem:[%s19164_s3 + $0x3a0] ss:$20 sps:$4 sm:$0xff]   ;;  %v13530_v62 = vld [vmem:[%s19164_s3 + $0x438] ss:$20 sps:$4 sm:$0xff]  }
 0x371   : > { %v4055_v3 = vadd.f32 %v16758_v45, %v3877_v13  ;;  %v3879_v24 = vpop.f32.mrb[201].mxu0  ;;  %v4227_v43 = vadd.f32 %v16591_v11, %v4184_v50  ;;  %v4262_v22 = vmax.f32 %v4226_v48, 0.0  ;;  %v19409_v45 = vld [vmem:[#allocation22_spill] sm:$0xff]  ;;  %v13475_v50 = vld [vmem:[%s19164_s3 + $0x2b4] ss:$20 sps:$4 sm:$0xff]  }
 0x372   : > { %v3880_v17 = vpop.f32.mrb[202].mxu0  ;;  %v19411_v51 = vmax.f32 %v19409_v45, %v19410_v31  ;;  %v13470_v13 = vld [vmem:[%s19164_s3 + $0x2a8] ss:$20 sps:$4 sm:$0xff]   ;;  %v13488_v45 = vld [vmem:[%s19164_s3 + $0x320] ss:$20 sps:$4 sm:$0xff]  }
 0x373   : > { %v4149_v6 = vmax.f32 %v19404_v57, %v4055_v3  ;;  %v4058_v14 = vadd.f32 %v16768_v58, %v3880_v17  ;;  %v4263_v7 = vmax.f32 %v4227_v43, 0.0  ;;  %v3882_v20 = vpop.f32.mrb[203].mxu0  ;;  %4352 = vst.msk [vmem:[#allocation2 + $0x68] sm:$0xff] %vm4272_vm1, %v4262_v22  ;;  %v13473_v3 = vld [vmem:[%s19164_s3 + $0x2b0] ss:$20 sps:$4 sm:$0xff]  }
 0x374   : > { %v13478_v17 = vld [vmem:[%s19164_s3 + $0x2d4] ss:$20 sps:$4 sm:$0xff]   ;;  %v13481_v57 = vld [vmem:[%s19164_s3 + $0x2dc] ss:$20 sps:$4 sm:$0xff]   ;;  %v13487_v20 = vld [vmem:[%s19164_s3 + $0x304] ss:$20 sps:$4 sm:$0xff]  }
 0x375   : > { %v4185_v35 = vmax.f32 %v19407_v55, %v4149_v6  ;;  %v4150_v59 = vmax.f32 %v19408_v26, %v4058_v14  ;;  %4354 = vrot.lane.b32.xlu0 %v4263_v7, %s14507_s25  ;;  %v13476_v6 = vld [vmem:[%s19164_s3 + $0x2d0] ss:$20 sps:$4 sm:$0xff]   ;;  %v13479_v14 = vld [vmem:[%s19164_s3 + $0x2d8] ss:$20 sps:$4 sm:$0xff]   ;;  %v13485_v55 = vld [vmem:[%s19164_s3 + $0x300] ss:$20 sps:$4 sm:$0xff]  }
 0x376   : > { %v13484_v7 = vld [vmem:[%s19164_s3 + $0x2fc] ss:$20 sps:$4 sm:$0xff]   ;;  %v13490_v26 = vld [vmem:[%s19164_s3 + $0x324] ss:$20 sps:$4 sm:$0xff]   ;;  %v13517_v25 = vld [vmem:[%s19164_s3 + $0x3cc] ss:$20 sps:$4 sm:$0xff]  }
 0x377   : > { %v4186_v18 = vmax.f32 %v19411_v51, %v4150_v59  ;;  %v4228_v8 = vadd.f32 %v16591_v11, %v4185_v35  ;;  %v13493_v59 = vld [vmem:[%s19164_s3 + $0x32c] ss:$20 sps:$4 sm:$0xff]   ;;  %v13491_v31 = vld [vmem:[%s19164_s3 + $0x328] ss:$20 sps:$4 sm:$0xff]  }
 0x378   : > { %v3885_v16 = vpop.f32.mrb[204].mxu0  ;;  %v13496_v51 = vld [vmem:[%s19164_s3 + $0x34c] ss:$20 sps:$4 sm:$0xff]  }
 0x379   : > { %v4063_v58 = vadd.f32 %v16755_v37, %v3885_v16  ;;  %v3887_v49 = vpop.f32.mrb[205].mxu0  ;;  %v4229_v44 = vadd.f32 %v16591_v11, %v4186_v18  ;;  %v4264_v2 = vmax.f32 %v4228_v8, 0.0  ;;  %v19416_v37 = vld [vmem:[#allocation70_spill] sm:$0xff]  ;;  %v13499_v18 = vld [vmem:[%s19164_s3 + $0x354] ss:$20 sps:$4 sm:$0xff]  }
 0x37a   : > { %v3888_v9 = vpop.f32.mrb[206].mxu0  ;;  %v13494_v8 = vld [vmem:[%s19164_s3 + $0x348] ss:$20 sps:$4 sm:$0xff]   ;;  %v13497_v16 = vld [vmem:[%s19164_s3 + $0x350] ss:$20 sps:$4 sm:$0xff]  }
 0x37b   : > { %v4151_v10 = vmax.f32 %v19412_v38, %v4063_v58  ;;  %v4066_v32 = vadd.f32 %v16761_v46, %v3888_v9  ;;  %v4265_v63 = vmax.f32 %v4229_v44, 0.0  ;;  %4358 = vst.msk [vmem:[#allocation2 + $0x70] sm:$0xff] %vm4272_vm1, %v4264_v2  ;;  %v3890_v47 = vpop.f32.mrb[207].mxu0  ;;  %v13502_v49 = vld [vmem:[%s19164_s3 + $0x374] ss:$20 sps:$4 sm:$0xff]  }
 0x37c   : > { %v13505_v44 = vld [vmem:[%s19164_s3 + $0x37c] ss:$20 sps:$4 sm:$0xff]   ;;  %v13503_v9 = vld [vmem:[%s19164_s3 + $0x378] ss:$20 sps:$4 sm:$0xff]  }
 0x37d   : > { %v4187_v30 = vmax.f32 %v19415_v21, %v4151_v10  ;;  %v4152_v12 = vmax.f32 %v19416_v37, %v4066_v32  ;;  %4360 = vrot.lane.b32.xlu1 %v4265_v63, %s14507_s25  ;;  %v13500_v2 = vld [vmem:[%s19164_s3 + $0x370] ss:$20 sps:$4 sm:$0xff]   ;;  %v13506_v63 = vld [vmem:[%s19164_s3 + $0x398] ss:$20 sps:$4 sm:$0xff]   ;;  %v13515_v21 = vld [vmem:[%s19164_s3 + $0x3c8] ss:$20 sps:$4 sm:$0xff]  }
 0x37e   : > { %v13508_v38 = vld [vmem:[%s19164_s3 + $0x39c] ss:$20 sps:$4 sm:$0xff]   ;;  %v13511_v10 = vld [vmem:[%s19164_s3 + $0x3a4] ss:$20 sps:$4 sm:$0xff]   ;;  %v13523_v37 = vld [vmem:[%s19164_s3 + $0x3f4] ss:$20 sps:$4 sm:$0xff]  }
 0x37f   : > { %v4188_v40 = vmax.f32 %v19419_v29, %v4152_v12  ;;  %v4230_v46 = vadd.f32 %v16591_v11, %v4187_v30  ;;  %v13514_v47 = vld [vmem:[%s19164_s3 + $0x3c4] ss:$20 sps:$4 sm:$0xff]   ;;  %v13520_v30 = vld [vmem:[%s19164_s3 + $0x3ec] ss:$20 sps:$4 sm:$0xff]   ;;  %v13526_v29 = vld [vmem:[%s19164_s3 + $0x414] ss:$20 sps:$4 sm:$0xff]  }
 0x381   : > { %4372 = vrot.lane.b32.xlu1 %v4269_v1, %s14507_s25  ;;  %v4231_v23 = vadd.f32 %v16591_v11, %v4188_v40  ;;  %v4266_v33 = vmax.f32 %v4230_v46, 0.0  ;;  %v13529_v40 = vld [vmem:[%s19164_s3 + $0x41c] ss:$20 sps:$4 sm:$0xff]   ;;  %v13527_v46 = vld [vmem:[%s19164_s3 + $0x418] ss:$20 sps:$4 sm:$0xff]  }
 0x382   : > { %v13524_v1 = vld [vmem:[%s19164_s3 + $0x410] ss:$20 sps:$4 sm:$0xff]  }
 0x383   : > { %v4267_v0 = vmax.f32 %v4231_v23, 0.0  ;;  %4364 = vst.msk [vmem:[#allocation2 + $0x78] sm:$0xff] %vm4272_vm1, %v4266_v33  ;;  %v13532_v23 = vld [vmem:[%s19164_s3 + $0x43c] ss:$20 sps:$4 sm:$0xff]   ;;  %v13535_v33 = vld [vmem:[%s19164_s3 + $0x444] ss:$20 sps:$4 sm:$0xff]  }
 0x385   : > { %4366 = vrot.lane.b32.xlu0 %v4267_v0, %s14507_s25 }
 0x389   : > { %4378 = vrot.lane.b32.xlu0 %v4271_v56, %s14507_s25  ;;  %v13533_v56 = vld [vmem:[%s19164_s3 + $0x440] ss:$20 sps:$4 sm:$0xff]   ;;  %s12378_s25 = sshll.u32 %s10789_s13, 7  ;;  %s14442_s13 = scalar_lea.vmem %s19119_s28, 128 }
 0x38a   : > { %s19117_s16 = scalar_lea.hbm %s19170_s9, %s12378_s25  ;;  %p14443_p13 = scmp.ne.s32.totalorder %s19119_s28, %s14442_s13 }
 0x38b   : > { %p14450_p3 = scmp.lt.s32.totalorder %s14448_s26, %s14442_s13 }
 0x38c   : > { %p14444_p0 = pnand %p14443_p13, %p14599_p6 }
 0x38d   : > { %p14451_p4 = por %p14450_p3, %p14449_p2 }
 0x38e   : > { %p14445_p1 = pneg %p14444_p0 }
 0x390   : > { %p14452_p5 = pnand %p14451_p4, %p14445_p1 }
 0x3a1   : > { %v4283_v53 = vpop.permute.xlu0 %4282 }
 0x3a2   : > { %4285 = vst.msk [vmem:[#allocation2 + $0x8] sm:$0xff] %vm4278_vm2, %v4283_v53  ;;  %v13538_v53 = vld [vmem:[%s19164_s3 + $0x464] ss:$20 sps:$4 sm:$0xff]  }
 0x3a5   : > { %v4276_v15 = vpop.permute.xlu0 %4275 }
 0x3a6   : > { %4279 = vst.msk [vmem:[#allocation2] sm:$0xff] %vm4278_vm2, %v4276_v15  ;;  %v13541_v15 = vld [vmem:[%s19164_s3 + $0x46c] ss:$20 sps:$4 sm:$0xff]  }
 0x3a9   : > { %v4295_v19 = vpop.permute.xlu1 %4294  ;;  %v4383_v36 = vld [vmem:[#allocation2 + $0x8] sm:$0xff] }
 0x3aa   : > { %4297 = vst.msk [vmem:[#allocation2 + $0x18] sm:$0xff] %vm4278_vm2, %v4295_v19  ;;  %v16862_v52 = vpack.c.bf16 %v4383_v36, %v4383_v36  ;;  %v13536_v19 = vld [vmem:[%s19164_s3 + $0x460] ss:$20 sps:$4 sm:$0xff]   ;;  %v13539_v36 = vld [vmem:[%s19164_s3 + $0x468] ss:$20 sps:$4 sm:$0xff]  }
 0x3ac   : > { %9085 = vmatprep.mubr.bf16.mxu1 %v16862_v52  ;;  %9454 = vmatprep.mubr.bf16.mxu0 %v16862_v52 }
 0x3ad   : > { %v4289_v11 = vpop.permute.xlu1 %4288  ;;  %v4382_v60 = vld [vmem:[#allocation2] sm:$0xff] }
 0x3ae   : > { %4291 = vst.msk [vmem:[#allocation2 + $0x10] sm:$0xff] %vm4278_vm2, %v4289_v11  ;;  %v16873_v27 = vpack.c.bf16 %v4382_v60, %v4382_v60  ;;  %v13544_v11 = vld [vmem:[%s19164_s3 + $0x48c] ss:$20 sps:$4 sm:$0xff]   ;;  %v13542_v60 = vld [vmem:[%s19164_s3 + $0x488] ss:$20 sps:$4 sm:$0xff]  }
 0x3b0   : > { %9086 = vmatmul.mubr.bf16.vlgmr.msra.gmra.mrb[224].mxu1 %v16873_v27  ;;  %9455 = vmatmul.mubr.bf16.vlgmr.msra.gmra.mrb[208].mxu0 %v16873_v27 }
 0x3b1   : > { %9095 = vmatpush1.bf16.msra.mxu1 %v13464_v61  ;;  %9464 = vmatpush1.bf16.msra.mxu0 %v13467_v34  ;;  %v4307_v48 = vpop.permute.xlu0 %4306  ;;  %v4385_v24 = vld [vmem:[#allocation2 + $0x18] sm:$0xff]  ;;  %v13547_v61 = vld [vmem:[%s19164_s3 + $0x494] ss:$20 sps:$4 sm:$0xff]  }
 0x3b2   : > { %4309 = vst.msk [vmem:[#allocation2 + $0x28] sm:$0xff] %vm4278_vm2, %v4307_v48  ;;  %v4301_v43 = vpop.permute.xlu1 %4300  ;;  %9096 = vmatprep.subr.bf16.mxu1 %v13472_v5  ;;  %9465 = vmatprep.subr.bf16.mxu0 %v13475_v50  ;;  %v16890_v22 = vpack.c.bf16 %v4385_v24, %v4385_v24  ;;  %v13545_v5 = vld [vmem:[%s19164_s3 + $0x490] ss:$20 sps:$4 sm:$0xff]   ;;  %v13550_v50 = vld [vmem:[%s19164_s3 + $0x4b4] ss:$20 sps:$4 sm:$0xff]  }
 0x3b3   : > { %4303 = vst.msk [vmem:[#allocation2 + $0x20] sm:$0xff] %vm4278_vm2, %v4301_v43  ;;  %v13553_v48 = vld [vmem:[%s19164_s3 + $0x4bc] ss:$20 sps:$4 sm:$0xff]   ;;  %v13559_v43 = vld [vmem:[%s19164_s3 + $0x4e4] ss:$20 sps:$4 sm:$0xff]  }
 0x3b4   : > { %9126 = vmatprep.mubr.bf16.mxu1 %v16890_v22  ;;  %9495 = vmatprep.mubr.bf16.mxu0 %v16890_v22  ;;  %v13556_v24 = vld [vmem:[%s19164_s3 + $0x4dc] ss:$20 sps:$4 sm:$0xff]  }
 0x3b5   : > { %9097 = vmatpush1.bf16.msra.mxu1 %v13470_v13  ;;  %9466 = vmatpush1.bf16.msra.mxu0 %v13473_v3  ;;  %v13548_v13 = vld [vmem:[%s19164_s3 + $0x4b0] ss:$20 sps:$4 sm:$0xff]   ;;  %v13551_v3 = vld [vmem:[%s19164_s3 + $0x4b8] ss:$20 sps:$4 sm:$0xff]  }
 0x3b6   : > { %9098 = vmatprep.subr.bf16.mxu1 %v13478_v17  ;;  %9467 = vmatprep.subr.bf16.mxu0 %v13481_v57  ;;  %v13554_v57 = vld [vmem:[%s19164_s3 + $0x4d8] ss:$20 sps:$4 sm:$0xff]  }
 0x3b9   : > { %9099 = vmatpush1.bf16.msra.mxu1 %v13476_v6  ;;  %9468 = vmatpush1.bf16.msra.mxu0 %v13479_v14  ;;  %v4319_v41 = vpop.permute.xlu0 %4318  ;;  %v13557_v6 = vld [vmem:[%s19164_s3 + $0x4e0] ss:$20 sps:$4 sm:$0xff]   ;;  %v13562_v14 = vld [vmem:[%s19164_s3 + $0x504] ss:$20 sps:$4 sm:$0xff]  }
 0x3ba   : > { %4321 = vst.msk [vmem:[#allocation2 + $0x38] sm:$0xff] %vm4278_vm2, %v4319_v41  ;;  %v4313_v35 = vpop.permute.xlu1 %4312  ;;  %9100 = vmatprep.subr.bf16.mxu1 %v13484_v7  ;;  %9469 = vmatprep.subr.bf16.mxu0 %v13487_v20  ;;  %v13565_v7 = vld [vmem:[%s19164_s3 + $0x50c] ss:$20 sps:$4 sm:$0xff]   ;;  %v4384_v20 = vld [vmem:[#allocation2 + $0x10] sm:$0xff] }
 0x3bb   : > { %4315 = vst.msk [vmem:[#allocation2 + $0x30] sm:$0xff] %vm4278_vm2, %v4313_v35  ;;  %v4387_v41 = vld [vmem:[#allocation2 + $0x28] sm:$0xff] }
 0x3bc   : > { %v13563_v35 = vld [vmem:[%s19164_s3 + $0x508] ss:$20 sps:$4 sm:$0xff]  }
 0x3bd   : > { %9101 = vmatpush1.bf16.msra.mxu1 %v13482_v42  ;;  %9470 = vmatpush1.bf16.msra.mxu0 %v13485_v55  ;;  %v13560_v42 = vld [vmem:[%s19164_s3 + $0x500] ss:$20 sps:$4 sm:$0xff]   ;;  %v17080_v55 = vpack.c.bf16 %v4384_v20, %v4384_v20  ;;  %v13641_v20 = vld [vmem:[%s19164_s3 + $0x710] ss:$20 sps:$4 sm:$0xff]  }
 0x3be   : > { %9102 = vmatprep.subr.bf16.mxu1 %v13490_v26  ;;  %9471 = vmatprep.subr.bf16.mxu0 %v13493_v59  ;;  %v17085_v59 = vpack.c.bf16 %v4387_v41, %v4387_v41  ;;  %v13646_v41 = vld [vmem:[%s19164_s3 + $0x734] ss:$20 sps:$4 sm:$0xff]  }
 0x3c1   : > { %9103 = vmatpush1.bf16.msra.mxu1 %v13488_v45  ;;  %9472 = vmatpush1.bf16.msra.mxu0 %v13491_v31  ;;  %v13568_v45 = vld [vmem:[%s19164_s3 + $0x52c] ss:$20 sps:$4 sm:$0xff]   ;;  %v13571_v31 = vld [vmem:[%s19164_s3 + $0x534] ss:$20 sps:$4 sm:$0xff]  }
 0x3c2   : > { %v4325_v58 = vpop.permute.xlu1 %4324  ;;  %9104 = vmatprep.subr.bf16.mxu1 %v13496_v51  ;;  %9473 = vmatprep.subr.bf16.mxu0 %v13499_v18  ;;  %v13566_v51 = vld [vmem:[%s19164_s3 + $0x528] ss:$20 sps:$4 sm:$0xff]   ;;  %v13569_v18 = vld [vmem:[%s19164_s3 + $0x530] ss:$20 sps:$4 sm:$0xff]  }
 0x3c3   : > { %4327 = vst.msk [vmem:[#allocation2 + $0x40] sm:$0xff] %vm4278_vm2, %v4325_v58  ;;  %v13577_v58 = vld [vmem:[%s19164_s3 + $0x55c] ss:$20 sps:$4 sm:$0xff]  }
 0x3c5   : > { %9105 = vmatpush1.bf16.msra.mxu1 %v13494_v8  ;;  %9474 = vmatpush1.bf16.msra.mxu0 %v13497_v16  ;;  %v13574_v8 = vld [vmem:[%s19164_s3 + $0x554] ss:$20 sps:$4 sm:$0xff]  }
 0x3c6   : > { %9106 = vmatprep.subr.bf16.mxu1 %v13502_v49  ;;  %9475 = vmatprep.subr.bf16.mxu0 %v13505_v44  ;;  %v13572_v49 = vld [vmem:[%s19164_s3 + $0x550] ss:$20 sps:$4 sm:$0xff]   ;;  %v13575_v44 = vld [vmem:[%s19164_s3 + $0x558] ss:$20 sps:$4 sm:$0xff]  }
 0x3c7   : > { %v4331_v32 = vpop.permute.xlu0 %4330 }
 0x3c8   : > { %4333 = vst.msk [vmem:[#allocation2 + $0x48] sm:$0xff] %vm4278_vm2, %v4331_v32  ;;  %v13581_v32 = vld [vmem:[%s19164_s3 + $0x580] ss:$20 sps:$4 sm:$0xff]  }
 0x3c9   : > { %9107 = vmatpush1.bf16.msra.mxu1 %v13500_v2  ;;  %9476 = vmatpush1.bf16.msra.mxu0 %v13503_v9  ;;  %v13580_v2 = vld [vmem:[%s19164_s3 + $0x57c] ss:$20 sps:$4 sm:$0xff]  }
 0x3ca   : > { %9108 = vmatprep.subr.bf16.mxu1 %v13508_v38  ;;  %9477 = vmatprep.subr.bf16.mxu0 %v13511_v10  ;;  %v13583_v38 = vld [vmem:[%s19164_s3 + $0x584] ss:$20 sps:$4 sm:$0xff]  }
 0x3cb   : > { %v13578_v10 = vld [vmem:[%s19164_s3 + $0x578] ss:$20 sps:$4 sm:$0xff]  }
 0x3cd   : > { %9109 = vmatpush1.bf16.msra.mxu1 %v13506_v63  ;;  %9478 = vmatpush1.bf16.msra.mxu0 %v13509_v39  ;;  %v13586_v63 = vld [vmem:[%s19164_s3 + $0x5a4] ss:$20 sps:$4 sm:$0xff]  }
 0x3ce   : > { %9110 = vmatprep.subr.bf16.mxu1 %v13514_v47  ;;  %9479 = vmatprep.subr.bf16.mxu0 %v13517_v25  ;;  %v13589_v47 = vld [vmem:[%s19164_s3 + $0x5ac] ss:$20 sps:$4 sm:$0xff]  }
 0x3cf   : > { %v4337_v12 = vpop.permute.xlu1 %4336  ;;  %v13584_v25 = vld [vmem:[%s19164_s3 + $0x5a0] ss:$20 sps:$4 sm:$0xff]  }
 0x3d0   : > { %4339 = vst.msk [vmem:[#allocation2 + $0x50] sm:$0xff] %vm4278_vm2, %v4337_v12  ;;  %v13593_v12 = vld [vmem:[%s19164_s3 + $0x5d0] ss:$20 sps:$4 sm:$0xff]  }
 0x3d1   : > { %9111 = vmatpush1.bf16.msra.mxu1 %v13512_v28  ;;  %9480 = vmatpush1.bf16.msra.mxu0 %v13515_v21  ;;  %v13587_v28 = vld [vmem:[%s19164_s3 + $0x5a8] ss:$20 sps:$4 sm:$0xff]   ;;  %v13592_v21 = vld [vmem:[%s19164_s3 + $0x5cc] ss:$20 sps:$4 sm:$0xff]  }
 0x3d2   : > { %9112 = vmatprep.subr.bf16.mxu1 %v13520_v30  ;;  %9481 = vmatprep.subr.bf16.mxu0 %v13523_v37  ;;  %v13595_v30 = vld [vmem:[%s19164_s3 + $0x5d4] ss:$20 sps:$4 sm:$0xff]  }
 0x3d3   : > { %v13590_v37 = vld [vmem:[%s19164_s3 + $0x5c8] ss:$20 sps:$4 sm:$0xff]  }
 0x3d5   : > { %9113 = vmatpush1.bf16.msra.mxu1 %v13518_v4  ;;  %9482 = vmatpush1.bf16.msra.mxu0 %v13521_v54  ;;  %v13598_v4 = vld [vmem:[%s19164_s3 + $0x5f4] ss:$20 sps:$4 sm:$0xff]   ;;  %v13601_v54 = vld [vmem:[%s19164_s3 + $0x5fc] ss:$20 sps:$4 sm:$0xff]  }
 0x3d6   : > { %9114 = vmatprep.subr.bf16.mxu1 %v13526_v29  ;;  %9483 = vmatprep.subr.bf16.mxu0 %v13529_v40  ;;  %v13596_v29 = vld [vmem:[%s19164_s3 + $0x5f0] ss:$20 sps:$4 sm:$0xff]   ;;  %v13599_v40 = vld [vmem:[%s19164_s3 + $0x5f8] ss:$20 sps:$4 sm:$0xff]  }
 0x3d7   : > { %v4343_v0 = vpop.permute.xlu0 %4342 }
 0x3d8   : > { %4345 = vst.msk [vmem:[#allocation2 + $0x58] sm:$0xff] %vm4278_vm2, %v4343_v0  ;;  %v13610_v0 = vld [vmem:[%s19164_s3 + $0x644] ss:$20 sps:$4 sm:$0xff]  }
 0x3d9   : > { %9115 = vmatpush1.bf16.msra.mxu1 %v13524_v1  ;;  %9484 = vmatpush1.bf16.msra.mxu0 %v13527_v46  ;;  %v13604_v1 = vld [vmem:[%s19164_s3 + $0x61c] ss:$20 sps:$4 sm:$0xff]   ;;  %v13607_v46 = vld [vmem:[%s19164_s3 + $0x624] ss:$20 sps:$4 sm:$0xff]  }
 0x3da   : > { %9116 = vmatprep.subr.bf16.mxu1 %v13532_v23  ;;  %9485 = vmatprep.subr.bf16.mxu0 %v13535_v33  ;;  %v13602_v23 = vld [vmem:[%s19164_s3 + $0x618] ss:$20 sps:$4 sm:$0xff]   ;;  %v13605_v33 = vld [vmem:[%s19164_s3 + $0x620] ss:$20 sps:$4 sm:$0xff]  }
 0x3dd   : > { %9117 = vmatpush1.bf16.msra.mxu1 %v13530_v62  ;;  %9486 = vmatpush1.bf16.msra.mxu0 %v13533_v56  ;;  %v13613_v62 = vld [vmem:[%s19164_s3 + $0x64c] ss:$20 sps:$4 sm:$0xff]  }
 0x3de   : > { %9118 = vmatprep.subr.bf16.mxu1 %v13538_v53  ;;  %9487 = vmatprep.subr.bf16.mxu0 %v13541_v15  ;;  %v13608_v56 = vld [vmem:[%s19164_s3 + $0x640] ss:$20 sps:$4 sm:$0xff]   ;;  %v13611_v53 = vld [vmem:[%s19164_s3 + $0x648] ss:$20 sps:$4 sm:$0xff]  }
 0x3df   : > { %v4349_v34 = vpop.permute.xlu1 %4348  ;;  %v13616_v15 = vld [vmem:[%s19164_s3 + $0x66c] ss:$20 sps:$4 sm:$0xff]  }
 0x3e0   : > { %4351 = vst.msk [vmem:[#allocation2 + $0x60] sm:$0xff] %vm4278_vm2, %v4349_v34  ;;  %v13625_v34 = vld [vmem:[%s19164_s3 + $0x69c] ss:$20 sps:$4 sm:$0xff]  }
 0x3e1   : > { %9119 = vmatpush1.bf16.msra.mxu1 %v13536_v19  ;;  %9488 = vmatpush1.bf16.msra.mxu0 %v13539_v36  ;;  %v13619_v19 = vld [vmem:[%s19164_s3 + $0x674] ss:$20 sps:$4 sm:$0xff]  }
 0x3e2   : > { %9120 = vmatprep.subr.bf16.mxu1 %v13544_v11  ;;  %9489 = vmatprep.subr.bf16.mxu0 %v13547_v61  ;;  %v13614_v36 = vld [vmem:[%s19164_s3 + $0x668] ss:$20 sps:$4 sm:$0xff]   ;;  %v13617_v11 = vld [vmem:[%s19164_s3 + $0x670] ss:$20 sps:$4 sm:$0xff]  }
 0x3e3   : > { %v13622_v61 = vld [vmem:[%s19164_s3 + $0x694] ss:$20 sps:$4 sm:$0xff]  }
 0x3e5   : > { %9121 = vmatpush1.bf16.msra.mxu1 %v13542_v60  ;;  %9490 = vmatpush1.bf16.msra.mxu0 %v13545_v5  ;;  %v13620_v60 = vld [vmem:[%s19164_s3 + $0x690] ss:$20 sps:$4 sm:$0xff]   ;;  %v13623_v5 = vld [vmem:[%s19164_s3 + $0x698] ss:$20 sps:$4 sm:$0xff]  }
 0x3e6   : > { %9122 = vmatprep.subr.bf16.mxu1 %v13550_v50  ;;  %9491 = vmatprep.subr.bf16.mxu0 %v13553_v48  ;;  %v13628_v50 = vld [vmem:[%s19164_s3 + $0x6bc] ss:$20 sps:$4 sm:$0xff]   ;;  %v13631_v48 = vld [vmem:[%s19164_s3 + $0x6c4] ss:$20 sps:$4 sm:$0xff]  }
 0x3e7   : > { %v4355_v17 = vpop.permute.xlu0 %4354 }
 0x3e8   : > { %4357 = vst.msk [vmem:[#allocation2 + $0x68] sm:$0xff] %vm4278_vm2, %v4355_v17  ;;  %v13632_v17 = vld [vmem:[%s19164_s3 + $0x6e0] ss:$20 sps:$4 sm:$0xff]  }
 0x3e9   : > { %9123 = vmatpush1.bf16.msra.mxu1 %v13548_v13  ;;  %9492 = vmatpush1.bf16.msra.mxu0 %v13551_v3  ;;  %v13626_v13 = vld [vmem:[%s19164_s3 + $0x6b8] ss:$20 sps:$4 sm:$0xff]   ;;  %v13629_v3 = vld [vmem:[%s19164_s3 + $0x6c0] ss:$20 sps:$4 sm:$0xff]  }
 0x3ea   : > { %9124 = vmatprep.subr.bf16.mxu1 %v13556_v24  ;;  %9493 = vmatprep.subr.bf16.mxu0 %v13559_v43  ;;  %v13634_v24 = vld [vmem:[%s19164_s3 + $0x6e4] ss:$20 sps:$4 sm:$0xff]   ;;  %v13637_v43 = vld [vmem:[%s19164_s3 + $0x6ec] ss:$20 sps:$4 sm:$0xff]  }
 0x3ed   : > { %9125 = vmatpush1.bf16.msra.mxu1 %v13554_v57  ;;  %9494 = vmatpush1.bf16.msra.mxu0 %v13557_v6  ;;  %v13635_v57 = vld [vmem:[%s19164_s3 + $0x6e8] ss:$20 sps:$4 sm:$0xff]   ;;  %v13640_v6 = vld [vmem:[%s19164_s3 + $0x70c] ss:$20 sps:$4 sm:$0xff]  }
 0x3ee   : > { %9135 = vmatprep.subr.bf16.mxu1 %v13562_v14  ;;  %9504 = vmatprep.subr.bf16.mxu0 %v13565_v7  ;;  %v13643_v14 = vld [vmem:[%s19164_s3 + $0x714] ss:$20 sps:$4 sm:$0xff]  }
 0x3ef   : > { %v4361_v26 = vpop.permute.xlu1 %4360  ;;  %v13638_v7 = vld [vmem:[%s19164_s3 + $0x708] ss:$20 sps:$4 sm:$0xff]  }
 0x3f0   : > { %9127 = vmatmul.mubr.bf16.vlgmr.msra.gmra.mrb[224].mxu1 %v17080_v55  ;;  %9496 = vmatmul.mubr.bf16.vlgmr.msra.gmra.mrb[208].mxu0 %v17080_v55  ;;  %4363 = vst.msk [vmem:[#allocation2 + $0x70] sm:$0xff] %vm4278_vm2, %v4361_v26  ;;  %v13647_v26 = vld [vmem:[%s19164_s3 + $0x738] ss:$20 sps:$4 sm:$0xff]  }
 0x3f1   : > { %9136 = vmatpush1.bf16.msra.mxu1 %v13560_v42  ;;  %9167 = vmatprep.mubr.bf16.mxu1 %v17085_v59  ;;  %v13649_v42 = vld [vmem:[%s19164_s3 + $0x73c] ss:$20 sps:$4 sm:$0xff]  }
 0x3f2   : > { %9505 = vmatpush1.bf16.msra.mxu0 %v13563_v35  ;;  %9536 = vmatprep.mubr.bf16.mxu0 %v17085_v59  ;;  %v13644_v35 = vld [vmem:[%s19164_s3 + $0x730] ss:$20 sps:$4 sm:$0xff]  }
 0x3f3   : > { %9137 = vmatprep.subr.bf16.mxu1 %v13568_v45  ;;  %9506 = vmatprep.subr.bf16.mxu0 %v13571_v31  ;;  %v4373_v16 = vpop.permute.xlu1 %4372  ;;  %v13652_v45 = vld [vmem:[%s19164_s3 + $0x75c] ss:$20 sps:$4 sm:$0xff]   ;;  %v13655_v31 = vld [vmem:[%s19164_s3 + $0x764] ss:$20 sps:$4 sm:$0xff]  }
 0x3f4   : > { %4375 = vst.msk [vmem:[#allocation2 + $0x80] sm:$0xff] %vm4278_vm2, %v4373_v16  ;;  %v4386_v16 = vld [vmem:[#allocation2 + $0x20] sm:$0xff] }
 0x3f5   : > { %9138 = vmatpush1.bf16.msra.mxu1 %v13566_v51  ;;  %v13650_v51 = vld [vmem:[%s19164_s3 + $0x758] ss:$20 sps:$4 sm:$0xff]  }
 0x3f6   : > { %9507 = vmatpush1.bf16.msra.mxu0 %v13569_v18  ;;  %9139 = vmatprep.subr.bf16.mxu1 %v13574_v8  ;;  %v13653_v18 = vld [vmem:[%s19164_s3 + $0x760] ss:$20 sps:$4 sm:$0xff]   ;;  %v13658_v8 = vld [vmem:[%s19164_s3 + $0x784] ss:$20 sps:$4 sm:$0xff]  }
 0x3f7   : > { %9508 = vmatprep.subr.bf16.mxu0 %v13577_v58  ;;  %v4367_v9 = vpop.permute.xlu0 %4366  ;;  %v13661_v58 = vld [vmem:[%s19164_s3 + $0x78c] ss:$20 sps:$4 sm:$0xff]  }
 0x3f8   : > { %4369 = vst.msk [vmem:[#allocation2 + $0x78] sm:$0xff] %vm4278_vm2, %v4367_v9  ;;  %v13659_v9 = vld [vmem:[%s19164_s3 + $0x788] ss:$20 sps:$4 sm:$0xff]  }
 0x3f9   : > { %9140 = vmatpush1.bf16.msra.mxu1 %v13572_v49  ;;  %v13656_v49 = vld [vmem:[%s19164_s3 + $0x780] ss:$20 sps:$4 sm:$0xff]  }
 0x3fa   : > { %9509 = vmatpush1.bf16.msra.mxu0 %v13575_v44  ;;  %9141 = vmatprep.subr.bf16.mxu1 %v13580_v2  ;;  %v4389_v44 = vld [vmem:[#allocation2 + $0x38] sm:$0xff]  ;;  %v17284_v2 = vpack.c.bf16 %v4386_v16, %v4386_v16  ;;  %v13742_v16 = vld [vmem:[%s19164_s3 + $0x9b4] ss:$20 sps:$4 sm:$0xff]  }
 0x3fb   : > { %9510 = vmatprep.subr.bf16.mxu0 %v13583_v38  ;;  %v4379_v39 = vpop.permute.xlu0 %4378  ;;  %v13664_v38 = vld [vmem:[%s19164_s3 + $0x7ac] ss:$20 sps:$4 sm:$0xff]  }
 0x3fc   : > { %4381 = vst.msk [vmem:[#allocation2 + $0x88] sm:$0xff] %vm4278_vm2, %v4379_v39  ;;  %v13665_v39 = vld [vmem:[%s19164_s3 + $0x7b0] ss:$20 sps:$4 sm:$0xff]  }
 0x3fd   : > { %9142 = vmatpush1.bf16.msra.mxu1 %v13578_v10  ;;  %v17293_v10 = vpack.c.bf16 %v4389_v44, %v4389_v44  ;;  %v13743_v44 = vld [vmem:[%s19164_s3 + $0x9b8] ss:$20 sps:$4 sm:$0xff]  }
 0x3fe   : > { %9511 = vmatpush1.bf16.msra.mxu0 %v13581_v32  ;;  %9143 = vmatprep.subr.bf16.mxu1 %v13586_v63  ;;  %v13667_v32 = vld [vmem:[%s19164_s3 + $0x7b4] ss:$20 sps:$4 sm:$0xff]  }
 0x3ff   : > { %9512 = vmatprep.subr.bf16.mxu0 %v13589_v47  ;;  %v13662_v63 = vld [vmem:[%s19164_s3 + $0x7a8] ss:$20 sps:$4 sm:$0xff]  }
 0x400   : > { %v13670_v47 = vld [vmem:[%s19164_s3 + $0x7d4] ss:$20 sps:$4 sm:$0xff]  }
 0x401   : > { %9144 = vmatpush1.bf16.msra.mxu1 %v13584_v25  ;;  %v13673_v25 = vld [vmem:[%s19164_s3 + $0x7dc] ss:$20 sps:$4 sm:$0xff]  }
 0x402   : > { %9513 = vmatpush1.bf16.msra.mxu0 %v13587_v28  ;;  %9145 = vmatprep.subr.bf16.mxu1 %v13592_v21  ;;  %v13668_v28 = vld [vmem:[%s19164_s3 + $0x7d0] ss:$20 sps:$4 sm:$0xff]   ;;  %v13671_v21 = vld [vmem:[%s19164_s3 + $0x7d8] ss:$20 sps:$4 sm:$0xff]  }
 0x403   : > { %9514 = vmatprep.subr.bf16.mxu0 %v13595_v30  ;;  %v13676_v30 = vld [vmem:[%s19164_s3 + $0x7fc] ss:$20 sps:$4 sm:$0xff]  }
 0x405   : > { %9146 = vmatpush1.bf16.msra.mxu1 %v13590_v37  ;;  %v13679_v37 = vld [vmem:[%s19164_s3 + $0x804] ss:$20 sps:$4 sm:$0xff]  }
 0x406   : > { %9515 = vmatpush1.bf16.msra.mxu0 %v13593_v12  ;;  %9147 = vmatprep.subr.bf16.mxu1 %v13598_v4  ;;  %v13674_v12 = vld [vmem:[%s19164_s3 + $0x7f8] ss:$20 sps:$4 sm:$0xff]   ;;  %v13677_v4 = vld [vmem:[%s19164_s3 + $0x800] ss:$20 sps:$4 sm:$0xff]  }
 0x407   : > { %9516 = vmatprep.subr.bf16.mxu0 %v13601_v54  ;;  %v13682_v54 = vld [vmem:[%s19164_s3 + $0x824] ss:$20 sps:$4 sm:$0xff]  }
 0x409   : > { %9148 = vmatpush1.bf16.msra.mxu1 %v13596_v29  ;;  %v13685_v29 = vld [vmem:[%s19164_s3 + $0x82c] ss:$20 sps:$4 sm:$0xff]  }
 0x40a   : > { %9517 = vmatpush1.bf16.msra.mxu0 %v13599_v40  ;;  %9149 = vmatprep.subr.bf16.mxu1 %v13604_v1  ;;  %v13680_v40 = vld [vmem:[%s19164_s3 + $0x820] ss:$20 sps:$4 sm:$0xff]   ;;  %v13683_v1 = vld [vmem:[%s19164_s3 + $0x828] ss:$20 sps:$4 sm:$0xff]  }
 0x40b   : > { %9518 = vmatprep.subr.bf16.mxu0 %v13607_v46  ;;  %v13688_v46 = vld [vmem:[%s19164_s3 + $0x84c] ss:$20 sps:$4 sm:$0xff]  }
 0x40d   : > { %9150 = vmatpush1.bf16.msra.mxu1 %v13602_v23  ;;  %v13691_v23 = vld [vmem:[%s19164_s3 + $0x854] ss:$20 sps:$4 sm:$0xff]  }
 0x40e   : > { %9519 = vmatpush1.bf16.msra.mxu0 %v13605_v33  ;;  %9151 = vmatprep.subr.bf16.mxu1 %v13610_v0  ;;  %v13686_v33 = vld [vmem:[%s19164_s3 + $0x848] ss:$20 sps:$4 sm:$0xff]   ;;  %v13689_v0 = vld [vmem:[%s19164_s3 + $0x850] ss:$20 sps:$4 sm:$0xff]  }
 0x40f   : > { %9520 = vmatprep.subr.bf16.mxu0 %v13613_v62  ;;  %v13694_v62 = vld [vmem:[%s19164_s3 + $0x874] ss:$20 sps:$4 sm:$0xff]  }
 0x411   : > { %9152 = vmatpush1.bf16.msra.mxu1 %v13608_v56  ;;  %v13697_v56 = vld [vmem:[%s19164_s3 + $0x87c] ss:$20 sps:$4 sm:$0xff]  }
 0x412   : > { %9521 = vmatpush1.bf16.msra.mxu0 %v13611_v53  ;;  %9153 = vmatprep.subr.bf16.mxu1 %v13616_v15  ;;  %v13692_v53 = vld [vmem:[%s19164_s3 + $0x870] ss:$20 sps:$4 sm:$0xff]   ;;  %v13695_v15 = vld [vmem:[%s19164_s3 + $0x878] ss:$20 sps:$4 sm:$0xff]  }
 0x413   : > { %9522 = vmatprep.subr.bf16.mxu0 %v13619_v19  ;;  %v13700_v19 = vld [vmem:[%s19164_s3 + $0x89c] ss:$20 sps:$4 sm:$0xff]  }
 0x415   : > { %9154 = vmatpush1.bf16.msra.mxu1 %v13614_v36  ;;  %v13703_v36 = vld [vmem:[%s19164_s3 + $0x8a4] ss:$20 sps:$4 sm:$0xff]  }
 0x416   : > { %9523 = vmatpush1.bf16.msra.mxu0 %v13617_v11  ;;  %9155 = vmatprep.subr.bf16.mxu1 %v13622_v61  ;;  %v13698_v11 = vld [vmem:[%s19164_s3 + $0x898] ss:$20 sps:$4 sm:$0xff]   ;;  %v13701_v61 = vld [vmem:[%s19164_s3 + $0x8a0] ss:$20 sps:$4 sm:$0xff]  }
 0x417   : > { %9524 = vmatprep.subr.bf16.mxu0 %v13625_v34  ;;  %v13706_v34 = vld [vmem:[%s19164_s3 + $0x8c4] ss:$20 sps:$4 sm:$0xff]  }
 0x419   : > { %9156 = vmatpush1.bf16.msra.mxu1 %v13620_v60  ;;  %v13709_v60 = vld [vmem:[%s19164_s3 + $0x8cc] ss:$20 sps:$4 sm:$0xff]  }
 0x41a   : > { %9525 = vmatpush1.bf16.msra.mxu0 %v13623_v5  ;;  %9157 = vmatprep.subr.bf16.mxu1 %v13628_v50  ;;  %v13704_v5 = vld [vmem:[%s19164_s3 + $0x8c0] ss:$20 sps:$4 sm:$0xff]   ;;  %v13707_v50 = vld [vmem:[%s19164_s3 + $0x8c8] ss:$20 sps:$4 sm:$0xff]  }
 0x41b   : > { %9526 = vmatprep.subr.bf16.mxu0 %v13631_v48  ;;  %v13712_v48 = vld [vmem:[%s19164_s3 + $0x8ec] ss:$20 sps:$4 sm:$0xff]  }
 0x41d   : > { %9158 = vmatpush1.bf16.msra.mxu1 %v13626_v13  ;;  %v13715_v13 = vld [vmem:[%s19164_s3 + $0x8f4] ss:$20 sps:$4 sm:$0xff]  }
 0x41e   : > { %9527 = vmatpush1.bf16.msra.mxu0 %v13629_v3  ;;  %9159 = vmatprep.subr.bf16.mxu1 %v13634_v24  ;;  %v13710_v3 = vld [vmem:[%s19164_s3 + $0x8e8] ss:$20 sps:$4 sm:$0xff]   ;;  %v13713_v24 = vld [vmem:[%s19164_s3 + $0x8f0] ss:$20 sps:$4 sm:$0xff]  }
 0x41f   : > { %9528 = vmatprep.subr.bf16.mxu0 %v13637_v43  ;;  %v13718_v43 = vld [vmem:[%s19164_s3 + $0x914] ss:$20 sps:$4 sm:$0xff]  }
 0x421   : > { %9160 = vmatpush1.bf16.msra.mxu1 %v13632_v17  ;;  %v13721_v17 = vld [vmem:[%s19164_s3 + $0x91c] ss:$20 sps:$4 sm:$0xff]  }
 0x422   : > { %9529 = vmatpush1.bf16.msra.mxu0 %v13635_v57  ;;  %9161 = vmatprep.subr.bf16.mxu1 %v13640_v6  ;;  %v13716_v57 = vld [vmem:[%s19164_s3 + $0x910] ss:$20 sps:$4 sm:$0xff]   ;;  %v13719_v6 = vld [vmem:[%s19164_s3 + $0x918] ss:$20 sps:$4 sm:$0xff]  }
 0x423   : > { %9530 = vmatprep.subr.bf16.mxu0 %v13643_v14  ;;  %v13724_v14 = vld [vmem:[%s19164_s3 + $0x93c] ss:$20 sps:$4 sm:$0xff]  }
 0x425   : > { %9162 = vmatpush1.bf16.msra.mxu1 %v13638_v7  ;;  %v13727_v7 = vld [vmem:[%s19164_s3 + $0x944] ss:$20 sps:$4 sm:$0xff]  }
 0x426   : > { %9531 = vmatpush1.bf16.msra.mxu0 %v13641_v20  ;;  %9163 = vmatprep.subr.bf16.mxu1 %v13646_v41  ;;  %v13722_v20 = vld [vmem:[%s19164_s3 + $0x938] ss:$20 sps:$4 sm:$0xff]   ;;  %v13725_v41 = vld [vmem:[%s19164_s3 + $0x940] ss:$20 sps:$4 sm:$0xff]  }
 0x427   : > { %9532 = vmatprep.subr.bf16.mxu0 %v13649_v42  ;;  %v13730_v42 = vld [vmem:[%s19164_s3 + $0x964] ss:$20 sps:$4 sm:$0xff]  }
 0x429   : > { %9164 = vmatpush1.bf16.msra.mxu1 %v13644_v35  ;;  %v13733_v35 = vld [vmem:[%s19164_s3 + $0x96c] ss:$20 sps:$4 sm:$0xff]  }
 0x42a   : > { %9533 = vmatpush1.bf16.msra.mxu0 %v13647_v26  ;;  %9165 = vmatprep.subr.bf16.mxu1 %v13652_v45  ;;  %v13728_v26 = vld [vmem:[%s19164_s3 + $0x960] ss:$20 sps:$4 sm:$0xff]   ;;  %v13731_v45 = vld [vmem:[%s19164_s3 + $0x968] ss:$20 sps:$4 sm:$0xff]  }
 0x42b   : > { %9534 = vmatprep.subr.bf16.mxu0 %v13655_v31  ;;  %v13736_v31 = vld [vmem:[%s19164_s3 + $0x98c] ss:$20 sps:$4 sm:$0xff]  }
 0x42d   : > { %9166 = vmatpush1.bf16.msra.mxu1 %v13650_v51  ;;  %v13739_v51 = vld [vmem:[%s19164_s3 + $0x994] ss:$20 sps:$4 sm:$0xff]  }
 0x42e   : > { %9535 = vmatpush1.bf16.msra.mxu0 %v13653_v18  ;;  %9176 = vmatprep.subr.bf16.mxu1 %v13658_v8  ;;  %v13734_v18 = vld [vmem:[%s19164_s3 + $0x988] ss:$20 sps:$4 sm:$0xff]   ;;  %v13737_v8 = vld [vmem:[%s19164_s3 + $0x990] ss:$20 sps:$4 sm:$0xff]  }
 0x42f   : > { %9545 = vmatprep.subr.bf16.mxu0 %v13661_v58  ;;  %v13745_v58 = vld [vmem:[%s19164_s3 + $0x9bc] ss:$20 sps:$4 sm:$0xff]  }
 0x430   : > { %9168 = vmatmul.mubr.bf16.vlgmr.msra.gmra.mrb[224].mxu1 %v17284_v2 }
 0x431   : > { %9537 = vmatmul.mubr.bf16.vlgmr.msra.gmra.mrb[208].mxu0 %v17284_v2  ;;  %9177 = vmatpush1.bf16.msra.mxu1 %v13656_v49  ;;  %v13740_v49 = vld [vmem:[%s19164_s3 + $0x9b0] ss:$20 sps:$4 sm:$0xff]  }
 0x432   : > { %9208 = vmatprep.mubr.bf16.mxu1 %v17293_v10  ;;  %9546 = vmatpush1.bf16.msra.mxu0 %v13659_v9  ;;  %v13748_v9 = vld [vmem:[%s19164_s3 + $0x9dc] ss:$20 sps:$4 sm:$0xff]  }
 0x433   : > { %9577 = vmatprep.mubr.bf16.mxu0 %v17293_v10  ;;  %9178 = vmatprep.subr.bf16.mxu1 %v13664_v38  ;;  %v13751_v38 = vld [vmem:[%s19164_s3 + $0x9e4] ss:$20 sps:$4 sm:$0xff]  }
 0x434   : > { %9547 = vmatprep.subr.bf16.mxu0 %v13667_v32  ;;  %v13746_v32 = vld [vmem:[%s19164_s3 + $0x9d8] ss:$20 sps:$4 sm:$0xff]  }
 0x435   : > { %9179 = vmatpush1.bf16.msra.mxu1 %v13662_v63  ;;  %v13749_v63 = vld [vmem:[%s19164_s3 + $0x9e0] ss:$20 sps:$4 sm:$0xff]  }
 0x436   : > { %9548 = vmatpush1.bf16.msra.mxu0 %v13665_v39  ;;  %9180 = vmatprep.subr.bf16.mxu1 %v13670_v47  ;;  %v13754_v39 = vld [vmem:[%s19164_s3 + $0xa04] ss:$20 sps:$4 sm:$0xff]   ;;  %v4388_v47 = vld [vmem:[#allocation2 + $0x30] sm:$0xff] }
 0x437   : > { %9549 = vmatprep.subr.bf16.mxu0 %v13673_v25  ;;  %v13757_v25 = vld [vmem:[%s19164_s3 + $0xa0c] ss:$20 sps:$4 sm:$0xff]  }
 0x439   : > { %9181 = vmatpush1.bf16.msra.mxu1 %v13668_v28  ;;  %v13752_v28 = vld [vmem:[%s19164_s3 + $0xa00] ss:$20 sps:$4 sm:$0xff]  }
 0x43a   : > { %9550 = vmatpush1.bf16.msra.mxu0 %v13671_v21  ;;  %9182 = vmatprep.subr.bf16.mxu1 %v13676_v30  ;;  %v4391_v21 = vld [vmem:[#allocation2 + $0x48] sm:$0xff]  ;;  %v17484_v30 = vpack.c.bf16 %v4388_v47, %v4388_v47 }
 0x43b   : > { %9551 = vmatprep.subr.bf16.mxu0 %v13679_v37  ;;  %v13755_v37 = vld [vmem:[%s19164_s3 + $0xa08] ss:$20 sps:$4 sm:$0xff]  }
 0x43c   : > { %v13830_v47 = vld [vmem:[%s19164_s3 + $0xc08] ss:$20 sps:$4 sm:$0xff]  }
 0x43d   : > { %9183 = vmatpush1.bf16.msra.mxu1 %v13674_v12  ;;  %v13760_v12 = vld [vmem:[%s19164_s3 + $0xa2c] ss:$20 sps:$4 sm:$0xff]  }
 0x43e   : > { %9552 = vmatpush1.bf16.msra.mxu0 %v13677_v4  ;;  %9184 = vmatprep.subr.bf16.mxu1 %v13682_v54  ;;  %v17493_v4 = vpack.c.bf16 %v4391_v21, %v4391_v21  ;;  %v13763_v54 = vld [vmem:[%s19164_s3 + $0xa34] ss:$20 sps:$4 sm:$0xff]   ;;  %v13841_v21 = vld [vmem:[%s19164_s3 + $0xc3c] ss:$20 sps:$4 sm:$0xff]  }
 0x43f   : > { %9553 = vmatprep.subr.bf16.mxu0 %v13685_v29  ;;  %v13758_v29 = vld [vmem:[%s19164_s3 + $0xa28] ss:$20 sps:$4 sm:$0xff]  }
 0x441   : > { %9185 = vmatpush1.bf16.msra.mxu1 %v13680_v40  ;;  %v13761_v40 = vld [vmem:[%s19164_s3 + $0xa30] ss:$20 sps:$4 sm:$0xff]  }
 0x442   : > { %9554 = vmatpush1.bf16.msra.mxu0 %v13683_v1  ;;  %9186 = vmatprep.subr.bf16.mxu1 %v13688_v46  ;;  %v13766_v1 = vld [vmem:[%s19164_s3 + $0xa54] ss:$20 sps:$4 sm:$0xff]   ;;  %v13769_v46 = vld [vmem:[%s19164_s3 + $0xa5c] ss:$20 sps:$4 sm:$0xff]  }
 0x443   : > { %9555 = vmatprep.subr.bf16.mxu0 %v13691_v23  ;;  %v13764_v23 = vld [vmem:[%s19164_s3 + $0xa50] ss:$20 sps:$4 sm:$0xff]  }
 0x445   : > { %9187 = vmatpush1.bf16.msra.mxu1 %v13686_v33  ;;  %v13767_v33 = vld [vmem:[%s19164_s3 + $0xa58] ss:$20 sps:$4 sm:$0xff]  }
 0x446   : > { %9556 = vmatpush1.bf16.msra.mxu0 %v13689_v0  ;;  %9188 = vmatprep.subr.bf16.mxu1 %v13694_v62  ;;  %v13772_v0 = vld [vmem:[%s19164_s3 + $0xa7c] ss:$20 sps:$4 sm:$0xff]   ;;  %v13775_v62 = vld [vmem:[%s19164_s3 + $0xa84] ss:$20 sps:$4 sm:$0xff]  }
 0x447   : > { %9557 = vmatprep.subr.bf16.mxu0 %v13697_v56  ;;  %v13770_v56 = vld [vmem:[%s19164_s3 + $0xa78] ss:$20 sps:$4 sm:$0xff]  }
 0x449   : > { %9189 = vmatpush1.bf16.msra.mxu1 %v13692_v53  ;;  %v13773_v53 = vld [vmem:[%s19164_s3 + $0xa80] ss:$20 sps:$4 sm:$0xff]  }
 0x44a   : > { %9558 = vmatpush1.bf16.msra.mxu0 %v13695_v15  ;;  %9190 = vmatprep.subr.bf16.mxu1 %v13700_v19  ;;  %v13778_v15 = vld [vmem:[%s19164_s3 + $0xaa4] ss:$20 sps:$4 sm:$0xff]   ;;  %v13781_v19 = vld [vmem:[%s19164_s3 + $0xaac] ss:$20 sps:$4 sm:$0xff]  }
 0x44b   : > { %9559 = vmatprep.subr.bf16.mxu0 %v13703_v36  ;;  %v13776_v36 = vld [vmem:[%s19164_s3 + $0xaa0] ss:$20 sps:$4 sm:$0xff]  }
 0x44d   : > { %9191 = vmatpush1.bf16.msra.mxu1 %v13698_v11  ;;  %v13779_v11 = vld [vmem:[%s19164_s3 + $0xaa8] ss:$20 sps:$4 sm:$0xff]  }
 0x44e   : > { %9560 = vmatpush1.bf16.msra.mxu0 %v13701_v61  ;;  %9192 = vmatprep.subr.bf16.mxu1 %v13706_v34  ;;  %v13784_v61 = vld [vmem:[%s19164_s3 + $0xacc] ss:$20 sps:$4 sm:$0xff]   ;;  %v13787_v34 = vld [vmem:[%s19164_s3 + $0xad4] ss:$20 sps:$4 sm:$0xff]  }
 0x44f   : > { %9561 = vmatprep.subr.bf16.mxu0 %v13709_v60  ;;  %v13782_v60 = vld [vmem:[%s19164_s3 + $0xac8] ss:$20 sps:$4 sm:$0xff]  }
 0x451   : > { %9193 = vmatpush1.bf16.msra.mxu1 %v13704_v5  ;;  %v13785_v5 = vld [vmem:[%s19164_s3 + $0xad0] ss:$20 sps:$4 sm:$0xff]  }
 0x452   : > { %9562 = vmatpush1.bf16.msra.mxu0 %v13707_v50  ;;  %9194 = vmatprep.subr.bf16.mxu1 %v13712_v48  ;;  %v13790_v50 = vld [vmem:[%s19164_s3 + $0xaf4] ss:$20 sps:$4 sm:$0xff]   ;;  %v13793_v48 = vld [vmem:[%s19164_s3 + $0xafc] ss:$20 sps:$4 sm:$0xff]  }
 0x453   : > { %9563 = vmatprep.subr.bf16.mxu0 %v13715_v13  ;;  %v13788_v13 = vld [vmem:[%s19164_s3 + $0xaf0] ss:$20 sps:$4 sm:$0xff]  }
 0x455   : > { %9195 = vmatpush1.bf16.msra.mxu1 %v13710_v3  ;;  %v13791_v3 = vld [vmem:[%s19164_s3 + $0xaf8] ss:$20 sps:$4 sm:$0xff]  }
 0x456   : > { %9564 = vmatpush1.bf16.msra.mxu0 %v13713_v24  ;;  %9196 = vmatprep.subr.bf16.mxu1 %v13718_v43  ;;  %v13796_v24 = vld [vmem:[%s19164_s3 + $0xb1c] ss:$20 sps:$4 sm:$0xff]   ;;  %v13799_v43 = vld [vmem:[%s19164_s3 + $0xb24] ss:$20 sps:$4 sm:$0xff]  }
 0x457   : > { %9565 = vmatprep.subr.bf16.mxu0 %v13721_v17  ;;  %v13794_v17 = vld [vmem:[%s19164_s3 + $0xb18] ss:$20 sps:$4 sm:$0xff]  }
 0x459   : > { %9197 = vmatpush1.bf16.msra.mxu1 %v13716_v57  ;;  %v13797_v57 = vld [vmem:[%s19164_s3 + $0xb20] ss:$20 sps:$4 sm:$0xff]  }
 0x45a   : > { %9566 = vmatpush1.bf16.msra.mxu0 %v13719_v6  ;;  %9198 = vmatprep.subr.bf16.mxu1 %v13724_v14  ;;  %v13802_v6 = vld [vmem:[%s19164_s3 + $0xb44] ss:$20 sps:$4 sm:$0xff]   ;;  %v13805_v14 = vld [vmem:[%s19164_s3 + $0xb4c] ss:$20 sps:$4 sm:$0xff]  }
 0x45b   : > { %9567 = vmatprep.subr.bf16.mxu0 %v13727_v7  ;;  %v13800_v7 = vld [vmem:[%s19164_s3 + $0xb40] ss:$20 sps:$4 sm:$0xff]  }
 0x45d   : > { %9199 = vmatpush1.bf16.msra.mxu1 %v13722_v20  ;;  %v13803_v20 = vld [vmem:[%s19164_s3 + $0xb48] ss:$20 sps:$4 sm:$0xff]  }
 0x45e   : > { %9568 = vmatpush1.bf16.msra.mxu0 %v13725_v41  ;;  %9200 = vmatprep.subr.bf16.mxu1 %v13730_v42  ;;  %v13808_v41 = vld [vmem:[%s19164_s3 + $0xb6c] ss:$20 sps:$4 sm:$0xff]   ;;  %v13811_v42 = vld [vmem:[%s19164_s3 + $0xb74] ss:$20 sps:$4 sm:$0xff]  }
 0x45f   : > { %9569 = vmatprep.subr.bf16.mxu0 %v13733_v35  ;;  %v13806_v35 = vld [vmem:[%s19164_s3 + $0xb68] ss:$20 sps:$4 sm:$0xff]  }
 0x461   : > { %9201 = vmatpush1.bf16.msra.mxu1 %v13728_v26  ;;  %v13809_v26 = vld [vmem:[%s19164_s3 + $0xb70] ss:$20 sps:$4 sm:$0xff]  }
 0x462   : > { %9570 = vmatpush1.bf16.msra.mxu0 %v13731_v45  ;;  %9202 = vmatprep.subr.bf16.mxu1 %v13736_v31  ;;  %v13814_v45 = vld [vmem:[%s19164_s3 + $0xb94] ss:$20 sps:$4 sm:$0xff]   ;;  %v13817_v31 = vld [vmem:[%s19164_s3 + $0xb9c] ss:$20 sps:$4 sm:$0xff]  }
 0x463   : > { %9571 = vmatprep.subr.bf16.mxu0 %v13739_v51  ;;  %v13812_v51 = vld [vmem:[%s19164_s3 + $0xb90] ss:$20 sps:$4 sm:$0xff]  }
 0x465   : > { %9203 = vmatpush1.bf16.msra.mxu1 %v13734_v18  ;;  %v13815_v18 = vld [vmem:[%s19164_s3 + $0xb98] ss:$20 sps:$4 sm:$0xff]  }
 0x466   : > { %9572 = vmatpush1.bf16.msra.mxu0 %v13737_v8  ;;  %9204 = vmatprep.subr.bf16.mxu1 %v13742_v16  ;;  %v13820_v8 = vld [vmem:[%s19164_s3 + $0xbbc] ss:$20 sps:$4 sm:$0xff]   ;;  %v13823_v16 = vld [vmem:[%s19164_s3 + $0xbc4] ss:$20 sps:$4 sm:$0xff]  }
 0x467   : > { %9573 = vmatprep.subr.bf16.mxu0 %v13745_v58  ;;  %v13818_v58 = vld [vmem:[%s19164_s3 + $0xbb8] ss:$20 sps:$4 sm:$0xff]  }
 0x469   : > { %9205 = vmatpush1.bf16.msra.mxu1 %v13740_v49  ;;  %v13821_v49 = vld [vmem:[%s19164_s3 + $0xbc0] ss:$20 sps:$4 sm:$0xff]  }
 0x46a   : > { %9574 = vmatpush1.bf16.msra.mxu0 %v13743_v44  ;;  %9206 = vmatprep.subr.bf16.mxu1 %v13748_v9  ;;  %v13826_v44 = vld [vmem:[%s19164_s3 + $0xbe4] ss:$20 sps:$4 sm:$0xff]   ;;  %v13829_v9 = vld [vmem:[%s19164_s3 + $0xbec] ss:$20 sps:$4 sm:$0xff]  }
 0x46b   : > { %9575 = vmatprep.subr.bf16.mxu0 %v13751_v38  ;;  %v13824_v38 = vld [vmem:[%s19164_s3 + $0xbe0] ss:$20 sps:$4 sm:$0xff]  }
 0x46d   : > { %9207 = vmatpush1.bf16.msra.mxu1 %v13746_v32  ;;  %v13827_v32 = vld [vmem:[%s19164_s3 + $0xbe8] ss:$20 sps:$4 sm:$0xff]  }
 0x46e   : > { %9576 = vmatpush1.bf16.msra.mxu0 %v13749_v63  ;;  %9217 = vmatprep.subr.bf16.mxu1 %v13754_v39  ;;  %v13832_v63 = vld [vmem:[%s19164_s3 + $0xc0c] ss:$20 sps:$4 sm:$0xff]   ;;  %v13835_v39 = vld [vmem:[%s19164_s3 + $0xc14] ss:$20 sps:$4 sm:$0xff]  }
 0x46f   : > { %9586 = vmatprep.subr.bf16.mxu0 %v13757_v25  ;;  %v13833_v25 = vld [vmem:[%s19164_s3 + $0xc10] ss:$20 sps:$4 sm:$0xff]  }
 0x470   : > { %9209 = vmatmul.mubr.bf16.vlgmr.msra.gmra.mrb[224].mxu1 %v17484_v30 }
 0x471   : > { %9578 = vmatmul.mubr.bf16.vlgmr.msra.gmra.mrb[208].mxu0 %v17484_v30  ;;  %9218 = vmatpush1.bf16.msra.mxu1 %v13752_v28  ;;  %v13838_v28 = vld [vmem:[%s19164_s3 + $0xc34] ss:$20 sps:$4 sm:$0xff]  }
 0x472   : > { %9249 = vmatprep.mubr.bf16.mxu1 %v17493_v4  ;;  %9587 = vmatpush1.bf16.msra.mxu0 %v13755_v37  ;;  %v13836_v37 = vld [vmem:[%s19164_s3 + $0xc30] ss:$20 sps:$4 sm:$0xff]  }
 0x473   : > { %9618 = vmatprep.mubr.bf16.mxu0 %v17493_v4  ;;  %9219 = vmatprep.subr.bf16.mxu1 %v13760_v12  ;;  %v13839_v12 = vld [vmem:[%s19164_s3 + $0xc38] ss:$20 sps:$4 sm:$0xff]  }
 0x474   : > { %9588 = vmatprep.subr.bf16.mxu0 %v13763_v54  ;;  %v13844_v54 = vld [vmem:[%s19164_s3 + $0xc5c] ss:$20 sps:$4 sm:$0xff]  }
 0x475   : > { %9220 = vmatpush1.bf16.msra.mxu1 %v13758_v29  ;;  %v13847_v29 = vld [vmem:[%s19164_s3 + $0xc64] ss:$20 sps:$4 sm:$0xff]  }
 0x476   : > { %9589 = vmatpush1.bf16.msra.mxu0 %v13761_v40  ;;  %9221 = vmatprep.subr.bf16.mxu1 %v13766_v1  ;;  %v13842_v40 = vld [vmem:[%s19164_s3 + $0xc58] ss:$20 sps:$4 sm:$0xff]   ;;  %v13845_v1 = vld [vmem:[%s19164_s3 + $0xc60] ss:$20 sps:$4 sm:$0xff]  }
 0x477   : > { %9590 = vmatprep.subr.bf16.mxu0 %v13769_v46  ;;  %v13850_v46 = vld [vmem:[%s19164_s3 + $0xc84] ss:$20 sps:$4 sm:$0xff]  }
 0x479   : > { %9222 = vmatpush1.bf16.msra.mxu1 %v13764_v23  ;;  %v4390_v23 = vld [vmem:[#allocation2 + $0x40] sm:$0xff] }
 0x47a   : > { %9591 = vmatpush1.bf16.msra.mxu0 %v13767_v33  ;;  %9223 = vmatprep.subr.bf16.mxu1 %v13772_v0  ;;  %v13853_v33 = vld [vmem:[%s19164_s3 + $0xc8c] ss:$20 sps:$4 sm:$0xff]  }
 0x47b   : > { %9592 = vmatprep.subr.bf16.mxu0 %v13775_v62  ;;  %v13848_v0 = vld [vmem:[%s19164_s3 + $0xc80] ss:$20 sps:$4 sm:$0xff]   ;;  %v4393_v62 = vld [vmem:[#allocation2 + $0x58] sm:$0xff] }
 0x47d   : > { %9224 = vmatpush1.bf16.msra.mxu1 %v13770_v56  ;;  %v17684_v56 = vpack.c.bf16 %v4390_v23, %v4390_v23  ;;  %v13928_v23 = vld [vmem:[%s19164_s3 + $0xe8c] ss:$20 sps:$4 sm:$0xff]  }
 0x47e   : > { %9593 = vmatpush1.bf16.msra.mxu0 %v13773_v53  ;;  %9225 = vmatprep.subr.bf16.mxu1 %v13778_v15  ;;  %v13851_v53 = vld [vmem:[%s19164_s3 + $0xc88] ss:$20 sps:$4 sm:$0xff]   ;;  %v13856_v15 = vld [vmem:[%s19164_s3 + $0xcac] ss:$20 sps:$4 sm:$0xff]  }
 0x47f   : > { %9594 = vmatprep.subr.bf16.mxu0 %v13781_v19  ;;  %v17693_v19 = vpack.c.bf16 %v4393_v62, %v4393_v62  ;;  %v13929_v62 = vld [vmem:[%s19164_s3 + $0xe90] ss:$20 sps:$4 sm:$0xff]  }
 0x481   : > { %9226 = vmatpush1.bf16.msra.mxu1 %v13776_v36  ;;  %v13859_v36 = vld [vmem:[%s19164_s3 + $0xcb4] ss:$20 sps:$4 sm:$0xff]  }
 0x482   : > { %9595 = vmatpush1.bf16.msra.mxu0 %v13779_v11  ;;  %9227 = vmatprep.subr.bf16.mxu1 %v13784_v61  ;;  %v13854_v11 = vld [vmem:[%s19164_s3 + $0xca8] ss:$20 sps:$4 sm:$0xff]   ;;  %v13857_v61 = vld [vmem:[%s19164_s3 + $0xcb0] ss:$20 sps:$4 sm:$0xff]  }
 0x483   : > { %9596 = vmatprep.subr.bf16.mxu0 %v13787_v34  ;;  %v13862_v34 = vld [vmem:[%s19164_s3 + $0xcd4] ss:$20 sps:$4 sm:$0xff]  }
 0x485   : > { %9228 = vmatpush1.bf16.msra.mxu1 %v13782_v60  ;;  %v13865_v60 = vld [vmem:[%s19164_s3 + $0xcdc] ss:$20 sps:$4 sm:$0xff]  }
 0x486   : > { %9597 = vmatpush1.bf16.msra.mxu0 %v13785_v5  ;;  %9229 = vmatprep.subr.bf16.mxu1 %v13790_v50  ;;  %v13860_v5 = vld [vmem:[%s19164_s3 + $0xcd0] ss:$20 sps:$4 sm:$0xff]   ;;  %v13863_v50 = vld [vmem:[%s19164_s3 + $0xcd8] ss:$20 sps:$4 sm:$0xff]  }
 0x487   : > { %9598 = vmatprep.subr.bf16.mxu0 %v13793_v48  ;;  %v13868_v48 = vld [vmem:[%s19164_s3 + $0xcfc] ss:$20 sps:$4 sm:$0xff]  }
 0x489   : > { %9230 = vmatpush1.bf16.msra.mxu1 %v13788_v13  ;;  %v13871_v13 = vld [vmem:[%s19164_s3 + $0xd04] ss:$20 sps:$4 sm:$0xff]  }
 0x48a   : > { %9599 = vmatpush1.bf16.msra.mxu0 %v13791_v3  ;;  %9231 = vmatprep.subr.bf16.mxu1 %v13796_v24  ;;  %v13866_v3 = vld [vmem:[%s19164_s3 + $0xcf8] ss:$20 sps:$4 sm:$0xff]   ;;  %v13869_v24 = vld [vmem:[%s19164_s3 + $0xd00] ss:$20 sps:$4 sm:$0xff]  }
 0x48b   : > { %9600 = vmatprep.subr.bf16.mxu0 %v13799_v43  ;;  %v13874_v43 = vld [vmem:[%s19164_s3 + $0xd24] ss:$20 sps:$4 sm:$0xff]  }
 0x48d   : > { %9232 = vmatpush1.bf16.msra.mxu1 %v13794_v17  ;;  %v13877_v17 = vld [vmem:[%s19164_s3 + $0xd2c] ss:$20 sps:$4 sm:$0xff]  }
 0x48e   : > { %9601 = vmatpush1.bf16.msra.mxu0 %v13797_v57  ;;  %9233 = vmatprep.subr.bf16.mxu1 %v13802_v6  ;;  %v13872_v57 = vld [vmem:[%s19164_s3 + $0xd20] ss:$20 sps:$4 sm:$0xff]   ;;  %v13875_v6 = vld [vmem:[%s19164_s3 + $0xd28] ss:$20 sps:$4 sm:$0xff]  }
 0x48f   : > { %9602 = vmatprep.subr.bf16.mxu0 %v13805_v14  ;;  %v13880_v14 = vld [vmem:[%s19164_s3 + $0xd4c] ss:$20 sps:$4 sm:$0xff]  }
 0x491   : > { %9234 = vmatpush1.bf16.msra.mxu1 %v13800_v7  ;;  %v13883_v7 = vld [vmem:[%s19164_s3 + $0xd54] ss:$20 sps:$4 sm:$0xff]  }
 0x492   : > { %9603 = vmatpush1.bf16.msra.mxu0 %v13803_v20  ;;  %9235 = vmatprep.subr.bf16.mxu1 %v13808_v41  ;;  %v13878_v20 = vld [vmem:[%s19164_s3 + $0xd48] ss:$20 sps:$4 sm:$0xff]   ;;  %v13881_v41 = vld [vmem:[%s19164_s3 + $0xd50] ss:$20 sps:$4 sm:$0xff]  }
 0x493   : > { %9604 = vmatprep.subr.bf16.mxu0 %v13811_v42  ;;  %v13886_v42 = vld [vmem:[%s19164_s3 + $0xd74] ss:$20 sps:$4 sm:$0xff]  }
 0x495   : > { %9236 = vmatpush1.bf16.msra.mxu1 %v13806_v35  ;;  %v13889_v35 = vld [vmem:[%s19164_s3 + $0xd7c] ss:$20 sps:$4 sm:$0xff]  }
 0x496   : > { %9605 = vmatpush1.bf16.msra.mxu0 %v13809_v26  ;;  %9237 = vmatprep.subr.bf16.mxu1 %v13814_v45  ;;  %v13884_v26 = vld [vmem:[%s19164_s3 + $0xd70] ss:$20 sps:$4 sm:$0xff]   ;;  %v13887_v45 = vld [vmem:[%s19164_s3 + $0xd78] ss:$20 sps:$4 sm:$0xff]  }
 0x497   : > { %9606 = vmatprep.subr.bf16.mxu0 %v13817_v31  ;;  %v13892_v31 = vld [vmem:[%s19164_s3 + $0xd9c] ss:$20 sps:$4 sm:$0xff]  }
 0x499   : > { %9238 = vmatpush1.bf16.msra.mxu1 %v13812_v51  ;;  %v13895_v51 = vld [vmem:[%s19164_s3 + $0xda4] ss:$20 sps:$4 sm:$0xff]  }
 0x49a   : > { %9607 = vmatpush1.bf16.msra.mxu0 %v13815_v18  ;;  %9239 = vmatprep.subr.bf16.mxu1 %v13820_v8  ;;  %v13890_v18 = vld [vmem:[%s19164_s3 + $0xd98] ss:$20 sps:$4 sm:$0xff]   ;;  %v13893_v8 = vld [vmem:[%s19164_s3 + $0xda0] ss:$20 sps:$4 sm:$0xff]  }
 0x49b   : > { %9608 = vmatprep.subr.bf16.mxu0 %v13823_v16  ;;  %v13898_v16 = vld [vmem:[%s19164_s3 + $0xdc4] ss:$20 sps:$4 sm:$0xff]  }
 0x49d   : > { %9240 = vmatpush1.bf16.msra.mxu1 %v13818_v58  ;;  %v13901_v58 = vld [vmem:[%s19164_s3 + $0xdcc] ss:$20 sps:$4 sm:$0xff]  }
 0x49e   : > { %9609 = vmatpush1.bf16.msra.mxu0 %v13821_v49  ;;  %9241 = vmatprep.subr.bf16.mxu1 %v13826_v44  ;;  %v13896_v49 = vld [vmem:[%s19164_s3 + $0xdc0] ss:$20 sps:$4 sm:$0xff]   ;;  %v13899_v44 = vld [vmem:[%s19164_s3 + $0xdc8] ss:$20 sps:$4 sm:$0xff]  }
 0x49f   : > { %9610 = vmatprep.subr.bf16.mxu0 %v13829_v9  ;;  %v13904_v9 = vld [vmem:[%s19164_s3 + $0xdec] ss:$20 sps:$4 sm:$0xff]  }
 0x4a1   : > { %9242 = vmatpush1.bf16.msra.mxu1 %v13824_v38  ;;  %v13907_v38 = vld [vmem:[%s19164_s3 + $0xdf4] ss:$20 sps:$4 sm:$0xff]  }
 0x4a2   : > { %9611 = vmatpush1.bf16.msra.mxu0 %v13827_v32  ;;  %9243 = vmatprep.subr.bf16.mxu1 %v13832_v63  ;;  %v13902_v32 = vld [vmem:[%s19164_s3 + $0xde8] ss:$20 sps:$4 sm:$0xff]   ;;  %v13905_v63 = vld [vmem:[%s19164_s3 + $0xdf0] ss:$20 sps:$4 sm:$0xff]  }
 0x4a3   : > { %9612 = vmatprep.subr.bf16.mxu0 %v13835_v39  ;;  %v13910_v39 = vld [vmem:[%s19164_s3 + $0xe14] ss:$20 sps:$4 sm:$0xff]  }
 0x4a5   : > { %9244 = vmatpush1.bf16.msra.mxu1 %v13830_v47  ;;  %v13913_v47 = vld [vmem:[%s19164_s3 + $0xe1c] ss:$20 sps:$4 sm:$0xff]  }
 0x4a6   : > { %9613 = vmatpush1.bf16.msra.mxu0 %v13833_v25  ;;  %9245 = vmatprep.subr.bf16.mxu1 %v13838_v28  ;;  %v13908_v25 = vld [vmem:[%s19164_s3 + $0xe10] ss:$20 sps:$4 sm:$0xff]   ;;  %v13911_v28 = vld [vmem:[%s19164_s3 + $0xe18] ss:$20 sps:$4 sm:$0xff]  }
 0x4a7   : > { %9614 = vmatprep.subr.bf16.mxu0 %v13841_v21  ;;  %v13916_v21 = vld [vmem:[%s19164_s3 + $0xe3c] ss:$20 sps:$4 sm:$0xff]  }
 0x4a9   : > { %9246 = vmatpush1.bf16.msra.mxu1 %v13836_v37  ;;  %v13919_v37 = vld [vmem:[%s19164_s3 + $0xe44] ss:$20 sps:$4 sm:$0xff]  }
 0x4aa   : > { %9615 = vmatpush1.bf16.msra.mxu0 %v13839_v12  ;;  %9247 = vmatprep.subr.bf16.mxu1 %v13844_v54  ;;  %v13914_v12 = vld [vmem:[%s19164_s3 + $0xe38] ss:$20 sps:$4 sm:$0xff]   ;;  %v13917_v54 = vld [vmem:[%s19164_s3 + $0xe40] ss:$20 sps:$4 sm:$0xff]  }
 0x4ab   : > { %9616 = vmatprep.subr.bf16.mxu0 %v13847_v29  ;;  %v13922_v29 = vld [vmem:[%s19164_s3 + $0xe64] ss:$20 sps:$4 sm:$0xff]  }
 0x4ad   : > { %9248 = vmatpush1.bf16.msra.mxu1 %v13842_v40  ;;  %v13925_v40 = vld [vmem:[%s19164_s3 + $0xe6c] ss:$20 sps:$4 sm:$0xff]  }
 0x4ae   : > { %9617 = vmatpush1.bf16.msra.mxu0 %v13845_v1  ;;  %9258 = vmatprep.subr.bf16.mxu1 %v13850_v46  ;;  %v13920_v1 = vld [vmem:[%s19164_s3 + $0xe60] ss:$20 sps:$4 sm:$0xff]   ;;  %v13923_v46 = vld [vmem:[%s19164_s3 + $0xe68] ss:$20 sps:$4 sm:$0xff]  }
 0x4af   : > { %9627 = vmatprep.subr.bf16.mxu0 %v13853_v33  ;;  %v13931_v33 = vld [vmem:[%s19164_s3 + $0xe94] ss:$20 sps:$4 sm:$0xff]  }
 0x4b0   : > { %9250 = vmatmul.mubr.bf16.vlgmr.msra.gmra.mrb[224].mxu1 %v17684_v56 }
 0x4b1   : > { %9619 = vmatmul.mubr.bf16.vlgmr.msra.gmra.mrb[208].mxu0 %v17684_v56  ;;  %9259 = vmatpush1.bf16.msra.mxu1 %v13848_v0  ;;  %v13926_v0 = vld [vmem:[%s19164_s3 + $0xe88] ss:$20 sps:$4 sm:$0xff]  }
 0x4b2   : > { %9290 = vmatprep.mubr.bf16.mxu1 %v17693_v19  ;;  %9628 = vmatpush1.bf16.msra.mxu0 %v13851_v53  ;;  %v13934_v53 = vld [vmem:[%s19164_s3 + $0xeb4] ss:$20 sps:$4 sm:$0xff]  }
 0x4b3   : > { %9659 = vmatprep.mubr.bf16.mxu0 %v17693_v19  ;;  %9260 = vmatprep.subr.bf16.mxu1 %v13856_v15  ;;  %v13937_v15 = vld [vmem:[%s19164_s3 + $0xebc] ss:$20 sps:$4 sm:$0xff]  }
 0x4b4   : > { %9629 = vmatprep.subr.bf16.mxu0 %v13859_v36  ;;  %v13932_v36 = vld [vmem:[%s19164_s3 + $0xeb0] ss:$20 sps:$4 sm:$0xff]  }
 0x4b5   : > { %9261 = vmatpush1.bf16.msra.mxu1 %v13854_v11  ;;  %v13935_v11 = vld [vmem:[%s19164_s3 + $0xeb8] ss:$20 sps:$4 sm:$0xff]  }
 0x4b6   : > { %9630 = vmatpush1.bf16.msra.mxu0 %v13857_v61  ;;  %9262 = vmatprep.subr.bf16.mxu1 %v13862_v34  ;;  %v13940_v61 = vld [vmem:[%s19164_s3 + $0xedc] ss:$20 sps:$4 sm:$0xff]   ;;  %v13943_v34 = vld [vmem:[%s19164_s3 + $0xee4] ss:$20 sps:$4 sm:$0xff]  }
 0x4b7   : > { %9631 = vmatprep.subr.bf16.mxu0 %v13865_v60  ;;  %v13938_v60 = vld [vmem:[%s19164_s3 + $0xed8] ss:$20 sps:$4 sm:$0xff]  }
 0x4b9   : > { %9263 = vmatpush1.bf16.msra.mxu1 %v13860_v5  ;;  %v13941_v5 = vld [vmem:[%s19164_s3 + $0xee0] ss:$20 sps:$4 sm:$0xff]  }
 0x4ba   : > { %9632 = vmatpush1.bf16.msra.mxu0 %v13863_v50  ;;  %9264 = vmatprep.subr.bf16.mxu1 %v13868_v48  ;;  %v13946_v50 = vld [vmem:[%s19164_s3 + $0xf04] ss:$20 sps:$4 sm:$0xff]   ;;  %v4392_v48 = vld [vmem:[#allocation2 + $0x50] sm:$0xff] }
 0x4bb   : > { %9633 = vmatprep.subr.bf16.mxu0 %v13871_v13  ;;  %v13949_v13 = vld [vmem:[%s19164_s3 + $0xf0c] ss:$20 sps:$4 sm:$0xff]  }
 0x4bd   : > { %9265 = vmatpush1.bf16.msra.mxu1 %v13866_v3  ;;  %v13944_v3 = vld [vmem:[%s19164_s3 + $0xf00] ss:$20 sps:$4 sm:$0xff]  }
 0x4be   : > { %9634 = vmatpush1.bf16.msra.mxu0 %v13869_v24  ;;  %9266 = vmatprep.subr.bf16.mxu1 %v13874_v43  ;;  %v4395_v24 = vld [vmem:[#allocation2 + $0x68] sm:$0xff]  ;;  %v17884_v43 = vpack.c.bf16 %v4392_v48, %v4392_v48  ;;  %v14016_v48 = vld [vmem:[%s19164_s3 + $0x10e0] ss:$20 sps:$4 sm:$0xff]  }
 0x4bf   : > { %9635 = vmatprep.subr.bf16.mxu0 %v13877_v17  ;;  %v13947_v17 = vld [vmem:[%s19164_s3 + $0xf08] ss:$20 sps:$4 sm:$0xff]  }
 0x4c1   : > { %9267 = vmatpush1.bf16.msra.mxu1 %v13872_v57  ;;  %v13952_v57 = vld [vmem:[%s19164_s3 + $0xf2c] ss:$20 sps:$4 sm:$0xff]  }
 0x4c2   : > { %9636 = vmatpush1.bf16.msra.mxu0 %v13875_v6  ;;  %9268 = vmatprep.subr.bf16.mxu1 %v13880_v14  ;;  %v17893_v6 = vpack.c.bf16 %v4395_v24, %v4395_v24  ;;  %v13955_v14 = vld [vmem:[%s19164_s3 + $0xf34] ss:$20 sps:$4 sm:$0xff]  }
 0x4c3   : > { %9637 = vmatprep.subr.bf16.mxu0 %v13883_v7  ;;  %v13950_v7 = vld [vmem:[%s19164_s3 + $0xf28] ss:$20 sps:$4 sm:$0xff]  }
 0x4c4   : > { %v14027_v24 = vld [vmem:[%s19164_s3 + $0x1114] ss:$20 sps:$4 sm:$0xff]  }
 0x4c5   : > { %9269 = vmatpush1.bf16.msra.mxu1 %v13878_v20  ;;  %v13953_v20 = vld [vmem:[%s19164_s3 + $0xf30] ss:$20 sps:$4 sm:$0xff]  }
 0x4c6   : > { %9638 = vmatpush1.bf16.msra.mxu0 %v13881_v41  ;;  %9270 = vmatprep.subr.bf16.mxu1 %v13886_v42  ;;  %v13958_v41 = vld [vmem:[%s19164_s3 + $0xf54] ss:$20 sps:$4 sm:$0xff]   ;;  %v13961_v42 = vld [vmem:[%s19164_s3 + $0xf5c] ss:$20 sps:$4 sm:$0xff]  }
 0x4c7   : > { %9639 = vmatprep.subr.bf16.mxu0 %v13889_v35  ;;  %v13956_v35 = vld [vmem:[%s19164_s3 + $0xf50] ss:$20 sps:$4 sm:$0xff]  }
 0x4c9   : > { %9271 = vmatpush1.bf16.msra.mxu1 %v13884_v26  ;;  %v13959_v26 = vld [vmem:[%s19164_s3 + $0xf58] ss:$20 sps:$4 sm:$0xff]  }
 0x4ca   : > { %9640 = vmatpush1.bf16.msra.mxu0 %v13887_v45  ;;  %9272 = vmatprep.subr.bf16.mxu1 %v13892_v31  ;;  %v13964_v45 = vld [vmem:[%s19164_s3 + $0xf7c] ss:$20 sps:$4 sm:$0xff]   ;;  %v13967_v31 = vld [vmem:[%s19164_s3 + $0xf84] ss:$20 sps:$4 sm:$0xff]  }
 0x4cb   : > { %9641 = vmatprep.subr.bf16.mxu0 %v13895_v51  ;;  %v13962_v51 = vld [vmem:[%s19164_s3 + $0xf78] ss:$20 sps:$4 sm:$0xff]  }
 0x4cd   : > { %9273 = vmatpush1.bf16.msra.mxu1 %v13890_v18  ;;  %v13965_v18 = vld [vmem:[%s19164_s3 + $0xf80] ss:$20 sps:$4 sm:$0xff]  }
 0x4ce   : > { %9642 = vmatpush1.bf16.msra.mxu0 %v13893_v8  ;;  %9274 = vmatprep.subr.bf16.mxu1 %v13898_v16  ;;  %v13970_v8 = vld [vmem:[%s19164_s3 + $0xfa4] ss:$20 sps:$4 sm:$0xff]   ;;  %v13973_v16 = vld [vmem:[%s19164_s3 + $0xfac] ss:$20 sps:$4 sm:$0xff]  }
 0x4cf   : > { %9643 = vmatprep.subr.bf16.mxu0 %v13901_v58  ;;  %v13968_v58 = vld [vmem:[%s19164_s3 + $0xfa0] ss:$20 sps:$4 sm:$0xff]  }
 0x4d1   : > { %9275 = vmatpush1.bf16.msra.mxu1 %v13896_v49  ;;  %v13971_v49 = vld [vmem:[%s19164_s3 + $0xfa8] ss:$20 sps:$4 sm:$0xff]  }
 0x4d2   : > { %9644 = vmatpush1.bf16.msra.mxu0 %v13899_v44  ;;  %9276 = vmatprep.subr.bf16.mxu1 %v13904_v9  ;;  %v13976_v44 = vld [vmem:[%s19164_s3 + $0xfcc] ss:$20 sps:$4 sm:$0xff]   ;;  %v13979_v9 = vld [vmem:[%s19164_s3 + $0xfd4] ss:$20 sps:$4 sm:$0xff]  }
 0x4d3   : > { %9645 = vmatprep.subr.bf16.mxu0 %v13907_v38  ;;  %v13974_v38 = vld [vmem:[%s19164_s3 + $0xfc8] ss:$20 sps:$4 sm:$0xff]  }
 0x4d5   : > { %9277 = vmatpush1.bf16.msra.mxu1 %v13902_v32  ;;  %v13977_v32 = vld [vmem:[%s19164_s3 + $0xfd0] ss:$20 sps:$4 sm:$0xff]  }
 0x4d6   : > { %9646 = vmatpush1.bf16.msra.mxu0 %v13905_v63  ;;  %9278 = vmatprep.subr.bf16.mxu1 %v13910_v39  ;;  %v13982_v63 = vld [vmem:[%s19164_s3 + $0xff4] ss:$20 sps:$4 sm:$0xff]   ;;  %v13985_v39 = vld [vmem:[%s19164_s3 + $0xffc] ss:$20 sps:$4 sm:$0xff]  }
 0x4d7   : > { %9647 = vmatprep.subr.bf16.mxu0 %v13913_v47  ;;  %v13980_v47 = vld [vmem:[%s19164_s3 + $0xff0] ss:$20 sps:$4 sm:$0xff]  }
 0x4d9   : > { %9279 = vmatpush1.bf16.msra.mxu1 %v13908_v25  ;;  %v13983_v25 = vld [vmem:[%s19164_s3 + $0xff8] ss:$20 sps:$4 sm:$0xff]  }
 0x4da   : > { %9648 = vmatpush1.bf16.msra.mxu0 %v13911_v28  ;;  %9280 = vmatprep.subr.bf16.mxu1 %v13916_v21  ;;  %v13988_v28 = vld [vmem:[%s19164_s3 + $0x101c] ss:$20 sps:$4 sm:$0xff]   ;;  %v13991_v21 = vld [vmem:[%s19164_s3 + $0x1024] ss:$20 sps:$4 sm:$0xff]  }
 0x4db   : > { %9649 = vmatprep.subr.bf16.mxu0 %v13919_v37  ;;  %v13986_v37 = vld [vmem:[%s19164_s3 + $0x1018] ss:$20 sps:$4 sm:$0xff]  }
 0x4dd   : > { %9281 = vmatpush1.bf16.msra.mxu1 %v13914_v12  ;;  %v13989_v12 = vld [vmem:[%s19164_s3 + $0x1020] ss:$20 sps:$4 sm:$0xff]  }
 0x4de   : > { %9650 = vmatpush1.bf16.msra.mxu0 %v13917_v54  ;;  %9282 = vmatprep.subr.bf16.mxu1 %v13922_v29  ;;  %v13994_v54 = vld [vmem:[%s19164_s3 + $0x1044] ss:$20 sps:$4 sm:$0xff]   ;;  %v13997_v29 = vld [vmem:[%s19164_s3 + $0x104c] ss:$20 sps:$4 sm:$0xff]  }
 0x4df   : > { %9651 = vmatprep.subr.bf16.mxu0 %v13925_v40  ;;  %v13992_v40 = vld [vmem:[%s19164_s3 + $0x1040] ss:$20 sps:$4 sm:$0xff]  }
 0x4e1   : > { %9283 = vmatpush1.bf16.msra.mxu1 %v13920_v1  ;;  %v13995_v1 = vld [vmem:[%s19164_s3 + $0x1048] ss:$20 sps:$4 sm:$0xff]  }
 0x4e2   : > { %9652 = vmatpush1.bf16.msra.mxu0 %v13923_v46  ;;  %9284 = vmatprep.subr.bf16.mxu1 %v13928_v23  ;;  %v14000_v46 = vld [vmem:[%s19164_s3 + $0x106c] ss:$20 sps:$4 sm:$0xff]   ;;  %v14003_v23 = vld [vmem:[%s19164_s3 + $0x1074] ss:$20 sps:$4 sm:$0xff]  }
 0x4e3   : > { %9653 = vmatprep.subr.bf16.mxu0 %v13931_v33  ;;  %v13998_v33 = vld [vmem:[%s19164_s3 + $0x1068] ss:$20 sps:$4 sm:$0xff]  }
 0x4e5   : > { %9285 = vmatpush1.bf16.msra.mxu1 %v13926_v0  ;;  %v14001_v0 = vld [vmem:[%s19164_s3 + $0x1070] ss:$20 sps:$4 sm:$0xff]  }
 0x4e6   : > { %9654 = vmatpush1.bf16.msra.mxu0 %v13929_v62  ;;  %9286 = vmatprep.subr.bf16.mxu1 %v13934_v53  ;;  %v14006_v62 = vld [vmem:[%s19164_s3 + $0x1094] ss:$20 sps:$4 sm:$0xff]   ;;  %v14009_v53 = vld [vmem:[%s19164_s3 + $0x109c] ss:$20 sps:$4 sm:$0xff]  }
 0x4e7   : > { %9655 = vmatprep.subr.bf16.mxu0 %v13937_v15  ;;  %v14004_v15 = vld [vmem:[%s19164_s3 + $0x1090] ss:$20 sps:$4 sm:$0xff]  }
 0x4e9   : > { %9287 = vmatpush1.bf16.msra.mxu1 %v13932_v36  ;;  %v14007_v36 = vld [vmem:[%s19164_s3 + $0x1098] ss:$20 sps:$4 sm:$0xff]  }
 0x4ea   : > { %9656 = vmatpush1.bf16.msra.mxu0 %v13935_v11  ;;  %9288 = vmatprep.subr.bf16.mxu1 %v13940_v61  ;;  %v14012_v11 = vld [vmem:[%s19164_s3 + $0x10bc] ss:$20 sps:$4 sm:$0xff]   ;;  %v14015_v61 = vld [vmem:[%s19164_s3 + $0x10c4] ss:$20 sps:$4 sm:$0xff]  }
 0x4eb   : > { %9657 = vmatprep.subr.bf16.mxu0 %v13943_v34  ;;  %v14010_v34 = vld [vmem:[%s19164_s3 + $0x10b8] ss:$20 sps:$4 sm:$0xff]  }
 0x4ed   : > { %9289 = vmatpush1.bf16.msra.mxu1 %v13938_v60  ;;  %v14013_v60 = vld [vmem:[%s19164_s3 + $0x10c0] ss:$20 sps:$4 sm:$0xff]  }
 0x4ee   : > { %9658 = vmatpush1.bf16.msra.mxu0 %v13941_v5  ;;  %9299 = vmatprep.subr.bf16.mxu1 %v13946_v50  ;;  %v14018_v5 = vld [vmem:[%s19164_s3 + $0x10e4] ss:$20 sps:$4 sm:$0xff]   ;;  %v14021_v50 = vld [vmem:[%s19164_s3 + $0x10ec] ss:$20 sps:$4 sm:$0xff]  }
 0x4ef   : > { %9668 = vmatprep.subr.bf16.mxu0 %v13949_v13  ;;  %v14019_v13 = vld [vmem:[%s19164_s3 + $0x10e8] ss:$20 sps:$4 sm:$0xff]  }
 0x4f0   : > { %9291 = vmatmul.mubr.bf16.vlgmr.msra.gmra.mrb[224].mxu1 %v17884_v43 }
 0x4f1   : > { %9660 = vmatmul.mubr.bf16.vlgmr.msra.gmra.mrb[208].mxu0 %v17884_v43  ;;  %9300 = vmatpush1.bf16.msra.mxu1 %v13944_v3  ;;  %v14024_v3 = vld [vmem:[%s19164_s3 + $0x110c] ss:$20 sps:$4 sm:$0xff]  }
 0x4f2   : > { %9331 = vmatprep.mubr.bf16.mxu1 %v17893_v6  ;;  %9669 = vmatpush1.bf16.msra.mxu0 %v13947_v17  ;;  %v14022_v17 = vld [vmem:[%s19164_s3 + $0x1108] ss:$20 sps:$4 sm:$0xff]  }
 0x4f3   : > { %9700 = vmatprep.mubr.bf16.mxu0 %v17893_v6  ;;  %9301 = vmatprep.subr.bf16.mxu1 %v13952_v57  ;;  %v14025_v57 = vld [vmem:[%s19164_s3 + $0x1110] ss:$20 sps:$4 sm:$0xff]  }
 0x4f4   : > { %9670 = vmatprep.subr.bf16.mxu0 %v13955_v14  ;;  %v14030_v14 = vld [vmem:[%s19164_s3 + $0x1134] ss:$20 sps:$4 sm:$0xff]  }
 0x4f5   : > { %9302 = vmatpush1.bf16.msra.mxu1 %v13950_v7  ;;  %v14033_v7 = vld [vmem:[%s19164_s3 + $0x113c] ss:$20 sps:$4 sm:$0xff]  }
 0x4f6   : > { %9671 = vmatpush1.bf16.msra.mxu0 %v13953_v20  ;;  %9303 = vmatprep.subr.bf16.mxu1 %v13958_v41  ;;  %v14028_v20 = vld [vmem:[%s19164_s3 + $0x1130] ss:$20 sps:$4 sm:$0xff]   ;;  %v14031_v41 = vld [vmem:[%s19164_s3 + $0x1138] ss:$20 sps:$4 sm:$0xff]  }
 0x4f7   : > { %9672 = vmatprep.subr.bf16.mxu0 %v13961_v42  ;;  %v14036_v42 = vld [vmem:[%s19164_s3 + $0x115c] ss:$20 sps:$4 sm:$0xff]  }
 0x4f9   : > { %9304 = vmatpush1.bf16.msra.mxu1 %v13956_v35  ;;  %v14039_v35 = vld [vmem:[%s19164_s3 + $0x1164] ss:$20 sps:$4 sm:$0xff]  }
 0x4fa   : > { %9673 = vmatpush1.bf16.msra.mxu0 %v13959_v26  ;;  %9305 = vmatprep.subr.bf16.mxu1 %v13964_v45  ;;  %v14034_v26 = vld [vmem:[%s19164_s3 + $0x1158] ss:$20 sps:$4 sm:$0xff]   ;;  %v14037_v45 = vld [vmem:[%s19164_s3 + $0x1160] ss:$20 sps:$4 sm:$0xff]  }
 0x4fb   : > { %9674 = vmatprep.subr.bf16.mxu0 %v13967_v31  ;;  %v14042_v31 = vld [vmem:[%s19164_s3 + $0x1184] ss:$20 sps:$4 sm:$0xff]  }
 0x4fd   : > { %9306 = vmatpush1.bf16.msra.mxu1 %v13962_v51  ;;  %v4394_v51 = vld [vmem:[#allocation2 + $0x60] sm:$0xff] }
 0x4fe   : > { %9675 = vmatpush1.bf16.msra.mxu0 %v13965_v18  ;;  %9307 = vmatprep.subr.bf16.mxu1 %v13970_v8  ;;  %v14045_v18 = vld [vmem:[%s19164_s3 + $0x118c] ss:$20 sps:$4 sm:$0xff]  }
 0x4ff   : > { %9676 = vmatprep.subr.bf16.mxu0 %v13973_v16  ;;  %v14040_v8 = vld [vmem:[%s19164_s3 + $0x1180] ss:$20 sps:$4 sm:$0xff]   ;;  %v4397_v16 = vld [vmem:[#allocation2 + $0x78] sm:$0xff] }
 0x501   : > { %9308 = vmatpush1.bf16.msra.mxu1 %v13968_v58  ;;  %v18084_v58 = vpack.c.bf16 %v4394_v51, %v4394_v51  ;;  %v14114_v51 = vld [vmem:[%s19164_s3 + $0x1364] ss:$20 sps:$4 sm:$0xff]  }
 0x502   : > { %9677 = vmatpush1.bf16.msra.mxu0 %v13971_v49  ;;  %9309 = vmatprep.subr.bf16.mxu1 %v13976_v44  ;;  %v14043_v49 = vld [vmem:[%s19164_s3 + $0x1188] ss:$20 sps:$4 sm:$0xff]   ;;  %v14048_v44 = vld [vmem:[%s19164_s3 + $0x11ac] ss:$20 sps:$4 sm:$0xff]  }
 0x503   : > { %9678 = vmatprep.subr.bf16.mxu0 %v13979_v9  ;;  %v18093_v9 = vpack.c.bf16 %v4397_v16, %v4397_v16  ;;  %v14115_v16 = vld [vmem:[%s19164_s3 + $0x1368] ss:$20 sps:$4 sm:$0xff]  }
 0x505   : > { %9310 = vmatpush1.bf16.msra.mxu1 %v13974_v38  ;;  %v14051_v38 = vld [vmem:[%s19164_s3 + $0x11b4] ss:$20 sps:$4 sm:$0xff]  }
 0x506   : > { %9679 = vmatpush1.bf16.msra.mxu0 %v13977_v32  ;;  %9311 = vmatprep.subr.bf16.mxu1 %v13982_v63  ;;  %v14046_v32 = vld [vmem:[%s19164_s3 + $0x11a8] ss:$20 sps:$4 sm:$0xff]   ;;  %v14049_v63 = vld [vmem:[%s19164_s3 + $0x11b0] ss:$20 sps:$4 sm:$0xff]  }
 0x507   : > { %9680 = vmatprep.subr.bf16.mxu0 %v13985_v39  ;;  %v14054_v39 = vld [vmem:[%s19164_s3 + $0x11d4] ss:$20 sps:$4 sm:$0xff]  }
 0x509   : > { %9312 = vmatpush1.bf16.msra.mxu1 %v13980_v47  ;;  %v14057_v47 = vld [vmem:[%s19164_s3 + $0x11dc] ss:$20 sps:$4 sm:$0xff]  }
 0x50a   : > { %9681 = vmatpush1.bf16.msra.mxu0 %v13983_v25  ;;  %9313 = vmatprep.subr.bf16.mxu1 %v13988_v28  ;;  %v14052_v25 = vld [vmem:[%s19164_s3 + $0x11d0] ss:$20 sps:$4 sm:$0xff]   ;;  %v14055_v28 = vld [vmem:[%s19164_s3 + $0x11d8] ss:$20 sps:$4 sm:$0xff]  }
 0x50b   : > { %9682 = vmatprep.subr.bf16.mxu0 %v13991_v21  ;;  %v14060_v21 = vld [vmem:[%s19164_s3 + $0x11fc] ss:$20 sps:$4 sm:$0xff]  }
 0x50d   : > { %9314 = vmatpush1.bf16.msra.mxu1 %v13986_v37  ;;  %v14063_v37 = vld [vmem:[%s19164_s3 + $0x1204] ss:$20 sps:$4 sm:$0xff]  }
 0x50e   : > { %9683 = vmatpush1.bf16.msra.mxu0 %v13989_v12  ;;  %9315 = vmatprep.subr.bf16.mxu1 %v13994_v54  ;;  %v14058_v12 = vld [vmem:[%s19164_s3 + $0x11f8] ss:$20 sps:$4 sm:$0xff]   ;;  %v14061_v54 = vld [vmem:[%s19164_s3 + $0x1200] ss:$20 sps:$4 sm:$0xff]  }
 0x50f   : > { %9684 = vmatprep.subr.bf16.mxu0 %v13997_v29  ;;  %v14066_v29 = vld [vmem:[%s19164_s3 + $0x1224] ss:$20 sps:$4 sm:$0xff]  }
 0x511   : > { %9316 = vmatpush1.bf16.msra.mxu1 %v13992_v40  ;;  %v14069_v40 = vld [vmem:[%s19164_s3 + $0x122c] ss:$20 sps:$4 sm:$0xff]  }
 0x512   : > { %9685 = vmatpush1.bf16.msra.mxu0 %v13995_v1  ;;  %9317 = vmatprep.subr.bf16.mxu1 %v14000_v46  ;;  %v14064_v1 = vld [vmem:[%s19164_s3 + $0x1220] ss:$20 sps:$4 sm:$0xff]   ;;  %v14067_v46 = vld [vmem:[%s19164_s3 + $0x1228] ss:$20 sps:$4 sm:$0xff]  }
 0x513   : > { %9686 = vmatprep.subr.bf16.mxu0 %v14003_v23  ;;  %v14072_v23 = vld [vmem:[%s19164_s3 + $0x124c] ss:$20 sps:$4 sm:$0xff]  }
 0x515   : > { %9318 = vmatpush1.bf16.msra.mxu1 %v13998_v33  ;;  %v14075_v33 = vld [vmem:[%s19164_s3 + $0x1254] ss:$20 sps:$4 sm:$0xff]  }
 0x516   : > { %9687 = vmatpush1.bf16.msra.mxu0 %v14001_v0  ;;  %9319 = vmatprep.subr.bf16.mxu1 %v14006_v62  ;;  %v14070_v0 = vld [vmem:[%s19164_s3 + $0x1248] ss:$20 sps:$4 sm:$0xff]   ;;  %v14073_v62 = vld [vmem:[%s19164_s3 + $0x1250] ss:$20 sps:$4 sm:$0xff]  }
 0x517   : > { %9688 = vmatprep.subr.bf16.mxu0 %v14009_v53  ;;  %v14078_v53 = vld [vmem:[%s19164_s3 + $0x1274] ss:$20 sps:$4 sm:$0xff]  }
 0x519   : > { %9320 = vmatpush1.bf16.msra.mxu1 %v14004_v15  ;;  %v14081_v15 = vld [vmem:[%s19164_s3 + $0x127c] ss:$20 sps:$4 sm:$0xff]  }
 0x51a   : > { %9689 = vmatpush1.bf16.msra.mxu0 %v14007_v36  ;;  %9321 = vmatprep.subr.bf16.mxu1 %v14012_v11  ;;  %v14076_v36 = vld [vmem:[%s19164_s3 + $0x1270] ss:$20 sps:$4 sm:$0xff]   ;;  %v14079_v11 = vld [vmem:[%s19164_s3 + $0x1278] ss:$20 sps:$4 sm:$0xff]  }
 0x51b   : > { %9690 = vmatprep.subr.bf16.mxu0 %v14015_v61  ;;  %v14084_v61 = vld [vmem:[%s19164_s3 + $0x129c] ss:$20 sps:$4 sm:$0xff]  }
 0x51d   : > { %9322 = vmatpush1.bf16.msra.mxu1 %v14010_v34  ;;  %v14087_v34 = vld [vmem:[%s19164_s3 + $0x12a4] ss:$20 sps:$4 sm:$0xff]  }
 0x51e   : > { %9691 = vmatpush1.bf16.msra.mxu0 %v14013_v60  ;;  %9323 = vmatprep.subr.bf16.mxu1 %v14018_v5  ;;  %v14082_v60 = vld [vmem:[%s19164_s3 + $0x1298] ss:$20 sps:$4 sm:$0xff]   ;;  %v14085_v5 = vld [vmem:[%s19164_s3 + $0x12a0] ss:$20 sps:$4 sm:$0xff]  }
 0x51f   : > { %9692 = vmatprep.subr.bf16.mxu0 %v14021_v50  ;;  %v14090_v50 = vld [vmem:[%s19164_s3 + $0x12c4] ss:$20 sps:$4 sm:$0xff]  }
 0x521   : > { %9324 = vmatpush1.bf16.msra.mxu1 %v14016_v48  ;;  %v14093_v48 = vld [vmem:[%s19164_s3 + $0x12cc] ss:$20 sps:$4 sm:$0xff]  }
 0x522   : > { %9693 = vmatpush1.bf16.msra.mxu0 %v14019_v13  ;;  %9325 = vmatprep.subr.bf16.mxu1 %v14024_v3  ;;  %v14088_v13 = vld [vmem:[%s19164_s3 + $0x12c0] ss:$20 sps:$4 sm:$0xff]   ;;  %v14091_v3 = vld [vmem:[%s19164_s3 + $0x12c8] ss:$20 sps:$4 sm:$0xff]  }
 0x523   : > { %9694 = vmatprep.subr.bf16.mxu0 %v14027_v24  ;;  %v14096_v24 = vld [vmem:[%s19164_s3 + $0x12ec] ss:$20 sps:$4 sm:$0xff]  }
 0x525   : > { %9326 = vmatpush1.bf16.msra.mxu1 %v14022_v17  ;;  %v14099_v17 = vld [vmem:[%s19164_s3 + $0x12f4] ss:$20 sps:$4 sm:$0xff]  }
 0x526   : > { %9695 = vmatpush1.bf16.msra.mxu0 %v14025_v57  ;;  %9327 = vmatprep.subr.bf16.mxu1 %v14030_v14  ;;  %v14094_v57 = vld [vmem:[%s19164_s3 + $0x12e8] ss:$20 sps:$4 sm:$0xff]   ;;  %v14097_v14 = vld [vmem:[%s19164_s3 + $0x12f0] ss:$20 sps:$4 sm:$0xff]  }
 0x527   : > { %9696 = vmatprep.subr.bf16.mxu0 %v14033_v7  ;;  %v14102_v7 = vld [vmem:[%s19164_s3 + $0x1314] ss:$20 sps:$4 sm:$0xff]  }
 0x529   : > { %9328 = vmatpush1.bf16.msra.mxu1 %v14028_v20  ;;  %v14105_v20 = vld [vmem:[%s19164_s3 + $0x131c] ss:$20 sps:$4 sm:$0xff]  }
 0x52a   : > { %9697 = vmatpush1.bf16.msra.mxu0 %v14031_v41  ;;  %9329 = vmatprep.subr.bf16.mxu1 %v14036_v42  ;;  %v14100_v41 = vld [vmem:[%s19164_s3 + $0x1310] ss:$20 sps:$4 sm:$0xff]   ;;  %v14103_v42 = vld [vmem:[%s19164_s3 + $0x1318] ss:$20 sps:$4 sm:$0xff]  }
 0x52b   : > { %9698 = vmatprep.subr.bf16.mxu0 %v14039_v35  ;;  %v14108_v35 = vld [vmem:[%s19164_s3 + $0x133c] ss:$20 sps:$4 sm:$0xff]  }
 0x52d   : > { %9330 = vmatpush1.bf16.msra.mxu1 %v14034_v26  ;;  %v14111_v26 = vld [vmem:[%s19164_s3 + $0x1344] ss:$20 sps:$4 sm:$0xff]  }
 0x52e   : > { %9699 = vmatpush1.bf16.msra.mxu0 %v14037_v45  ;;  %9340 = vmatprep.subr.bf16.mxu1 %v14042_v31  ;;  %v14106_v45 = vld [vmem:[%s19164_s3 + $0x1338] ss:$20 sps:$4 sm:$0xff]   ;;  %v14109_v31 = vld [vmem:[%s19164_s3 + $0x1340] ss:$20 sps:$4 sm:$0xff]  }
 0x52f   : > { %9709 = vmatprep.subr.bf16.mxu0 %v14045_v18  ;;  %v14117_v18 = vld [vmem:[%s19164_s3 + $0x136c] ss:$20 sps:$4 sm:$0xff]  }
 0x530   : > { %9332 = vmatmul.mubr.bf16.vlgmr.msra.gmra.mrb[224].mxu1 %v18084_v58 }
 0x531   : > { %9701 = vmatmul.mubr.bf16.vlgmr.msra.gmra.mrb[208].mxu0 %v18084_v58  ;;  %9341 = vmatpush1.bf16.msra.mxu1 %v14040_v8  ;;  %v14112_v8 = vld [vmem:[%s19164_s3 + $0x1360] ss:$20 sps:$4 sm:$0xff]  }
 0x532   : > { %9372 = vmatprep.mubr.bf16.mxu1 %v18093_v9  ;;  %9710 = vmatpush1.bf16.msra.mxu0 %v14043_v49  ;;  %v14120_v49 = vld [vmem:[%s19164_s3 + $0x138c] ss:$20 sps:$4 sm:$0xff]  }
 0x533   : > { %9741 = vmatprep.mubr.bf16.mxu0 %v18093_v9  ;;  %9342 = vmatprep.subr.bf16.mxu1 %v14048_v44  ;;  %v14123_v44 = vld [vmem:[%s19164_s3 + $0x1394] ss:$20 sps:$4 sm:$0xff]  }
 0x534   : > { %9711 = vmatprep.subr.bf16.mxu0 %v14051_v38  ;;  %v14118_v38 = vld [vmem:[%s19164_s3 + $0x1388] ss:$20 sps:$4 sm:$0xff]  }
 0x535   : > { %9343 = vmatpush1.bf16.msra.mxu1 %v14046_v32  ;;  %v14121_v32 = vld [vmem:[%s19164_s3 + $0x1390] ss:$20 sps:$4 sm:$0xff]  }
 0x536   : > { %9712 = vmatpush1.bf16.msra.mxu0 %v14049_v63  ;;  %9344 = vmatprep.subr.bf16.mxu1 %v14054_v39  ;;  %v14126_v63 = vld [vmem:[%s19164_s3 + $0x13b4] ss:$20 sps:$4 sm:$0xff]   ;;  %v14129_v39 = vld [vmem:[%s19164_s3 + $0x13bc] ss:$20 sps:$4 sm:$0xff]  }
 0x537   : > { %9713 = vmatprep.subr.bf16.mxu0 %v14057_v47  ;;  %v14124_v47 = vld [vmem:[%s19164_s3 + $0x13b0] ss:$20 sps:$4 sm:$0xff]  }
 0x539   : > { %9345 = vmatpush1.bf16.msra.mxu1 %v14052_v25  ;;  %v14127_v25 = vld [vmem:[%s19164_s3 + $0x13b8] ss:$20 sps:$4 sm:$0xff]  }
 0x53a   : > { %9714 = vmatpush1.bf16.msra.mxu0 %v14055_v28  ;;  %9346 = vmatprep.subr.bf16.mxu1 %v14060_v21  ;;  %v14132_v28 = vld [vmem:[%s19164_s3 + $0x13dc] ss:$20 sps:$4 sm:$0xff]   ;;  %v14135_v21 = vld [vmem:[%s19164_s3 + $0x13e4] ss:$20 sps:$4 sm:$0xff]  }
 0x53b   : > { %9715 = vmatprep.subr.bf16.mxu0 %v14063_v37  ;;  %v14130_v37 = vld [vmem:[%s19164_s3 + $0x13d8] ss:$20 sps:$4 sm:$0xff]  }
 0x53d   : > { %9347 = vmatpush1.bf16.msra.mxu1 %v14058_v12  ;;  %v14133_v12 = vld [vmem:[%s19164_s3 + $0x13e0] ss:$20 sps:$4 sm:$0xff]  }
 0x53e   : > { %9716 = vmatpush1.bf16.msra.mxu0 %v14061_v54  ;;  %9348 = vmatprep.subr.bf16.mxu1 %v14066_v29  ;;  %v14138_v54 = vld [vmem:[%s19164_s3 + $0x1404] ss:$20 sps:$4 sm:$0xff]   ;;  %v4396_v29 = vld [vmem:[#allocation2 + $0x70] sm:$0xff] }
 0x53f   : > { %9717 = vmatprep.subr.bf16.mxu0 %v14069_v40  ;;  %v14141_v40 = vld [vmem:[%s19164_s3 + $0x140c] ss:$20 sps:$4 sm:$0xff]  }
 0x541   : > { %9349 = vmatpush1.bf16.msra.mxu1 %v14064_v1  ;;  %v14136_v1 = vld [vmem:[%s19164_s3 + $0x1400] ss:$20 sps:$4 sm:$0xff]  }
 0x542   : > { %9718 = vmatpush1.bf16.msra.mxu0 %v14067_v46  ;;  %9350 = vmatprep.subr.bf16.mxu1 %v14072_v23  ;;  %v4399_v46 = vld [vmem:[#allocation2 + $0x88] sm:$0xff]  ;;  %v18284_v23 = vpack.c.bf16 %v4396_v29, %v4396_v29 }
 0x543   : > { %9719 = vmatprep.subr.bf16.mxu0 %v14075_v33  ;;  %v14139_v33 = vld [vmem:[%s19164_s3 + $0x1408] ss:$20 sps:$4 sm:$0xff]   ;;  %v14202_v29 = vld [vmem:[%s19164_s3 + $0x15b8] ss:$20 sps:$4 sm:$0xff]  }
 0x545   : > { %9351 = vmatpush1.bf16.msra.mxu1 %v14070_v0  ;;  %v14144_v0 = vld [vmem:[%s19164_s3 + $0x142c] ss:$20 sps:$4 sm:$0xff]  }
 0x546   : > { %9720 = vmatpush1.bf16.msra.mxu0 %v14073_v62  ;;  %9352 = vmatprep.subr.bf16.mxu1 %v14078_v53  ;;  %v18293_v62 = vpack.c.bf16 %v4399_v46, %v4399_v46  ;;  %v14147_v53 = vld [vmem:[%s19164_s3 + $0x1434] ss:$20 sps:$4 sm:$0xff]   ;;  %v14213_v46 = vld [vmem:[%s19164_s3 + $0x15ec] ss:$20 sps:$4 sm:$0xff]  }
 0x547   : > { %9721 = vmatprep.subr.bf16.mxu0 %v14081_v15  ;;  %v14142_v15 = vld [vmem:[%s19164_s3 + $0x1428] ss:$20 sps:$4 sm:$0xff]  }
 0x549   : > { %9353 = vmatpush1.bf16.msra.mxu1 %v14076_v36  ;;  %v14145_v36 = vld [vmem:[%s19164_s3 + $0x1430] ss:$20 sps:$4 sm:$0xff]  }
 0x54a   : > { %9722 = vmatpush1.bf16.msra.mxu0 %v14079_v11  ;;  %9354 = vmatprep.subr.bf16.mxu1 %v14084_v61  ;;  %v14150_v11 = vld [vmem:[%s19164_s3 + $0x1454] ss:$20 sps:$4 sm:$0xff]   ;;  %v14153_v61 = vld [vmem:[%s19164_s3 + $0x145c] ss:$20 sps:$4 sm:$0xff]  }
 0x54b   : > { %9723 = vmatprep.subr.bf16.mxu0 %v14087_v34  ;;  %v14148_v34 = vld [vmem:[%s19164_s3 + $0x1450] ss:$20 sps:$4 sm:$0xff]  }
 0x54d   : > { %9355 = vmatpush1.bf16.msra.mxu1 %v14082_v60  ;;  %v14151_v60 = vld [vmem:[%s19164_s3 + $0x1458] ss:$20 sps:$4 sm:$0xff]  }
 0x54e   : > { %9724 = vmatpush1.bf16.msra.mxu0 %v14085_v5  ;;  %9356 = vmatprep.subr.bf16.mxu1 %v14090_v50  ;;  %v14156_v5 = vld [vmem:[%s19164_s3 + $0x147c] ss:$20 sps:$4 sm:$0xff]   ;;  %v14159_v50 = vld [vmem:[%s19164_s3 + $0x1484] ss:$20 sps:$4 sm:$0xff]  }
 0x54f   : > { %9725 = vmatprep.subr.bf16.mxu0 %v14093_v48  ;;  %v14154_v48 = vld [vmem:[%s19164_s3 + $0x1478] ss:$20 sps:$4 sm:$0xff]  }
 0x551   : > { %9357 = vmatpush1.bf16.msra.mxu1 %v14088_v13  ;;  %v14157_v13 = vld [vmem:[%s19164_s3 + $0x1480] ss:$20 sps:$4 sm:$0xff]  }
 0x552   : > { %9726 = vmatpush1.bf16.msra.mxu0 %v14091_v3  ;;  %9358 = vmatprep.subr.bf16.mxu1 %v14096_v24  ;;  %v14162_v3 = vld [vmem:[%s19164_s3 + $0x14a4] ss:$20 sps:$4 sm:$0xff]   ;;  %v14165_v24 = vld [vmem:[%s19164_s3 + $0x14ac] ss:$20 sps:$4 sm:$0xff]  }
 0x553   : > { %9727 = vmatprep.subr.bf16.mxu0 %v14099_v17  ;;  %v14160_v17 = vld [vmem:[%s19164_s3 + $0x14a0] ss:$20 sps:$4 sm:$0xff]  }
 0x555   : > { %9359 = vmatpush1.bf16.msra.mxu1 %v14094_v57  ;;  %v14163_v57 = vld [vmem:[%s19164_s3 + $0x14a8] ss:$20 sps:$4 sm:$0xff]  }
 0x556   : > { %9728 = vmatpush1.bf16.msra.mxu0 %v14097_v14  ;;  %9360 = vmatprep.subr.bf16.mxu1 %v14102_v7  ;;  %v14168_v14 = vld [vmem:[%s19164_s3 + $0x14cc] ss:$20 sps:$4 sm:$0xff]   ;;  %v14171_v7 = vld [vmem:[%s19164_s3 + $0x14d4] ss:$20 sps:$4 sm:$0xff]  }
 0x557   : > { %9729 = vmatprep.subr.bf16.mxu0 %v14105_v20  ;;  %v14166_v20 = vld [vmem:[%s19164_s3 + $0x14c8] ss:$20 sps:$4 sm:$0xff]  }
 0x559   : > { %9361 = vmatpush1.bf16.msra.mxu1 %v14100_v41  ;;  %v14169_v41 = vld [vmem:[%s19164_s3 + $0x14d0] ss:$20 sps:$4 sm:$0xff]  }
 0x55a   : > { %9730 = vmatpush1.bf16.msra.mxu0 %v14103_v42  ;;  %9362 = vmatprep.subr.bf16.mxu1 %v14108_v35  ;;  %v14174_v42 = vld [vmem:[%s19164_s3 + $0x14f4] ss:$20 sps:$4 sm:$0xff]   ;;  %v14177_v35 = vld [vmem:[%s19164_s3 + $0x14fc] ss:$20 sps:$4 sm:$0xff]  }
 0x55b   : > { %9731 = vmatprep.subr.bf16.mxu0 %v14111_v26  ;;  %v14172_v26 = vld [vmem:[%s19164_s3 + $0x14f0] ss:$20 sps:$4 sm:$0xff]  }
 0x55d   : > { %9363 = vmatpush1.bf16.msra.mxu1 %v14106_v45  ;;  %v14175_v45 = vld [vmem:[%s19164_s3 + $0x14f8] ss:$20 sps:$4 sm:$0xff]  }
 0x55e   : > { %9732 = vmatpush1.bf16.msra.mxu0 %v14109_v31  ;;  %9364 = vmatprep.subr.bf16.mxu1 %v14114_v51  ;;  %v14180_v31 = vld [vmem:[%s19164_s3 + $0x151c] ss:$20 sps:$4 sm:$0xff]   ;;  %v14183_v51 = vld [vmem:[%s19164_s3 + $0x1524] ss:$20 sps:$4 sm:$0xff]  }
 0x55f   : > { %9733 = vmatprep.subr.bf16.mxu0 %v14117_v18  ;;  %v14178_v18 = vld [vmem:[%s19164_s3 + $0x1518] ss:$20 sps:$4 sm:$0xff]  }
 0x561   : > { %9365 = vmatpush1.bf16.msra.mxu1 %v14112_v8  ;;  %v14181_v8 = vld [vmem:[%s19164_s3 + $0x1520] ss:$20 sps:$4 sm:$0xff]  }
 0x562   : > { %9734 = vmatpush1.bf16.msra.mxu0 %v14115_v16  ;;  %9366 = vmatprep.subr.bf16.mxu1 %v14120_v49  ;;  %v14186_v16 = vld [vmem:[%s19164_s3 + $0x1544] ss:$20 sps:$4 sm:$0xff]   ;;  %v14189_v49 = vld [vmem:[%s19164_s3 + $0x154c] ss:$20 sps:$4 sm:$0xff]  }
 0x563   : > { %9735 = vmatprep.subr.bf16.mxu0 %v14123_v44  ;;  %v14184_v44 = vld [vmem:[%s19164_s3 + $0x1540] ss:$20 sps:$4 sm:$0xff]  }
 0x565   : > { %9367 = vmatpush1.bf16.msra.mxu1 %v14118_v38  ;;  %v14187_v38 = vld [vmem:[%s19164_s3 + $0x1548] ss:$20 sps:$4 sm:$0xff]  }
 0x566   : > { %9736 = vmatpush1.bf16.msra.mxu0 %v14121_v32  ;;  %9368 = vmatprep.subr.bf16.mxu1 %v14126_v63  ;;  %v14192_v32 = vld [vmem:[%s19164_s3 + $0x156c] ss:$20 sps:$4 sm:$0xff]   ;;  %v14195_v63 = vld [vmem:[%s19164_s3 + $0x1574] ss:$20 sps:$4 sm:$0xff]  }
 0x567   : > { %9737 = vmatprep.subr.bf16.mxu0 %v14129_v39  ;;  %v14190_v39 = vld [vmem:[%s19164_s3 + $0x1568] ss:$20 sps:$4 sm:$0xff]  }
 0x569   : > { %9369 = vmatpush1.bf16.msra.mxu1 %v14124_v47  ;;  %v14193_v47 = vld [vmem:[%s19164_s3 + $0x1570] ss:$20 sps:$4 sm:$0xff]  }
 0x56a   : > { %9738 = vmatpush1.bf16.msra.mxu0 %v14127_v25  ;;  %9370 = vmatprep.subr.bf16.mxu1 %v14132_v28  ;;  %v14198_v25 = vld [vmem:[%s19164_s3 + $0x1594] ss:$20 sps:$4 sm:$0xff]   ;;  %v14201_v28 = vld [vmem:[%s19164_s3 + $0x159c] ss:$20 sps:$4 sm:$0xff]  }
 0x56b   : > { %9739 = vmatprep.subr.bf16.mxu0 %v14135_v21  ;;  %v14196_v21 = vld [vmem:[%s19164_s3 + $0x1590] ss:$20 sps:$4 sm:$0xff]  }
 0x56d   : > { %9371 = vmatpush1.bf16.msra.mxu1 %v14130_v37  ;;  %v14199_v37 = vld [vmem:[%s19164_s3 + $0x1598] ss:$20 sps:$4 sm:$0xff]  }
 0x56e   : > { %9740 = vmatpush1.bf16.msra.mxu0 %v14133_v12  ;;  %9381 = vmatprep.subr.bf16.mxu1 %v14138_v54  ;;  %v14204_v12 = vld [vmem:[%s19164_s3 + $0x15bc] ss:$20 sps:$4 sm:$0xff]   ;;  %v14207_v54 = vld [vmem:[%s19164_s3 + $0x15c4] ss:$20 sps:$4 sm:$0xff]  }
 0x56f   : > { %9750 = vmatprep.subr.bf16.mxu0 %v14141_v40  ;;  %v14205_v40 = vld [vmem:[%s19164_s3 + $0x15c0] ss:$20 sps:$4 sm:$0xff]  }
 0x570   : > { %9373 = vmatmul.mubr.bf16.vlgmr.msra.gmra.mrb[224].mxu1 %v18284_v23 }
 0x571   : > { %9742 = vmatmul.mubr.bf16.vlgmr.msra.gmra.mrb[208].mxu0 %v18284_v23  ;;  %9382 = vmatpush1.bf16.msra.mxu1 %v14136_v1  ;;  %v14210_v1 = vld [vmem:[%s19164_s3 + $0x15e4] ss:$20 sps:$4 sm:$0xff]  }
 0x572   : > { %9413 = vmatprep.mubr.bf16.mxu1 %v18293_v62  ;;  %9751 = vmatpush1.bf16.msra.mxu0 %v14139_v33  ;;  %v14208_v33 = vld [vmem:[%s19164_s3 + $0x15e0] ss:$20 sps:$4 sm:$0xff]  }
 0x573   : > { %9782 = vmatprep.mubr.bf16.mxu0 %v18293_v62  ;;  %9383 = vmatprep.subr.bf16.mxu1 %v14144_v0  ;;  %v14211_v0 = vld [vmem:[%s19164_s3 + $0x15e8] ss:$20 sps:$4 sm:$0xff]  }
 0x574   : > { %9752 = vmatprep.subr.bf16.mxu0 %v14147_v53  ;;  %v14216_v53 = vld [vmem:[%s19164_s3 + $0x160c] ss:$20 sps:$4 sm:$0xff]  }
 0x575   : > { %9384 = vmatpush1.bf16.msra.mxu1 %v14142_v15  ;;  %v14219_v15 = vld [vmem:[%s19164_s3 + $0x1614] ss:$20 sps:$4 sm:$0xff]  }
 0x576   : > { %9753 = vmatpush1.bf16.msra.mxu0 %v14145_v36  ;;  %9385 = vmatprep.subr.bf16.mxu1 %v14150_v11  ;;  %v14214_v36 = vld [vmem:[%s19164_s3 + $0x1608] ss:$20 sps:$4 sm:$0xff]   ;;  %v14217_v11 = vld [vmem:[%s19164_s3 + $0x1610] ss:$20 sps:$4 sm:$0xff]  }
 0x577   : > { %9754 = vmatprep.subr.bf16.mxu0 %v14153_v61  ;;  %v14222_v61 = vld [vmem:[%s19164_s3 + $0x1634] ss:$20 sps:$4 sm:$0xff]  }
 0x579   : > { %9386 = vmatpush1.bf16.msra.mxu1 %v14148_v34  ;;  %v14225_v34 = vld [vmem:[%s19164_s3 + $0x163c] ss:$20 sps:$4 sm:$0xff]  }
 0x57a   : > { %9755 = vmatpush1.bf16.msra.mxu0 %v14151_v60  ;;  %9387 = vmatprep.subr.bf16.mxu1 %v14156_v5  ;;  %v14220_v60 = vld [vmem:[%s19164_s3 + $0x1630] ss:$20 sps:$4 sm:$0xff]   ;;  %v14223_v5 = vld [vmem:[%s19164_s3 + $0x1638] ss:$20 sps:$4 sm:$0xff]  }
 0x57b   : > { %9756 = vmatprep.subr.bf16.mxu0 %v14159_v50  ;;  %v14228_v50 = vld [vmem:[%s19164_s3 + $0x165c] ss:$20 sps:$4 sm:$0xff]  }
 0x57d   : > { %9388 = vmatpush1.bf16.msra.mxu1 %v14154_v48  ;;  %v14231_v48 = vld [vmem:[%s19164_s3 + $0x1664] ss:$20 sps:$4 sm:$0xff]  }
 0x57e   : > { %9757 = vmatpush1.bf16.msra.mxu0 %v14157_v13  ;;  %9389 = vmatprep.subr.bf16.mxu1 %v14162_v3  ;;  %v14226_v13 = vld [vmem:[%s19164_s3 + $0x1658] ss:$20 sps:$4 sm:$0xff]   ;;  %v14229_v3 = vld [vmem:[%s19164_s3 + $0x1660] ss:$20 sps:$4 sm:$0xff]  }
 0x57f   : > { %9758 = vmatprep.subr.bf16.mxu0 %v14165_v24  ;;  %v14232_v24 = vld [vmem:[%s19164_s3 + $0x150] ss:$20 sps:$4 sm:$0xff]  }
 0x581   : > { %9390 = vmatpush1.bf16.msra.mxu1 %v14160_v17  ;;  %v4398_v17 = vld [vmem:[#allocation2 + $0x80] sm:$0xff] }
 0x582   : > { %9759 = vmatpush1.bf16.msra.mxu0 %v14163_v57  ;;  %9391 = vmatprep.subr.bf16.mxu1 %v14168_v14  ;;  %v14233_v57 = vld [vmem:[%s19164_s3 + $0x650] ss:$20 sps:$4 sm:$0xff]  }
 0x583   : > { %9760 = vmatprep.subr.bf16.mxu0 %v14171_v7  ;;  %v14234_v14 = vld [vmem:[%s19164_s3 + $0x10] ss:$20 sps:$4 sm:$0xff]   ;;  %v18484_v7 = vpack.c.bf16 %v4398_v17, %v4398_v17  ;;  %v14284_v17 = vld [vmem:[%s19164_s3 + $0x498] ss:$20 sps:$4 sm:$0xff]  }
 0x585   : > { %9392 = vmatpush1.bf16.msra.mxu1 %v14166_v20  ;;  %v14235_v20 = vld [vmem:[%s19164_s3 + $0x510] ss:$20 sps:$4 sm:$0xff]  }
 0x586   : > { %9761 = vmatpush1.bf16.msra.mxu0 %v14169_v41  ;;  %9393 = vmatprep.subr.bf16.mxu1 %v14174_v42  ;;  %v14236_v41 = vld [vmem:[%s19164_s3 + $0x178] ss:$20 sps:$4 sm:$0xff]  }
 0x587   : > { %9762 = vmatprep.subr.bf16.mxu0 %v14177_v35  ;;  %v14237_v42 = vld [vmem:[%s19164_s3 + $0x678] ss:$20 sps:$4 sm:$0xff]  }
 0x588   : > { %v14238_v35 = vld [vmem:[%s19164_s3 + $0x38] ss:$20 sps:$4 sm:$0xff]  }
 0x589   : > { %9394 = vmatpush1.bf16.msra.mxu1 %v14172_v26  ;;  %v14239_v26 = vld [vmem:[%s19164_s3 + $0x538] ss:$20 sps:$4 sm:$0xff]  }
 0x58a   : > { %9763 = vmatpush1.bf16.msra.mxu0 %v14175_v45  ;;  %9395 = vmatprep.subr.bf16.mxu1 %v14180_v31  ;;  %v14240_v45 = vld [vmem:[%s19164_s3 + $0x1a0] ss:$20 sps:$4 sm:$0xff]  }
 0x58b   : > { %9764 = vmatprep.subr.bf16.mxu0 %v14183_v51  ;;  %v14241_v31 = vld [vmem:[%s19164_s3 + $0x6a0] ss:$20 sps:$4 sm:$0xff]  }
 0x58c   : > { %v14243_v51 = vld [vmem:[%s19164_s3 + $0x560] ss:$20 sps:$4 sm:$0xff]  }
 0x58d   : > { %9396 = vmatpush1.bf16.msra.mxu1 %v14178_v18  ;;  %v14245_v18 = vld [vmem:[%s19164_s3 + $0x6c8] ss:$20 sps:$4 sm:$0xff]  }
 0x58e   : > { %9765 = vmatpush1.bf16.msra.mxu0 %v14181_v8  ;;  %9397 = vmatprep.subr.bf16.mxu1 %v14186_v16  ;;  %v14246_v8 = vld [vmem:[%s19164_s3 + $0x88] ss:$20 sps:$4 sm:$0xff]  }
 0x58f   : > { %9766 = vmatprep.subr.bf16.mxu0 %v14189_v49  ;;  %v14247_v16 = vld [vmem:[%s19164_s3 + $0x588] ss:$20 sps:$4 sm:$0xff]   ;;  %v14248_v49 = vld [vmem:[%s19164_s3 + $0x1f0] ss:$20 sps:$4 sm:$0xff]  }
 0x591   : > { %9398 = vmatpush1.bf16.msra.mxu1 %v14184_v44  ;;  %v14249_v44 = vld [vmem:[%s19164_s3 + $0x6f0] ss:$20 sps:$4 sm:$0xff]  }
 0x592   : > { %9767 = vmatpush1.bf16.msra.mxu0 %v14187_v38  ;;  %9399 = vmatprep.subr.bf16.mxu1 %v14192_v32  ;;  %v14250_v38 = vld [vmem:[%s19164_s3 + $0xb0] ss:$20 sps:$4 sm:$0xff]  }
 0x593   : > { %9768 = vmatprep.subr.bf16.mxu0 %v14195_v63  ;;  %v14251_v32 = vld [vmem:[%s19164_s3 + $0x5b0] ss:$20 sps:$4 sm:$0xff]   ;;  %v14252_v63 = vld [vmem:[%s19164_s3 + $0x218] ss:$20 sps:$4 sm:$0xff]  }
 0x595   : > { %9400 = vmatpush1.bf16.msra.mxu1 %v14190_v39  ;;  %v14253_v39 = vld [vmem:[%s19164_s3 + $0x718] ss:$20 sps:$4 sm:$0xff]  }
 0x596   : > { %9769 = vmatpush1.bf16.msra.mxu0 %v14193_v47  ;;  %9401 = vmatprep.subr.bf16.mxu1 %v14198_v25  ;;  %v14254_v47 = vld [vmem:[%s19164_s3 + $0xd8] ss:$20 sps:$4 sm:$0xff]  }
 0x597   : > { %9770 = vmatprep.subr.bf16.mxu0 %v14201_v28  ;;  %v14255_v25 = vld [vmem:[%s19164_s3 + $0x5d8] ss:$20 sps:$4 sm:$0xff]   ;;  %v14256_v28 = vld [vmem:[%s19164_s3 + $0x240] ss:$20 sps:$4 sm:$0xff]  }
 0x599   : > { %9402 = vmatpush1.bf16.msra.mxu1 %v14196_v21  ;;  %v14257_v21 = vld [vmem:[%s19164_s3 + $0x740] ss:$20 sps:$4 sm:$0xff]  }
 0x59a   : > { %9771 = vmatpush1.bf16.msra.mxu0 %v14199_v37  ;;  %9403 = vmatprep.subr.bf16.mxu1 %v14204_v12  ;;  %v14258_v37 = vld [vmem:[%s19164_s3 + $0x100] ss:$20 sps:$4 sm:$0xff]  }
 0x59b   : > { %9772 = vmatprep.subr.bf16.mxu0 %v14207_v54  ;;  %v14259_v12 = vld [vmem:[%s19164_s3 + $0x600] ss:$20 sps:$4 sm:$0xff]   ;;  %v14260_v54 = vld [vmem:[%s19164_s3 + $0x268] ss:$20 sps:$4 sm:$0xff]  }
 0x59d   : > { %9404 = vmatpush1.bf16.msra.mxu1 %v14202_v29  ;;  %v14261_v29 = vld [vmem:[%s19164_s3 + $0x768] ss:$20 sps:$4 sm:$0xff]  }
 0x59e   : > { %9773 = vmatpush1.bf16.msra.mxu0 %v14205_v40  ;;  %9405 = vmatprep.subr.bf16.mxu1 %v14210_v1  ;;  %v14262_v40 = vld [vmem:[%s19164_s3 + $0x128] ss:$20 sps:$4 sm:$0xff]  }
 0x59f   : > { %9774 = vmatprep.subr.bf16.mxu0 %v14213_v46  ;;  %v14263_v1 = vld [vmem:[%s19164_s3 + $0x628] ss:$20 sps:$4 sm:$0xff]   ;;  %v14264_v46 = vld [vmem:[%s19164_s3 + $0x3d0] ss:$20 sps:$4 sm:$0xff]  }
 0x5a1   : > { %9406 = vmatpush1.bf16.msra.mxu1 %v14208_v33  ;;  %v14265_v33 = vld [vmem:[%s19164_s3 + $0xb50] ss:$20 sps:$4 sm:$0xff]  }
 0x5a2   : > { %9775 = vmatpush1.bf16.msra.mxu0 %v14211_v0  ;;  %9407 = vmatprep.subr.bf16.mxu1 %v14216_v53  ;;  %v14266_v0 = vld [vmem:[%s19164_s3 + $0x290] ss:$20 sps:$4 sm:$0xff]  }
 0x5a3   : > { %9776 = vmatprep.subr.bf16.mxu0 %v14219_v15  ;;  %v14267_v53 = vld [vmem:[%s19164_s3 + $0xa10] ss:$20 sps:$4 sm:$0xff]   ;;  %v14268_v15 = vld [vmem:[%s19164_s3 + $0x3f8] ss:$20 sps:$4 sm:$0xff]  }
 0x5a5   : > { %9408 = vmatpush1.bf16.msra.mxu1 %v14214_v36  ;;  %v14269_v36 = vld [vmem:[%s19164_s3 + $0xb78] ss:$20 sps:$4 sm:$0xff]  }
 0x5a6   : > { %9777 = vmatpush1.bf16.msra.mxu0 %v14217_v11  ;;  %9409 = vmatprep.subr.bf16.mxu1 %v14222_v61  ;;  %v14270_v11 = vld [vmem:[%s19164_s3 + $0x2b8] ss:$20 sps:$4 sm:$0xff]  }
 0x5a7   : > { %9778 = vmatprep.subr.bf16.mxu0 %v14225_v34  ;;  %v14271_v61 = vld [vmem:[%s19164_s3 + $0xa38] ss:$20 sps:$4 sm:$0xff]   ;;  %v14275_v34 = vld [vmem:[%s19164_s3 + $0xa60] ss:$20 sps:$4 sm:$0xff]  }
 0x5a9   : > { %9410 = vmatpush1.bf16.msra.mxu1 %v14220_v60  ;;  %v14277_v60 = vld [vmem:[%s19164_s3 + $0xbc8] ss:$20 sps:$4 sm:$0xff]  }
 0x5aa   : > { %9779 = vmatpush1.bf16.msra.mxu0 %v14223_v5  ;;  %9411 = vmatprep.subr.bf16.mxu1 %v14228_v50  ;;  %v14278_v5 = vld [vmem:[%s19164_s3 + $0x308] ss:$20 sps:$4 sm:$0xff]  }
 0x5ab   : > { %9780 = vmatprep.subr.bf16.mxu0 %v14231_v48  ;;  %v14279_v50 = vld [vmem:[%s19164_s3 + $0xa88] ss:$20 sps:$4 sm:$0xff]   ;;  %v14280_v48 = vld [vmem:[%s19164_s3 + $0x470] ss:$20 sps:$4 sm:$0xff]  }
 0x5ad   : > { %9412 = vmatpush1.bf16.msra.mxu1 %v14226_v13  ;;  %v14281_v13 = vld [vmem:[%s19164_s3 + $0xbf0] ss:$20 sps:$4 sm:$0xff]  }
 0x5ae   : > { %9781 = vmatpush1.bf16.msra.mxu0 %v14229_v3  ;;  %12461 = vmatprep.subr.bf16.mxu1 %v14232_v24  ;;  %v14282_v3 = vld [vmem:[%s19164_s3 + $0x330] ss:$20 sps:$4 sm:$0xff]  }
 0x5af   : > { %12505 = vmatprep.subr.bf16.mxu0 %v14233_v57  ;;  %v14283_v24 = vld [vmem:[%s19164_s3 + $0xab0] ss:$20 sps:$4 sm:$0xff]   ;;  %v14285_v57 = vld [vmem:[%s19164_s3 + $0xc18] ss:$20 sps:$4 sm:$0xff]  }
 0x5b0   : > { %9414 = vmatmul.mubr.bf16.vlgmr.msra.gmra.mrb[224].mxu1 %v18484_v7 }
 0x5b1   : > { %9783 = vmatmul.mubr.bf16.vlgmr.msra.gmra.mrb[208].mxu0 %v18484_v7  ;;  %12462 = vmatpush3.bf16.msra.mxu1 %v14234_v14  ;;  %v14286_v14 = vld [vmem:[%s19164_s3 + $0x358] ss:$20 sps:$4 sm:$0xff]  }
 0x5b2   : > { %9823 = vmatprep.mubr.bf16.mxu1 %v16862_v52  ;;  %12506 = vmatpush3.bf16.msra.mxu0 %v14235_v20  ;;  %v14242_v52 = vld [vmem:[%s19164_s3 + $0x60] ss:$20 sps:$4 sm:$0xff]   ;;  %v14287_v20 = vld [vmem:[%s19164_s3 + $0xad8] ss:$20 sps:$4 sm:$0xff]  }
 0x5b3   : > { %9903 = vmatprep.mubr.bf16.mxu0 %v17085_v59  ;;  %12463 = vmatprep.subr.bf16.mxu1 %v14236_v41  ;;  %v14244_v59 = vld [vmem:[%s19164_s3 + $0x1c8] ss:$20 sps:$4 sm:$0xff]   ;;  %v14288_v41 = vld [vmem:[%s19164_s3 + $0x4c0] ss:$20 sps:$4 sm:$0xff]  }
 0x5b4   : > { %12507 = vmatprep.subr.bf16.mxu0 %v14237_v42  ;;  %v14289_v42 = vld [vmem:[%s19164_s3 + $0xc40] ss:$20 sps:$4 sm:$0xff]  }
 0x5b5   : > { %12464 = vmatpush3.bf16.msra.mxu1 %v14238_v35  ;;  %v14290_v35 = vld [vmem:[%s19164_s3 + $0x380] ss:$20 sps:$4 sm:$0xff]  }
 0x5b6   : > { %12508 = vmatpush3.bf16.msra.mxu0 %v14239_v26  ;;  %12465 = vmatprep.subr.bf16.mxu1 %v14240_v45  ;;  %v14291_v26 = vld [vmem:[%s19164_s3 + $0xb00] ss:$20 sps:$4 sm:$0xff]   ;;  %v14292_v45 = vld [vmem:[%s19164_s3 + $0x4e8] ss:$20 sps:$4 sm:$0xff]  }
 0x5b7   : > { %12509 = vmatprep.subr.bf16.mxu0 %v14241_v31  ;;  %v14293_v31 = vld [vmem:[%s19164_s3 + $0xc68] ss:$20 sps:$4 sm:$0xff]  }
 0x5b9   : > { %12466 = vmatpush3.bf16.msra.mxu1 %v14242_v52  ;;  %v14294_v52 = vld [vmem:[%s19164_s3 + $0x3a8] ss:$20 sps:$4 sm:$0xff]  }
 0x5ba   : > { %12510 = vmatpush3.bf16.msra.mxu0 %v14243_v51  ;;  %12467 = vmatprep.subr.bf16.mxu1 %v14244_v59  ;;  %v14295_v51 = vld [vmem:[%s19164_s3 + $0xb28] ss:$20 sps:$4 sm:$0xff]   ;;  %v14296_v59 = vld [vmem:[%s19164_s3 + $0x8d0] ss:$20 sps:$4 sm:$0xff]  }
 0x5bb   : > { %12511 = vmatprep.subr.bf16.mxu0 %v14245_v18  ;;  %v14297_v18 = vld [vmem:[%s19164_s3 + $0x1050] ss:$20 sps:$4 sm:$0xff]  }
 0x5bd   : > { %12468 = vmatpush3.bf16.msra.mxu1 %v14246_v8  ;;  %v14298_v8 = vld [vmem:[%s19164_s3 + $0x790] ss:$20 sps:$4 sm:$0xff]  }
 0x5be   : > { %12512 = vmatpush3.bf16.msra.mxu0 %v14247_v16  ;;  %12469 = vmatprep.subr.bf16.mxu1 %v14248_v49  ;;  %v14299_v16 = vld [vmem:[%s19164_s3 + $0xf10] ss:$20 sps:$4 sm:$0xff]   ;;  %v14300_v49 = vld [vmem:[%s19164_s3 + $0x8f8] ss:$20 sps:$4 sm:$0xff]  }
 0x5bf   : > { %12513 = vmatprep.subr.bf16.mxu0 %v14249_v44  ;;  %v14301_v44 = vld [vmem:[%s19164_s3 + $0x1078] ss:$20 sps:$4 sm:$0xff]  }
 0x5c1   : > { %12470 = vmatpush3.bf16.msra.mxu1 %v14250_v38  ;;  %v14302_v38 = vld [vmem:[%s19164_s3 + $0x7b8] ss:$20 sps:$4 sm:$0xff]  }
 0x5c2   : > { %12514 = vmatpush3.bf16.msra.mxu0 %v14251_v32  ;;  %12471 = vmatprep.subr.bf16.mxu1 %v14252_v63  ;;  %v14303_v32 = vld [vmem:[%s19164_s3 + $0xf38] ss:$20 sps:$4 sm:$0xff]   ;;  %v14307_v63 = vld [vmem:[%s19164_s3 + $0xf60] ss:$20 sps:$4 sm:$0xff]  }
 0x5c3   : > { %12515 = vmatprep.subr.bf16.mxu0 %v14253_v39  ;;  %v14309_v39 = vld [vmem:[%s19164_s3 + $0x10c8] ss:$20 sps:$4 sm:$0xff]  }
 0x5c5   : > { %12472 = vmatpush3.bf16.msra.mxu1 %v14254_v47  ;;  %v14310_v47 = vld [vmem:[%s19164_s3 + $0x808] ss:$20 sps:$4 sm:$0xff]  }
 0x5c6   : > { %12516 = vmatpush3.bf16.msra.mxu0 %v14255_v25  ;;  %12473 = vmatprep.subr.bf16.mxu1 %v14256_v28  ;;  %v14311_v25 = vld [vmem:[%s19164_s3 + $0xf88] ss:$20 sps:$4 sm:$0xff]   ;;  %v14312_v28 = vld [vmem:[%s19164_s3 + $0x970] ss:$20 sps:$4 sm:$0xff]  }
 0x5c7   : > { %12517 = vmatprep.subr.bf16.mxu0 %v14257_v21  ;;  %v14313_v21 = vld [vmem:[%s19164_s3 + $0x10f0] ss:$20 sps:$4 sm:$0xff]  }
 0x5c9   : > { %12474 = vmatpush3.bf16.msra.mxu1 %v14258_v37  ;;  %v14314_v37 = vld [vmem:[%s19164_s3 + $0x830] ss:$20 sps:$4 sm:$0xff]  }
 0x5ca   : > { %12518 = vmatpush3.bf16.msra.mxu0 %v14259_v12  ;;  %12475 = vmatprep.subr.bf16.mxu1 %v14260_v54  ;;  %v14315_v12 = vld [vmem:[%s19164_s3 + $0xfb0] ss:$20 sps:$4 sm:$0xff]   ;;  %v14316_v54 = vld [vmem:[%s19164_s3 + $0x998] ss:$20 sps:$4 sm:$0xff]  }
 0x5cb   : > { %12519 = vmatprep.subr.bf16.mxu0 %v14261_v29  ;;  %v14317_v29 = vld [vmem:[%s19164_s3 + $0x1118] ss:$20 sps:$4 sm:$0xff]  }
 0x5cd   : > { %12476 = vmatpush3.bf16.msra.mxu1 %v14262_v40  ;;  %v14318_v40 = vld [vmem:[%s19164_s3 + $0x858] ss:$20 sps:$4 sm:$0xff]  }
 0x5ce   : > { %12520 = vmatpush3.bf16.msra.mxu0 %v14263_v1  ;;  %12483 = vmatprep.subr.bf16.mxu1 %v14264_v46  ;;  %v14319_v1 = vld [vmem:[%s19164_s3 + $0xfd8] ss:$20 sps:$4 sm:$0xff]   ;;  %v14320_v46 = vld [vmem:[%s19164_s3 + $0x9c0] ss:$20 sps:$4 sm:$0xff]  }
 0x5cf   : > { %12549 = vmatprep.subr.bf16.mxu0 %v14265_v33  ;;  %v14321_v33 = vld [vmem:[%s19164_s3 + $0x1140] ss:$20 sps:$4 sm:$0xff]  }
 0x5d0   : > { %9824 = vmatmul.mubr.bf16.vlgmr.msra.gmra.mrb[228].mxu1 %v16873_v27  ;;  %v14272_v27 = vld [vmem:[%s19164_s3 + $0x420] ss:$20 sps:$4 sm:$0xff]  }
 0x5d1   : > { %9904 = vmatmul.mubr.bf16.vlgmr.msra.gmra.mrb[212].mxu0 %v17284_v2  ;;  %12484 = vmatpush3.bf16.msra.mxu1 %v14266_v0  ;;  %v14273_v2 = vld [vmem:[%s19164_s3 + $0xba0] ss:$20 sps:$4 sm:$0xff]  }
 0x5d2   : > { %9863 = vmatprep.mubr.bf16.mxu1 %v16890_v22  ;;  %12550 = vmatpush3.bf16.msra.mxu0 %v14267_v53  ;;  %v14274_v22 = vld [vmem:[%s19164_s3 + $0x2e0] ss:$20 sps:$4 sm:$0xff]  }
 0x5d3   : > { %9983 = vmatprep.mubr.bf16.mxu0 %v17493_v4  ;;  %12485 = vmatprep.subr.bf16.mxu1 %v14268_v15  ;;  %v14276_v4 = vld [vmem:[%s19164_s3 + $0x448] ss:$20 sps:$4 sm:$0xff]   ;;  %v14322_v0 = vld [vmem:[%s19164_s3 + $0x880] ss:$20 sps:$4 sm:$0xff]  }
 0x5d4   : > { %12551 = vmatprep.subr.bf16.mxu0 %v14269_v36  ;;  %v14323_v53 = vld [vmem:[%s19164_s3 + $0x1000] ss:$20 sps:$4 sm:$0xff]   ;;  %v14324_v15 = vld [vmem:[%s19164_s3 + $0x9e8] ss:$20 sps:$4 sm:$0xff]  }
 0x5d5   : > { %12486 = vmatpush3.bf16.msra.mxu1 %v14270_v11  ;;  %v14325_v36 = vld [vmem:[%s19164_s3 + $0x1168] ss:$20 sps:$4 sm:$0xff]  }
 0x5d6   : > { %12552 = vmatpush3.bf16.msra.mxu0 %v14271_v61  ;;  %12487 = vmatprep.subr.bf16.mxu1 %v14272_v27  ;;  %v14326_v11 = vld [vmem:[%s19164_s3 + $0x8a8] ss:$20 sps:$4 sm:$0xff]   ;;  %v14328_v27 = vld [vmem:[%s19164_s3 + $0xdd0] ss:$20 sps:$4 sm:$0xff]  }
 0x5d7   : > { %12553 = vmatprep.subr.bf16.mxu0 %v14273_v2  ;;  %v14327_v61 = vld [vmem:[%s19164_s3 + $0x1028] ss:$20 sps:$4 sm:$0xff]   ;;  %v14329_v2 = vld [vmem:[%s19164_s3 + $0x1550] ss:$20 sps:$4 sm:$0xff]  }
 0x5d9   : > { %12488 = vmatpush3.bf16.msra.mxu1 %v14274_v22  ;;  %v14330_v22 = vld [vmem:[%s19164_s3 + $0xc90] ss:$20 sps:$4 sm:$0xff]  }
 0x5da   : > { %12554 = vmatpush3.bf16.msra.mxu0 %v14275_v34  ;;  %12489 = vmatprep.subr.bf16.mxu1 %v14276_v4  ;;  %v14331_v34 = vld [vmem:[%s19164_s3 + $0x1410] ss:$20 sps:$4 sm:$0xff]   ;;  %v14332_v4 = vld [vmem:[%s19164_s3 + $0xdf8] ss:$20 sps:$4 sm:$0xff]  }
 0x5db   : > { %12555 = vmatprep.subr.bf16.mxu0 %v14277_v60  ;;  %v14333_v60 = vld [vmem:[%s19164_s3 + $0x1578] ss:$20 sps:$4 sm:$0xff]  }
 0x5dd   : > { %12490 = vmatpush3.bf16.msra.mxu1 %v14278_v5  ;;  %v14334_v5 = vld [vmem:[%s19164_s3 + $0xcb8] ss:$20 sps:$4 sm:$0xff]  }
 0x5de   : > { %12556 = vmatpush3.bf16.msra.mxu0 %v14279_v50  ;;  %12491 = vmatprep.subr.bf16.mxu1 %v14280_v48  ;;  %v14335_v50 = vld [vmem:[%s19164_s3 + $0x1438] ss:$20 sps:$4 sm:$0xff]   ;;  %v14339_v48 = vld [vmem:[%s19164_s3 + $0x1460] ss:$20 sps:$4 sm:$0xff]  }
 0x5df   : > { %12557 = vmatprep.subr.bf16.mxu0 %v14281_v13  ;;  %v14341_v13 = vld [vmem:[%s19164_s3 + $0x15c8] ss:$20 sps:$4 sm:$0xff]  }
 0x5e1   : > { %12492 = vmatpush3.bf16.msra.mxu1 %v14282_v3  ;;  %v14342_v3 = vld [vmem:[%s19164_s3 + $0xd08] ss:$20 sps:$4 sm:$0xff]  }
 0x5e2   : > { %12558 = vmatpush3.bf16.msra.mxu0 %v14283_v24  ;;  %12493 = vmatprep.subr.bf16.mxu1 %v14284_v17  ;;  %v14343_v24 = vld [vmem:[%s19164_s3 + $0x1488] ss:$20 sps:$4 sm:$0xff]   ;;  %v14344_v17 = vld [vmem:[%s19164_s3 + $0xe70] ss:$20 sps:$4 sm:$0xff]  }
 0x5e3   : > { %12559 = vmatprep.subr.bf16.mxu0 %v14285_v57  ;;  %v14345_v57 = vld [vmem:[%s19164_s3 + $0x15f0] ss:$20 sps:$4 sm:$0xff]  }
 0x5e5   : > { %12494 = vmatpush3.bf16.msra.mxu1 %v14286_v14  ;;  %v14346_v14 = vld [vmem:[%s19164_s3 + $0xd30] ss:$20 sps:$4 sm:$0xff]  }
 0x5e6   : > { %12560 = vmatpush3.bf16.msra.mxu0 %v14287_v20  ;;  %12495 = vmatprep.subr.bf16.mxu1 %v14288_v41  ;;  %v14347_v20 = vld [vmem:[%s19164_s3 + $0x14b0] ss:$20 sps:$4 sm:$0xff]   ;;  %v14348_v41 = vld [vmem:[%s19164_s3 + $0xe98] ss:$20 sps:$4 sm:$0xff]  }
 0x5e7   : > { %12561 = vmatprep.subr.bf16.mxu0 %v14289_v42  ;;  %v5284_v42 = vlaneseq }
 0x5e9   : > { %12496 = vmatpush3.bf16.msra.mxu1 %v14290_v35  ;;  %v14349_v35 = vld [vmem:[%s19164_s3 + $0x1618] ss:$20 sps:$4 sm:$0xff]  }
 0x5ea   : > { %12562 = vmatpush3.bf16.msra.mxu0 %v14291_v26  ;;  %12497 = vmatprep.subr.bf16.mxu1 %v14292_v45  ;;  %v14350_v26 = vld [vmem:[%s19164_s3 + $0xd58] ss:$20 sps:$4 sm:$0xff]  }
 0x5eb   : > { %12563 = vmatprep.subr.bf16.mxu0 %v14293_v31  ;;  %v14351_v45 = vld [vmem:[%s19164_s3 + $0x14d8] ss:$20 sps:$4 sm:$0xff]   ;;  %v14352_v31 = vld [vmem:[%s19164_s3 + $0xec0] ss:$20 sps:$4 sm:$0xff]  }
 0x5ed   : > { %12498 = vmatpush3.bf16.msra.mxu1 %v14294_v52  ;;  %v18856_v52 = vshrl.u32 %v5284_v42, 7 }
 0x5ee   : > { %12564 = vmatpush3.bf16.msra.mxu0 %v14295_v51  ;;  %12527 = vmatprep.subr.bf16.mxu1 %v14296_v59  ;;  %v14353_v51 = vld [vmem:[%s19164_s3 + $0x1640] ss:$20 sps:$4 sm:$0xff]  }
 0x5ef   : > { %12593 = vmatprep.subr.bf16.mxu0 %v14297_v18  ;;  %v5302_v59 = vsub.s32 4, %v18856_v52  ;;  %v14354_v18 = vld [vmem:[%s19164_s3 + $0xd80] ss:$20 sps:$4 sm:$0xff]   ;;  %v5286_v42 = vsub.s32 0, %v18856_v52 }
 0x5f0   : > { %9864 = vmatmul.mubr.bf16.vlgmr.msra.gmra.mrb[232].mxu1 %v17080_v55  ;;  %v14304_v55 = vld [vmem:[%s19164_s3 + $0x920] ss:$20 sps:$4 sm:$0xff]  }
 0x5f1   : > { %9984 = vmatmul.mubr.bf16.vlgmr.msra.gmra.mrb[216].mxu0 %v17684_v56  ;;  %12528 = vmatpush3.bf16.msra.mxu1 %v14298_v8  ;;  %v14305_v56 = vld [vmem:[%s19164_s3 + $0x10a0] ss:$20 sps:$4 sm:$0xff]  }
 0x5f2   : > { %9943 = vmatprep.mubr.bf16.mxu1 %v17293_v10  ;;  %12594 = vmatpush3.bf16.msra.mxu0 %v14299_v16  ;;  %v14306_v10 = vld [vmem:[%s19164_s3 + $0x7e0] ss:$20 sps:$4 sm:$0xff]  }
 0x5f3   : > { %10063 = vmatprep.mubr.bf16.mxu0 %v17893_v6  ;;  %12529 = vmatprep.subr.bf16.mxu1 %v14300_v49  ;;  %v14308_v6 = vld [vmem:[%s19164_s3 + $0x948] ss:$20 sps:$4 sm:$0xff]   ;;  %v18868_v8 = vld [vmem:[%s19165_s4] sm:$0x1f] }
 0x5f4   : > { %12595 = vmatprep.subr.bf16.mxu0 %v14301_v44  ;;  %v14355_v16 = vld [vmem:[%s19164_s3 + $0x1500] ss:$20 sps:$4 sm:$0xff]   ;;  %v14356_v49 = vld [vmem:[%s19164_s3 + $0xee8] ss:$20 sps:$4 sm:$0xff]   ;;  %v18877_v44 = vrot.slane %v18868_v8, %v5302_v59 }
 0x5f5   : > { %12530 = vmatpush3.bf16.msra.mxu1 %v14302_v38  ;;  %v14357_v38 = vld [vmem:[%s19164_s3 + $0x1668] ss:$20 sps:$4 sm:$0xff]  }
 0x5f6   : > { %12596 = vmatpush3.bf16.msra.mxu0 %v14303_v32  ;;  %12531 = vmatprep.subr.bf16.mxu1 %v14304_v55  ;;  %v14358_v32 = vld [vmem:[%s19164_s3 + $0xda8] ss:$20 sps:$4 sm:$0xff]  }
 0x5f7   : > { %12597 = vmatprep.subr.bf16.mxu0 %v14305_v56  ;;  %v14359_v55 = vld [vmem:[%s19164_s3 + $0x1528] ss:$20 sps:$4 sm:$0xff]   ;;  %v14360_v56 = vld [vmem:[%s19164_s3 + $0x12d0] ss:$20 sps:$4 sm:$0xff]  }
 0x5f9   : > { %12532 = vmatpush3.bf16.msra.mxu1 %v14306_v10  ;;  %v14377_v10 = vld [vmem:[%s19166_s5 + $0xc0] sm:$0xff]  }
 0x5fa   : > { %12598 = vmatpush3.bf16.msra.mxu0 %v14307_v63  ;;  %12533 = vmatprep.subr.bf16.mxu1 %v14308_v6  ;;  %v14361_v63 = vld [vmem:[%s19164_s3 + $0x1190] ss:$20 sps:$4 sm:$0xff]   ;;  %v14362_v6 = vld [vmem:[%s19164_s3 + $0x12f8] ss:$20 sps:$4 sm:$0xff]  }
 0x5fb   : > { %12599 = vmatprep.subr.bf16.mxu0 %v14309_v39  ;;  %v14379_v39 = vld [vmem:[%s19166_s5 + $0x80] sm:$0xff]  }
 0x5fd   : > { %12534 = vmatpush3.bf16.msra.mxu1 %v14310_v47  ;;  %v14381_v47 = vld [vmem:[%s19166_s5 + $0xc8] sm:$0xff]  }
 0x5fe   : > { %12600 = vmatpush3.bf16.msra.mxu0 %v14311_v25  ;;  %12535 = vmatprep.subr.bf16.mxu1 %v14312_v28  ;;  %v14363_v25 = vld [vmem:[%s19164_s3 + $0x11b8] ss:$20 sps:$4 sm:$0xff]   ;;  %v14364_v28 = vld [vmem:[%s19164_s3 + $0x1320] ss:$20 sps:$4 sm:$0xff]  }
 0x5ff   : > { %12601 = vmatprep.subr.bf16.mxu0 %v14313_v21  ;;  %v14366_v21 = vld [vmem:[%s19164_s3 + $0x1348] ss:$20 sps:$4 sm:$0xff]  }
 0x601   : > { %12536 = vmatpush3.bf16.msra.mxu1 %v14314_v37  ;;  %v14387_v37 = vld [vmem:[%s19166_s5 + $0x90] sm:$0xff]  }
 0x602   : > { %12602 = vmatpush3.bf16.msra.mxu0 %v14315_v12  ;;  %12537 = vmatprep.subr.bf16.mxu1 %v14316_v54  ;;  %v14389_v12 = vld [vmem:[%s19166_s5 + $0xd8] sm:$0xff]  }
 0x603   : > { %12603 = vmatprep.subr.bf16.mxu0 %v14317_v29  ;;  %v14367_v54 = vld [vmem:[%s19164_s3 + $0x1208] ss:$20 sps:$4 sm:$0xff]   ;;  %v14368_v29 = vld [vmem:[%s19164_s3 + $0x1370] ss:$20 sps:$4 sm:$0xff]  }
 0x605   : > { %12538 = vmatpush3.bf16.msra.mxu1 %v14318_v40  ;;  %v14391_v40 = vld [vmem:[%s19166_s5 + $0x98] sm:$0xff]  }
 0x606   : > { %12604 = vmatpush3.bf16.msra.mxu0 %v14319_v1  ;;  %12539 = vmatprep.subr.bf16.mxu1 %v14320_v46  ;;  %v14393_v1 = vld [vmem:[%s19166_s5 + $0xe0] sm:$0xff]  }
 0x607   : > { %12605 = vmatprep.subr.bf16.mxu0 %v14321_v33  ;;  %v14369_v46 = vld [vmem:[%s19164_s3 + $0x1230] ss:$20 sps:$4 sm:$0xff]   ;;  %v14370_v33 = vld [vmem:[%s19164_s3 + $0x1398] ss:$20 sps:$4 sm:$0xff]  }
 0x609   : > { %12540 = vmatpush3.bf16.msra.mxu1 %v14322_v0  ;;  %v14395_v0 = vld [vmem:[%s19166_s5 + $0xa0] sm:$0xff]  }
 0x60a   : > { %12606 = vmatpush3.bf16.msra.mxu0 %v14323_v53  ;;  %12541 = vmatprep.subr.bf16.mxu1 %v14324_v15  ;;  %v14397_v53 = vld [vmem:[%s19166_s5 + $0xe8] sm:$0xff]  }
 0x60b   : > { %12607 = vmatprep.subr.bf16.mxu0 %v14325_v36  ;;  %v14371_v15 = vld [vmem:[%s19164_s3 + $0x1258] ss:$20 sps:$4 sm:$0xff]   ;;  %v14372_v36 = vld [vmem:[%s19164_s3 + $0x13c0] ss:$20 sps:$4 sm:$0xff]  }
 0x60d   : > { %12542 = vmatpush3.bf16.msra.mxu1 %v14326_v11  ;;  %v14399_v11 = vld [vmem:[%s19166_s5 + $0xa8] sm:$0xff]  }
 0x60e   : > { %12608 = vmatpush3.bf16.msra.mxu0 %v14327_v61  ;;  %12571 = vmatprep.subr.bf16.mxu1 %v14328_v27  ;;  %v14401_v61 = vld [vmem:[%s19166_s5 + $0xf0] sm:$0xff]  }
 0x60f   : > { %12637 = vmatprep.subr.bf16.mxu0 %v14329_v2  ;;  %v14373_v27 = vld [vmem:[%s19164_s3 + $0x1280] ss:$20 sps:$4 sm:$0xff]   ;;  %v14374_v2 = vld [vmem:[%s19164_s3 + $0x13e8] ss:$20 sps:$4 sm:$0xff]  }
 0x610   : > { %9944 = vmatmul.mubr.bf16.vlgmr.msra.gmra.mrb[236].mxu1 %v17484_v30  ;;  %v14336_v30 = vld [vmem:[%s19164_s3 + $0xe20] ss:$20 sps:$4 sm:$0xff]  }
 0x611   : > { %10064 = vmatmul.mubr.bf16.vlgmr.msra.gmra.mrb[220].mxu0 %v18084_v58  ;;  %12572 = vmatpush3.bf16.msra.mxu1 %v14330_v22  ;;  %v14337_v58 = vld [vmem:[%s19164_s3 + $0x15a0] ss:$20 sps:$4 sm:$0xff]  }
 0x612   : > { %10023 = vmatprep.mubr.bf16.mxu1 %v17693_v19  ;;  %12638 = vmatpush3.bf16.msra.mxu0 %v14331_v34  ;;  %v14338_v19 = vld [vmem:[%s19164_s3 + $0xce0] ss:$20 sps:$4 sm:$0xff]   ;;  %v14405_v34 = vld [vmem:[%s19166_s5 + $0xf8] sm:$0xff]  }
 0x613   : > { %10143 = vmatprep.mubr.bf16.mxu0 %v18293_v62  ;;  %12573 = vmatprep.subr.bf16.mxu1 %v14332_v4  ;;  %v14340_v62 = vld [vmem:[%s19164_s3 + $0xe48] ss:$20 sps:$4 sm:$0xff]   ;;  %v14403_v22 = vld [vmem:[%s19166_s5 + $0xb0] sm:$0xff]  }
 0x614   : > { %12639 = vmatprep.subr.bf16.mxu0 %v14333_v60  ;;  %v14375_v4 = vld [vmem:[%s19164_s3 + $0x12a8] ss:$20 sps:$4 sm:$0xff]   ;;  %v14376_v60 = vld [vmem:[%s19166_s5 + $0x40] sm:$0xff]  }
 0x615   : > { %12574 = vmatpush3.bf16.msra.mxu1 %v14334_v5  ;;  %v14407_v5 = vld [vmem:[%s19166_s5 + $0xb8] sm:$0xff]  }
 0x616   : > { %12640 = vmatpush3.bf16.msra.mxu0 %v14335_v50  ;;  %12575 = vmatprep.subr.bf16.mxu1 %v14336_v30  ;;  %v14378_v50 = vld [vmem:[%s19166_s5] sm:$0xff]   ;;  %v14380_v30 = vld [vmem:[%s19166_s5 + $0x48] sm:$0xff]  }
 0x617   : > { %12641 = vmatprep.subr.bf16.mxu0 %v14337_v58  ;;  %v14382_v58 = vld [vmem:[%s19166_s5 + $0x8] sm:$0xff]  }
 0x619   : > { %12576 = vmatpush3.bf16.msra.mxu1 %v14338_v19  ;;  %v14384_v19 = vld [vmem:[%s19166_s5 + $0x50] sm:$0xff]  }
 0x61a   : > { %12642 = vmatpush3.bf16.msra.mxu0 %v14339_v48  ;;  %12577 = vmatprep.subr.bf16.mxu1 %v14340_v62  ;;  %v14386_v48 = vld [vmem:[%s19166_s5 + $0x10] sm:$0xff]   ;;  %v14390_v62 = vld [vmem:[%s19166_s5 + $0x18] sm:$0xff]  }
 0x61b   : > { %12643 = vmatprep.subr.bf16.mxu0 %v14341_v13  ;;  %v14392_v13 = vld [vmem:[%s19166_s5 + $0x60] sm:$0xff]  }
 0x61d   : > { %12578 = vmatpush3.bf16.msra.mxu1 %v14342_v3  ;;  %v14394_v3 = vld [vmem:[%s19166_s5 + $0x20] sm:$0xff]  }
 0x61e   : > { %12644 = vmatpush3.bf16.msra.mxu0 %v14343_v24  ;;  %12579 = vmatprep.subr.bf16.mxu1 %v14344_v17  ;;  %v14396_v24 = vld [vmem:[%s19166_s5 + $0x68] sm:$0xff]  }
 0x61f   : > { %12645 = vmatprep.subr.bf16.mxu0 %v14345_v57  ;;  %v14398_v17 = vld [vmem:[%s19166_s5 + $0x28] sm:$0xff]   ;;  %v14400_v57 = vld [vmem:[%s19166_s5 + $0x70] sm:$0xff]  }
 0x621   : > { %12580 = vmatpush3.bf16.msra.mxu1 %v14346_v14  ;;  %v14402_v14 = vld [vmem:[%s19166_s5 + $0x30] sm:$0xff]  }
 0x622   : > { %12646 = vmatpush3.bf16.msra.mxu0 %v14347_v20  ;;  %12581 = vmatprep.subr.bf16.mxu1 %v14348_v41  ;;  %v14404_v20 = vld [vmem:[%s19166_s5 + $0x78] sm:$0xff]  }
 0x623   : > { %12647 = vmatprep.subr.bf16.mxu0 %v14349_v35  ;;  %v14406_v41 = vld [vmem:[%s19166_s5 + $0x38] sm:$0xff]   ;;  %v5294_v35 = vsub.s32 2, %v18856_v52 }
 0x625   : > { %12582 = vmatpush3.bf16.msra.mxu1 %v14350_v26  ;;  %v5290_v26 = vsub.s32 1, %v18856_v52 }
 0x626   : > { %12648 = vmatpush3.bf16.msra.mxu0 %v14351_v45  ;;  %12583 = vmatprep.subr.bf16.mxu1 %v14352_v31  ;;  %v5298_v45 = vsub.s32 3, %v18856_v52  ;;  %v5287_v31 = vrot.slane %v18868_v8, %v5286_v42 }
 0x627   : > { %12649 = vmatprep.subr.bf16.mxu0 %v14353_v51  ;;  %v5295_v51 = vrot.slane %v18868_v8, %v5294_v35  ;;  %v5291_v59 = vrot.slane %v18868_v8, %v5290_v26 }
 0x629   : > { %12584 = vmatpush3.bf16.msra.mxu1 %v14354_v18  ;;  %v5299_v18 = vrot.slane %v18868_v8, %v5298_v45  ;;  %v14508_v8 = vmov 0.0  }
 0x62a   : > { %12650 = vmatpush3.bf16.msra.mxu0 %v14355_v16  ;;  %12585 = vmatprep.subr.bf16.mxu1 %v14356_v49 }
 0x62b   : > { %12651 = vmatprep.subr.bf16.mxu0 %v14357_v38 }
 0x62d   : > { %12586 = vmatpush3.bf16.msra.mxu1 %v14358_v32 }
 0x62e   : > { %12652 = vmatpush3.bf16.msra.mxu0 %v14359_v55  ;;  %12615 = vmatprep.subr.bf16.mxu1 %v14360_v56 }
 0x62f   : > { %12681 = vmatprep.subr.bf16.mxu0 %v14377_v10 }
 0x630   : > { %10024 = vmatmul.mubr.bf16.vlgmr.msra.gmra.mrb[240].mxu1 %v17884_v43  ;;  %v14383_v43 = vld [vmem:[%s19166_s5 + $0x88] sm:$0xff]  }
 0x631   : > { %10144 = vmatmul.mubr.bf16.vlgmr.msra.gmra.mrb[224].mxu0 %v18484_v7  ;;  %12616 = vmatpush3.bf16.msra.mxu1 %v14361_v63  ;;  %v14385_v7 = vld [vmem:[%s19166_s5 + $0xd0] sm:$0xff]  }
 0x632   : > { %10103 = vmatprep.mubr.bf16.mxu1 %v18093_v9  ;;  %12617 = vmatprep.subr.bf16.mxu1 %v14362_v6  ;;  %v14365_v9 = vld [vmem:[%s19164_s3 + $0x11e0] ss:$20 sps:$4 sm:$0xff]  }
 0x633   : > { %12682 = vmatpush3.bf16.msra.mxu0 %v14379_v39 }
 0x634   : > { %12683 = vmatprep.subr.bf16.mxu0 %v14381_v47 }
 0x635   : > { %12618 = vmatpush3.bf16.msra.mxu1 %v14363_v25 }
 0x636   : > { %12619 = vmatprep.subr.bf16.mxu1 %v14364_v28  ;;  %v14408_v28 = vld [vmem:[%s19166_s5 + $0x100] sm:$0xff]  }
 0x637   : > { %12684 = vmatpush3.bf16.msra.mxu0 %v14383_v43 }
 0x638   : > { %12685 = vmatprep.subr.bf16.mxu0 %v14385_v7 }
 0x639   : > { %12620 = vmatpush3.bf16.msra.mxu1 %v14365_v9 }
 0x63a   : > { %12621 = vmatprep.subr.bf16.mxu1 %v14366_v21  ;;  %v14409_v21 = vld [vmem:[%s19166_s5 + $0x108] sm:$0xff]  }
 0x63b   : > { %12686 = vmatpush3.bf16.msra.mxu0 %v14387_v37  ;;  %v14410_v37 = vld [vmem:[%s19166_s5 + $0x110] sm:$0xff]  }
 0x63c   : > { %12687 = vmatprep.subr.bf16.mxu0 %v14389_v12  ;;  %v14411_v12 = vld [vmem:[%s19166_s5 + $0x118] sm:$0xff]  }
 0x63d   : > { %12622 = vmatpush3.bf16.msra.mxu1 %v14367_v54 }
 0x63e   : > { %12623 = vmatprep.subr.bf16.mxu1 %v14368_v29 }
 0x63f   : > { %12688 = vmatpush3.bf16.msra.mxu0 %v14391_v40 }
 0x640   : > { %12689 = vmatprep.subr.bf16.mxu0 %v14393_v1 }
 0x641   : > { %12624 = vmatpush3.bf16.msra.mxu1 %v14369_v46 }
 0x642   : > { %12625 = vmatprep.subr.bf16.mxu1 %v14370_v33 }
 0x643   : > { %12690 = vmatpush3.bf16.msra.mxu0 %v14395_v0 }
 0x644   : > { %12691 = vmatprep.subr.bf16.mxu0 %v14397_v53 }
 0x645   : > { %12626 = vmatpush3.bf16.msra.mxu1 %v14371_v15 }
 0x646   : > { %12627 = vmatprep.subr.bf16.mxu1 %v14372_v36  ;;  %v14412_v36 = vld [vmem:[%s19166_s5 + $0x120] sm:$0xff]  }
 0x647   : > { %12692 = vmatpush3.bf16.msra.mxu0 %v14399_v11 }
 0x648   : > { %12693 = vmatprep.subr.bf16.mxu0 %v14401_v61 }
 0x649   : > { %12628 = vmatpush3.bf16.msra.mxu1 %v14373_v27  ;;  %v14413_v27 = vld [vmem:[%s19166_s5 + $0x128] ss:$0 sps:$4 sm:$0xff]  }
 0x64a   : > { %12629 = vmatprep.subr.bf16.mxu1 %v14374_v2  ;;  %v10469_v2 = vsel %vm10467_vm3, %v14413_v27, 0 }
 0x64b   : > { %12694 = vmatpush3.bf16.msra.mxu0 %v14403_v22 }
 0x64c   : > { %12695 = vmatprep.subr.bf16.mxu0 %v14405_v34 }
 0x64d   : > { %12630 = vmatpush3.bf16.msra.mxu1 %v14375_v4 }
 0x64e   : > { %12659 = vmatprep.subr.bf16.mxu1 %v14376_v60 }
 0x64f   : > { %12696 = vmatpush3.bf16.msra.mxu0 %v14407_v5 }
 0x650   : > { %10104 = vmatmul.mubr.bf16.vlgmr.msra.gmra.mrb[244].mxu1 %v18284_v23  ;;  %v14388_v23 = vld [vmem:[%s19166_s5 + $0x58] sm:$0xff]   ;;  %12895 = vmatprep.subr.bf16.mxu0 %v14508_v8 }
 0x651   : > { %12660 = vmatpush3.bf16.msra.mxu1 %v14378_v50 }
 0x652   : > { %12661 = vmatprep.subr.bf16.mxu1 %v14380_v30 }
 0x655   : > { %12662 = vmatpush3.bf16.msra.mxu1 %v14382_v58 }
 0x656   : > { %12663 = vmatprep.subr.bf16.mxu1 %v14384_v19 }
 0x659   : > { %12664 = vmatpush3.bf16.msra.mxu1 %v14386_v48 }
 0x65a   : > { %12665 = vmatprep.subr.bf16.mxu1 %v14388_v23 }
 0x65d   : > { %12666 = vmatpush3.bf16.msra.mxu1 %v14390_v62  ;;  %v14414_v62 = vld [vmem:[%s19168_s7] sm:$0xff]  }
 0x65e   : > { %12667 = vmatprep.subr.bf16.mxu1 %v14392_v13 }
 0x661   : > { %12668 = vmatpush3.bf16.msra.mxu1 %v14394_v3  ;;  %v14415_v3 = vld [vmem:[%s19168_s7 + $0x8] sm:$0xff]  }
 0x662   : > { %12669 = vmatprep.subr.bf16.mxu1 %v14396_v24 }
 0x665   : > { %12670 = vmatpush3.bf16.msra.mxu1 %v14398_v17 }
 0x666   : > { %12671 = vmatprep.subr.bf16.mxu1 %v14400_v57 }
 0x669   : > { %12672 = vmatpush3.bf16.msra.mxu1 %v14402_v14 }
 0x66a   : > { %12673 = vmatprep.subr.bf16.mxu1 %v14404_v20 }
 0x66d   : > { %12674 = vmatpush3.bf16.msra.mxu1 %v14406_v41 }
 0x66e   : > { %12879 = vmatprep.subr.bf16.mxu1 %v14508_v8 }
 0x683   : > { %v9415_v16 = vpop.f32.mrb[224].mxu1 }
 0x684   : > { %v12947_v49 = vadd.f32 %v9415_v16, %v5287_v31  ;;  %v9784_v38 = vpop.f32.mrb[208].mxu0  ;;  %v9417_v32 = vpop.f32.mrb[225].mxu1  ;;  %v14416_v31 = vld [vmem:[%s19168_s7 + $0x10] sm:$0xff]   ;;  %v14419_v16 = vld [vmem:[%s19168_s7 + $0x28] sm:$0xff]  }
 0x685   : > { %v12949_v55 = vadd.f32 %v9784_v38, %v5295_v51  ;;  %v12948_v56 = vadd.f32 %v9417_v32, %v5291_v59  ;;  %v9786_v10 = vpop.f32.mrb[209].mxu0  ;;  %v9419_v63 = vpop.f32.mrb[226].mxu1  ;;  %v14417_v59 = vld [vmem:[%s19168_s7 + $0x18] sm:$0xff]  }
 0x686   : > { %v12950_v6 = vadd.f32 %v9786_v10, %v5299_v18  ;;  %v9788_v39 = vpop.f32.mrb[210].mxu0  ;;  %v9420_v47 = vpop.f32.mrb[227].mxu1  ;;  %v10151_v43 = vpack.c.bf16 %v12947_v49, %v12947_v49  ;;  %v14418_v18 = vld [vmem:[%s19168_s7 + $0x20] sm:$0xff]   ;;  %v14420_v49 = vld [vmem:[%s19168_s7 + $0x30] sm:$0xff]  }
 0x687   : > { %v10152_v52 = vpack.c.bf16 %v12948_v56, %v12948_v56  ;;  %v9789_v25 = vpop.f32.mrb[211].mxu0  ;;  %v10153_v9 = vpack.c.bf16 %v12949_v55, %v12949_v55 }
 0x688   : > { %v10154_v7 = vpack.c.bf16 %v12950_v6, %v12950_v6 }
 0x689   : > { %10503 = vmatprep.mubr.bf16.mxu1 %v10152_v52 }
 0x68a   : > { %10543 = vmatprep.mubr.bf16.mxu0 %v10154_v7  ;;  %10504 = vmatmul.mubr.bf16.vlgmr.msra.gmra.mrb[248].mxu1 %v10151_v43 }
 0x68b   : > { %10544 = vmatmul.mubr.bf16.vlgmr.msra.gmra.mrb[228].mxu0 %v10153_v9  ;;  %12880 = vmatpush3.bf16.msra.mxu1 %v14408_v28 }
 0x68c   : > { %12881 = vmatprep.subr.bf16.mxu1 %v14508_v8  ;;  %12891 = vmatprep.mubr.msk.bf16.mxu1 %vm14509_vm4, %v14508_v8 }
 0x68d   : > { %12911 = vmatprep.mubr.msk.bf16.mxu0 %vm14509_vm4, %v14508_v8  ;;  %12896 = vmatpush3.bf16.msra.mxu0 %v14414_v62 }
 0x68e   : > { %12897 = vmatprep.subr.bf16.mxu0 %v14508_v8 }
 0x68f   : > { %12882 = vmatpush3.bf16.msra.mxu1 %v14409_v21 }
 0x690   : > { %12883 = vmatprep.subr.bf16.mxu1 %v14508_v8 }
 0x691   : > { %12898 = vmatpush3.bf16.msra.mxu0 %v14415_v3 }
 0x692   : > { %12899 = vmatprep.subr.bf16.mxu0 %v14508_v8 }
 0x693   : > { %12884 = vmatpush3.bf16.msra.mxu1 %v14410_v37 }
 0x694   : > { %12885 = vmatprep.subr.bf16.mxu1 %v14508_v8 }
 0x695   : > { %12900 = vmatpush3.bf16.msra.mxu0 %v14416_v31 }
 0x696   : > { %12901 = vmatprep.subr.bf16.mxu0 %v14508_v8 }
 0x697   : > { %12886 = vmatpush3.bf16.msra.mxu1 %v14411_v12 }
 0x698   : > { %12887 = vmatprep.subr.bf16.mxu1 %v14508_v8 }
 0x699   : > { %12902 = vmatpush3.bf16.msra.mxu0 %v14417_v59 }
 0x69a   : > { %12903 = vmatprep.subr.bf16.mxu0 %v14508_v8 }
 0x69b   : > { %12888 = vmatpush3.bf16.msra.mxu1 %v14412_v36 }
 0x69c   : > { %12889 = vmatprep.subr.bf16.mxu1 %v14508_v8 }
 0x69d   : > { %12904 = vmatpush3.bf16.msra.mxu0 %v14418_v18 }
 0x69e   : > { %12905 = vmatprep.subr.bf16.mxu0 %v14508_v8 }
 0x69f   : > { %12890 = vmatpush3.bf16.msra.mxu1 %v10469_v2 }
 0x6a1   : > { %12906 = vmatpush3.bf16.msra.mxu0 %v14419_v16 }
 0x6a2   : > { %12907 = vmatprep.subr.bf16.mxu0 %v14508_v8 }
 0x6a3   : > { %v12477_v54 = vpop.f32.mrb[228].mxu1 }
 0x6a4   : > { %v12521_v29 = vpop.f32.mrb[212].mxu0  ;;  %v12478_v40 = vpop.f32.mrb[229].mxu1 }
 0x6a5   : > { %v12479_v1 = vadd.f32 %v12478_v40, %v12477_v54  ;;  %v12522_v46 = vpop.f32.mrb[213].mxu0  ;;  %v12480_v33 = vpop.f32.mrb[230].mxu1  ;;  %12908 = vmatpush3.bf16.msra.mxu0 %v14420_v49 }
 0x6a6   : > { %v12523_v0 = vadd.f32 %v12522_v46, %v12521_v29  ;;  %v12524_v53 = vpop.f32.mrb[214].mxu0  ;;  %v12481_v15 = vpop.f32.mrb[231].mxu1  ;;  %12909 = vmatprep.subr.bf16.mxu0 %v14508_v8 }
 0x6a7   : > { %v9826_v11 = vadd.f32 %v12479_v1, %v18877_v44  ;;  %v12525_v61 = vpop.f32.mrb[215].mxu0  ;;  %v12327_v1 = vld [vmem:[%s19167_s6] ss:$0 sm:$0xff] }
 0x6c3   : > { %v12499_v22 = vpop.f32.mrb[232].mxu1 }
 0x6c4   : > { %v12565_v34 = vpop.f32.mrb[216].mxu0  ;;  %v12500_v44 = vpop.f32.mrb[233].mxu1 }
 0x6c5   : > { %v12501_v4 = vadd.f32 %v12500_v44, %v12499_v22  ;;  %v12566_v60 = vpop.f32.mrb[217].mxu0  ;;  %v12502_v5 = vpop.f32.mrb[234].mxu1  ;;  %v14421_v22 = vld [vmem:[%s19168_s7 + $0x38] ss:$0 sps:$4 sm:$0xff]  }
 0x6c6   : > { %v12567_v50 = vadd.f32 %v12566_v60, %v12565_v34  ;;  %v12568_v30 = vpop.f32.mrb[218].mxu0  ;;  %v12503_v58 = vpop.f32.mrb[235].mxu1  ;;  %v10664_v34 = vsel %vm10467_vm3, %v14421_v22, 0 }
 0x6c7   : > { %v9866_v19 = vadd.f32 %v12501_v4, %v9826_v11  ;;  %v12569_v48 = vpop.f32.mrb[219].mxu0  ;;  %12910 = vmatpush3.bf16.msra.mxu0 %v10664_v34  ;;  %v12367_v58 = vld [vmem:[%s19169_s8] ss:$0 sm:$0xff] }
 0x6c9   : > { %v9906_v23 = vadd.f32 %v12523_v0, %v9866_v19 }
 0x6e3   : > { %v12543_v13 = vpop.f32.mrb[236].mxu1 }
 0x6e4   : > { %v12609_v24 = vpop.f32.mrb[220].mxu0  ;;  %v12544_v17 = vpop.f32.mrb[237].mxu1 }
 0x6e5   : > { %v12545_v57 = vadd.f32 %v12544_v17, %v12543_v13  ;;  %v12610_v14 = vpop.f32.mrb[221].mxu0  ;;  %v12546_v20 = vpop.f32.mrb[238].mxu1 }
 0x6e6   : > { %v12611_v41 = vadd.f32 %v12610_v14, %v12609_v24  ;;  %v12612_v42 = vpop.f32.mrb[222].mxu0  ;;  %v12547_v35 = vpop.f32.mrb[239].mxu1 }
 0x6e7   : > { %v9946_v26 = vadd.f32 %v12545_v57, %v9906_v23  ;;  %v12613_v45 = vpop.f32.mrb[223].mxu0 }
 0x6e9   : > { %v9986_v51 = vadd.f32 %v12567_v50, %v9946_v26 }
 0x703   : > { %v12587_v38 = vpop.f32.mrb[240].mxu1 }
 0x704   : > { %v12653_v32 = vpop.f32.mrb[224].mxu0  ;;  %v12588_v55 = vpop.f32.mrb[241].mxu1 }
 0x705   : > { %v12589_v56 = vadd.f32 %v12588_v55, %v12587_v38  ;;  %v12654_v10 = vpop.f32.mrb[225].mxu0  ;;  %v12590_v63 = vpop.f32.mrb[242].mxu1 }
 0x706   : > { %v12655_v6 = vadd.f32 %v12654_v10, %v12653_v32  ;;  %v12656_v39 = vpop.f32.mrb[226].mxu0  ;;  %v12591_v47 = vpop.f32.mrb[243].mxu1 }
 0x707   : > { %v10026_v52 = vadd.f32 %v12589_v56, %v9986_v51  ;;  %v12657_v25 = vpop.f32.mrb[227].mxu0 }
 0x709   : > { %v10066_v28 = vadd.f32 %v12611_v41, %v10026_v52 }
 0x723   : > { %v12631_v43 = vpop.f32.mrb[244].mxu1 }
 0x724   : > { %v12632_v7 = vpop.f32.mrb[245].mxu1 }
 0x725   : > { %v12633_v9 = vadd.f32 %v12632_v7, %v12631_v43  ;;  %v12634_v21 = vpop.f32.mrb[246].mxu1 }
 0x726   : > { %v12635_v37 = vpop.f32.mrb[247].mxu1 }
 0x727   : > { %v10106_v12 = vadd.f32 %v12633_v9, %v10066_v28 }
 0x729   : > { %v10146_v54 = vadd.f32 %v12655_v6, %v10106_v12 }
 0x72b   : > { %v10155_v8 = vpack.c.bf16 %v10146_v54, %v10146_v54 }
 0x72d   : > { %12892 = vmatmul.mubr.msk.bf16.vlgmr.msra.gmra.mrb[252].mxu1 %vm10463_vm5, %v10155_v8 }
 0x75d   : > { %v12675_v29 = vpop.f32.mrb[248].mxu1 }
 0x75e   : > { %v12697_v40 = vpop.f32.mrb[228].mxu0  ;;  %v12676_v46 = vpop.f32.mrb[249].mxu1 }
 0x75f   : > { %v12677_v33 = vadd.f32 %v12676_v46, %v12675_v29  ;;  %v12698_v0 = vpop.f32.mrb[229].mxu0  ;;  %v12678_v53 = vpop.f32.mrb[250].mxu1 }
 0x760   : > { %v12699_v15 = vadd.f32 %v12698_v0, %v12697_v40  ;;  %v12700_v36 = vpop.f32.mrb[230].mxu0  ;;  %v12679_v11 = vpop.f32.mrb[251].mxu1 }
 0x761   : > { %v10506_v61 = vadd.f32 %v12677_v33, %v12327_v1  ;;  %v12701_v27 = vpop.f32.mrb[231].mxu0 }
 0x763   : > { %v10546_v2 = vadd.f32 %v12699_v15, %v10506_v61 }
 0x800   : > { %v10585_v44 = vpop.f32.mrb[252].mxu1 }
 0x801   : > { %v10586_v4 = vadd.f32 %v10585_v44, %v10546_v2  ;;  %v12893_v60 = vpop.f32.mrb[253].mxu1 }
 0x802   : > { %v10588_v5 = vpop.f32.mrb[254].mxu1 }
 0x803   : > { %v10591_v50 = vpack.c.bf16 %v10586_v4, %v10586_v4  ;;  %v12894_v30 = vpop.f32.mrb[255].mxu1 }
 0x805   : > { %12912 = vmatmul.mubr.msk.bf16.vlgmr.msra.gmra.mrb[232].mxu0 %vm10659_vm6, %v10591_v50 }
 0x8d8   : > { %v10700_v19 = vpop.f32.mrb[232].mxu0 }
 0x8d9   : > { %v10701_v48 = vadd.f32 %v12367_v58, %v10700_v19  ;;  %v12913_v23 = vpop.f32.mrb[233].mxu0 }
 0x8da   : > { %v10703_v62 = vpop.f32.mrb[234].mxu0 }
 0x8db   : > { %10706 = vst [vmem:[%s934_s27] sm:$0xff] %v10701_v48  ;;  %v12914_v13 = vpop.f32.mrb[235].mxu0 }
 0x8dc   : > { %14455 = shalt.err (!%p14452_p5)
}
 0x8dd   : > { %s14456_s17 = scalar_lea.hbm %s19117_s16, 128  ;;  %s14460_s27 = scalar_lea.hbm %s19170_s9, 256 }
 0x8de   : > { %p14457_p7 = scmp.ne.s32.totalorder %s19117_s16, %s14456_s17  ;;  %p14461_p12 = scmp.lt.u32.totalorder %s19117_s16, %s19170_s9 }
 0x8df   : > { %p14462_p13 = scmp.lt.u32.totalorder %s14460_s27, %s14456_s17  ;;  %p14464_p1 = scmp.lt.u32.totalorder %s14456_s17, %s19117_s16 }
 0x8e0   : > { %p14458_p10 = pnand %p14457_p7, %p14599_p6 }
 0x8e1   : > { %p14463_p0 = por %p14462_p13, %p14461_p12 }
 0x8e2   : > { %p14459_p11 = pneg %p14458_p10 }
 0x8e3   : > { %p14465_p2 = por %p14464_p1, %p14463_p0 }
 0x8e5   : > { %p14466_p3 = pnand %p14465_p2, %p14459_p11 }
 0x8e7   : > { %14469 = shalt.err (!%p14466_p3)
}
 0x8e8   : > { %13018 = dma.vmem_to_hbm [thread:$0]  (%p14599_p6), %s19119_s28, 128, %s19117_s16, %s10708_s21  }
 0x8e9 PF: > { %s10733_s13 = sand.u32 1, %s14492_s30   ;;  %p13021_p4 = pnand %p10792_p9, %p14603_p8 }
 0x8ea   : > { %s10734_s22 = scalar_lea.sflag [#allocation5], %s10733_s13 }
 0x8eb   : > { %14487 = dma.done.wait (!%p13021_p4), %s10734_s22, 128  }
 0x8ec   : > { %14489 = vsyncadd (!%p13021_p4), %s10734_s22, 4294967168  ;;  %p19_p5 = scmp.ge.s32.totalorder %s14584_s15, 4   ;;  %s19420_s30 = smov %s14496_s10 }
 0x8ed   : > { %s19421_s10 = smov %s14500_s11  ;;  %s19422_s11 = smov %s14597_s18 }
 0x8ee   : > { %s19423_s12 = smov %s14584_s15  ;;  %21 = sbr.rel (!%p19_p5) target bundleno = 3 (0x3), region = 131 }
 0x8f5   :  { %10739 = vsyncpa [#allocation5], 1 }
 0x8f6   :  { %10741 = vsyncpa [#allocation5 + $0x1], 1 }

</bundles_post_ra>
